<compile_context>
chip_gen: v5e
topology: v5e:2x2
jax: 0.10.0
libtpu: 0.0.40
codegen_flags: <defaults>
</compile_context>

<pallas_src>
import functools

import jax
import jax.numpy as jnp
from jax import lax
from jax.experimental import pallas as pl
from jax.experimental.pallas import tpu as pltpu


# ----------------------------------------------------------------------------
# helpers
# ----------------------------------------------------------------------------

def _round_up(a, m):
    return (a + m - 1) // m * m


def _pad2(a, rows, cols):
    pr, pc = rows - a.shape[0], cols - a.shape[1]
    if pr == 0 and pc == 0:
        return a
    return jnp.pad(a, ((0, pr), (0, pc)))


# ----------------------------------------------------------------------------
# Pallas kernels
# ----------------------------------------------------------------------------

def _linear_kernel(*refs, activation, fuse_ln, fuse_res, k_steps, k_true, eps):
    it = iter(refs)
    x_ref = next(it)
    w_ref = next(it)
    b_ref = next(it)
    g_ref = bb_ref = r_ref = None
    if fuse_ln:
        g_ref = next(it)
        bb_ref = next(it)
    if fuse_res:
        r_ref = next(it)
    o_ref = next(it)
    acc_ref = next(it)

    kk = pl.program_id(2)

    @pl.when(kk == 0)
    def _():
        acc_ref[...] = jnp.zeros_like(acc_ref)

    x = x_ref[...]
    if fuse_ln:
        # LayerNorm fused in front of the matmul (full K resident in this tile).
        # Stats in f32; padded K columns are zero so the sums are unaffected,
        # and gamma/beta are zero-padded so padded columns stay zero.
        xf = x.astype(jnp.float32)
        inv_k = 1.0 / k_true
        mean = jnp.sum(xf, axis=-1, keepdims=True) * inv_k
        var = jnp.sum(xf * xf, axis=-1, keepdims=True) * inv_k - mean * mean
        xf = (xf - mean) * lax.rsqrt(var + eps)
        xf = xf * g_ref[...] + bb_ref[...]
        x = xf.astype(x_ref.dtype)

    acc_ref[...] += jnp.dot(x, w_ref[...], preferred_element_type=jnp.float32)

    @pl.when(kk == k_steps - 1)
    def _():
        y = acc_ref[...] + b_ref[...]
        if activation == "gelu":
            # exact (erf) GELU, matching nn.GELU default
            y = 0.5 * y * (1.0 + lax.erf(y * 0.7071067811865476))
        if fuse_res:
            y = y + r_ref[...].astype(jnp.float32)
        o_ref[...] = y.astype(o_ref.dtype)


def linear(x, w, b=None, *, activation=None, residual=None, ln=None,
           out_dtype=None, tm=256, tn=256, tk=512, eps=1e-5):
    """y = (LN?(x)) @ w + b  (+ fused GELU / residual), tiled & pipelined."""
    orig_lead = x.shape[:-1]
    K = x.shape[-1]
    N = w.shape[-1]
    x2 = x.reshape(-1, K)
    M = x2.shape[0]
    out_dtype = out_dtype or x.dtype

    tm = min(tm, _round_up(M, 8))
    tn = min(tn, _round_up(N, 128))
    tk_full = _round_up(K, 128)
    tk = tk_full if ln is not None else min(tk, tk_full)   # LN fusion needs full K
    Mp, Np, Kp = _round_up(M, tm), _round_up(N, tn), _round_up(K, tk)

    xp = _pad2(x2, Mp, Kp)
    wp = _pad2(w, Kp, Np)
    if b is None:
        b = jnp.zeros((N,), jnp.float32)
    bp = _pad2(b.astype(jnp.float32).reshape(1, N), 1, Np)

    grid = (Mp // tm, Np // tn, Kp // tk)
    k_steps = grid[2]

    inputs = [xp, wp, bp]
    in_specs = [
        pl.BlockSpec((tm, tk), lambda i, j, k: (i, k)),
        pl.BlockSpec((tk, tn), lambda i, j, k: (k, j)),
        pl.BlockSpec((1, tn), lambda i, j, k: (0, j)),
    ]
    fuse_ln = ln is not None
    if fuse_ln:
        g, bb = ln
        inputs += [_pad2(g.astype(jnp.float32).reshape(1, K), 1, Kp),
                   _pad2(bb.astype(jnp.float32).reshape(1, K), 1, Kp)]
        in_specs += [pl.BlockSpec((1, tk), lambda i, j, k: (0, k)),
                     pl.BlockSpec((1, tk), lambda i, j, k: (0, k))]
    fuse_res = residual is not None
    if fuse_res:
        inputs.append(_pad2(residual.reshape(-1, N), Mp, Np))
        in_specs.append(pl.BlockSpec((tm, tn), lambda i, j, k: (i, j)))

    out = pl.pallas_call(
        functools.partial(_linear_kernel, activation=activation,
                          fuse_ln=fuse_ln, fuse_res=fuse_res,
                          k_steps=k_steps, k_true=float(K), eps=eps),
        out_shape=jax.ShapeDtypeStruct((Mp, Np), out_dtype),
        grid=grid,
        in_specs=in_specs,
        out_specs=pl.BlockSpec((tm, tn), lambda i, j, k: (i, j)),
        scratch_shapes=[pltpu.VMEM((tm, tn), jnp.float32)],
        compiler_params=pltpu.CompilerParams(
            dimension_semantics=("parallel", "parallel", "arbitrary")),
    )(*inputs)

    out = out[:M, :N]
    return out.reshape(orig_lead + (N,))


def _layernorm_kernel(x_ref, g_ref, b_ref, o_ref, *, eps, c_true):
    x = x_ref[...].astype(jnp.float32)
    inv_c = 1.0 / c_true
    mean = jnp.sum(x, axis=-1, keepdims=True) * inv_c
    var = jnp.sum(x * x, axis=-1, keepdims=True) * inv_c - mean * mean
    y = (x - mean) * lax.rsqrt(var + eps)
    y = y * g_ref[...] + b_ref[...]
    o_ref[...] = y.astype(o_ref.dtype)


def layernorm(x, g, b, eps=1e-5, tm=512):
    """Standalone row-tiled LayerNorm (used only where fusion isn't possible)."""
    shape = x.shape
    C = shape[-1]
    x2 = x.reshape(-1, C)
    M = x2.shape[0]
    Cp = _round_up(C, 128)
    tm = min(tm, _round_up(M, 8))
    Mp = _round_up(M, tm)

    out = pl.pallas_call(
        functools.partial(_layernorm_kernel, eps=eps, c_true=float(C)),
        out_shape=jax.ShapeDtypeStruct((Mp, Cp), x.dtype),
        grid=(Mp // tm,),
        in_specs=[pl.BlockSpec((tm, Cp), lambda i: (i, 0)),
                  pl.BlockSpec((1, Cp), lambda i: (0, 0)),
                  pl.BlockSpec((1, Cp), lambda i: (0, 0))],
        out_specs=pl.BlockSpec((tm, Cp), lambda i: (i, 0)),
        compiler_params=pltpu.CompilerParams(dimension_semantics=("parallel",)),
    )(_pad2(x2, Mp, Cp),
      _pad2(g.astype(jnp.float32).reshape(1, C), 1, Cp),
      _pad2(b.astype(jnp.float32).reshape(1, C), 1, Cp))
    return out[:M, :C].reshape(shape)


def _wattn_kernel(*refs, scale, masked):
    # q,k,v block: (WB, nH, T, Dh)   bias: (nH, T, T)   mask (if any): (WB, T, T)
    if masked:
        q_ref, k_ref, v_ref, bias_ref, mask_ref, o_ref = refs
    else:
        q_ref, k_ref, v_ref, bias_ref, o_ref = refs
        mask_ref = None
    WB, nH, T, Dh = q_ref.shape
    q = q_ref[...].reshape(WB * nH, T, Dh)
    k = k_ref[...].reshape(WB * nH, T, Dh)
    s = lax.dot_general(q, k, (((2,), (2,)), ((0,), (0,))),
                        preferred_element_type=jnp.float32) * scale
    s = s.reshape(WB, nH, T, T)
    s = s + bias_ref[...][None]              # relative position bias per head
    if masked:
        s = s + mask_ref[...][:, None]       # shifted-window mask per window
    s = s - jnp.max(s, axis=-1, keepdims=True)
    p = jnp.exp(s)
    p = p * pl.reciprocal(jnp.sum(p, axis=-1, keepdims=True), approx=True)
    p = p.reshape(WB * nH, T, T).astype(v_ref.dtype)
    v = v_ref[...].reshape(WB * nH, T, Dh)
    o = lax.dot_general(p, v, (((2,), (1,)), ((0,), (0,))),
                        preferred_element_type=jnp.float32)
    o_ref[...] = o.reshape(WB, nH, T, Dh).astype(o_ref.dtype)


def _pick_wb(nW, nH, T, budget_bytes=4 * 1024 * 1024):
    # Several windows per grid step (amortize step overhead) but bounded VMEM
    # (the f32 score tensor is the dominant per-window cost).
    per_w = max(1, nH * T * T * 4 * 3)
    max_wb = max(1, budget_bytes // per_w)
    wb = 1
    for c in range(1, nW + 1):
        if nW % c == 0 and c <= max_wb:
            wb = c
    return wb


def window_attention(q, k, v, bias, scale, nW, mask=None):
    """q,k,v: (B*nW, nH, T, Dh); bias: (nH,T,T) f32; mask: (nW,T,T) f32 or None."""
    BnW, nH, T, Dh = q.shape
    WB = _pick_wb(nW, nH, T)
    grid = (BnW // WB,)

    qkv_spec = pl.BlockSpec((WB, nH, T, Dh), lambda i: (i, 0, 0, 0))
    bias_spec = pl.BlockSpec((nH, T, T), lambda i: (0, 0, 0))
    masked = mask is not None

    inputs = [q, k, v, bias.astype(jnp.float32)]
    in_specs = [qkv_spec, qkv_spec, qkv_spec, bias_spec]
    if masked:
        nWb = nW // WB
        if nWb == 1:
            mask_spec = pl.BlockSpec((WB, T, T), lambda i: (0, 0, 0))
        else:
            mask_spec = pl.BlockSpec((WB, T, T), lambda i: (i % nWb, 0, 0))
        inputs.append(mask.astype(jnp.float32))
        in_specs.append(mask_spec)

    return pl.pallas_call(
        functools.partial(_wattn_kernel, scale=scale, masked=masked),
        out_shape=jax.ShapeDtypeStruct(q.shape, q.dtype),
        grid=grid,
        in_specs=in_specs,
        out_specs=qkv_spec,
        compiler_params=pltpu.CompilerParams(dimension_semantics=("parallel",)),
    )(*inputs)


# ----------------------------------------------------------------------------
# Glue: window partition/reverse, relative position bias, shifted-window mask
# ----------------------------------------------------------------------------

def window_partition(x, ws):
    B, H, W, C = x.shape
    x = x.reshape(B, H // ws, ws, W // ws, ws, C)
    return x.transpose(0, 1, 3, 2, 4, 5).reshape(-1, ws * ws, C)


def window_reverse(xw, ws, H, W, B):
    C = xw.shape[-1]
    x = xw.reshape(B, H // ws, W // ws, ws, ws, C)
    return x.transpose(0, 1, 3, 2, 4, 5).reshape(B, H, W, C)


def relative_position_index(ws):
    coords = jnp.stack(
        jnp.meshgrid(jnp.arange(ws), jnp.arange(ws), indexing="ij"))  # (2, ws, ws)
    flat = coords.reshape(2, -1)
    rel = flat[:, :, None] - flat[:, None, :]          # (2, T, T)
    rel = rel.transpose(1, 2, 0) + (ws - 1)            # (T, T, 2)
    return rel[..., 0] * (2 * ws - 1) + rel[..., 1]    # (T, T)


def shifted_window_mask(H, W, ws, shift):
    img_mask = jnp.zeros((1, H, W, 1), jnp.float32)
    cnt = 0
    slices = (slice(0, -ws), slice(-ws, -shift), slice(-shift, None))
    for hs in slices:
        for wsl in slices:
            img_mask = img_mask.at[:, hs, wsl, :].set(float(cnt))
            cnt += 1
    mw = window_partition(img_mask, ws).reshape(-1, ws * ws)   # (nW, T)
    am = mw[:, None, :] - mw[:, :, None]
    return jnp.where(am != 0, -100.0, 0.0).astype(jnp.float32)  # (nW, T, T)


# ----------------------------------------------------------------------------
# Swin building blocks
# ----------------------------------------------------------------------------

def swin_block(x, p, ws, shift, num_heads, rp_index, mask):
    B, H, W, C = x.shape
    T = ws * ws
    nW = (H // ws) * (W // ws)
    head_dim = C // num_heads
    scale = head_dim ** -0.5

    shortcut = x
    # LN1 is per-token, so it commutes with the cyclic shift / window partition;
    # it is fused into the qkv matmul below.
    xs = x if shift == 0 else jnp.roll(x, shift=(-shift, -shift), axis=(1, 2))
    xw = window_partition(xs, ws)                      # (B*nW, T, C)
    BnW = xw.shape[0]

    qkv = linear(xw, p["qkv_w"], p["qkv_b"],
                 ln=(p["ln1_g"], p["ln1_b"]))          # (B*nW, T, 3C)
    qkv = qkv.reshape(BnW, T, 3, num_heads, head_dim).transpose(2, 0, 3, 1, 4)
    q, k, v = qkv[0], qkv[1], qkv[2]                   # (B*nW, nH, T, Dh)

    bias = p["rel_table"][rp_index].reshape(T, T, num_heads).transpose(2, 0, 1)

    o = window_attention(q, k, v, bias, scale, nW,
                         mask=mask if shift > 0 else None)   # (B*nW, nH, T, Dh)
    o = o.transpose(0, 2, 1, 3).reshape(BnW, T, C)
    o = linear(o, p["proj_w"], p["proj_b"])
    xr = window_reverse(o, ws, H, W, B)
    if shift > 0:
        xr = jnp.roll(xr, shift=(shift, shift), axis=(1, 2))
    x = shortcut + xr

    # MLP: LN2 fused into fc1, residual fused into fc2 epilogue.
    h = linear(x, p["fc1_w"], p["fc1_b"], activation="gelu",
               ln=(p["ln2_g"], p["ln2_b"]))
    x = linear(h, p["fc2_w"], p["fc2_b"], residual=x)
    return x


def patch_merging(x, p):
    B, H, W, C = x.shape
    x = x.reshape(B, H // 2, 2, W // 2, 2, C)
    x = x.transpose(0, 1, 3, 4, 2, 5).reshape(B, H // 2, W // 2, 4 * C)
    # LN fused into the reduction Linear(4C -> 2C, bias=False)
    x = linear(x, p["red_w"], ln=(p["ln_g"], p["ln_b"]))
    return x


def swin_forward(x_nchw, params, cfg):
    ps = cfg["patch_size"]
    x = jnp.transpose(x_nchw, (0, 2, 3, 1)).astype(jnp.bfloat16)   # NCHW -> NHWC
    B, Himg, Wimg, Cin = x.shape
    Hp, Wp = Himg // ps, Wimg // ps

    # Patch embed: stride-4 4x4 conv as unfold + tiled matmul
    x = x.reshape(B, Hp, ps, Wp, ps, Cin).transpose(0, 1, 3, 2, 4, 5)
    x = x.reshape(B, Hp, Wp, ps * ps * Cin)
    pe = params["patch_embed"]
    x = linear(x, pe["w"], pe["b"])
    x = layernorm(x, pe["ln_g"], pe["ln_b"])

    ws = cfg["window_size"]
    for s, (depth, nh) in enumerate(zip(cfg["depths"], cfg["num_heads"])):
        stage_p = params["stages"][s]
        if s > 0:
            x = patch_merging(x, stage_p["downsample"])
        H, W = x.shape[1], x.shape[2]
        ws_s = min(ws, H, W)
        # Hoisted per-stage tables (identical for every block in the stage).
        rp_index = relative_position_index(ws_s).reshape(-1)
        shift_size = ws_s // 2 if ws_s < min(H, W) else 0
        stage_mask = (shifted_window_mask(H, W, ws_s, shift_size)
                      if shift_size > 0 else None)
        for bi in range(depth):
            shift = shift_size if (bi % 2 == 1) else 0
            x = swin_block(x, stage_p["blocks"][bi], ws_s, shift, nh,
                           rp_index, stage_mask)

    x = layernorm(x, params["norm_g"], params["norm_b"])
    x = jnp.mean(x.astype(jnp.float32), axis=(1, 2)).astype(jnp.bfloat16)  # GAP
    # Classifier head: N padded to 128 lanes inside linear(), sliced back to 6.
    logits = linear(x, params["head_w"], params["head_b"], out_dtype=jnp.float32)
    return logits


# ----------------------------------------------------------------------------
# Deterministic synthetic parameter init (bf16 matmul weights, f32 LN/bias)
# ----------------------------------------------------------------------------

def init_params(key, cfg):
    def take():
        nonlocal key
        key, sub = jax.random.split(key)
        return sub

    def nrm(shape, std=0.02, dtype=jnp.bfloat16):
        return (std * jax.random.normal(take(), shape)).astype(dtype)

    zeros = lambda s: jnp.zeros(s, jnp.float32)
    ones = lambda s: jnp.ones(s, jnp.float32)

    ps, cin, ed, ws = cfg["patch_size"], cfg["in_chans"], cfg["embed_dim"], cfg["window_size"]
    params = {
        "patch_embed": {
            "w": nrm((ps * ps * cin, ed)),
            "b": zeros((ed,)),
            "ln_g": ones((ed,)),
            "ln_b": zeros((ed,)),
        },
        "stages": [],
    }
    dims = [ed * (2 ** s) for s in range(len(cfg["depths"]))]
    for s, (depth, nh) in enumerate(zip(cfg["depths"], cfg["num_heads"])):
        D = dims[s]
        stage = {"blocks": []}
        if s > 0:
            Dp = dims[s - 1]
            stage["downsample"] = {
                "ln_g": ones((4 * Dp,)),
                "ln_b": zeros((4 * Dp,)),
                "red_w": nrm((4 * Dp, 2 * Dp)),
            }
        for _ in range(depth):
            stage["blocks"].append({
                "ln1_g": ones((D,)), "ln1_b": zeros((D,)),
                "qkv_w": nrm((D, 3 * D)), "qkv_b": zeros((3 * D,)),
                "rel_table": nrm(((2 * ws - 1) ** 2, nh), dtype=jnp.float32),
                "proj_w": nrm((D, D)), "proj_b": zeros((D,)),
                "ln2_g": ones((D,)), "ln2_b": zeros((D,)),
                "fc1_w": nrm((D, cfg["mlp_ratio"] * D)),
                "fc1_b": zeros((cfg["mlp_ratio"] * D,)),
                "fc2_w": nrm((cfg["mlp_ratio"] * D, D)), "fc2_b": zeros((D,)),
            })
        params["stages"].append(stage)
    Df = dims[-1]
    params["norm_g"] = ones((Df,))
    params["norm_b"] = zeros((Df,))
    params["head_w"] = nrm((Df, cfg["num_classes"]))
    params["head_b"] = zeros((cfg["num_classes"],))
    return params


# ----------------------------------------------------------------------------

if __name__ == "__main__":
    cfg = dict(
        img_size=32, patch_size=4, in_chans=3, embed_dim=32,
        depths=(2, 2), num_heads=(2, 4), window_size=4,
        mlp_ratio=4, num_classes=6,
    )
    key = jax.random.PRNGKey(0)
    pkey, xkey = jax.random.split(key)
    params = init_params(pkey, cfg)
    x = jax.random.normal(
        xkey, (2, cfg["in_chans"], cfg["img_size"], cfg["img_size"]), jnp.float32
    )

    fwd = jax.jit(functools.partial(swin_forward, cfg=cfg))
    logits = fwd(x, params)
    jax.block_until_ready(logits)
    assert logits.shape == (2, cfg["num_classes"])
    assert logits.dtype == jnp.float32
    print("KERNEL_OK")
</pallas_src>

<mosaic_0001>
module attributes {stable_mosaic.version = 11 : i64} {
  func.func @_layernorm_kernel(%arg0: i32, %arg1: memref<128x128xbf16, #tpu.memory_space<vmem>>, %arg2: memref<1x128xf32, #tpu.memory_space<vmem>>, %arg3: memref<1x128xf32, #tpu.memory_space<vmem>>, %arg4: memref<128x128xbf16, #tpu.memory_space<vmem>>) attributes {dimension_semantics = [#tpu.dimension_semantics<parallel>], iteration_bounds = array<i64: 1>, scalar_prefetch = 0 : i64, scratch_operands = 0 : i64, tpu.core_type = #tpu.core_type<tc>, window_params = [{transform_indices = @transform_0, window_bounds = array<i64: 128, 128>}, {pipeline_mode = #tpu.pipeline_mode<synchronous>, transform_indices = @transform_1, window_bounds = array<i64: 1, 128>}, {pipeline_mode = #tpu.pipeline_mode<synchronous>, transform_indices = @transform_2, window_bounds = array<i64: 1, 128>}, {transform_indices = @transform_3, window_bounds = array<i64: 128, 128>}]} {
    %c0 = arith.constant 0 : index
    %c0_0 = arith.constant 0 : index
    %0 = vector.load %arg1[%c0, %c0_0] : memref<128x128xbf16, #tpu.memory_space<vmem>>, vector<128x128xbf16>
    %1 = arith.extf %0 : vector<128x128xbf16> to vector<128x128xf32>
    %cst = arith.constant dense<0.000000e+00> : vector<128xf32>
    %2 = vector.multi_reduction <add>, %1, %cst [1] : vector<128x128xf32> to vector<128xf32>
    %3 = vector.shape_cast %2 : vector<128xf32> to vector<128x1xf32>
    %cst_1 = arith.constant 3.125000e-02 : f32
    %4 = vector.broadcast %cst_1 : f32 to vector<128x1xf32>
    %5 = arith.mulf %3, %4 : vector<128x1xf32>
    %6 = arith.mulf %1, %1 : vector<128x128xf32>
    %cst_2 = arith.constant dense<0.000000e+00> : vector<128xf32>
    %7 = vector.multi_reduction <add>, %6, %cst_2 [1] : vector<128x128xf32> to vector<128xf32>
    %8 = vector.shape_cast %7 : vector<128xf32> to vector<128x1xf32>
    %cst_3 = arith.constant 3.125000e-02 : f32
    %9 = vector.broadcast %cst_3 : f32 to vector<128x1xf32>
    %10 = arith.mulf %8, %9 : vector<128x1xf32>
    %11 = arith.mulf %5, %5 : vector<128x1xf32>
    %12 = arith.subf %10, %11 : vector<128x1xf32>
    %13 = vector.broadcast %5 : vector<128x1xf32> to vector<128x128xf32>
    %14 = arith.subf %1, %13 : vector<128x128xf32>
    %cst_4 = arith.constant 9.99999974E-6 : f32
    %15 = vector.broadcast %cst_4 : f32 to vector<128x1xf32>
    %16 = arith.addf %12, %15 : vector<128x1xf32>
    %17 = math.rsqrt %16 : vector<128x1xf32>
    %18 = vector.broadcast %17 : vector<128x1xf32> to vector<128x128xf32>
    %19 = arith.mulf %14, %18 : vector<128x128xf32>
    %c0_5 = arith.constant 0 : index
    %c0_6 = arith.constant 0 : index
    %20 = vector.load %arg2[%c0_5, %c0_6] : memref<1x128xf32, #tpu.memory_space<vmem>>, vector<1x128xf32>
    %21 = vector.broadcast %20 : vector<1x128xf32> to vector<128x128xf32>
    %22 = arith.mulf %19, %21 : vector<128x128xf32>
    %c0_7 = arith.constant 0 : index
    %c0_8 = arith.constant 0 : index
    %23 = vector.load %arg3[%c0_7, %c0_8] : memref<1x128xf32, #tpu.memory_space<vmem>>, vector<1x128xf32>
    %24 = vector.broadcast %23 : vector<1x128xf32> to vector<128x128xf32>
    %25 = arith.addf %22, %24 : vector<128x128xf32>
    %26 = arith.truncf %25 : vector<128x128xf32> to vector<128x128xbf16>
    %c0_9 = arith.constant 0 : index
    %c0_10 = arith.constant 0 : index
    %27 = vector.load %arg4[%c0_9, %c0_10] : memref<128x128xbf16, #tpu.memory_space<vmem>>, vector<128x128xbf16>
    tpu.vector_store %arg4[%c0_9, %c0_10], %26 {strides = array<i32>} : memref<128x128xbf16, #tpu.memory_space<vmem>>, vector<128x128xbf16>,
    return
  }
  func.func @transform_0(%arg0: i32) -> (i32, i32) {
    %c0_i32 = arith.constant 0 : i32
    %c0_i32_0 = arith.constant 0 : i32
    return %arg0, %c0_i32 : i32, i32
  }
  func.func @transform_1(%arg0: i32) -> (i32, i32) {
    %c0_i32 = arith.constant 0 : i32
    %c0_i32_0 = arith.constant 0 : i32
    %c0_i32_1 = arith.constant 0 : i32
    return %c0_i32, %c0_i32_0 : i32, i32
  }
  func.func @transform_2(%arg0: i32) -> (i32, i32) {
    %c0_i32 = arith.constant 0 : i32
    %c0_i32_0 = arith.constant 0 : i32
    %c0_i32_1 = arith.constant 0 : i32
    return %c0_i32, %c0_i32_0 : i32, i32
  }
  func.func @transform_3(%arg0: i32) -> (i32, i32) {
    %c0_i32 = arith.constant 0 : i32
    %c0_i32_0 = arith.constant 0 : i32
    return %arg0, %c0_i32 : i32, i32
  }
}

module attributes {stable_mosaic.version = 11 : i64} {
  func.func @_linear_kernel(%arg0: i32, %arg1: i32, %arg2: i32, %arg3: memref<128x128xbf16, #tpu.memory_space<vmem>>, %arg4: memref<128x128xbf16, #tpu.memory_space<vmem>>, %arg5: memref<1x128xf32, #tpu.memory_space<vmem>>, %arg6: memref<128x128xbf16, #tpu.memory_space<vmem>>, %arg7: memref<128x128xf32, #tpu.memory_space<vmem>>) attributes {dimension_semantics = [#tpu.dimension_semantics<parallel>, #tpu.dimension_semantics<parallel>, #tpu.dimension_semantics<arbitrary>], iteration_bounds = array<i64: 1, 1, 1>, scalar_prefetch = 0 : i64, scratch_operands = 1 : i64, tpu.core_type = #tpu.core_type<tc>, window_params = [{transform_indices = @transform_0, window_bounds = array<i64: 128, 128>}, {transform_indices = @transform_1, window_bounds = array<i64: 128, 128>}, {transform_indices = @transform_2, window_bounds = array<i64: 1, 128>}, {transform_indices = @transform_3, window_bounds = array<i64: 128, 128>}]} {
    %c0_i32 = arith.constant 0 : i32
    %0 = arith.cmpi eq, %arg2, %c0_i32 : i32
    %1 = arith.extui %0 : i1 to i32
    %c0_i32_0 = arith.constant 0 : i32
    %2 = arith.cmpi ne, %1, %c0_i32_0 : i32
    scf.if %2 {
      %cst_10 = arith.constant 0.000000e+00 : f32
      %12 = vector.broadcast %cst_10 : f32 to vector<128x128xf32>
      %c0_11 = arith.constant 0 : index
      %c0_12 = arith.constant 0 : index
      %13 = vector.load %arg7[%c0_11, %c0_12] : memref<128x128xf32, #tpu.memory_space<vmem>>, vector<128x128xf32>
      tpu.vector_store %arg7[%c0_11, %c0_12], %12 {strides = array<i32>} : memref<128x128xf32, #tpu.memory_space<vmem>>, vector<128x128xf32>,
    } else {
    }
    %c0 = arith.constant 0 : index
    %c0_1 = arith.constant 0 : index
    %3 = vector.load %arg3[%c0, %c0_1] : memref<128x128xbf16, #tpu.memory_space<vmem>>, vector<128x128xbf16>
    %c0_2 = arith.constant 0 : index
    %c0_3 = arith.constant 0 : index
    %4 = vector.load %arg7[%c0_2, %c0_3] : memref<128x128xf32, #tpu.memory_space<vmem>>, vector<128x128xf32>
    %c0_4 = arith.constant 0 : index
    %c0_5 = arith.constant 0 : index
    %5 = vector.load %arg4[%c0_4, %c0_5] : memref<128x128xbf16, #tpu.memory_space<vmem>>, vector<128x128xbf16>
    %cst = arith.constant dense<0.000000e+00> : vector<128x128xf32>
    %6 = tpu.matmul %3, %5, %cst {dimension_numbers = #tpu.dot_dimension_numbers<[1], [0], [0], [1], [0, 0, 1, 1], [], []>} : vector<128x128xbf16>, vector<128x128xbf16>, vector<128x128xf32> -> vector<128x128xf32>
    %7 = arith.addf %4, %6 : vector<128x128xf32>
    %c0_6 = arith.constant 0 : index
    %c0_7 = arith.constant 0 : index
    %8 = vector.load %arg7[%c0_6, %c0_7] : memref<128x128xf32, #tpu.memory_space<vmem>>, vector<128x128xf32>
    tpu.vector_store %arg7[%c0_6, %c0_7], %7 {strides = array<i32>} : memref<128x128xf32, #tpu.memory_space<vmem>>, vector<128x128xf32>,
    %c0_i32_8 = arith.constant 0 : i32
    %9 = arith.cmpi eq, %arg2, %c0_i32_8 : i32
    %10 = arith.extui %9 : i1 to i32
    %c0_i32_9 = arith.constant 0 : i32
    %11 = arith.cmpi ne, %10, %c0_i32_9 : i32
    scf.if %11 {
      %c0_10 = arith.constant 0 : index
      %c0_11 = arith.constant 0 : index
      %12 = vector.load %arg7[%c0_10, %c0_11] : memref<128x128xf32, #tpu.memory_space<vmem>>, vector<128x128xf32>
      %c0_12 = arith.constant 0 : index
      %c0_13 = arith.constant 0 : index
      %13 = vector.load %arg5[%c0_12, %c0_13] : memref<1x128xf32, #tpu.memory_space<vmem>>, vector<1x128xf32>
      %14 = vector.broadcast %13 : vector<1x128xf32> to vector<128x128xf32>
      %15 = arith.addf %12, %14 : vector<128x128xf32>
      %16 = arith.truncf %15 : vector<128x128xf32> to vector<128x128xbf16>
      %c0_14 = arith.constant 0 : index
      %c0_15 = arith.constant 0 : index
      %17 = vector.load %arg6[%c0_14, %c0_15] : memref<128x128xbf16, #tpu.memory_space<vmem>>, vector<128x128xbf16>
      tpu.vector_store %arg6[%c0_14, %c0_15], %16 {strides = array<i32>} : memref<128x128xbf16, #tpu.memory_space<vmem>>, vector<128x128xbf16>,
    } else {
    }
    return
  }
  func.func @transform_0(%arg0: i32, %arg1: i32, %arg2: i32) -> (i32, i32) {
    %c0_i32 = arith.constant 0 : i32
    return %arg0, %arg2 : i32, i32
  }
  func.func @transform_1(%arg0: i32, %arg1: i32, %arg2: i32) -> (i32, i32) {
    %c0_i32 = arith.constant 0 : i32
    return %arg2, %arg1 : i32, i32
  }
  func.func @transform_2(%arg0: i32, %arg1: i32, %arg2: i32) -> (i32, i32) {
    %c0_i32 = arith.constant 0 : i32
    %c0_i32_0 = arith.constant 0 : i32
    return %c0_i32, %arg1 : i32, i32
  }
  func.func @transform_3(%arg0: i32, %arg1: i32, %arg2: i32) -> (i32, i32) {
    %c0_i32 = arith.constant 0 : i32
    return %arg0, %arg1 : i32, i32
  }
}

module attributes {stable_mosaic.version = 11 : i64} {
  func.func @_linear_kernel(%arg0: i32, %arg1: i32, %arg2: i32, %arg3: memref<128x128xbf16, #tpu.memory_space<vmem>>, %arg4: memref<128x128xbf16, #tpu.memory_space<vmem>>, %arg5: memref<1x128xf32, #tpu.memory_space<vmem>>, %arg6: memref<1x128xf32, #tpu.memory_space<vmem>>, %arg7: memref<1x128xf32, #tpu.memory_space<vmem>>, %arg8: memref<128x128xbf16, #tpu.memory_space<vmem>>, %arg9: memref<128x128xf32, #tpu.memory_space<vmem>>) attributes {dimension_semantics = [#tpu.dimension_semantics<parallel>, #tpu.dimension_semantics<parallel>, #tpu.dimension_semantics<arbitrary>], iteration_bounds = array<i64: 1, 1, 1>, scalar_prefetch = 0 : i64, scratch_operands = 1 : i64, tpu.core_type = #tpu.core_type<tc>, window_params = [{transform_indices = @transform_0, window_bounds = array<i64: 128, 128>}, {transform_indices = @transform_1, window_bounds = array<i64: 128, 128>}, {transform_indices = @transform_2, window_bounds = array<i64: 1, 128>}, {transform_indices = @transform_3, window_bounds = array<i64: 1, 128>}, {transform_indices = @transform_4, window_bounds = array<i64: 1, 128>}, {transform_indices = @transform_5, window_bounds = array<i64: 128, 128>}]} {
    %c0_i32 = arith.constant 0 : i32
    %0 = arith.cmpi eq, %arg2, %c0_i32 : i32
    %1 = arith.extui %0 : i1 to i32
    %c0_i32_0 = arith.constant 0 : i32
    %2 = arith.cmpi ne, %1, %c0_i32_0 : i32
    scf.if %2 {
      %cst_19 = arith.constant 0.000000e+00 : f32
      %38 = vector.broadcast %cst_19 : f32 to vector<128x128xf32>
      %c0_20 = arith.constant 0 : index
      %c0_21 = arith.constant 0 : index
      %39 = vector.load %arg9[%c0_20, %c0_21] : memref<128x128xf32, #tpu.memory_space<vmem>>, vector<128x128xf32>
      tpu.vector_store %arg9[%c0_20, %c0_21], %38 {strides = array<i32>} : memref<128x128xf32, #tpu.memory_space<vmem>>, vector<128x128xf32>,
    } else {
    }
    %c0 = arith.constant 0 : index
    %c0_1 = arith.constant 0 : index
    %3 = vector.load %arg3[%c0, %c0_1] : memref<128x128xbf16, #tpu.memory_space<vmem>>, vector<128x128xbf16>
    %4 = arith.extf %3 : vector<128x128xbf16> to vector<128x128xf32>
    %cst = arith.constant dense<0.000000e+00> : vector<128xf32>
    %5 = vector.multi_reduction <add>, %4, %cst [1] : vector<128x128xf32> to vector<128xf32>
    %6 = vector.shape_cast %5 : vector<128xf32> to vector<128x1xf32>
    %cst_2 = arith.constant 3.125000e-02 : f32
    %7 = vector.broadcast %cst_2 : f32 to vector<128x1xf32>
    %8 = arith.mulf %6, %7 : vector<128x1xf32>
    %9 = arith.mulf %4, %4 : vector<128x128xf32>
    %cst_3 = arith.constant dense<0.000000e+00> : vector<128xf32>
    %10 = vector.multi_reduction <add>, %9, %cst_3 [1] : vector<128x128xf32> to vector<128xf32>
    %11 = vector.shape_cast %10 : vector<128xf32> to vector<128x1xf32>
    %cst_4 = arith.constant 3.125000e-02 : f32
    %12 = vector.broadcast %cst_4 : f32 to vector<128x1xf32>
    %13 = arith.mulf %11, %12 : vector<128x1xf32>
    %14 = arith.mulf %8, %8 : vector<128x1xf32>
    %15 = arith.subf %13, %14 : vector<128x1xf32>
    %16 = vector.broadcast %8 : vector<128x1xf32> to vector<128x128xf32>
    %17 = arith.subf %4, %16 : vector<128x128xf32>
    %cst_5 = arith.constant 9.99999974E-6 : f32
    %18 = vector.broadcast %cst_5 : f32 to vector<128x1xf32>
    %19 = arith.addf %15, %18 : vector<128x1xf32>
    %20 = math.rsqrt %19 : vector<128x1xf32>
    %21 = vector.broadcast %20 : vector<128x1xf32> to vector<128x128xf32>
    %22 = arith.mulf %17, %21 : vector<128x128xf32>
    %c0_6 = arith.constant 0 : index
    %c0_7 = arith.constant 0 : index
    %23 = vector.load %arg6[%c0_6, %c0_7] : memref<1x128xf32, #tpu.memory_space<vmem>>, vector<1x128xf32>
    %24 = vector.broadcast %23 : vector<1x128xf32> to vector<128x128xf32>
    %25 = arith.mulf %22, %24 : vector<128x128xf32>
    %c0_8 = arith.constant 0 : index
    %c0_9 = arith.constant 0 : index
    %26 = vector.load %arg7[%c0_8, %c0_9] : memref<1x128xf32, #tpu.memory_space<vmem>>, vector<1x128xf32>
    %27 = vector.broadcast %26 : vector<1x128xf32> to vector<128x128xf32>
    %28 = arith.addf %25, %27 : vector<128x128xf32>
    %29 = arith.truncf %28 : vector<128x128xf32> to vector<128x128xbf16>
    %c0_10 = arith.constant 0 : index
    %c0_11 = arith.constant 0 : index
    %30 = vector.load %arg9[%c0_10, %c0_11] : memref<128x128xf32, #tpu.memory_space<vmem>>, vector<128x128xf32>
    %c0_12 = arith.constant 0 : index
    %c0_13 = arith.constant 0 : index
    %31 = vector.load %arg4[%c0_12, %c0_13] : memref<128x128xbf16, #tpu.memory_space<vmem>>, vector<128x128xbf16>
    %cst_14 = arith.constant dense<0.000000e+00> : vector<128x128xf32>
    %32 = tpu.matmul %29, %31, %cst_14 {dimension_numbers = #tpu.dot_dimension_numbers<[1], [0], [0], [1], [0, 0, 1, 1], [], []>} : vector<128x128xbf16>, vector<128x128xbf16>, vector<128x128xf32> -> vector<128x128xf32>
    %33 = arith.addf %30, %32 : vector<128x128xf32>
    %c0_15 = arith.constant 0 : index
    %c0_16 = arith.constant 0 : index
    %34 = vector.load %arg9[%c0_15, %c0_16] : memref<128x128xf32, #tpu.memory_space<vmem>>, vector<128x128xf32>
    tpu.vector_store %arg9[%c0_15, %c0_16], %33 {strides = array<i32>} : memref<128x128xf32, #tpu.memory_space<vmem>>, vector<128x128xf32>,
    %c0_i32_17 = arith.constant 0 : i32
    %35 = arith.cmpi eq, %arg2, %c0_i32_17 : i32
    %36 = arith.extui %35 : i1 to i32
    %c0_i32_18 = arith.constant 0 : i32
    %37 = arith.cmpi ne, %36, %c0_i32_18 : i32
    scf.if %37 {
      %c0_19 = arith.constant 0 : index
      %c0_20 = arith.constant 0 : index
      %38 = vector.load %arg9[%c0_19, %c0_20] : memref<128x128xf32, #tpu.memory_space<vmem>>, vector<128x128xf32>
      %c0_21 = arith.constant 0 : index
      %c0_22 = arith.constant 0 : index
      %39 = vector.load %arg5[%c0_21, %c0_22] : memref<1x128xf32, #tpu.memory_space<vmem>>, vector<1x128xf32>
      %40 = vector.broadcast %39 : vector<1x128xf32> to vector<128x128xf32>
      %41 = arith.addf %38, %40 : vector<128x128xf32>
      %42 = arith.truncf %41 : vector<128x128xf32> to vector<128x128xbf16>
      %c0_23 = arith.constant 0 : index
      %c0_24 = arith.constant 0 : index
      %43 = vector.load %arg8[%c0_23, %c0_24] : memref<128x128xbf16, #tpu.memory_space<vmem>>, vector<128x128xbf16>
      tpu.vector_store %arg8[%c0_23, %c0_24], %42 {strides = array<i32>} : memref<128x128xbf16, #tpu.memory_space<vmem>>, vector<128x128xbf16>,
    } else {
    }
    return
  }
  func.func @transform_0(%arg0: i32, %arg1: i32, %arg2: i32) -> (i32, i32) {
    %c0_i32 = arith.constant 0 : i32
    return %arg0, %arg2 : i32, i32
  }
  func.func @transform_1(%arg0: i32, %arg1: i32, %arg2: i32) -> (i32, i32) {
    %c0_i32 = arith.constant 0 : i32
    return %arg2, %arg1 : i32, i32
  }
  func.func @transform_2(%arg0: i32, %arg1: i32, %arg2: i32) -> (i32, i32) {
    %c0_i32 = arith.constant 0 : i32
    %c0_i32_0 = arith.constant 0 : i32
    return %c0_i32, %arg1 : i32, i32
  }
  func.func @transform_3(%arg0: i32, %arg1: i32, %arg2: i32) -> (i32, i32) {
    %c0_i32 = arith.constant 0 : i32
    %c0_i32_0 = arith.constant 0 : i32
    return %c0_i32, %arg2 : i32, i32
  }
  func.func @transform_4(%arg0: i32, %arg1: i32, %arg2: i32) -> (i32, i32) {
    %c0_i32 = arith.constant 0 : i32
    %c0_i32_0 = arith.constant 0 : i32
    return %c0_i32, %arg2 : i32, i32
  }
  func.func @transform_5(%arg0: i32, %arg1: i32, %arg2: i32) -> (i32, i32) {
    %c0_i32 = arith.constant 0 : i32
    return %arg0, %arg1 : i32, i32
  }
}

module attributes {stable_mosaic.version = 11 : i64} {
  func.func @_wattn_kernel(%arg0: i32, %arg1: memref<4x2x16x16xbf16, #tpu.memory_space<vmem>>, %arg2: memref<4x2x16x16xbf16, #tpu.memory_space<vmem>>, %arg3: memref<4x2x16x16xbf16, #tpu.memory_space<vmem>>, %arg4: memref<2x16x16xf32, #tpu.memory_space<vmem>>, %arg5: memref<4x2x16x16xbf16, #tpu.memory_space<vmem>>) attributes {dimension_semantics = [#tpu.dimension_semantics<parallel>], iteration_bounds = array<i64: 2>, scalar_prefetch = 0 : i64, scratch_operands = 0 : i64, tpu.core_type = #tpu.core_type<tc>, window_params = [{transform_indices = @transform_0, window_bounds = array<i64: 4, 2, 16, 16>}, {transform_indices = @transform_1, window_bounds = array<i64: 4, 2, 16, 16>}, {transform_indices = @transform_2, window_bounds = array<i64: 4, 2, 16, 16>}, {pipeline_mode = #tpu.pipeline_mode<synchronous>, transform_indices = @transform_3, window_bounds = array<i64: 2, 16, 16>}, {transform_indices = @transform_4, window_bounds = array<i64: 4, 2, 16, 16>}]} {
    %c0 = arith.constant 0 : index
    %c0_0 = arith.constant 0 : index
    %c0_1 = arith.constant 0 : index
    %c0_2 = arith.constant 0 : index
    %0 = vector.load %arg1[%c0, %c0_0, %c0_1, %c0_2] : memref<4x2x16x16xbf16, #tpu.memory_space<vmem>>, vector<4x2x16x16xbf16>
    %1 = vector.shape_cast %0 : vector<4x2x16x16xbf16> to vector<8x16x16xbf16>
    %c0_3 = arith.constant 0 : index
    %c0_4 = arith.constant 0 : index
    %c0_5 = arith.constant 0 : index
    %c0_6 = arith.constant 0 : index
    %2 = vector.load %arg2[%c0_3, %c0_4, %c0_5, %c0_6] : memref<4x2x16x16xbf16, #tpu.memory_space<vmem>>, vector<4x2x16x16xbf16>
    %3 = vector.shape_cast %2 : vector<4x2x16x16xbf16> to vector<8x16x16xbf16>
    %cst = arith.constant dense<0.000000e+00> : vector<8x16x16xf32>
    %4 = tpu.matmul %1, %3, %cst {dimension_numbers = #tpu.dot_dimension_numbers<[2], [2], [1], [1], [0, 0, 0, 1, 1, 1], [0], [0]>} : vector<8x16x16xbf16>, vector<8x16x16xbf16>, vector<8x16x16xf32> -> vector<8x16x16xf32>
    %cst_7 = arith.constant 2.500000e-01 : f32
    %5 = vector.broadcast %cst_7 : f32 to vector<8x16x16xf32>
    %6 = arith.mulf %4, %5 : vector<8x16x16xf32>
    %7 = vector.shape_cast %6 : vector<8x16x16xf32> to vector<4x2x16x16xf32>
    %c0_8 = arith.constant 0 : index
    %c0_9 = arith.constant 0 : index
    %c0_10 = arith.constant 0 : index
    %8 = vector.load %arg4[%c0_8, %c0_9, %c0_10] : memref<2x16x16xf32, #tpu.memory_space<vmem>>, vector<2x16x16xf32>
    %9 = vector.shape_cast %8 : vector<2x16x16xf32> to vector<1x2x16x16xf32>
    %10 = vector.broadcast %9 : vector<1x2x16x16xf32> to vector<4x2x16x16xf32>
    %11 = arith.addf %7, %10 : vector<4x2x16x16xf32>
    %cst_11 = arith.constant dense<0xFF800000> : vector<4x2x16xf32>
    %12 = vector.multi_reduction <maximumf>, %11, %cst_11 [3] : vector<4x2x16x16xf32> to vector<4x2x16xf32>
    %13 = vector.shape_cast %12 : vector<4x2x16xf32> to vector<4x2x16x1xf32>
    %14 = vector.broadcast %13 : vector<4x2x16x1xf32> to vector<4x2x16x16xf32>
    %15 = arith.subf %11, %14 : vector<4x2x16x16xf32>
    %16 = math.exp %15 : vector<4x2x16x16xf32>
    %cst_12 = arith.constant dense<0.000000e+00> : vector<4x2x16xf32>
    %17 = vector.multi_reduction <add>, %16, %cst_12 [3] : vector<4x2x16x16xf32> to vector<4x2x16xf32>
    %18 = vector.shape_cast %17 : vector<4x2x16xf32> to vector<4x2x16x1xf32>
    %19 = tpu.reciprocal %18 {approx = true} : vector<4x2x16x1xf32> -> vector<4x2x16x1xf32>
    %20 = vector.broadcast %19 : vector<4x2x16x1xf32> to vector<4x2x16x16xf32>
    %21 = arith.mulf %16, %20 : vector<4x2x16x16xf32>
    %22 = vector.shape_cast %21 : vector<4x2x16x16xf32> to vector<8x16x16xf32>
    %23 = arith.truncf %22 : vector<8x16x16xf32> to vector<8x16x16xbf16>
    %c0_13 = arith.constant 0 : index
    %c0_14 = arith.constant 0 : index
    %c0_15 = arith.constant 0 : index
    %c0_16 = arith.constant 0 : index
    %24 = vector.load %arg3[%c0_13, %c0_14, %c0_15, %c0_16] : memref<4x2x16x16xbf16, #tpu.memory_space<vmem>>, vector<4x2x16x16xbf16>
    %25 = vector.shape_cast %24 : vector<4x2x16x16xbf16> to vector<8x16x16xbf16>
    %cst_17 = arith.constant dense<0.000000e+00> : vector<8x16x16xf32>
    %26 = tpu.matmul %23, %25, %cst_17 {dimension_numbers = #tpu.dot_dimension_numbers<[2], [1], [1], [2], [0, 0, 0, 1, 1, 2], [0], [0]>} : vector<8x16x16xbf16>, vector<8x16x16xbf16>, vector<8x16x16xf32> -> vector<8x16x16xf32>
    %27 = vector.shape_cast %26 : vector<8x16x16xf32> to vector<4x2x16x16xf32>
    %28 = arith.truncf %27 : vector<4x2x16x16xf32> to vector<4x2x16x16xbf16>
    %c0_18 = arith.constant 0 : index
    %c0_19 = arith.constant 0 : index
    %c0_20 = arith.constant 0 : index
    %c0_21 = arith.constant 0 : index
    %29 = vector.load %arg5[%c0_18, %c0_19, %c0_20, %c0_21] : memref<4x2x16x16xbf16, #tpu.memory_space<vmem>>, vector<4x2x16x16xbf16>
    tpu.vector_store %arg5[%c0_18, %c0_19, %c0_20, %c0_21], %28 {strides = array<i32>} : memref<4x2x16x16xbf16, #tpu.memory_space<vmem>>, vector<4x2x16x16xbf16>,
    return
  }
  func.func @transform_0(%arg0: i32) -> (i32, i32, i32, i32) {
    %c0_i32 = arith.constant 0 : i32
    %c0_i32_0 = arith.constant 0 : i32
    %c0_i32_1 = arith.constant 0 : i32
    %c0_i32_2 = arith.constant 0 : i32
    return %arg0, %c0_i32, %c0_i32_0, %c0_i32_1 : i32, i32, i32, i32
  }
  func.func @transform_1(%arg0: i32) -> (i32, i32, i32, i32) {
    %c0_i32 = arith.constant 0 : i32
    %c0_i32_0 = arith.constant 0 : i32
    %c0_i32_1 = arith.constant 0 : i32
    %c0_i32_2 = arith.constant 0 : i32
    return %arg0, %c0_i32, %c0_i32_0, %c0_i32_1 : i32, i32, i32, i32
  }
  func.func @transform_2(%arg0: i32) -> (i32, i32, i32, i32) {
    %c0_i32 = arith.constant 0 : i32
    %c0_i32_0 = arith.constant 0 : i32
    %c0_i32_1 = arith.constant 0 : i32
    %c0_i32_2 = arith.constant 0 : i32
    return %arg0, %c0_i32, %c0_i32_0, %c0_i32_1 : i32, i32, i32, i32
  }
  func.func @transform_3(%arg0: i32) -> (i32, i32, i32) {
    %c0_i32 = arith.constant 0 : i32
    %c0_i32_0 = arith.constant 0 : i32
    %c0_i32_1 = arith.constant 0 : i32
    %c0_i32_2 = arith.constant 0 : i32
    return %c0_i32, %c0_i32_0, %c0_i32_1 : i32, i32, i32
  }
  func.func @transform_4(%arg0: i32) -> (i32, i32, i32, i32) {
    %c0_i32 = arith.constant 0 : i32
    %c0_i32_0 = arith.constant 0 : i32
    %c0_i32_1 = arith.constant 0 : i32
    %c0_i32_2 = arith.constant 0 : i32
    return %arg0, %c0_i32, %c0_i32_0, %c0_i32_1 : i32, i32, i32, i32
  }
}

module attributes {stable_mosaic.version = 11 : i64} {
  func.func @_linear_kernel(%arg0: i32, %arg1: i32, %arg2: i32, %arg3: memref<128x128xbf16, #tpu.memory_space<vmem>>, %arg4: memref<128x128xbf16, #tpu.memory_space<vmem>>, %arg5: memref<1x128xf32, #tpu.memory_space<vmem>>, %arg6: memref<1x128xf32, #tpu.memory_space<vmem>>, %arg7: memref<1x128xf32, #tpu.memory_space<vmem>>, %arg8: memref<128x128xbf16, #tpu.memory_space<vmem>>, %arg9: memref<128x128xf32, #tpu.memory_space<vmem>>) attributes {dimension_semantics = [#tpu.dimension_semantics<parallel>, #tpu.dimension_semantics<parallel>, #tpu.dimension_semantics<arbitrary>], iteration_bounds = array<i64: 1, 1, 1>, scalar_prefetch = 0 : i64, scratch_operands = 1 : i64, tpu.core_type = #tpu.core_type<tc>, window_params = [{transform_indices = @transform_0, window_bounds = array<i64: 128, 128>}, {transform_indices = @transform_1, window_bounds = array<i64: 128, 128>}, {transform_indices = @transform_2, window_bounds = array<i64: 1, 128>}, {transform_indices = @transform_3, window_bounds = array<i64: 1, 128>}, {transform_indices = @transform_4, window_bounds = array<i64: 1, 128>}, {transform_indices = @transform_5, window_bounds = array<i64: 128, 128>}]} {
    %c0_i32 = arith.constant 0 : i32
    %0 = arith.cmpi eq, %arg2, %c0_i32 : i32
    %1 = arith.extui %0 : i1 to i32
    %c0_i32_0 = arith.constant 0 : i32
    %2 = arith.cmpi ne, %1, %c0_i32_0 : i32
    scf.if %2 {
      %cst_19 = arith.constant 0.000000e+00 : f32
      %38 = vector.broadcast %cst_19 : f32 to vector<128x128xf32>
      %c0_20 = arith.constant 0 : index
      %c0_21 = arith.constant 0 : index
      %39 = vector.load %arg9[%c0_20, %c0_21] : memref<128x128xf32, #tpu.memory_space<vmem>>, vector<128x128xf32>
      tpu.vector_store %arg9[%c0_20, %c0_21], %38 {strides = array<i32>} : memref<128x128xf32, #tpu.memory_space<vmem>>, vector<128x128xf32>,
    } else {
    }
    %c0 = arith.constant 0 : index
    %c0_1 = arith.constant 0 : index
    %3 = vector.load %arg3[%c0, %c0_1] : memref<128x128xbf16, #tpu.memory_space<vmem>>, vector<128x128xbf16>
    %4 = arith.extf %3 : vector<128x128xbf16> to vector<128x128xf32>
    %cst = arith.constant dense<0.000000e+00> : vector<128xf32>
    %5 = vector.multi_reduction <add>, %4, %cst [1] : vector<128x128xf32> to vector<128xf32>
    %6 = vector.shape_cast %5 : vector<128xf32> to vector<128x1xf32>
    %cst_2 = arith.constant 3.125000e-02 : f32
    %7 = vector.broadcast %cst_2 : f32 to vector<128x1xf32>
    %8 = arith.mulf %6, %7 : vector<128x1xf32>
    %9 = arith.mulf %4, %4 : vector<128x128xf32>
    %cst_3 = arith.constant dense<0.000000e+00> : vector<128xf32>
    %10 = vector.multi_reduction <add>, %9, %cst_3 [1] : vector<128x128xf32> to vector<128xf32>
    %11 = vector.shape_cast %10 : vector<128xf32> to vector<128x1xf32>
    %cst_4 = arith.constant 3.125000e-02 : f32
    %12 = vector.broadcast %cst_4 : f32 to vector<128x1xf32>
    %13 = arith.mulf %11, %12 : vector<128x1xf32>
    %14 = arith.mulf %8, %8 : vector<128x1xf32>
    %15 = arith.subf %13, %14 : vector<128x1xf32>
    %16 = vector.broadcast %8 : vector<128x1xf32> to vector<128x128xf32>
    %17 = arith.subf %4, %16 : vector<128x128xf32>
    %cst_5 = arith.constant 9.99999974E-6 : f32
    %18 = vector.broadcast %cst_5 : f32 to vector<128x1xf32>
    %19 = arith.addf %15, %18 : vector<128x1xf32>
    %20 = math.rsqrt %19 : vector<128x1xf32>
    %21 = vector.broadcast %20 : vector<128x1xf32> to vector<128x128xf32>
    %22 = arith.mulf %17, %21 : vector<128x128xf32>
    %c0_6 = arith.constant 0 : index
    %c0_7 = arith.constant 0 : index
    %23 = vector.load %arg6[%c0_6, %c0_7] : memref<1x128xf32, #tpu.memory_space<vmem>>, vector<1x128xf32>
    %24 = vector.broadcast %23 : vector<1x128xf32> to vector<128x128xf32>
    %25 = arith.mulf %22, %24 : vector<128x128xf32>
    %c0_8 = arith.constant 0 : index
    %c0_9 = arith.constant 0 : index
    %26 = vector.load %arg7[%c0_8, %c0_9] : memref<1x128xf32, #tpu.memory_space<vmem>>, vector<1x128xf32>
    %27 = vector.broadcast %26 : vector<1x128xf32> to vector<128x128xf32>
    %28 = arith.addf %25, %27 : vector<128x128xf32>
    %29 = arith.truncf %28 : vector<128x128xf32> to vector<128x128xbf16>
    %c0_10 = arith.constant 0 : index
    %c0_11 = arith.constant 0 : index
    %30 = vector.load %arg9[%c0_10, %c0_11] : memref<128x128xf32, #tpu.memory_space<vmem>>, vector<128x128xf32>
    %c0_12 = arith.constant 0 : index
    %c0_13 = arith.constant 0 : index
    %31 = vector.load %arg4[%c0_12, %c0_13] : memref<128x128xbf16, #tpu.memory_space<vmem>>, vector<128x128xbf16>
    %cst_14 = arith.constant dense<0.000000e+00> : vector<128x128xf32>
    %32 = tpu.matmul %29, %31, %cst_14 {dimension_numbers = #tpu.dot_dimension_numbers<[1], [0], [0], [1], [0, 0, 1, 1], [], []>} : vector<128x128xbf16>, vector<128x128xbf16>, vector<128x128xf32> -> vector<128x128xf32>
    %33 = arith.addf %30, %32 : vector<128x128xf32>
    %c0_15 = arith.constant 0 : index
    %c0_16 = arith.constant 0 : index
    %34 = vector.load %arg9[%c0_15, %c0_16] : memref<128x128xf32, #tpu.memory_space<vmem>>, vector<128x128xf32>
    tpu.vector_store %arg9[%c0_15, %c0_16], %33 {strides = array<i32>} : memref<128x128xf32, #tpu.memory_space<vmem>>, vector<128x128xf32>,
    %c0_i32_17 = arith.constant 0 : i32
    %35 = arith.cmpi eq, %arg2, %c0_i32_17 : i32
    %36 = arith.extui %35 : i1 to i32
    %c0_i32_18 = arith.constant 0 : i32
    %37 = arith.cmpi ne, %36, %c0_i32_18 : i32
    scf.if %37 {
      %c0_19 = arith.constant 0 : index
      %c0_20 = arith.constant 0 : index
      %38 = vector.load %arg9[%c0_19, %c0_20] : memref<128x128xf32, #tpu.memory_space<vmem>>, vector<128x128xf32>
      %c0_21 = arith.constant 0 : index
      %c0_22 = arith.constant 0 : index
      %39 = vector.load %arg5[%c0_21, %c0_22] : memref<1x128xf32, #tpu.memory_space<vmem>>, vector<1x128xf32>
      %40 = vector.broadcast %39 : vector<1x128xf32> to vector<128x128xf32>
      %41 = arith.addf %38, %40 : vector<128x128xf32>
      %cst_23 = arith.constant 5.000000e-01 : f32
      %42 = vector.broadcast %cst_23 : f32 to vector<128x128xf32>
      %43 = arith.mulf %42, %41 : vector<128x128xf32>
      %cst_24 = arith.constant 0.707106769 : f32
      %44 = vector.broadcast %cst_24 : f32 to vector<128x128xf32>
      %45 = arith.mulf %41, %44 : vector<128x128xf32>
      %46 = math.erf %45 : vector<128x128xf32>
      %cst_25 = arith.constant 1.000000e+00 : f32
      %47 = vector.broadcast %cst_25 : f32 to vector<128x128xf32>
      %48 = arith.addf %47, %46 : vector<128x128xf32>
      %49 = arith.mulf %43, %48 : vector<128x128xf32>
      %50 = arith.truncf %49 : vector<128x128xf32> to vector<128x128xbf16>
      %c0_26 = arith.constant 0 : index
      %c0_27 = arith.constant 0 : index
      %51 = vector.load %arg8[%c0_26, %c0_27] : memref<128x128xbf16, #tpu.memory_space<vmem>>, vector<128x128xbf16>
      tpu.vector_store %arg8[%c0_26, %c0_27], %50 {strides = array<i32>} : memref<128x128xbf16, #tpu.memory_space<vmem>>, vector<128x128xbf16>,
    } else {
    }
    return
  }
  func.func @transform_0(%arg0: i32, %arg1: i32, %arg2: i32) -> (i32, i32) {
    %c0_i32 = arith.constant 0 : i32
    return %arg0, %arg2 : i32, i32
  }
  func.func @transform_1(%arg0: i32, %arg1: i32, %arg2: i32) -> (i32, i32) {
    %c0_i32 = arith.constant 0 : i32
    return %arg2, %arg1 : i32, i32
  }
  func.func @transform_2(%arg0: i32, %arg1: i32, %arg2: i32) -> (i32, i32) {
    %c0_i32 = arith.constant 0 : i32
    %c0_i32_0 = arith.constant 0 : i32
    return %c0_i32, %arg1 : i32, i32
  }
  func.func @transform_3(%arg0: i32, %arg1: i32, %arg2: i32) -> (i32, i32) {
    %c0_i32 = arith.constant 0 : i32
    %c0_i32_0 = arith.constant 0 : i32
    return %c0_i32, %arg2 : i32, i32
  }
  func.func @transform_4(%arg0: i32, %arg1: i32, %arg2: i32) -> (i32, i32) {
    %c0_i32 = arith.constant 0 : i32
    %c0_i32_0 = arith.constant 0 : i32
    return %c0_i32, %arg2 : i32, i32
  }
  func.func @transform_5(%arg0: i32, %arg1: i32, %arg2: i32) -> (i32, i32) {
    %c0_i32 = arith.constant 0 : i32
    return %arg0, %arg1 : i32, i32
  }
}

module attributes {stable_mosaic.version = 11 : i64} {
  func.func @_linear_kernel(%arg0: i32, %arg1: i32, %arg2: i32, %arg3: memref<128x128xbf16, #tpu.memory_space<vmem>>, %arg4: memref<128x128xbf16, #tpu.memory_space<vmem>>, %arg5: memref<1x128xf32, #tpu.memory_space<vmem>>, %arg6: memref<128x128xbf16, #tpu.memory_space<vmem>>, %arg7: memref<128x128xbf16, #tpu.memory_space<vmem>>, %arg8: memref<128x128xf32, #tpu.memory_space<vmem>>) attributes {dimension_semantics = [#tpu.dimension_semantics<parallel>, #tpu.dimension_semantics<parallel>, #tpu.dimension_semantics<arbitrary>], iteration_bounds = array<i64: 1, 1, 1>, scalar_prefetch = 0 : i64, scratch_operands = 1 : i64, tpu.core_type = #tpu.core_type<tc>, window_params = [{transform_indices = @transform_0, window_bounds = array<i64: 128, 128>}, {transform_indices = @transform_1, window_bounds = array<i64: 128, 128>}, {transform_indices = @transform_2, window_bounds = array<i64: 1, 128>}, {transform_indices = @transform_3, window_bounds = array<i64: 128, 128>}, {transform_indices = @transform_4, window_bounds = array<i64: 128, 128>}]} {
    %c0_i32 = arith.constant 0 : i32
    %0 = arith.cmpi eq, %arg2, %c0_i32 : i32
    %1 = arith.extui %0 : i1 to i32
    %c0_i32_0 = arith.constant 0 : i32
    %2 = arith.cmpi ne, %1, %c0_i32_0 : i32
    scf.if %2 {
      %cst_10 = arith.constant 0.000000e+00 : f32
      %12 = vector.broadcast %cst_10 : f32 to vector<128x128xf32>
      %c0_11 = arith.constant 0 : index
      %c0_12 = arith.constant 0 : index
      %13 = vector.load %arg8[%c0_11, %c0_12] : memref<128x128xf32, #tpu.memory_space<vmem>>, vector<128x128xf32>
      tpu.vector_store %arg8[%c0_11, %c0_12], %12 {strides = array<i32>} : memref<128x128xf32, #tpu.memory_space<vmem>>, vector<128x128xf32>,
    } else {
    }
    %c0 = arith.constant 0 : index
    %c0_1 = arith.constant 0 : index
    %3 = vector.load %arg3[%c0, %c0_1] : memref<128x128xbf16, #tpu.memory_space<vmem>>, vector<128x128xbf16>
    %c0_2 = arith.constant 0 : index
    %c0_3 = arith.constant 0 : index
    %4 = vector.load %arg8[%c0_2, %c0_3] : memref<128x128xf32, #tpu.memory_space<vmem>>, vector<128x128xf32>
    %c0_4 = arith.constant 0 : index
    %c0_5 = arith.constant 0 : index
    %5 = vector.load %arg4[%c0_4, %c0_5] : memref<128x128xbf16, #tpu.memory_space<vmem>>, vector<128x128xbf16>
    %cst = arith.constant dense<0.000000e+00> : vector<128x128xf32>
    %6 = tpu.matmul %3, %5, %cst {dimension_numbers = #tpu.dot_dimension_numbers<[1], [0], [0], [1], [0, 0, 1, 1], [], []>} : vector<128x128xbf16>, vector<128x128xbf16>, vector<128x128xf32> -> vector<128x128xf32>
    %7 = arith.addf %4, %6 : vector<128x128xf32>
    %c0_6 = arith.constant 0 : index
    %c0_7 = arith.constant 0 : index
    %8 = vector.load %arg8[%c0_6, %c0_7] : memref<128x128xf32, #tpu.memory_space<vmem>>, vector<128x128xf32>
    tpu.vector_store %arg8[%c0_6, %c0_7], %7 {strides = array<i32>} : memref<128x128xf32, #tpu.memory_space<vmem>>, vector<128x128xf32>,
    %c0_i32_8 = arith.constant 0 : i32
    %9 = arith.cmpi eq, %arg2, %c0_i32_8 : i32
    %10 = arith.extui %9 : i1 to i32
    %c0_i32_9 = arith.constant 0 : i32
    %11 = arith.cmpi ne, %10, %c0_i32_9 : i32
    scf.if %11 {
      %c0_10 = arith.constant 0 : index
      %c0_11 = arith.constant 0 : index
      %12 = vector.load %arg8[%c0_10, %c0_11] : memref<128x128xf32, #tpu.memory_space<vmem>>, vector<128x128xf32>
      %c0_12 = arith.constant 0 : index
      %c0_13 = arith.constant 0 : index
      %13 = vector.load %arg5[%c0_12, %c0_13] : memref<1x128xf32, #tpu.memory_space<vmem>>, vector<1x128xf32>
      %14 = vector.broadcast %13 : vector<1x128xf32> to vector<128x128xf32>
      %15 = arith.addf %12, %14 : vector<128x128xf32>
      %c0_14 = arith.constant 0 : index
      %c0_15 = arith.constant 0 : index
      %16 = vector.load %arg6[%c0_14, %c0_15] : memref<128x128xbf16, #tpu.memory_space<vmem>>, vector<128x128xbf16>
      %17 = arith.extf %16 : vector<128x128xbf16> to vector<128x128xf32>
      %18 = arith.addf %15, %17 : vector<128x128xf32>
      %19 = arith.truncf %18 : vector<128x128xf32> to vector<128x128xbf16>
      %c0_16 = arith.constant 0 : index
      %c0_17 = arith.constant 0 : index
      %20 = vector.load %arg7[%c0_16, %c0_17] : memref<128x128xbf16, #tpu.memory_space<vmem>>, vector<128x128xbf16>
      tpu.vector_store %arg7[%c0_16, %c0_17], %19 {strides = array<i32>} : memref<128x128xbf16, #tpu.memory_space<vmem>>, vector<128x128xbf16>,
    } else {
    }
    return
  }
  func.func @transform_0(%arg0: i32, %arg1: i32, %arg2: i32) -> (i32, i32) {
    %c0_i32 = arith.constant 0 : i32
    return %arg0, %arg2 : i32, i32
  }
  func.func @transform_1(%arg0: i32, %arg1: i32, %arg2: i32) -> (i32, i32) {
    %c0_i32 = arith.constant 0 : i32
    return %arg2, %arg1 : i32, i32
  }
  func.func @transform_2(%arg0: i32, %arg1: i32, %arg2: i32) -> (i32, i32) {
    %c0_i32 = arith.constant 0 : i32
    %c0_i32_0 = arith.constant 0 : i32
    return %c0_i32, %arg1 : i32, i32
  }
  func.func @transform_3(%arg0: i32, %arg1: i32, %arg2: i32) -> (i32, i32) {
    %c0_i32 = arith.constant 0 : i32
    return %arg0, %arg1 : i32, i32
  }
  func.func @transform_4(%arg0: i32, %arg1: i32, %arg2: i32) -> (i32, i32) {
    %c0_i32 = arith.constant 0 : i32
    return %arg0, %arg1 : i32, i32
  }
}

module attributes {stable_mosaic.version = 11 : i64} {
  func.func @_wattn_kernel(%arg0: i32, %arg1: memref<4x2x16x16xbf16, #tpu.memory_space<vmem>>, %arg2: memref<4x2x16x16xbf16, #tpu.memory_space<vmem>>, %arg3: memref<4x2x16x16xbf16, #tpu.memory_space<vmem>>, %arg4: memref<2x16x16xf32, #tpu.memory_space<vmem>>, %arg5: memref<4x16x16xf32, #tpu.memory_space<vmem>>, %arg6: memref<4x2x16x16xbf16, #tpu.memory_space<vmem>>) attributes {dimension_semantics = [#tpu.dimension_semantics<parallel>], iteration_bounds = array<i64: 2>, scalar_prefetch = 0 : i64, scratch_operands = 0 : i64, tpu.core_type = #tpu.core_type<tc>, window_params = [{transform_indices = @transform_0, window_bounds = array<i64: 4, 2, 16, 16>}, {transform_indices = @transform_1, window_bounds = array<i64: 4, 2, 16, 16>}, {transform_indices = @transform_2, window_bounds = array<i64: 4, 2, 16, 16>}, {pipeline_mode = #tpu.pipeline_mode<synchronous>, transform_indices = @transform_3, window_bounds = array<i64: 2, 16, 16>}, {pipeline_mode = #tpu.pipeline_mode<synchronous>, transform_indices = @transform_4, window_bounds = array<i64: 4, 16, 16>}, {transform_indices = @transform_5, window_bounds = array<i64: 4, 2, 16, 16>}]} {
    %c0 = arith.constant 0 : index
    %c0_0 = arith.constant 0 : index
    %c0_1 = arith.constant 0 : index
    %c0_2 = arith.constant 0 : index
    %0 = vector.load %arg1[%c0, %c0_0, %c0_1, %c0_2] : memref<4x2x16x16xbf16, #tpu.memory_space<vmem>>, vector<4x2x16x16xbf16>
    %1 = vector.shape_cast %0 : vector<4x2x16x16xbf16> to vector<8x16x16xbf16>
    %c0_3 = arith.constant 0 : index
    %c0_4 = arith.constant 0 : index
    %c0_5 = arith.constant 0 : index
    %c0_6 = arith.constant 0 : index
    %2 = vector.load %arg2[%c0_3, %c0_4, %c0_5, %c0_6] : memref<4x2x16x16xbf16, #tpu.memory_space<vmem>>, vector<4x2x16x16xbf16>
    %3 = vector.shape_cast %2 : vector<4x2x16x16xbf16> to vector<8x16x16xbf16>
    %cst = arith.constant dense<0.000000e+00> : vector<8x16x16xf32>
    %4 = tpu.matmul %1, %3, %cst {dimension_numbers = #tpu.dot_dimension_numbers<[2], [2], [1], [1], [0, 0, 0, 1, 1, 1], [0], [0]>} : vector<8x16x16xbf16>, vector<8x16x16xbf16>, vector<8x16x16xf32> -> vector<8x16x16xf32>
    %cst_7 = arith.constant 2.500000e-01 : f32
    %5 = vector.broadcast %cst_7 : f32 to vector<8x16x16xf32>
    %6 = arith.mulf %4, %5 : vector<8x16x16xf32>
    %7 = vector.shape_cast %6 : vector<8x16x16xf32> to vector<4x2x16x16xf32>
    %c0_8 = arith.constant 0 : index
    %c0_9 = arith.constant 0 : index
    %c0_10 = arith.constant 0 : index
    %8 = vector.load %arg4[%c0_8, %c0_9, %c0_10] : memref<2x16x16xf32, #tpu.memory_space<vmem>>, vector<2x16x16xf32>
    %9 = vector.shape_cast %8 : vector<2x16x16xf32> to vector<1x2x16x16xf32>
    %10 = vector.broadcast %9 : vector<1x2x16x16xf32> to vector<4x2x16x16xf32>
    %11 = arith.addf %7, %10 : vector<4x2x16x16xf32>
    %c0_11 = arith.constant 0 : index
    %c0_12 = arith.constant 0 : index
    %c0_13 = arith.constant 0 : index
    %12 = vector.load %arg5[%c0_11, %c0_12, %c0_13] : memref<4x16x16xf32, #tpu.memory_space<vmem>>, vector<4x16x16xf32>
    %13 = vector.shape_cast %12 : vector<4x16x16xf32> to vector<4x1x16x16xf32>
    %14 = vector.broadcast %13 : vector<4x1x16x16xf32> to vector<4x2x16x16xf32>
    %15 = arith.addf %11, %14 : vector<4x2x16x16xf32>
    %cst_14 = arith.constant dense<0xFF800000> : vector<4x2x16xf32>
    %16 = vector.multi_reduction <maximumf>, %15, %cst_14 [3] : vector<4x2x16x16xf32> to vector<4x2x16xf32>
    %17 = vector.shape_cast %16 : vector<4x2x16xf32> to vector<4x2x16x1xf32>
    %18 = vector.broadcast %17 : vector<4x2x16x1xf32> to vector<4x2x16x16xf32>
    %19 = arith.subf %15, %18 : vector<4x2x16x16xf32>
    %20 = math.exp %19 : vector<4x2x16x16xf32>
    %cst_15 = arith.constant dense<0.000000e+00> : vector<4x2x16xf32>
    %21 = vector.multi_reduction <add>, %20, %cst_15 [3] : vector<4x2x16x16xf32> to vector<4x2x16xf32>
    %22 = vector.shape_cast %21 : vector<4x2x16xf32> to vector<4x2x16x1xf32>
    %23 = tpu.reciprocal %22 {approx = true} : vector<4x2x16x1xf32> -> vector<4x2x16x1xf32>
    %24 = vector.broadcast %23 : vector<4x2x16x1xf32> to vector<4x2x16x16xf32>
    %25 = arith.mulf %20, %24 : vector<4x2x16x16xf32>
    %26 = vector.shape_cast %25 : vector<4x2x16x16xf32> to vector<8x16x16xf32>
    %27 = arith.truncf %26 : vector<8x16x16xf32> to vector<8x16x16xbf16>
    %c0_16 = arith.constant 0 : index
    %c0_17 = arith.constant 0 : index
    %c0_18 = arith.constant 0 : index
    %c0_19 = arith.constant 0 : index
    %28 = vector.load %arg3[%c0_16, %c0_17, %c0_18, %c0_19] : memref<4x2x16x16xbf16, #tpu.memory_space<vmem>>, vector<4x2x16x16xbf16>
    %29 = vector.shape_cast %28 : vector<4x2x16x16xbf16> to vector<8x16x16xbf16>
    %cst_20 = arith.constant dense<0.000000e+00> : vector<8x16x16xf32>
    %30 = tpu.matmul %27, %29, %cst_20 {dimension_numbers = #tpu.dot_dimension_numbers<[2], [1], [1], [2], [0, 0, 0, 1, 1, 2], [0], [0]>} : vector<8x16x16xbf16>, vector<8x16x16xbf16>, vector<8x16x16xf32> -> vector<8x16x16xf32>
    %31 = vector.shape_cast %30 : vector<8x16x16xf32> to vector<4x2x16x16xf32>
    %32 = arith.truncf %31 : vector<4x2x16x16xf32> to vector<4x2x16x16xbf16>
    %c0_21 = arith.constant 0 : index
    %c0_22 = arith.constant 0 : index
    %c0_23 = arith.constant 0 : index
    %c0_24 = arith.constant 0 : index
    %33 = vector.load %arg6[%c0_21, %c0_22, %c0_23, %c0_24] : memref<4x2x16x16xbf16, #tpu.memory_space<vmem>>, vector<4x2x16x16xbf16>
    tpu.vector_store %arg6[%c0_21, %c0_22, %c0_23, %c0_24], %32 {strides = array<i32>} : memref<4x2x16x16xbf16, #tpu.memory_space<vmem>>, vector<4x2x16x16xbf16>,
    return
  }
  func.func @transform_0(%arg0: i32) -> (i32, i32, i32, i32) {
    %c0_i32 = arith.constant 0 : i32
    %c0_i32_0 = arith.constant 0 : i32
    %c0_i32_1 = arith.constant 0 : i32
    %c0_i32_2 = arith.constant 0 : i32
    return %arg0, %c0_i32, %c0_i32_0, %c0_i32_1 : i32, i32, i32, i32
  }
  func.func @transform_1(%arg0: i32) -> (i32, i32, i32, i32) {
    %c0_i32 = arith.constant 0 : i32
    %c0_i32_0 = arith.constant 0 : i32
    %c0_i32_1 = arith.constant 0 : i32
    %c0_i32_2 = arith.constant 0 : i32
    return %arg0, %c0_i32, %c0_i32_0, %c0_i32_1 : i32, i32, i32, i32
  }
  func.func @transform_2(%arg0: i32) -> (i32, i32, i32, i32) {
    %c0_i32 = arith.constant 0 : i32
    %c0_i32_0 = arith.constant 0 : i32
    %c0_i32_1 = arith.constant 0 : i32
    %c0_i32_2 = arith.constant 0 : i32
    return %arg0, %c0_i32, %c0_i32_0, %c0_i32_1 : i32, i32, i32, i32
  }
  func.func @transform_3(%arg0: i32) -> (i32, i32, i32) {
    %c0_i32 = arith.constant 0 : i32
    %c0_i32_0 = arith.constant 0 : i32
    %c0_i32_1 = arith.constant 0 : i32
    %c0_i32_2 = arith.constant 0 : i32
    return %c0_i32, %c0_i32_0, %c0_i32_1 : i32, i32, i32
  }
  func.func @transform_4(%arg0: i32) -> (i32, i32, i32) {
    %c0_i32 = arith.constant 0 : i32
    %c0_i32_0 = arith.constant 0 : i32
    %c0_i32_1 = arith.constant 0 : i32
    %c0_i32_2 = arith.constant 0 : i32
    return %c0_i32, %c0_i32_0, %c0_i32_1 : i32, i32, i32
  }
  func.func @transform_5(%arg0: i32) -> (i32, i32, i32, i32) {
    %c0_i32 = arith.constant 0 : i32
    %c0_i32_0 = arith.constant 0 : i32
    %c0_i32_1 = arith.constant 0 : i32
    %c0_i32_2 = arith.constant 0 : i32
    return %arg0, %c0_i32, %c0_i32_0, %c0_i32_1 : i32, i32, i32, i32
  }
}

module attributes {stable_mosaic.version = 11 : i64} {
  func.func @_linear_kernel(%arg0: i32, %arg1: i32, %arg2: i32, %arg3: memref<32x128xbf16, #tpu.memory_space<vmem>>, %arg4: memref<128x128xbf16, #tpu.memory_space<vmem>>, %arg5: memref<1x128xf32, #tpu.memory_space<vmem>>, %arg6: memref<1x128xf32, #tpu.memory_space<vmem>>, %arg7: memref<1x128xf32, #tpu.memory_space<vmem>>, %arg8: memref<32x128xbf16, #tpu.memory_space<vmem>>, %arg9: memref<32x128xf32, #tpu.memory_space<vmem>>) attributes {dimension_semantics = [#tpu.dimension_semantics<parallel>, #tpu.dimension_semantics<parallel>, #tpu.dimension_semantics<arbitrary>], iteration_bounds = array<i64: 1, 1, 1>, scalar_prefetch = 0 : i64, scratch_operands = 1 : i64, tpu.core_type = #tpu.core_type<tc>, window_params = [{transform_indices = @transform_0, window_bounds = array<i64: 32, 128>}, {transform_indices = @transform_1, window_bounds = array<i64: 128, 128>}, {transform_indices = @transform_2, window_bounds = array<i64: 1, 128>}, {transform_indices = @transform_3, window_bounds = array<i64: 1, 128>}, {transform_indices = @transform_4, window_bounds = array<i64: 1, 128>}, {transform_indices = @transform_5, window_bounds = array<i64: 32, 128>}]} {
    %c0_i32 = arith.constant 0 : i32
    %0 = arith.cmpi eq, %arg2, %c0_i32 : i32
    %1 = arith.extui %0 : i1 to i32
    %c0_i32_0 = arith.constant 0 : i32
    %2 = arith.cmpi ne, %1, %c0_i32_0 : i32
    scf.if %2 {
      %cst_19 = arith.constant 0.000000e+00 : f32
      %38 = vector.broadcast %cst_19 : f32 to vector<32x128xf32>
      %c0_20 = arith.constant 0 : index
      %c0_21 = arith.constant 0 : index
      %39 = vector.load %arg9[%c0_20, %c0_21] : memref<32x128xf32, #tpu.memory_space<vmem>>, vector<32x128xf32>
      tpu.vector_store %arg9[%c0_20, %c0_21], %38 {strides = array<i32>} : memref<32x128xf32, #tpu.memory_space<vmem>>, vector<32x128xf32>,
    } else {
    }
    %c0 = arith.constant 0 : index
    %c0_1 = arith.constant 0 : index
    %3 = vector.load %arg3[%c0, %c0_1] : memref<32x128xbf16, #tpu.memory_space<vmem>>, vector<32x128xbf16>
    %4 = arith.extf %3 : vector<32x128xbf16> to vector<32x128xf32>
    %cst = arith.constant dense<0.000000e+00> : vector<32xf32>
    %5 = vector.multi_reduction <add>, %4, %cst [1] : vector<32x128xf32> to vector<32xf32>
    %6 = vector.shape_cast %5 : vector<32xf32> to vector<32x1xf32>
    %cst_2 = arith.constant 7.812500e-03 : f32
    %7 = vector.broadcast %cst_2 : f32 to vector<32x1xf32>
    %8 = arith.mulf %6, %7 : vector<32x1xf32>
    %9 = arith.mulf %4, %4 : vector<32x128xf32>
    %cst_3 = arith.constant dense<0.000000e+00> : vector<32xf32>
    %10 = vector.multi_reduction <add>, %9, %cst_3 [1] : vector<32x128xf32> to vector<32xf32>
    %11 = vector.shape_cast %10 : vector<32xf32> to vector<32x1xf32>
    %cst_4 = arith.constant 7.812500e-03 : f32
    %12 = vector.broadcast %cst_4 : f32 to vector<32x1xf32>
    %13 = arith.mulf %11, %12 : vector<32x1xf32>
    %14 = arith.mulf %8, %8 : vector<32x1xf32>
    %15 = arith.subf %13, %14 : vector<32x1xf32>
    %16 = vector.broadcast %8 : vector<32x1xf32> to vector<32x128xf32>
    %17 = arith.subf %4, %16 : vector<32x128xf32>
    %cst_5 = arith.constant 9.99999974E-6 : f32
    %18 = vector.broadcast %cst_5 : f32 to vector<32x1xf32>
    %19 = arith.addf %15, %18 : vector<32x1xf32>
    %20 = math.rsqrt %19 : vector<32x1xf32>
    %21 = vector.broadcast %20 : vector<32x1xf32> to vector<32x128xf32>
    %22 = arith.mulf %17, %21 : vector<32x128xf32>
    %c0_6 = arith.constant 0 : index
    %c0_7 = arith.constant 0 : index
    %23 = vector.load %arg6[%c0_6, %c0_7] : memref<1x128xf32, #tpu.memory_space<vmem>>, vector<1x128xf32>
    %24 = vector.broadcast %23 : vector<1x128xf32> to vector<32x128xf32>
    %25 = arith.mulf %22, %24 : vector<32x128xf32>
    %c0_8 = arith.constant 0 : index
    %c0_9 = arith.constant 0 : index
    %26 = vector.load %arg7[%c0_8, %c0_9] : memref<1x128xf32, #tpu.memory_space<vmem>>, vector<1x128xf32>
    %27 = vector.broadcast %26 : vector<1x128xf32> to vector<32x128xf32>
    %28 = arith.addf %25, %27 : vector<32x128xf32>
    %29 = arith.truncf %28 : vector<32x128xf32> to vector<32x128xbf16>
    %c0_10 = arith.constant 0 : index
    %c0_11 = arith.constant 0 : index
    %30 = vector.load %arg9[%c0_10, %c0_11] : memref<32x128xf32, #tpu.memory_space<vmem>>, vector<32x128xf32>
    %c0_12 = arith.constant 0 : index
    %c0_13 = arith.constant 0 : index
    %31 = vector.load %arg4[%c0_12, %c0_13] : memref<128x128xbf16, #tpu.memory_space<vmem>>, vector<128x128xbf16>
    %cst_14 = arith.constant dense<0.000000e+00> : vector<32x128xf32>
    %32 = tpu.matmul %29, %31, %cst_14 {dimension_numbers = #tpu.dot_dimension_numbers<[1], [0], [0], [1], [0, 0, 1, 1], [], []>} : vector<32x128xbf16>, vector<128x128xbf16>, vector<32x128xf32> -> vector<32x128xf32>
    %33 = arith.addf %30, %32 : vector<32x128xf32>
    %c0_15 = arith.constant 0 : index
    %c0_16 = arith.constant 0 : index
    %34 = vector.load %arg9[%c0_15, %c0_16] : memref<32x128xf32, #tpu.memory_space<vmem>>, vector<32x128xf32>
    tpu.vector_store %arg9[%c0_15, %c0_16], %33 {strides = array<i32>} : memref<32x128xf32, #tpu.memory_space<vmem>>, vector<32x128xf32>,
    %c0_i32_17 = arith.constant 0 : i32
    %35 = arith.cmpi eq, %arg2, %c0_i32_17 : i32
    %36 = arith.extui %35 : i1 to i32
    %c0_i32_18 = arith.constant 0 : i32
    %37 = arith.cmpi ne, %36, %c0_i32_18 : i32
    scf.if %37 {
      %c0_19 = arith.constant 0 : index
      %c0_20 = arith.constant 0 : index
      %38 = vector.load %arg9[%c0_19, %c0_20] : memref<32x128xf32, #tpu.memory_space<vmem>>, vector<32x128xf32>
      %c0_21 = arith.constant 0 : index
      %c0_22 = arith.constant 0 : index
      %39 = vector.load %arg5[%c0_21, %c0_22] : memref<1x128xf32, #tpu.memory_space<vmem>>, vector<1x128xf32>
      %40 = vector.broadcast %39 : vector<1x128xf32> to vector<32x128xf32>
      %41 = arith.addf %38, %40 : vector<32x128xf32>
      %42 = arith.truncf %41 : vector<32x128xf32> to vector<32x128xbf16>
      %c0_23 = arith.constant 0 : index
      %c0_24 = arith.constant 0 : index
      %43 = vector.load %arg8[%c0_23, %c0_24] : memref<32x128xbf16, #tpu.memory_space<vmem>>, vector<32x128xbf16>
      tpu.vector_store %arg8[%c0_23, %c0_24], %42 {strides = array<i32>} : memref<32x128xbf16, #tpu.memory_space<vmem>>, vector<32x128xbf16>,
    } else {
    }
    return
  }
  func.func @transform_0(%arg0: i32, %arg1: i32, %arg2: i32) -> (i32, i32) {
    %c0_i32 = arith.constant 0 : i32
    return %arg0, %arg2 : i32, i32
  }
  func.func @transform_1(%arg0: i32, %arg1: i32, %arg2: i32) -> (i32, i32) {
    %c0_i32 = arith.constant 0 : i32
    return %arg2, %arg1 : i32, i32
  }
  func.func @transform_2(%arg0: i32, %arg1: i32, %arg2: i32) -> (i32, i32) {
    %c0_i32 = arith.constant 0 : i32
    %c0_i32_0 = arith.constant 0 : i32
    return %c0_i32, %arg1 : i32, i32
  }
  func.func @transform_3(%arg0: i32, %arg1: i32, %arg2: i32) -> (i32, i32) {
    %c0_i32 = arith.constant 0 : i32
    %c0_i32_0 = arith.constant 0 : i32
    return %c0_i32, %arg2 : i32, i32
  }
  func.func @transform_4(%arg0: i32, %arg1: i32, %arg2: i32) -> (i32, i32) {
    %c0_i32 = arith.constant 0 : i32
    %c0_i32_0 = arith.constant 0 : i32
    return %c0_i32, %arg2 : i32, i32
  }
  func.func @transform_5(%arg0: i32, %arg1: i32, %arg2: i32) -> (i32, i32) {
    %c0_i32 = arith.constant 0 : i32
    return %arg0, %arg1 : i32, i32
  }
}

module attributes {stable_mosaic.version = 11 : i64} {
  func.func @_linear_kernel(%arg0: i32, %arg1: i32, %arg2: i32, %arg3: memref<32x128xbf16, #tpu.memory_space<vmem>>, %arg4: memref<128x256xbf16, #tpu.memory_space<vmem>>, %arg5: memref<1x256xf32, #tpu.memory_space<vmem>>, %arg6: memref<1x128xf32, #tpu.memory_space<vmem>>, %arg7: memref<1x128xf32, #tpu.memory_space<vmem>>, %arg8: memref<32x256xbf16, #tpu.memory_space<vmem>>, %arg9: memref<32x256xf32, #tpu.memory_space<vmem>>) attributes {dimension_semantics = [#tpu.dimension_semantics<parallel>, #tpu.dimension_semantics<parallel>, #tpu.dimension_semantics<arbitrary>], iteration_bounds = array<i64: 1, 1, 1>, scalar_prefetch = 0 : i64, scratch_operands = 1 : i64, tpu.core_type = #tpu.core_type<tc>, window_params = [{transform_indices = @transform_0, window_bounds = array<i64: 32, 128>}, {transform_indices = @transform_1, window_bounds = array<i64: 128, 256>}, {transform_indices = @transform_2, window_bounds = array<i64: 1, 256>}, {transform_indices = @transform_3, window_bounds = array<i64: 1, 128>}, {transform_indices = @transform_4, window_bounds = array<i64: 1, 128>}, {transform_indices = @transform_5, window_bounds = array<i64: 32, 256>}]} {
    %c0_i32 = arith.constant 0 : i32
    %0 = arith.cmpi eq, %arg2, %c0_i32 : i32
    %1 = arith.extui %0 : i1 to i32
    %c0_i32_0 = arith.constant 0 : i32
    %2 = arith.cmpi ne, %1, %c0_i32_0 : i32
    scf.if %2 {
      %cst_19 = arith.constant 0.000000e+00 : f32
      %38 = vector.broadcast %cst_19 : f32 to vector<32x256xf32>
      %c0_20 = arith.constant 0 : index
      %c0_21 = arith.constant 0 : index
      %39 = vector.load %arg9[%c0_20, %c0_21] : memref<32x256xf32, #tpu.memory_space<vmem>>, vector<32x256xf32>
      tpu.vector_store %arg9[%c0_20, %c0_21], %38 {strides = array<i32>} : memref<32x256xf32, #tpu.memory_space<vmem>>, vector<32x256xf32>,
    } else {
    }
    %c0 = arith.constant 0 : index
    %c0_1 = arith.constant 0 : index
    %3 = vector.load %arg3[%c0, %c0_1] : memref<32x128xbf16, #tpu.memory_space<vmem>>, vector<32x128xbf16>
    %4 = arith.extf %3 : vector<32x128xbf16> to vector<32x128xf32>
    %cst = arith.constant dense<0.000000e+00> : vector<32xf32>
    %5 = vector.multi_reduction <add>, %4, %cst [1] : vector<32x128xf32> to vector<32xf32>
    %6 = vector.shape_cast %5 : vector<32xf32> to vector<32x1xf32>
    %cst_2 = arith.constant 1.562500e-02 : f32
    %7 = vector.broadcast %cst_2 : f32 to vector<32x1xf32>
    %8 = arith.mulf %6, %7 : vector<32x1xf32>
    %9 = arith.mulf %4, %4 : vector<32x128xf32>
    %cst_3 = arith.constant dense<0.000000e+00> : vector<32xf32>
    %10 = vector.multi_reduction <add>, %9, %cst_3 [1] : vector<32x128xf32> to vector<32xf32>
    %11 = vector.shape_cast %10 : vector<32xf32> to vector<32x1xf32>
    %cst_4 = arith.constant 1.562500e-02 : f32
    %12 = vector.broadcast %cst_4 : f32 to vector<32x1xf32>
    %13 = arith.mulf %11, %12 : vector<32x1xf32>
    %14 = arith.mulf %8, %8 : vector<32x1xf32>
    %15 = arith.subf %13, %14 : vector<32x1xf32>
    %16 = vector.broadcast %8 : vector<32x1xf32> to vector<32x128xf32>
    %17 = arith.subf %4, %16 : vector<32x128xf32>
    %cst_5 = arith.constant 9.99999974E-6 : f32
    %18 = vector.broadcast %cst_5 : f32 to vector<32x1xf32>
    %19 = arith.addf %15, %18 : vector<32x1xf32>
    %20 = math.rsqrt %19 : vector<32x1xf32>
    %21 = vector.broadcast %20 : vector<32x1xf32> to vector<32x128xf32>
    %22 = arith.mulf %17, %21 : vector<32x128xf32>
    %c0_6 = arith.constant 0 : index
    %c0_7 = arith.constant 0 : index
    %23 = vector.load %arg6[%c0_6, %c0_7] : memref<1x128xf32, #tpu.memory_space<vmem>>, vector<1x128xf32>
    %24 = vector.broadcast %23 : vector<1x128xf32> to vector<32x128xf32>
    %25 = arith.mulf %22, %24 : vector<32x128xf32>
    %c0_8 = arith.constant 0 : index
    %c0_9 = arith.constant 0 : index
    %26 = vector.load %arg7[%c0_8, %c0_9] : memref<1x128xf32, #tpu.memory_space<vmem>>, vector<1x128xf32>
    %27 = vector.broadcast %26 : vector<1x128xf32> to vector<32x128xf32>
    %28 = arith.addf %25, %27 : vector<32x128xf32>
    %29 = arith.truncf %28 : vector<32x128xf32> to vector<32x128xbf16>
    %c0_10 = arith.constant 0 : index
    %c0_11 = arith.constant 0 : index
    %30 = vector.load %arg9[%c0_10, %c0_11] : memref<32x256xf32, #tpu.memory_space<vmem>>, vector<32x256xf32>
    %c0_12 = arith.constant 0 : index
    %c0_13 = arith.constant 0 : index
    %31 = vector.load %arg4[%c0_12, %c0_13] : memref<128x256xbf16, #tpu.memory_space<vmem>>, vector<128x256xbf16>
    %cst_14 = arith.constant dense<0.000000e+00> : vector<32x256xf32>
    %32 = tpu.matmul %29, %31, %cst_14 {dimension_numbers = #tpu.dot_dimension_numbers<[1], [0], [0], [1], [0, 0, 1, 1], [], []>} : vector<32x128xbf16>, vector<128x256xbf16>, vector<32x256xf32> -> vector<32x256xf32>
    %33 = arith.addf %30, %32 : vector<32x256xf32>
    %c0_15 = arith.constant 0 : index
    %c0_16 = arith.constant 0 : index
    %34 = vector.load %arg9[%c0_15, %c0_16] : memref<32x256xf32, #tpu.memory_space<vmem>>, vector<32x256xf32>
    tpu.vector_store %arg9[%c0_15, %c0_16], %33 {strides = array<i32>} : memref<32x256xf32, #tpu.memory_space<vmem>>, vector<32x256xf32>,
    %c0_i32_17 = arith.constant 0 : i32
    %35 = arith.cmpi eq, %arg2, %c0_i32_17 : i32
    %36 = arith.extui %35 : i1 to i32
    %c0_i32_18 = arith.constant 0 : i32
    %37 = arith.cmpi ne, %36, %c0_i32_18 : i32
    scf.if %37 {
      %c0_19 = arith.constant 0 : index
      %c0_20 = arith.constant 0 : index
      %38 = vector.load %arg9[%c0_19, %c0_20] : memref<32x256xf32, #tpu.memory_space<vmem>>, vector<32x256xf32>
      %c0_21 = arith.constant 0 : index
      %c0_22 = arith.constant 0 : index
      %39 = vector.load %arg5[%c0_21, %c0_22] : memref<1x256xf32, #tpu.memory_space<vmem>>, vector<1x256xf32>
      %40 = vector.broadcast %39 : vector<1x256xf32> to vector<32x256xf32>
      %41 = arith.addf %38, %40 : vector<32x256xf32>
      %42 = arith.truncf %41 : vector<32x256xf32> to vector<32x256xbf16>
      %c0_23 = arith.constant 0 : index
      %c0_24 = arith.constant 0 : index
      %43 = vector.load %arg8[%c0_23, %c0_24] : memref<32x256xbf16, #tpu.memory_space<vmem>>, vector<32x256xbf16>
      tpu.vector_store %arg8[%c0_23, %c0_24], %42 {strides = array<i32>} : memref<32x256xbf16, #tpu.memory_space<vmem>>, vector<32x256xbf16>,
    } else {
    }
    return
  }
  func.func @transform_0(%arg0: i32, %arg1: i32, %arg2: i32) -> (i32, i32) {
    %c0_i32 = arith.constant 0 : i32
    return %arg0, %arg2 : i32, i32
  }
  func.func @transform_1(%arg0: i32, %arg1: i32, %arg2: i32) -> (i32, i32) {
    %c0_i32 = arith.constant 0 : i32
    return %arg2, %arg1 : i32, i32
  }
  func.func @transform_2(%arg0: i32, %arg1: i32, %arg2: i32) -> (i32, i32) {
    %c0_i32 = arith.constant 0 : i32
    %c0_i32_0 = arith.constant 0 : i32
    return %c0_i32, %arg1 : i32, i32
  }
  func.func @transform_3(%arg0: i32, %arg1: i32, %arg2: i32) -> (i32, i32) {
    %c0_i32 = arith.constant 0 : i32
    %c0_i32_0 = arith.constant 0 : i32
    return %c0_i32, %arg2 : i32, i32
  }
  func.func @transform_4(%arg0: i32, %arg1: i32, %arg2: i32) -> (i32, i32) {
    %c0_i32 = arith.constant 0 : i32
    %c0_i32_0 = arith.constant 0 : i32
    return %c0_i32, %arg2 : i32, i32
  }
  func.func @transform_5(%arg0: i32, %arg1: i32, %arg2: i32) -> (i32, i32) {
    %c0_i32 = arith.constant 0 : i32
    return %arg0, %arg1 : i32, i32
  }
}

module attributes {stable_mosaic.version = 11 : i64} {
  func.func @_wattn_kernel(%arg0: i32, %arg1: memref<1x4x16x16xbf16, #tpu.memory_space<vmem>>, %arg2: memref<1x4x16x16xbf16, #tpu.memory_space<vmem>>, %arg3: memref<1x4x16x16xbf16, #tpu.memory_space<vmem>>, %arg4: memref<4x16x16xf32, #tpu.memory_space<vmem>>, %arg5: memref<1x4x16x16xbf16, #tpu.memory_space<vmem>>) attributes {dimension_semantics = [#tpu.dimension_semantics<parallel>], iteration_bounds = array<i64: 2>, scalar_prefetch = 0 : i64, scratch_operands = 0 : i64, tpu.core_type = #tpu.core_type<tc>, window_params = [{transform_indices = @transform_0, window_bounds = array<i64: 1, 4, 16, 16>}, {transform_indices = @transform_1, window_bounds = array<i64: 1, 4, 16, 16>}, {transform_indices = @transform_2, window_bounds = array<i64: 1, 4, 16, 16>}, {pipeline_mode = #tpu.pipeline_mode<synchronous>, transform_indices = @transform_3, window_bounds = array<i64: 4, 16, 16>}, {transform_indices = @transform_4, window_bounds = array<i64: 1, 4, 16, 16>}]} {
    %c0 = arith.constant 0 : index
    %c0_0 = arith.constant 0 : index
    %c0_1 = arith.constant 0 : index
    %c0_2 = arith.constant 0 : index
    %0 = vector.load %arg1[%c0, %c0_0, %c0_1, %c0_2] : memref<1x4x16x16xbf16, #tpu.memory_space<vmem>>, vector<1x4x16x16xbf16>
    %1 = vector.shape_cast %0 : vector<1x4x16x16xbf16> to vector<4x16x16xbf16>
    %c0_3 = arith.constant 0 : index
    %c0_4 = arith.constant 0 : index
    %c0_5 = arith.constant 0 : index
    %c0_6 = arith.constant 0 : index
    %2 = vector.load %arg2[%c0_3, %c0_4, %c0_5, %c0_6] : memref<1x4x16x16xbf16, #tpu.memory_space<vmem>>, vector<1x4x16x16xbf16>
    %3 = vector.shape_cast %2 : vector<1x4x16x16xbf16> to vector<4x16x16xbf16>
    %cst = arith.constant dense<0.000000e+00> : vector<4x16x16xf32>
    %4 = tpu.matmul %1, %3, %cst {dimension_numbers = #tpu.dot_dimension_numbers<[2], [2], [1], [1], [0, 0, 0, 1, 1, 1], [0], [0]>} : vector<4x16x16xbf16>, vector<4x16x16xbf16>, vector<4x16x16xf32> -> vector<4x16x16xf32>
    %cst_7 = arith.constant 2.500000e-01 : f32
    %5 = vector.broadcast %cst_7 : f32 to vector<4x16x16xf32>
    %6 = arith.mulf %4, %5 : vector<4x16x16xf32>
    %7 = vector.shape_cast %6 : vector<4x16x16xf32> to vector<1x4x16x16xf32>
    %c0_8 = arith.constant 0 : index
    %c0_9 = arith.constant 0 : index
    %c0_10 = arith.constant 0 : index
    %8 = vector.load %arg4[%c0_8, %c0_9, %c0_10] : memref<4x16x16xf32, #tpu.memory_space<vmem>>, vector<4x16x16xf32>
    %9 = vector.shape_cast %8 : vector<4x16x16xf32> to vector<1x4x16x16xf32>
    %10 = arith.addf %7, %9 : vector<1x4x16x16xf32>
    %cst_11 = arith.constant dense<0xFF800000> : vector<1x4x16xf32>
    %11 = vector.multi_reduction <maximumf>, %10, %cst_11 [3] : vector<1x4x16x16xf32> to vector<1x4x16xf32>
    %12 = vector.shape_cast %11 : vector<1x4x16xf32> to vector<1x4x16x1xf32>
    %13 = vector.broadcast %12 : vector<1x4x16x1xf32> to vector<1x4x16x16xf32>
    %14 = arith.subf %10, %13 : vector<1x4x16x16xf32>
    %15 = math.exp %14 : vector<1x4x16x16xf32>
    %cst_12 = arith.constant dense<0.000000e+00> : vector<1x4x16xf32>
    %16 = vector.multi_reduction <add>, %15, %cst_12 [3] : vector<1x4x16x16xf32> to vector<1x4x16xf32>
    %17 = vector.shape_cast %16 : vector<1x4x16xf32> to vector<1x4x16x1xf32>
    %18 = tpu.reciprocal %17 {approx = true} : vector<1x4x16x1xf32> -> vector<1x4x16x1xf32>
    %19 = vector.broadcast %18 : vector<1x4x16x1xf32> to vector<1x4x16x16xf32>
    %20 = arith.mulf %15, %19 : vector<1x4x16x16xf32>
    %21 = vector.shape_cast %20 : vector<1x4x16x16xf32> to vector<4x16x16xf32>
    %22 = arith.truncf %21 : vector<4x16x16xf32> to vector<4x16x16xbf16>
    %c0_13 = arith.constant 0 : index
    %c0_14 = arith.constant 0 : index
    %c0_15 = arith.constant 0 : index
    %c0_16 = arith.constant 0 : index
    %23 = vector.load %arg3[%c0_13, %c0_14, %c0_15, %c0_16] : memref<1x4x16x16xbf16, #tpu.memory_space<vmem>>, vector<1x4x16x16xbf16>
    %24 = vector.shape_cast %23 : vector<1x4x16x16xbf16> to vector<4x16x16xbf16>
    %cst_17 = arith.constant dense<0.000000e+00> : vector<4x16x16xf32>
    %25 = tpu.matmul %22, %24, %cst_17 {dimension_numbers = #tpu.dot_dimension_numbers<[2], [1], [1], [2], [0, 0, 0, 1, 1, 2], [0], [0]>} : vector<4x16x16xbf16>, vector<4x16x16xbf16>, vector<4x16x16xf32> -> vector<4x16x16xf32>
    %26 = vector.shape_cast %25 : vector<4x16x16xf32> to vector<1x4x16x16xf32>
    %27 = arith.truncf %26 : vector<1x4x16x16xf32> to vector<1x4x16x16xbf16>
    %c0_18 = arith.constant 0 : index
    %c0_19 = arith.constant 0 : index
    %c0_20 = arith.constant 0 : index
    %c0_21 = arith.constant 0 : index
    %28 = vector.load %arg5[%c0_18, %c0_19, %c0_20, %c0_21] : memref<1x4x16x16xbf16, #tpu.memory_space<vmem>>, vector<1x4x16x16xbf16>
    tpu.vector_store %arg5[%c0_18, %c0_19, %c0_20, %c0_21], %27 {strides = array<i32>} : memref<1x4x16x16xbf16, #tpu.memory_space<vmem>>, vector<1x4x16x16xbf16>,
    return
  }
  func.func @transform_0(%arg0: i32) -> (i32, i32, i32, i32) {
    %c0_i32 = arith.constant 0 : i32
    %c0_i32_0 = arith.constant 0 : i32
    %c0_i32_1 = arith.constant 0 : i32
    %c0_i32_2 = arith.constant 0 : i32
    return %arg0, %c0_i32, %c0_i32_0, %c0_i32_1 : i32, i32, i32, i32
  }
  func.func @transform_1(%arg0: i32) -> (i32, i32, i32, i32) {
    %c0_i32 = arith.constant 0 : i32
    %c0_i32_0 = arith.constant 0 : i32
    %c0_i32_1 = arith.constant 0 : i32
    %c0_i32_2 = arith.constant 0 : i32
    return %arg0, %c0_i32, %c0_i32_0, %c0_i32_1 : i32, i32, i32, i32
  }
  func.func @transform_2(%arg0: i32) -> (i32, i32, i32, i32) {
    %c0_i32 = arith.constant 0 : i32
    %c0_i32_0 = arith.constant 0 : i32
    %c0_i32_1 = arith.constant 0 : i32
    %c0_i32_2 = arith.constant 0 : i32
    return %arg0, %c0_i32, %c0_i32_0, %c0_i32_1 : i32, i32, i32, i32
  }
  func.func @transform_3(%arg0: i32) -> (i32, i32, i32) {
    %c0_i32 = arith.constant 0 : i32
    %c0_i32_0 = arith.constant 0 : i32
    %c0_i32_1 = arith.constant 0 : i32
    %c0_i32_2 = arith.constant 0 : i32
    return %c0_i32, %c0_i32_0, %c0_i32_1 : i32, i32, i32
  }
  func.func @transform_4(%arg0: i32) -> (i32, i32, i32, i32) {
    %c0_i32 = arith.constant 0 : i32
    %c0_i32_0 = arith.constant 0 : i32
    %c0_i32_1 = arith.constant 0 : i32
    %c0_i32_2 = arith.constant 0 : i32
    return %arg0, %c0_i32, %c0_i32_0, %c0_i32_1 : i32, i32, i32, i32
  }
}

module attributes {stable_mosaic.version = 11 : i64} {
  func.func @_linear_kernel(%arg0: i32, %arg1: i32, %arg2: i32, %arg3: memref<32x128xbf16, #tpu.memory_space<vmem>>, %arg4: memref<128x128xbf16, #tpu.memory_space<vmem>>, %arg5: memref<1x128xf32, #tpu.memory_space<vmem>>, %arg6: memref<32x128xbf16, #tpu.memory_space<vmem>>, %arg7: memref<32x128xf32, #tpu.memory_space<vmem>>) attributes {dimension_semantics = [#tpu.dimension_semantics<parallel>, #tpu.dimension_semantics<parallel>, #tpu.dimension_semantics<arbitrary>], iteration_bounds = array<i64: 1, 1, 1>, scalar_prefetch = 0 : i64, scratch_operands = 1 : i64, tpu.core_type = #tpu.core_type<tc>, window_params = [{transform_indices = @transform_0, window_bounds = array<i64: 32, 128>}, {transform_indices = @transform_1, window_bounds = array<i64: 128, 128>}, {transform_indices = @transform_2, window_bounds = array<i64: 1, 128>}, {transform_indices = @transform_3, window_bounds = array<i64: 32, 128>}]} {
    %c0_i32 = arith.constant 0 : i32
    %0 = arith.cmpi eq, %arg2, %c0_i32 : i32
    %1 = arith.extui %0 : i1 to i32
    %c0_i32_0 = arith.constant 0 : i32
    %2 = arith.cmpi ne, %1, %c0_i32_0 : i32
    scf.if %2 {
      %cst_10 = arith.constant 0.000000e+00 : f32
      %12 = vector.broadcast %cst_10 : f32 to vector<32x128xf32>
      %c0_11 = arith.constant 0 : index
      %c0_12 = arith.constant 0 : index
      %13 = vector.load %arg7[%c0_11, %c0_12] : memref<32x128xf32, #tpu.memory_space<vmem>>, vector<32x128xf32>
      tpu.vector_store %arg7[%c0_11, %c0_12], %12 {strides = array<i32>} : memref<32x128xf32, #tpu.memory_space<vmem>>, vector<32x128xf32>,
    } else {
    }
    %c0 = arith.constant 0 : index
    %c0_1 = arith.constant 0 : index
    %3 = vector.load %arg3[%c0, %c0_1] : memref<32x128xbf16, #tpu.memory_space<vmem>>, vector<32x128xbf16>
    %c0_2 = arith.constant 0 : index
    %c0_3 = arith.constant 0 : index
    %4 = vector.load %arg7[%c0_2, %c0_3] : memref<32x128xf32, #tpu.memory_space<vmem>>, vector<32x128xf32>
    %c0_4 = arith.constant 0 : index
    %c0_5 = arith.constant 0 : index
    %5 = vector.load %arg4[%c0_4, %c0_5] : memref<128x128xbf16, #tpu.memory_space<vmem>>, vector<128x128xbf16>
    %cst = arith.constant dense<0.000000e+00> : vector<32x128xf32>
    %6 = tpu.matmul %3, %5, %cst {dimension_numbers = #tpu.dot_dimension_numbers<[1], [0], [0], [1], [0, 0, 1, 1], [], []>} : vector<32x128xbf16>, vector<128x128xbf16>, vector<32x128xf32> -> vector<32x128xf32>
    %7 = arith.addf %4, %6 : vector<32x128xf32>
    %c0_6 = arith.constant 0 : index
    %c0_7 = arith.constant 0 : index
    %8 = vector.load %arg7[%c0_6, %c0_7] : memref<32x128xf32, #tpu.memory_space<vmem>>, vector<32x128xf32>
    tpu.vector_store %arg7[%c0_6, %c0_7], %7 {strides = array<i32>} : memref<32x128xf32, #tpu.memory_space<vmem>>, vector<32x128xf32>,
    %c0_i32_8 = arith.constant 0 : i32
    %9 = arith.cmpi eq, %arg2, %c0_i32_8 : i32
    %10 = arith.extui %9 : i1 to i32
    %c0_i32_9 = arith.constant 0 : i32
    %11 = arith.cmpi ne, %10, %c0_i32_9 : i32
    scf.if %11 {
      %c0_10 = arith.constant 0 : index
      %c0_11 = arith.constant 0 : index
      %12 = vector.load %arg7[%c0_10, %c0_11] : memref<32x128xf32, #tpu.memory_space<vmem>>, vector<32x128xf32>
      %c0_12 = arith.constant 0 : index
      %c0_13 = arith.constant 0 : index
      %13 = vector.load %arg5[%c0_12, %c0_13] : memref<1x128xf32, #tpu.memory_space<vmem>>, vector<1x128xf32>
      %14 = vector.broadcast %13 : vector<1x128xf32> to vector<32x128xf32>
      %15 = arith.addf %12, %14 : vector<32x128xf32>
      %16 = arith.truncf %15 : vector<32x128xf32> to vector<32x128xbf16>
      %c0_14 = arith.constant 0 : index
      %c0_15 = arith.constant 0 : index
      %17 = vector.load %arg6[%c0_14, %c0_15] : memref<32x128xbf16, #tpu.memory_space<vmem>>, vector<32x128xbf16>
      tpu.vector_store %arg6[%c0_14, %c0_15], %16 {strides = array<i32>} : memref<32x128xbf16, #tpu.memory_space<vmem>>, vector<32x128xbf16>,
    } else {
    }
    return
  }
  func.func @transform_0(%arg0: i32, %arg1: i32, %arg2: i32) -> (i32, i32) {
    %c0_i32 = arith.constant 0 : i32
    return %arg0, %arg2 : i32, i32
  }
  func.func @transform_1(%arg0: i32, %arg1: i32, %arg2: i32) -> (i32, i32) {
    %c0_i32 = arith.constant 0 : i32
    return %arg2, %arg1 : i32, i32
  }
  func.func @transform_2(%arg0: i32, %arg1: i32, %arg2: i32) -> (i32, i32) {
    %c0_i32 = arith.constant 0 : i32
    %c0_i32_0 = arith.constant 0 : i32
    return %c0_i32, %arg1 : i32, i32
  }
  func.func @transform_3(%arg0: i32, %arg1: i32, %arg2: i32) -> (i32, i32) {
    %c0_i32 = arith.constant 0 : i32
    return %arg0, %arg1 : i32, i32
  }
}

module attributes {stable_mosaic.version = 11 : i64} {
  func.func @_linear_kernel(%arg0: i32, %arg1: i32, %arg2: i32, %arg3: memref<32x128xbf16, #tpu.memory_space<vmem>>, %arg4: memref<128x256xbf16, #tpu.memory_space<vmem>>, %arg5: memref<1x256xf32, #tpu.memory_space<vmem>>, %arg6: memref<1x128xf32, #tpu.memory_space<vmem>>, %arg7: memref<1x128xf32, #tpu.memory_space<vmem>>, %arg8: memref<32x256xbf16, #tpu.memory_space<vmem>>, %arg9: memref<32x256xf32, #tpu.memory_space<vmem>>) attributes {dimension_semantics = [#tpu.dimension_semantics<parallel>, #tpu.dimension_semantics<parallel>, #tpu.dimension_semantics<arbitrary>], iteration_bounds = array<i64: 1, 1, 1>, scalar_prefetch = 0 : i64, scratch_operands = 1 : i64, tpu.core_type = #tpu.core_type<tc>, window_params = [{transform_indices = @transform_0, window_bounds = array<i64: 32, 128>}, {transform_indices = @transform_1, window_bounds = array<i64: 128, 256>}, {transform_indices = @transform_2, window_bounds = array<i64: 1, 256>}, {transform_indices = @transform_3, window_bounds = array<i64: 1, 128>}, {transform_indices = @transform_4, window_bounds = array<i64: 1, 128>}, {transform_indices = @transform_5, window_bounds = array<i64: 32, 256>}]} {
    %c0_i32 = arith.constant 0 : i32
    %0 = arith.cmpi eq, %arg2, %c0_i32 : i32
    %1 = arith.extui %0 : i1 to i32
    %c0_i32_0 = arith.constant 0 : i32
    %2 = arith.cmpi ne, %1, %c0_i32_0 : i32
    scf.if %2 {
      %cst_19 = arith.constant 0.000000e+00 : f32
      %38 = vector.broadcast %cst_19 : f32 to vector<32x256xf32>
      %c0_20 = arith.constant 0 : index
      %c0_21 = arith.constant 0 : index
      %39 = vector.load %arg9[%c0_20, %c0_21] : memref<32x256xf32, #tpu.memory_space<vmem>>, vector<32x256xf32>
      tpu.vector_store %arg9[%c0_20, %c0_21], %38 {strides = array<i32>} : memref<32x256xf32, #tpu.memory_space<vmem>>, vector<32x256xf32>,
    } else {
    }
    %c0 = arith.constant 0 : index
    %c0_1 = arith.constant 0 : index
    %3 = vector.load %arg3[%c0, %c0_1] : memref<32x128xbf16, #tpu.memory_space<vmem>>, vector<32x128xbf16>
    %4 = arith.extf %3 : vector<32x128xbf16> to vector<32x128xf32>
    %cst = arith.constant dense<0.000000e+00> : vector<32xf32>
    %5 = vector.multi_reduction <add>, %4, %cst [1] : vector<32x128xf32> to vector<32xf32>
    %6 = vector.shape_cast %5 : vector<32xf32> to vector<32x1xf32>
    %cst_2 = arith.constant 1.562500e-02 : f32
    %7 = vector.broadcast %cst_2 : f32 to vector<32x1xf32>
    %8 = arith.mulf %6, %7 : vector<32x1xf32>
    %9 = arith.mulf %4, %4 : vector<32x128xf32>
    %cst_3 = arith.constant dense<0.000000e+00> : vector<32xf32>
    %10 = vector.multi_reduction <add>, %9, %cst_3 [1] : vector<32x128xf32> to vector<32xf32>
    %11 = vector.shape_cast %10 : vector<32xf32> to vector<32x1xf32>
    %cst_4 = arith.constant 1.562500e-02 : f32
    %12 = vector.broadcast %cst_4 : f32 to vector<32x1xf32>
    %13 = arith.mulf %11, %12 : vector<32x1xf32>
    %14 = arith.mulf %8, %8 : vector<32x1xf32>
    %15 = arith.subf %13, %14 : vector<32x1xf32>
    %16 = vector.broadcast %8 : vector<32x1xf32> to vector<32x128xf32>
    %17 = arith.subf %4, %16 : vector<32x128xf32>
    %cst_5 = arith.constant 9.99999974E-6 : f32
    %18 = vector.broadcast %cst_5 : f32 to vector<32x1xf32>
    %19 = arith.addf %15, %18 : vector<32x1xf32>
    %20 = math.rsqrt %19 : vector<32x1xf32>
    %21 = vector.broadcast %20 : vector<32x1xf32> to vector<32x128xf32>
    %22 = arith.mulf %17, %21 : vector<32x128xf32>
    %c0_6 = arith.constant 0 : index
    %c0_7 = arith.constant 0 : index
    %23 = vector.load %arg6[%c0_6, %c0_7] : memref<1x128xf32, #tpu.memory_space<vmem>>, vector<1x128xf32>
    %24 = vector.broadcast %23 : vector<1x128xf32> to vector<32x128xf32>
    %25 = arith.mulf %22, %24 : vector<32x128xf32>
    %c0_8 = arith.constant 0 : index
    %c0_9 = arith.constant 0 : index
    %26 = vector.load %arg7[%c0_8, %c0_9] : memref<1x128xf32, #tpu.memory_space<vmem>>, vector<1x128xf32>
    %27 = vector.broadcast %26 : vector<1x128xf32> to vector<32x128xf32>
    %28 = arith.addf %25, %27 : vector<32x128xf32>
    %29 = arith.truncf %28 : vector<32x128xf32> to vector<32x128xbf16>
    %c0_10 = arith.constant 0 : index
    %c0_11 = arith.constant 0 : index
    %30 = vector.load %arg9[%c0_10, %c0_11] : memref<32x256xf32, #tpu.memory_space<vmem>>, vector<32x256xf32>
    %c0_12 = arith.constant 0 : index
    %c0_13 = arith.constant 0 : index
    %31 = vector.load %arg4[%c0_12, %c0_13] : memref<128x256xbf16, #tpu.memory_space<vmem>>, vector<128x256xbf16>
    %cst_14 = arith.constant dense<0.000000e+00> : vector<32x256xf32>
    %32 = tpu.matmul %29, %31, %cst_14 {dimension_numbers = #tpu.dot_dimension_numbers<[1], [0], [0], [1], [0, 0, 1, 1], [], []>} : vector<32x128xbf16>, vector<128x256xbf16>, vector<32x256xf32> -> vector<32x256xf32>
    %33 = arith.addf %30, %32 : vector<32x256xf32>
    %c0_15 = arith.constant 0 : index
    %c0_16 = arith.constant 0 : index
    %34 = vector.load %arg9[%c0_15, %c0_16] : memref<32x256xf32, #tpu.memory_space<vmem>>, vector<32x256xf32>
    tpu.vector_store %arg9[%c0_15, %c0_16], %33 {strides = array<i32>} : memref<32x256xf32, #tpu.memory_space<vmem>>, vector<32x256xf32>,
    %c0_i32_17 = arith.constant 0 : i32
    %35 = arith.cmpi eq, %arg2, %c0_i32_17 : i32
    %36 = arith.extui %35 : i1 to i32
    %c0_i32_18 = arith.constant 0 : i32
    %37 = arith.cmpi ne, %36, %c0_i32_18 : i32
    scf.if %37 {
      %c0_19 = arith.constant 0 : index
      %c0_20 = arith.constant 0 : index
      %38 = vector.load %arg9[%c0_19, %c0_20] : memref<32x256xf32, #tpu.memory_space<vmem>>, vector<32x256xf32>
      %c0_21 = arith.constant 0 : index
      %c0_22 = arith.constant 0 : index
      %39 = vector.load %arg5[%c0_21, %c0_22] : memref<1x256xf32, #tpu.memory_space<vmem>>, vector<1x256xf32>
      %40 = vector.broadcast %39 : vector<1x256xf32> to vector<32x256xf32>
      %41 = arith.addf %38, %40 : vector<32x256xf32>
      %cst_23 = arith.constant 5.000000e-01 : f32
      %42 = vector.broadcast %cst_23 : f32 to vector<32x256xf32>
      %43 = arith.mulf %42, %41 : vector<32x256xf32>
      %cst_24 = arith.constant 0.707106769 : f32
      %44 = vector.broadcast %cst_24 : f32 to vector<32x256xf32>
      %45 = arith.mulf %41, %44 : vector<32x256xf32>
      %46 = math.erf %45 : vector<32x256xf32>
      %cst_25 = arith.constant 1.000000e+00 : f32
      %47 = vector.broadcast %cst_25 : f32 to vector<32x256xf32>
      %48 = arith.addf %47, %46 : vector<32x256xf32>
      %49 = arith.mulf %43, %48 : vector<32x256xf32>
      %50 = arith.truncf %49 : vector<32x256xf32> to vector<32x256xbf16>
      %c0_26 = arith.constant 0 : index
      %c0_27 = arith.constant 0 : index
      %51 = vector.load %arg8[%c0_26, %c0_27] : memref<32x256xbf16, #tpu.memory_space<vmem>>, vector<32x256xbf16>
      tpu.vector_store %arg8[%c0_26, %c0_27], %50 {strides = array<i32>} : memref<32x256xbf16, #tpu.memory_space<vmem>>, vector<32x256xbf16>,
    } else {
    }
    return
  }
  func.func @transform_0(%arg0: i32, %arg1: i32, %arg2: i32) -> (i32, i32) {
    %c0_i32 = arith.constant 0 : i32
    return %arg0, %arg2 : i32, i32
  }
  func.func @transform_1(%arg0: i32, %arg1: i32, %arg2: i32) -> (i32, i32) {
    %c0_i32 = arith.constant 0 : i32
    return %arg2, %arg1 : i32, i32
  }
  func.func @transform_2(%arg0: i32, %arg1: i32, %arg2: i32) -> (i32, i32) {
    %c0_i32 = arith.constant 0 : i32
    %c0_i32_0 = arith.constant 0 : i32
    return %c0_i32, %arg1 : i32, i32
  }
  func.func @transform_3(%arg0: i32, %arg1: i32, %arg2: i32) -> (i32, i32) {
    %c0_i32 = arith.constant 0 : i32
    %c0_i32_0 = arith.constant 0 : i32
    return %c0_i32, %arg2 : i32, i32
  }
  func.func @transform_4(%arg0: i32, %arg1: i32, %arg2: i32) -> (i32, i32) {
    %c0_i32 = arith.constant 0 : i32
    %c0_i32_0 = arith.constant 0 : i32
    return %c0_i32, %arg2 : i32, i32
  }
  func.func @transform_5(%arg0: i32, %arg1: i32, %arg2: i32) -> (i32, i32) {
    %c0_i32 = arith.constant 0 : i32
    return %arg0, %arg1 : i32, i32
  }
}

module attributes {stable_mosaic.version = 11 : i64} {
  func.func @_linear_kernel(%arg0: i32, %arg1: i32, %arg2: i32, %arg3: memref<32x256xbf16, #tpu.memory_space<vmem>>, %arg4: memref<256x128xbf16, #tpu.memory_space<vmem>>, %arg5: memref<1x128xf32, #tpu.memory_space<vmem>>, %arg6: memref<32x128xbf16, #tpu.memory_space<vmem>>, %arg7: memref<32x128xbf16, #tpu.memory_space<vmem>>, %arg8: memref<32x128xf32, #tpu.memory_space<vmem>>) attributes {dimension_semantics = [#tpu.dimension_semantics<parallel>, #tpu.dimension_semantics<parallel>, #tpu.dimension_semantics<arbitrary>], iteration_bounds = array<i64: 1, 1, 1>, scalar_prefetch = 0 : i64, scratch_operands = 1 : i64, tpu.core_type = #tpu.core_type<tc>, window_params = [{transform_indices = @transform_0, window_bounds = array<i64: 32, 256>}, {transform_indices = @transform_1, window_bounds = array<i64: 256, 128>}, {transform_indices = @transform_2, window_bounds = array<i64: 1, 128>}, {transform_indices = @transform_3, window_bounds = array<i64: 32, 128>}, {transform_indices = @transform_4, window_bounds = array<i64: 32, 128>}]} {
    %c0_i32 = arith.constant 0 : i32
    %0 = arith.cmpi eq, %arg2, %c0_i32 : i32
    %1 = arith.extui %0 : i1 to i32
    %c0_i32_0 = arith.constant 0 : i32
    %2 = arith.cmpi ne, %1, %c0_i32_0 : i32
    scf.if %2 {
      %cst_10 = arith.constant 0.000000e+00 : f32
      %12 = vector.broadcast %cst_10 : f32 to vector<32x128xf32>
      %c0_11 = arith.constant 0 : index
      %c0_12 = arith.constant 0 : index
      %13 = vector.load %arg8[%c0_11, %c0_12] : memref<32x128xf32, #tpu.memory_space<vmem>>, vector<32x128xf32>
      tpu.vector_store %arg8[%c0_11, %c0_12], %12 {strides = array<i32>} : memref<32x128xf32, #tpu.memory_space<vmem>>, vector<32x128xf32>,
    } else {
    }
    %c0 = arith.constant 0 : index
    %c0_1 = arith.constant 0 : index
    %3 = vector.load %arg3[%c0, %c0_1] : memref<32x256xbf16, #tpu.memory_space<vmem>>, vector<32x256xbf16>
    %c0_2 = arith.constant 0 : index
    %c0_3 = arith.constant 0 : index
    %4 = vector.load %arg8[%c0_2, %c0_3] : memref<32x128xf32, #tpu.memory_space<vmem>>, vector<32x128xf32>
    %c0_4 = arith.constant 0 : index
    %c0_5 = arith.constant 0 : index
    %5 = vector.load %arg4[%c0_4, %c0_5] : memref<256x128xbf16, #tpu.memory_space<vmem>>, vector<256x128xbf16>
    %cst = arith.constant dense<0.000000e+00> : vector<32x128xf32>
    %6 = tpu.matmul %3, %5, %cst {dimension_numbers = #tpu.dot_dimension_numbers<[1], [0], [0], [1], [0, 0, 1, 1], [], []>} : vector<32x256xbf16>, vector<256x128xbf16>, vector<32x128xf32> -> vector<32x128xf32>
    %7 = arith.addf %4, %6 : vector<32x128xf32>
    %c0_6 = arith.constant 0 : index
    %c0_7 = arith.constant 0 : index
    %8 = vector.load %arg8[%c0_6, %c0_7] : memref<32x128xf32, #tpu.memory_space<vmem>>, vector<32x128xf32>
    tpu.vector_store %arg8[%c0_6, %c0_7], %7 {strides = array<i32>} : memref<32x128xf32, #tpu.memory_space<vmem>>, vector<32x128xf32>,
    %c0_i32_8 = arith.constant 0 : i32
    %9 = arith.cmpi eq, %arg2, %c0_i32_8 : i32
    %10 = arith.extui %9 : i1 to i32
    %c0_i32_9 = arith.constant 0 : i32
    %11 = arith.cmpi ne, %10, %c0_i32_9 : i32
    scf.if %11 {
      %c0_10 = arith.constant 0 : index
      %c0_11 = arith.constant 0 : index
      %12 = vector.load %arg8[%c0_10, %c0_11] : memref<32x128xf32, #tpu.memory_space<vmem>>, vector<32x128xf32>
      %c0_12 = arith.constant 0 : index
      %c0_13 = arith.constant 0 : index
      %13 = vector.load %arg5[%c0_12, %c0_13] : memref<1x128xf32, #tpu.memory_space<vmem>>, vector<1x128xf32>
      %14 = vector.broadcast %13 : vector<1x128xf32> to vector<32x128xf32>
      %15 = arith.addf %12, %14 : vector<32x128xf32>
      %c0_14 = arith.constant 0 : index
      %c0_15 = arith.constant 0 : index
      %16 = vector.load %arg6[%c0_14, %c0_15] : memref<32x128xbf16, #tpu.memory_space<vmem>>, vector<32x128xbf16>
      %17 = arith.extf %16 : vector<32x128xbf16> to vector<32x128xf32>
      %18 = arith.addf %15, %17 : vector<32x128xf32>
      %19 = arith.truncf %18 : vector<32x128xf32> to vector<32x128xbf16>
      %c0_16 = arith.constant 0 : index
      %c0_17 = arith.constant 0 : index
      %20 = vector.load %arg7[%c0_16, %c0_17] : memref<32x128xbf16, #tpu.memory_space<vmem>>, vector<32x128xbf16>
      tpu.vector_store %arg7[%c0_16, %c0_17], %19 {strides = array<i32>} : memref<32x128xbf16, #tpu.memory_space<vmem>>, vector<32x128xbf16>,
    } else {
    }
    return
  }
  func.func @transform_0(%arg0: i32, %arg1: i32, %arg2: i32) -> (i32, i32) {
    %c0_i32 = arith.constant 0 : i32
    return %arg0, %arg2 : i32, i32
  }
  func.func @transform_1(%arg0: i32, %arg1: i32, %arg2: i32) -> (i32, i32) {
    %c0_i32 = arith.constant 0 : i32
    return %arg2, %arg1 : i32, i32
  }
  func.func @transform_2(%arg0: i32, %arg1: i32, %arg2: i32) -> (i32, i32) {
    %c0_i32 = arith.constant 0 : i32
    %c0_i32_0 = arith.constant 0 : i32
    return %c0_i32, %arg1 : i32, i32
  }
  func.func @transform_3(%arg0: i32, %arg1: i32, %arg2: i32) -> (i32, i32) {
    %c0_i32 = arith.constant 0 : i32
    return %arg0, %arg1 : i32, i32
  }
  func.func @transform_4(%arg0: i32, %arg1: i32, %arg2: i32) -> (i32, i32) {
    %c0_i32 = arith.constant 0 : i32
    return %arg0, %arg1 : i32, i32
  }
}

module attributes {stable_mosaic.version = 11 : i64} {
  func.func @_layernorm_kernel(%arg0: i32, %arg1: memref<32x128xbf16, #tpu.memory_space<vmem>>, %arg2: memref<1x128xf32, #tpu.memory_space<vmem>>, %arg3: memref<1x128xf32, #tpu.memory_space<vmem>>, %arg4: memref<32x128xbf16, #tpu.memory_space<vmem>>) attributes {dimension_semantics = [#tpu.dimension_semantics<parallel>], iteration_bounds = array<i64: 1>, scalar_prefetch = 0 : i64, scratch_operands = 0 : i64, tpu.core_type = #tpu.core_type<tc>, window_params = [{transform_indices = @transform_0, window_bounds = array<i64: 32, 128>}, {pipeline_mode = #tpu.pipeline_mode<synchronous>, transform_indices = @transform_1, window_bounds = array<i64: 1, 128>}, {pipeline_mode = #tpu.pipeline_mode<synchronous>, transform_indices = @transform_2, window_bounds = array<i64: 1, 128>}, {transform_indices = @transform_3, window_bounds = array<i64: 32, 128>}]} {
    %c0 = arith.constant 0 : index
    %c0_0 = arith.constant 0 : index
    %0 = vector.load %arg1[%c0, %c0_0] : memref<32x128xbf16, #tpu.memory_space<vmem>>, vector<32x128xbf16>
    %1 = arith.extf %0 : vector<32x128xbf16> to vector<32x128xf32>
    %cst = arith.constant dense<0.000000e+00> : vector<32xf32>
    %2 = vector.multi_reduction <add>, %1, %cst [1] : vector<32x128xf32> to vector<32xf32>
    %3 = vector.shape_cast %2 : vector<32xf32> to vector<32x1xf32>
    %cst_1 = arith.constant 1.562500e-02 : f32
    %4 = vector.broadcast %cst_1 : f32 to vector<32x1xf32>
    %5 = arith.mulf %3, %4 : vector<32x1xf32>
    %6 = arith.mulf %1, %1 : vector<32x128xf32>
    %cst_2 = arith.constant dense<0.000000e+00> : vector<32xf32>
    %7 = vector.multi_reduction <add>, %6, %cst_2 [1] : vector<32x128xf32> to vector<32xf32>
    %8 = vector.shape_cast %7 : vector<32xf32> to vector<32x1xf32>
    %cst_3 = arith.constant 1.562500e-02 : f32
    %9 = vector.broadcast %cst_3 : f32 to vector<32x1xf32>
    %10 = arith.mulf %8, %9 : vector<32x1xf32>
    %11 = arith.mulf %5, %5 : vector<32x1xf32>
    %12 = arith.subf %10, %11 : vector<32x1xf32>
    %13 = vector.broadcast %5 : vector<32x1xf32> to vector<32x128xf32>
    %14 = arith.subf %1, %13 : vector<32x128xf32>
    %cst_4 = arith.constant 9.99999974E-6 : f32
    %15 = vector.broadcast %cst_4 : f32 to vector<32x1xf32>
    %16 = arith.addf %12, %15 : vector<32x1xf32>
    %17 = math.rsqrt %16 : vector<32x1xf32>
    %18 = vector.broadcast %17 : vector<32x1xf32> to vector<32x128xf32>
    %19 = arith.mulf %14, %18 : vector<32x128xf32>
    %c0_5 = arith.constant 0 : index
    %c0_6 = arith.constant 0 : index
    %20 = vector.load %arg2[%c0_5, %c0_6] : memref<1x128xf32, #tpu.memory_space<vmem>>, vector<1x128xf32>
    %21 = vector.broadcast %20 : vector<1x128xf32> to vector<32x128xf32>
    %22 = arith.mulf %19, %21 : vector<32x128xf32>
    %c0_7 = arith.constant 0 : index
    %c0_8 = arith.constant 0 : index
    %23 = vector.load %arg3[%c0_7, %c0_8] : memref<1x128xf32, #tpu.memory_space<vmem>>, vector<1x128xf32>
    %24 = vector.broadcast %23 : vector<1x128xf32> to vector<32x128xf32>
    %25 = arith.addf %22, %24 : vector<32x128xf32>
    %26 = arith.truncf %25 : vector<32x128xf32> to vector<32x128xbf16>
    %c0_9 = arith.constant 0 : index
    %c0_10 = arith.constant 0 : index
    %27 = vector.load %arg4[%c0_9, %c0_10] : memref<32x128xbf16, #tpu.memory_space<vmem>>, vector<32x128xbf16>
    tpu.vector_store %arg4[%c0_9, %c0_10], %26 {strides = array<i32>} : memref<32x128xbf16, #tpu.memory_space<vmem>>, vector<32x128xbf16>,
    return
  }
  func.func @transform_0(%arg0: i32) -> (i32, i32) {
    %c0_i32 = arith.constant 0 : i32
    %c0_i32_0 = arith.constant 0 : i32
    return %arg0, %c0_i32 : i32, i32
  }
  func.func @transform_1(%arg0: i32) -> (i32, i32) {
    %c0_i32 = arith.constant 0 : i32
    %c0_i32_0 = arith.constant 0 : i32
    %c0_i32_1 = arith.constant 0 : i32
    return %c0_i32, %c0_i32_0 : i32, i32
  }
  func.func @transform_2(%arg0: i32) -> (i32, i32) {
    %c0_i32 = arith.constant 0 : i32
    %c0_i32_0 = arith.constant 0 : i32
    %c0_i32_1 = arith.constant 0 : i32
    return %c0_i32, %c0_i32_0 : i32, i32
  }
  func.func @transform_3(%arg0: i32) -> (i32, i32) {
    %c0_i32 = arith.constant 0 : i32
    %c0_i32_0 = arith.constant 0 : i32
    return %arg0, %c0_i32 : i32, i32
  }
}

module attributes {stable_mosaic.version = 11 : i64} {
  func.func @_linear_kernel(%arg0: i32, %arg1: i32, %arg2: i32, %arg3: memref<8x128xbf16, #tpu.memory_space<vmem>>, %arg4: memref<128x128xbf16, #tpu.memory_space<vmem>>, %arg5: memref<1x128xf32, #tpu.memory_space<vmem>>, %arg6: memref<8x128xf32, #tpu.memory_space<vmem>>, %arg7: memref<8x128xf32, #tpu.memory_space<vmem>>) attributes {dimension_semantics = [#tpu.dimension_semantics<parallel>, #tpu.dimension_semantics<parallel>, #tpu.dimension_semantics<arbitrary>], iteration_bounds = array<i64: 1, 1, 1>, scalar_prefetch = 0 : i64, scratch_operands = 1 : i64, tpu.core_type = #tpu.core_type<tc>, window_params = [{transform_indices = @transform_0, window_bounds = array<i64: 8, 128>}, {transform_indices = @transform_1, window_bounds = array<i64: 128, 128>}, {transform_indices = @transform_2, window_bounds = array<i64: 1, 128>}, {transform_indices = @transform_3, window_bounds = array<i64: 8, 128>}]} {
    %c0_i32 = arith.constant 0 : i32
    %0 = arith.cmpi eq, %arg2, %c0_i32 : i32
    %1 = arith.extui %0 : i1 to i32
    %c0_i32_0 = arith.constant 0 : i32
    %2 = arith.cmpi ne, %1, %c0_i32_0 : i32
    scf.if %2 {
      %cst_10 = arith.constant 0.000000e+00 : f32
      %12 = vector.broadcast %cst_10 : f32 to vector<8x128xf32>
      %c0_11 = arith.constant 0 : index
      %c0_12 = arith.constant 0 : index
      %13 = vector.load %arg7[%c0_11, %c0_12] : memref<8x128xf32, #tpu.memory_space<vmem>>, vector<8x128xf32>
      tpu.vector_store %arg7[%c0_11, %c0_12], %12 {strides = array<i32>} : memref<8x128xf32, #tpu.memory_space<vmem>>, vector<8x128xf32>,
    } else {
    }
    %c0 = arith.constant 0 : index
    %c0_1 = arith.constant 0 : index
    %3 = vector.load %arg3[%c0, %c0_1] : memref<8x128xbf16, #tpu.memory_space<vmem>>, vector<8x128xbf16>
    %c0_2 = arith.constant 0 : index
    %c0_3 = arith.constant 0 : index
    %4 = vector.load %arg7[%c0_2, %c0_3] : memref<8x128xf32, #tpu.memory_space<vmem>>, vector<8x128xf32>
    %c0_4 = arith.constant 0 : index
    %c0_5 = arith.constant 0 : index
    %5 = vector.load %arg4[%c0_4, %c0_5] : memref<128x128xbf16, #tpu.memory_space<vmem>>, vector<128x128xbf16>
    %cst = arith.constant dense<0.000000e+00> : vector<8x128xf32>
    %6 = tpu.matmul %3, %5, %cst {dimension_numbers = #tpu.dot_dimension_numbers<[1], [0], [0], [1], [0, 0, 1, 1], [], []>} : vector<8x128xbf16>, vector<128x128xbf16>, vector<8x128xf32> -> vector<8x128xf32>
    %7 = arith.addf %4, %6 : vector<8x128xf32>
    %c0_6 = arith.constant 0 : index
    %c0_7 = arith.constant 0 : index
    %8 = vector.load %arg7[%c0_6, %c0_7] : memref<8x128xf32, #tpu.memory_space<vmem>>, vector<8x128xf32>
    tpu.vector_store %arg7[%c0_6, %c0_7], %7 {strides = array<i32>} : memref<8x128xf32, #tpu.memory_space<vmem>>, vector<8x128xf32>,
    %c0_i32_8 = arith.constant 0 : i32
    %9 = arith.cmpi eq, %arg2, %c0_i32_8 : i32
    %10 = arith.extui %9 : i1 to i32
    %c0_i32_9 = arith.constant 0 : i32
    %11 = arith.cmpi ne, %10, %c0_i32_9 : i32
    scf.if %11 {
      %c0_10 = arith.constant 0 : index
      %c0_11 = arith.constant 0 : index
      %12 = vector.load %arg7[%c0_10, %c0_11] : memref<8x128xf32, #tpu.memory_space<vmem>>, vector<8x128xf32>
      %c0_12 = arith.constant 0 : index
      %c0_13 = arith.constant 0 : index
      %13 = vector.load %arg5[%c0_12, %c0_13] : memref<1x128xf32, #tpu.memory_space<vmem>>, vector<1x128xf32>
      %14 = vector.broadcast %13 : vector<1x128xf32> to vector<8x128xf32>
      %15 = arith.addf %12, %14 : vector<8x128xf32>
      %c0_14 = arith.constant 0 : index
      %c0_15 = arith.constant 0 : index
      %16 = vector.load %arg6[%c0_14, %c0_15] : memref<8x128xf32, #tpu.memory_space<vmem>>, vector<8x128xf32>
      tpu.vector_store %arg6[%c0_14, %c0_15], %15 {strides = array<i32>} : memref<8x128xf32, #tpu.memory_space<vmem>>, vector<8x128xf32>,
    } else {
    }
    return
  }
  func.func @transform_0(%arg0: i32, %arg1: i32, %arg2: i32) -> (i32, i32) {
    %c0_i32 = arith.constant 0 : i32
    return %arg0, %arg2 : i32, i32
  }
  func.func @transform_1(%arg0: i32, %arg1: i32, %arg2: i32) -> (i32, i32) {
    %c0_i32 = arith.constant 0 : i32
    return %arg2, %arg1 : i32, i32
  }
  func.func @transform_2(%arg0: i32, %arg1: i32, %arg2: i32) -> (i32, i32) {
    %c0_i32 = arith.constant 0 : i32
    %c0_i32_0 = arith.constant 0 : i32
    return %c0_i32, %arg1 : i32, i32
  }
  func.func @transform_3(%arg0: i32, %arg1: i32, %arg2: i32) -> (i32, i32) {
    %c0_i32 = arith.constant 0 : i32
    return %arg0, %arg1 : i32, i32
  }
}

</mosaic_0001>

<bundles_post_ra>
// kernel: swin_forward.26
= control target key start
LH: loop header
LB: loop body
LE: loop exit
PB: predicated region body
PF: predicated region fallthrough
CT: control target
= control target key end

     0   :  { %s1100_s0 = inlined_call_operand.vmem [shape: bf16[128,128], index: 0, kind: input, shape index: {}]   ;;  %s1101_s1 = inlined_call_operand.vmem [shape: f32[1,128], index: 1, kind: input, shape index: {}]   ;;  %s1102_s2 = inlined_call_operand.vmem [shape: f32[1,128], index: 2, kind: input, shape index: {}]   ;;  %s1103_s3 = inlined_call_operand.vmem [shape: bf16[128,128], index: 3, kind: output, shape index: {}]  }
   0x1   :  { %v547_v0 = vld [vmem:[%s1100_s0 + $0x10] sm:$0xff]   ;;  %v546_v1 = vld [vmem:[%s1100_s0 + $0x8] sm:$0xff]   ;;  %v475_v2 = vld [vmem:[%s1100_s0] sm:$0xff]  }
   0x2   :  { %v623_v3 = vunpack.c.l.bf16 %v547_v0  ;;  %v625_v4 = vunpack.c.l.bf16 %v546_v1  ;;  %v627_v5 = vunpack.c.l.bf16 %v475_v2  ;;  %v632_v6 = vunpack.c.h.bf16 %v547_v0  ;;  %v549_v9 = vld [vmem:[%s1100_s0 + $0x20] sm:$0xff]   ;;  %v548_v10 = vld [vmem:[%s1100_s0 + $0x18] sm:$0xff]   ;;  %v550_v14 = vld [vmem:[%s1100_s0 + $0x28] sm:$0xff]  }
   0x3   :  { %v634_v7 = vunpack.c.h.bf16 %v546_v1  ;;  %v636_v8 = vunpack.c.h.bf16 %v475_v2  ;;  %v647_v11 = vunpack.c.l.bf16 %v549_v9  ;;  %v649_v12 = vunpack.c.h.bf16 %v548_v10  ;;  %v552_v18 = vld [vmem:[%s1100_s0 + $0x38] sm:$0xff]   ;;  %v551_v19 = vld [vmem:[%s1100_s0 + $0x30] sm:$0xff]  }
   0x4   :  { %54 = vadd.xlane.f32.xlu2 %v623_v3  ;;  %50 = vadd.xlane.f32.xlu1 %v625_v4  ;;  %v651_v13 = vunpack.c.l.bf16 %v548_v10  ;;  %v659_v15 = vunpack.c.h.bf16 %v550_v14  ;;  %v661_v16 = vunpack.c.l.bf16 %v550_v14  ;;  %v663_v17 = vunpack.c.h.bf16 %v549_v9 }
   0x5   :  { %46 = vadd.xlane.f32.xlu0 %v627_v5  ;;  %v674_v20 = vunpack.c.l.bf16 %v552_v18  ;;  %v676_v21 = vunpack.c.h.bf16 %v551_v19  ;;  %v678_v22 = vunpack.c.l.bf16 %v551_v19  ;;  %v95_v23 = vmul.f32 %v636_v8, %v636_v8 }
   0x6   :  { %v94_v24 = vmul.f32 %v627_v5, %v627_v5  ;;  %v687_v25 = vunpack.c.h.bf16 %v552_v18  ;;  %v98_v26 = vmul.f32 %v623_v3, %v623_v3  ;;  %v97_v27 = vmul.f32 %v634_v7, %v634_v7 }
   0x7   :  { %1106 = vst [vmem:[#allocation2_spill] sm:$0xff] %v674_v20  ;;  %v96_v28 = vmul.f32 %v625_v4, %v625_v4  ;;  %v101_v29 = vmul.f32 %v649_v12, %v649_v12  ;;  %v100_v30 = vmul.f32 %v651_v13, %v651_v13  ;;  %v99_v31 = vmul.f32 %v632_v6, %v632_v6 }
   0x8   :  { %1107 = vst [vmem:[#allocation3_spill] sm:$0xff] %v687_v25  ;;  %v104_v32 = vmul.f32 %v661_v16, %v661_v16  ;;  %v103_v33 = vmul.f32 %v663_v17, %v663_v17  ;;  %v102_v34 = vmul.f32 %v647_v11, %v647_v11  ;;  %v107_v35 = vmul.f32 %v676_v21, %v676_v21 }
   0x9   :  { %v106_v36 = vmul.f32 %v678_v22, %v678_v22  ;;  %v105_v37 = vmul.f32 %v659_v15, %v659_v15  ;;  %v109_v38 = vmul.f32 %v687_v25, %v687_v25  ;;  %v108_v39 = vmul.f32 %v674_v20, %v674_v20 }
   0xc   :  { %56 = vadd.xlane.f32.xlu2 %v632_v6  ;;  %52 = vadd.xlane.f32.xlu1 %v634_v7 }
   0xd   :  { %48 = vadd.xlane.f32.xlu0 %v636_v8 }
  0x14   :  { %62 = vadd.xlane.f32.xlu2 %v647_v11  ;;  %60 = vadd.xlane.f32.xlu1 %v649_v12 }
  0x15   :  { %58 = vadd.xlane.f32.xlu0 %v651_v13 }
  0x1c   :  { %68 = vadd.xlane.f32.xlu2 %v659_v15  ;;  %66 = vadd.xlane.f32.xlu1 %v661_v16 }
  0x1d   :  { %64 = vadd.xlane.f32.xlu0 %v663_v17 }
  0x24   :  { %74 = vadd.xlane.f32.xlu2 %v674_v20  ;;  %72 = vadd.xlane.f32.xlu1 %v676_v21 }
  0x25   :  { %70 = vadd.xlane.f32.xlu0 %v678_v22 }
  0x2c   :  { %112 = vadd.xlane.f32.xlu2 %v95_v23  ;;  %110 = vadd.xlane.f32.xlu1 %v94_v24 }
  0x2d   :  { %76 = vadd.xlane.f32.xlu0 %v687_v25 }
  0x34   :  { %118 = vadd.xlane.f32.xlu2 %v98_v26  ;;  %116 = vadd.xlane.f32.xlu1 %v97_v27 }
  0x35   :  { %114 = vadd.xlane.f32.xlu0 %v96_v28 }
  0x3c   :  { %124 = vadd.xlane.f32.xlu2 %v101_v29  ;;  %122 = vadd.xlane.f32.xlu1 %v100_v30 }
  0x3d   :  { %120 = vadd.xlane.f32.xlu0 %v99_v31 }
  0x44   :  { %130 = vadd.xlane.f32.xlu2 %v104_v32  ;;  %128 = vadd.xlane.f32.xlu1 %v103_v33 }
  0x45   :  { %126 = vadd.xlane.f32.xlu0 %v102_v34 }
  0x4c   :  { %136 = vadd.xlane.f32.xlu2 %v107_v35  ;;  %134 = vadd.xlane.f32.xlu1 %v106_v36 }
  0x4d   :  { %132 = vadd.xlane.f32.xlu0 %v105_v37 }
  0x54   :  { %140 = vadd.xlane.f32.xlu1 %v109_v38 }
  0x55   :  { %138 = vadd.xlane.f32.xlu0 %v108_v39 }
  0x77   :  { %v55_v40 = vpop.xlane.xlu2 %54  ;;  %v51_v41 = vpop.xlane.xlu1 %50 }
  0x78   :  { %v47_v42 = vpop.xlane.xlu0 %46  ;;  %v730_v0 = vmul.f32 0.03125, %v55_v40  ;;  %v732_v1 = vmul.f32 0.03125, %v51_v41 }
  0x79   :  { %v720_v55 = vmul.f32 0.03125, %v47_v42 }
  0x7a   :  { %v162_v23 = vmul.f32 %v730_v0, %v730_v0  ;;  %v160_v26 = vmul.f32 %v732_v1, %v732_v1 }
  0x7b   :  { %v158_v59 = vmul.f32 %v720_v55, %v720_v55 }
  0x7f   :  { %v57_v43 = vpop.xlane.xlu2 %56  ;;  %v53_v44 = vpop.xlane.xlu1 %52 }
  0x80   :  { %v49_v45 = vpop.xlane.xlu0 %48  ;;  %v734_v10 = vmul.f32 0.03125, %v57_v43  ;;  %v736_v14 = vmul.f32 0.03125, %v53_v44 }
  0x81   :  { %v722_v56 = vmul.f32 0.03125, %v49_v45 }
  0x82   :  { %v757_v30 = vmul.f32 %v734_v10, %v734_v10  ;;  %v161_v34 = vmul.f32 %v736_v14, %v736_v14 }
  0x83   :  { %v159_v60 = vmul.f32 %v722_v56, %v722_v56  ;;  %v191_v41 = vsub.f32 %v636_v8, %v722_v56 }
  0x87   :  { %v63_v46 = vpop.xlane.xlu2 %62  ;;  %v61_v47 = vpop.xlane.xlu1 %60 }
  0x88   :  { %v59_v48 = vpop.xlane.xlu0 %58  ;;  %v750_v28 = vmul.f32 0.03125, %v63_v46  ;;  %v759_v31 = vmul.f32 0.03125, %v61_v47 }
  0x89   :  { %v764_v35 = vmul.f32 0.03125, %v59_v48 }
  0x8a   :  { %v774_v43 = vmul.f32 %v750_v28, %v750_v28  ;;  %v165_v47 = vmul.f32 %v759_v31, %v759_v31 }
  0x8f   :  { %v69_v49 = vpop.xlane.xlu2 %68  ;;  %v67_v50 = vpop.xlane.xlu1 %66 }
  0x90   :  { %v65_v51 = vpop.xlane.xlu0 %64  ;;  %v776_v44 = vmul.f32 0.03125, %v69_v49  ;;  %v780_v48 = vmul.f32 0.03125, %v67_v50 }
  0x97   :  { %v75_v52 = vpop.xlane.xlu2 %74  ;;  %v73_v53 = vpop.xlane.xlu1 %72 }
  0x98   :  { %v718_v54 = vpop.xlane.xlu0 %70  ;;  %v794_v50 = vmul.f32 0.03125, %v75_v52 }
  0x9f   :  { %v113_v57 = vpop.xlane.xlu2 %112  ;;  %v111_v58 = vpop.xlane.xlu1 %110 }
  0xa0   :  { %v143_v61 = vmul.f32 0.03125, %v113_v57  ;;  %v728_v62 = vpop.xlane.xlu0 %76  ;;  %v142_v63 = vmul.f32 0.03125, %v111_v58  ;;  %v782_v57 = vmul.f32 0.03125, %v65_v51 }
  0xa2   :  { %v175_v2 = vsub.f32 %v143_v61, %v159_v60  ;;  %v174_v9 = vsub.f32 %v142_v63, %v158_v59  ;;  %v164_v61 = vmul.f32 %v764_v35, %v764_v35  ;;  %v813_v52 = vmul.f32 %v782_v57, %v782_v57 }
  0xa4   :  { %v738_v18 = vadd.f32 1e-05, %v175_v2  ;;  %v740_v19 = vadd.f32 1e-05, %v174_v9  ;;  %v822_v9 = vmul.f32 0.03125, %v718_v54 }
  0xa6   :  { %562 = vrsqrt.f32 %v738_v18  ;;  %vm238_vm0 = vweird.f32 %v738_v18  ;;  %vm228_vm2 = vweird.f32 %v740_v19 }
  0xa7   :  { %564 = vrsqrt.f32 %v740_v19  ;;  %v119_v32 = vpop.xlane.xlu2 %118  ;;  %v117_v33 = vpop.xlane.xlu1 %116 }
  0xa8   :  { %v146_v36 = vmul.f32 0.03125, %v119_v32  ;;  %v115_v37 = vpop.xlane.xlu0 %114  ;;  %v145_v38 = vmul.f32 0.03125, %v117_v33  ;;  %v803_v32 = vmul.f32 0.03125, %v73_v53 }
  0xa9   :  { %v144_v42 = vmul.f32 0.03125, %v115_v37 }
  0xaa   :  { %v178_v45 = vsub.f32 %v146_v36, %v162_v23  ;;  %v177_v46 = vsub.f32 %v145_v38, %v161_v34  ;;  %v809_v34 = vmul.f32 %v780_v48, %v780_v48 }
  0xab   :  { %v176_v58 = vsub.f32 %v144_v42, %v160_v26  ;;  %v801_v26 = vmul.f32 %v776_v44, %v776_v44 }
  0xac   :  { %v563_v59 = vpop.eup %562  ;;  %v788_v63 = vadd.f32 1e-05, %v178_v45  ;;  %v790_v49 = vadd.f32 1e-05, %v177_v46 }
  0xad   :  { %v565_v2 = vpop.eup %564  ;;  %v233_v51 = vmul.f32 %v563_v59, %v738_v18  ;;  %v797_v23 = vadd.f32 1e-05, %v176_v58  ;;  %v819_v58 = vmul.f32 %v794_v50, %v794_v50  ;;  %vm239_vm1 = vweird.f32 %v563_v59 }
  0xae   :  { %v223_v33 = vmul.f32 %v565_v2, %v740_v19  ;;  %566 = vrsqrt.f32 %v788_v63  ;;  %vm229_vm3 = vweird.f32 %v565_v2  ;;  %vm268_vm4 = vweird.f32 %v788_v63  ;;  %vm240_vm5 = vmor %vm238_vm0, %vm239_vm1 }
  0xaf   :  { %v234_v36 = vmul.f32 %v563_v59, %v233_v51  ;;  %568 = vrsqrt.f32 %v797_v23  ;;  %v125_v37 = vpop.xlane.xlu2 %124  ;;  %v123_v38 = vpop.xlane.xlu1 %122  ;;  %v826_v51 = vmul.f32 %v803_v32, %v803_v32  ;;  %vm230_vm6 = vmor %vm228_vm2, %vm229_vm3  ;;  %vm248_vm7 = vweird.f32 %v797_v23 }
  0xb0   :  { %v224_v42 = vmul.f32 %v565_v2, %v223_v33  ;;  %570 = vrsqrt.f32 %v790_v49  ;;  %v149_v53 = vmul.f32 0.03125, %v125_v37  ;;  %v121_v45 = vpop.xlane.xlu0 %120  ;;  %v148_v46 = vmul.f32 0.03125, %v123_v38 }
  0xb1   :  { %v235_v39 = vmul.f32 0.5, %v234_v36  ;;  %v147_v60 = vmul.f32 0.03125, %v121_v45  ;;  %vm258_vm12 = vweird.f32 %v790_v49 }
  0xb2   :  { %v225_v40 = vmul.f32 0.5, %v224_v42  ;;  %v181_v33 = vsub.f32 %v149_v53, %v165_v47  ;;  %v180_v24 = vsub.f32 %v148_v46, %v164_v61 }
  0xb3   :  { %v236_v27 = vsub.f32 1.5, %v235_v39  ;;  %v179_v37 = vsub.f32 %v147_v60, %v757_v30  ;;  %v847_v30 = vld [vmem:[%s1101_s1] ss:$0 sm:$0xff] }
  0xb4   :  { %v830_v38 = vpop.eup %566  ;;  %v226_v29 = vsub.f32 1.5, %v225_v40  ;;  %v833_v54 = vadd.f32 1e-05, %v181_v33  ;;  %v854_v60 = vadd.f32 1e-05, %v180_v24  ;;  %v1108_v33 = vsub.f32 %v627_v5, %v720_v55 }
  0xb5   :  { %v835_v36 = vpop.eup %568  ;;  %v237_v45 = vmul.f32 %v563_v59, %v236_v27  ;;  %v263_v47 = vmul.f32 %v830_v38, %v788_v63  ;;  %v840_v39 = vadd.f32 1e-05, %v179_v37  ;;  %vm269_vm8 = vweird.f32 %v830_v38 }
  0xb6   :  { %v842_v61 = vpop.eup %570  ;;  %v227_v40 = vmul.f32 %v565_v2, %v226_v29  ;;  %v243_v27 = vmul.f32 %v835_v36, %v797_v23  ;;  %572 = vrsqrt.f32 %v833_v54  ;;  %v866_v29 = vld [vmem:[%s1102_s2] ss:$0 sm:$0xff]  ;;  %vm249_vm9 = vweird.f32 %v835_v36  ;;  %vm894_vm11 = vmor %vm268_vm4, %vm269_vm8 }
  0xb7   :  { %v241_v42 = vsel %vm240_vm5, %v563_v59, %v237_v45  ;;  %v264_v53 = vmul.f32 %v830_v38, %v263_v47  ;;  %v253_v18 = vmul.f32 %v842_v61, %v790_v49  ;;  %574 = vrsqrt.f32 %v840_v39  ;;  %v131_v25 = vpop.xlane.xlu2 %130  ;;  %vm250_vm14 = vmor %vm248_vm7, %vm249_vm9 }
  0xb8   :  { %v383_v24 = vmul.f32 %v241_v42, %v191_v41  ;;  %v231_v59 = vsel %vm230_vm6, %v565_v2, %v227_v40  ;;  %v244_v19 = vmul.f32 %v835_v36, %v243_v27  ;;  %v127_v46 = vpop.xlane.xlu0 %126  ;;  %576 = vrsqrt.f32 %v854_v60 }
  0xb9   :  { %v382_v37 = vmul.f32 %v231_v59, %v1108_v33  ;;  %v265_v45 = vmul.f32 0.5, %v264_v53  ;;  %v254_v47 = vmul.f32 %v842_v61, %v253_v18  ;;  %vm259_vm10 = vweird.f32 %v842_v61  ;;  %v129_v53 = vpop.xlane.xlu1 %128 }
  0xba   :  { %v403_v20 = vmul.f32 %v847_v30, %v383_v24  ;;  %v245_v8 = vmul.f32 0.5, %v244_v19  ;;  %v152_v27 = vmul.f32 0.03125, %v131_v25  ;;  %v150_v42 = vmul.f32 0.03125, %v127_v46  ;;  %vm260_vm15 = vmor %vm258_vm12, %vm259_vm10 }
  0xbb   :  { %v402_v56 = vmul.f32 %v847_v30, %v382_v37  ;;  %v266_v41 = vsub.f32 1.5, %v265_v45  ;;  %v255_v2 = vmul.f32 0.5, %v254_v47  ;;  %vm298_vm13 = vweird.f32 %v833_v54 }
  0xbc   :  { %v883_v5 = vpop.eup %572  ;;  %v423_v55 = vadd.f32 %v866_v29, %v403_v20  ;;  %v246_v40 = vsub.f32 1.5, %v245_v8  ;;  %v184_v25 = vsub.f32 %v152_v27, %v809_v34  ;;  %vm278_vm0 = vweird.f32 %v840_v39 }
  0xbd   :  { %v422_v18 = vadd.f32 %v866_v29, %v402_v56  ;;  %v267_v24 = vmul.f32 %v830_v38, %v266_v41  ;;  %v256_v59 = vsub.f32 1.5, %v255_v2  ;;  %v293_v19 = vmul.f32 %v883_v5, %v833_v54  ;;  %v902_v46 = vpop.eup %574 }
  0xbe   :  { %v247_v20 = vmul.f32 %v835_v36, %v246_v40  ;;  %v913_v47 = vpop.eup %576  ;;  %v273_v8 = vmul.f32 %v902_v46, %v840_v39  ;;  %v1111_v56 = vsub.f32 %v625_v4, %v732_v1  ;;  %v1112_v40 = vsub.f32 %v623_v3, %v730_v0 }
  0xbf   :  { %v509_v37 = vpack.c.bf16 %v423_v55, %v422_v18  ;;  %v271_v45 = vsel %vm894_vm11, %v830_v38, %v267_v24  ;;  %v257_v63 = vmul.f32 %v842_v61, %v256_v59  ;;  %v294_v49 = vmul.f32 %v883_v5, %v293_v19  ;;  %v137_v33 = vpop.xlane.xlu2 %136 }
  0xc0   :  { %v251_v34 = vsel %vm250_vm14, %v835_v36, %v247_v20  ;;  %v182_v38 = vsub.f32 %v150_v42, %v774_v43  ;;  %v133_v23 = vpop.xlane.xlu0 %132  ;;  %v283_v55 = vmul.f32 %v913_v47, %v854_v60  ;;  %v386_v27 = vmul.f32 %v271_v45, %v1112_v40 }
  0xc1   :  { %510 = vst [vmem:[%s1103_s3] sm:$0xff] %v509_v37   ;;  %v384_v41 = vmul.f32 %v251_v34, %v1111_v56  ;;  %v261_v36 = vsel %vm260_vm15, %v842_v61, %v257_v63  ;;  %v295_v2 = vmul.f32 0.5, %v294_v49  ;;  %v1113_v43 = vsub.f32 %v634_v7, %v736_v14  ;;  %v135_v45 = vpop.xlane.xlu1 %134 }
  0xc2   :  { %vm299_vm1 = vweird.f32 %v883_v5  ;;  %v274_v18 = vmul.f32 %v902_v46, %v273_v8  ;;  %v284_v61 = vmul.f32 %v913_v47, %v283_v55  ;;  %v941_v24 = vadd.f32 1e-05, %v184_v25 }
  0xc3   :  { %v385_v42 = vmul.f32 %v261_v36, %v1113_v43  ;;  %v404_v4 = vmul.f32 %v847_v30, %v384_v41  ;;  %v296_v1 = vsub.f32 1.5, %v295_v2  ;;  %vm279_vm2 = vweird.f32 %v902_v46  ;;  %vm300_vm3 = vmor %vm298_vm13, %vm299_vm1 }
  0xc4   :  { %v275_v19 = vmul.f32 0.5, %v274_v18  ;;  %v945_v3 = vadd.f32 1e-05, %v182_v38  ;;  %v285_v14 = vmul.f32 0.5, %v284_v61  ;;  %578 = vrsqrt.f32 %v941_v24  ;;  %vm280_vm5 = vmor %vm278_vm0, %vm279_vm2 }
  0xc5   :  { %v405_v59 = vmul.f32 %v847_v30, %v385_v42  ;;  %v424_v7 = vadd.f32 %v866_v29, %v404_v4  ;;  %v297_v0 = vmul.f32 %v883_v5, %v296_v1  ;;  %v406_v20 = vmul.f32 %v847_v30, %v386_v27 }
  0xc6   :  { %v276_v37 = vsub.f32 1.5, %v275_v19  ;;  %580 = vrsqrt.f32 %v945_v3  ;;  %v286_v49 = vsub.f32 1.5, %v285_v14  ;;  %vm289_vm4 = vweird.f32 %v913_v47 }
  0xc7   :  { %v425_v25 = vadd.f32 %v866_v29, %v405_v59  ;;  %v301_v63 = vsel %vm300_vm3, %v883_v5, %v297_v0  ;;  %v151_v34 = vmul.f32 0.03125, %v129_v53  ;;  %v1114_v38 = vsub.f32 %v649_v12, %v759_v31 }
  0xc8   :  { %v277_v41 = vmul.f32 %v902_v46, %v276_v37  ;;  %v155_v36 = vmul.f32 0.03125, %v137_v33  ;;  %v287_v54 = vmul.f32 %v913_v47, %v286_v49  ;;  %vm288_vm6 = vweird.f32 %v854_v60  ;;  %v139_v55 = vpop.xlane.xlu0 %138 }
  0xc9   :  { %v514_v8 = vpack.c.bf16 %v425_v25, %v424_v7  ;;  %v389_v56 = vmul.f32 %v301_v63, %v1114_v38  ;;  %v183_v5 = vsub.f32 %v151_v34, %v813_v52  ;;  %v153_v53 = vmul.f32 0.03125, %v133_v23  ;;  %vm290_vm7 = vmor %vm288_vm6, %vm289_vm4  ;;  %v141_v25 = vpop.xlane.xlu1 %140 }
  0xca   :  { %v281_v31 = vsel %vm280_vm5, %v902_v46, %v277_v41  ;;  %v187_v2 = vsub.f32 %v155_v36, %v826_v51  ;;  %v154_v39 = vmul.f32 0.03125, %v135_v45  ;;  %v976_v40 = vpop.eup %578  ;;  %v1115_v60 = vsub.f32 %v632_v6, %v734_v10 }
  0xcb   :  { %553 = vst [vmem:[%s1103_s3 + $0x8] sm:$0xff] %v514_v8   ;;  %v409_v12 = vmul.f32 %v847_v30, %v389_v56  ;;  %v291_v23 = vsel %vm290_vm7, %v913_v47, %v287_v54  ;;  %v982_v27 = vadd.f32 1e-05, %v183_v5  ;;  %v185_v43 = vsub.f32 %v153_v53, %v801_v26 }
  0xcc   :  { %v387_v52 = vmul.f32 %v281_v31, %v1115_v60  ;;  %v581_v42 = vpop.eup %580  ;;  %v170_v46 = vmul.f32 %v822_v9, %v822_v9  ;;  %v426_v51 = vadd.f32 %v866_v29, %v406_v20  ;;  %v1116_v18 = vsub.f32 %v651_v13, %v764_v35 }
  0xcd   :  { %v323_v6 = vmul.f32 %v976_v40, %v941_v24  ;;  %v303_v47 = vmul.f32 %v581_v42, %v945_v3  ;;  %582 = vrsqrt.f32 %v982_v27  ;;  %v156_v26 = vmul.f32 0.03125, %v139_v55 }
  0xce   :  { %v388_v4 = vmul.f32 %v291_v23, %v1116_v18  ;;  %v407_v10 = vmul.f32 %v847_v30, %v387_v52  ;;  %v429_v1 = vadd.f32 %v866_v29, %v409_v12  ;;  %v999_v19 = vadd.f32 1e-05, %v187_v2 }
  0xcf   :  { %v324_v59 = vmul.f32 %v976_v40, %v323_v6  ;;  %v304_v35 = vmul.f32 %v581_v42, %v303_v47  ;;  %v1002_v7 = vadd.f32 1e-05, %v185_v43  ;;  %v186_v0 = vsub.f32 %v154_v39, %v170_v46 }
  0xd0   :  { %v408_v61 = vmul.f32 %v847_v30, %v388_v4  ;;  %v427_v13 = vadd.f32 %v866_v29, %v407_v10  ;;  %v1005_v14 = vmul.f32 0.03125, %v728_v62  ;;  %584 = vrsqrt.f32 %v999_v19 }
  0xd1   :  { %v325_v20 = vmul.f32 0.5, %v324_v59  ;;  %v305_v45 = vmul.f32 0.5, %v304_v35  ;;  %586 = vrsqrt.f32 %v1002_v7  ;;  %v1010_v49 = vadd.f32 1e-05, %v186_v0 }
  0xd2   :  { %v428_v33 = vadd.f32 %v866_v29, %v408_v61  ;;  %v519_v37 = vpack.c.bf16 %v427_v13, %v426_v51  ;;  %v188_v34 = vsub.f32 %v156_v26, %v819_v58  ;;  %vm309_vm8 = vweird.f32 %v581_v42 }
  0xd3   :  { %v583_v8 = vpop.eup %582  ;;  %v326_v62 = vsub.f32 1.5, %v325_v20  ;;  %v306_v38 = vsub.f32 1.5, %v305_v45  ;;  %v157_v56 = vmul.f32 0.03125, %v141_v25  ;;  %v173_v41 = vmul.f32 %v1005_v14, %v1005_v14 }
  0xd4   :  { %v524_v63 = vpack.c.bf16 %v429_v1, %v428_v33  ;;  %554 = vst [vmem:[%s1103_s3 + $0x10] sm:$0xff] %v519_v37   ;;  %v313_v36 = vmul.f32 %v583_v8, %v982_v27  ;;  %588 = vrsqrt.f32 %v1010_v49  ;;  %v198_v58 = vsub.f32 %v647_v11, %v750_v28 }
  0xd5   :  { %v307_v54 = vmul.f32 %v581_v42, %v306_v38  ;;  %vm308_vm9 = vweird.f32 %v945_v3  ;;  %v1026_v5 = vadd.f32 1e-05, %v188_v34  ;;  %v201_v12 = vsub.f32 %v659_v15, %v776_v44 }
  0xd6   :  { %555 = vst [vmem:[%s1103_s3 + $0x18] sm:$0xff] %v524_v63   ;;  %v585_v53 = vpop.eup %584  ;;  %v200_v31 = vsub.f32 %v661_v16, %v780_v48  ;;  %vm310_vm10 = vmor %vm308_vm9, %vm309_vm8  ;;  %v314_v2 = vmul.f32 %v583_v8, %v313_v36  ;;  %v189_v39 = vsub.f32 %v157_v56, %v173_v41  ;;  %v327_v60 = vmul.f32 %v976_v40, %v326_v62 }
  0xd7   :  { %v587_v55 = vpop.eup %586  ;;  %vm329_vm11 = vweird.f32 %v976_v40  ;;  %v311_v11 = vsel %vm310_vm10, %v581_v42, %v307_v54  ;;  %v353_v28 = vmul.f32 %v585_v53, %v999_v19  ;;  %v199_v3 = vsub.f32 %v663_v17, %v782_v57 }
  0xd8   :  { %v203_v15 = vsub.f32 %v676_v21, %v803_v32  ;;  %v315_v44 = vmul.f32 0.5, %v314_v2  ;;  %v333_v16 = vmul.f32 %v587_v55, %v1002_v7  ;;  %vm328_vm12 = vweird.f32 %v941_v24 }
  0xd9   :  { %v390_v48 = vmul.f32 %v311_v11, %v198_v58  ;;  %v354_v52 = vmul.f32 %v585_v53, %v353_v28  ;;  %590 = vrsqrt.f32 %v1026_v5  ;;  %vm1042_vm13 = vmor %vm328_vm12, %vm329_vm11  ;;  %vm319_vm14 = vweird.f32 %v583_v8 }
  0xda   :  { %v589_v23 = vpop.eup %588  ;;  %v316_v42 = vsub.f32 1.5, %v315_v44  ;;  %v334_v17 = vmul.f32 %v587_v55, %v333_v16  ;;  %v1046_v57 = vadd.f32 1e-05, %v189_v39  ;;  %v331_v21 = vsel %vm1042_vm13, %v976_v40, %v327_v60  ;;  %v1119_v60 = vld [vmem:[#allocation2_spill] sm:$0xff] }
  0xdb   :  { %vm318_vm15 = vweird.f32 %v982_v27  ;;  %v355_v32 = vmul.f32 0.5, %v354_v52  ;;  %v343_v24 = vmul.f32 %v589_v23, %v1010_v49  ;;  %vm358_vm0 = vweird.f32 %v999_v19 }
  0xdc   :  { %v317_v46 = vmul.f32 %v583_v8, %v316_v42  ;;  %v335_v51 = vmul.f32 0.5, %v334_v17  ;;  %592 = vrsqrt.f32 %v1046_v57  ;;  %v410_v18 = vmul.f32 %v847_v30, %v390_v48  ;;  %vm320_vm1 = vmor %vm318_vm15, %vm319_vm14 }
  0xdd   :  { %v356_v4 = vsub.f32 1.5, %v355_v32  ;;  %vm359_vm2 = vweird.f32 %v585_v53  ;;  %v344_v6 = vmul.f32 %v589_v23, %v343_v24  ;;  %v392_v10 = vmul.f32 %v331_v21, %v200_v31 }
  0xde   :  { %v321_v47 = vsel %vm320_vm1, %v583_v8, %v317_v46  ;;  %v336_v40 = vsub.f32 1.5, %v335_v51  ;;  %vm339_vm3 = vweird.f32 %v587_v55  ;;  %vm338_vm4 = vweird.f32 %v1002_v7  ;;  %vm360_vm5 = vmor %vm358_vm0, %vm359_vm2 }
  0xdf   :  { %v591_v27 = vpop.eup %590  ;;  %v391_v26 = vmul.f32 %v321_v47, %v199_v3  ;;  %v357_v1 = vmul.f32 %v585_v53, %v356_v4  ;;  %v345_v61 = vmul.f32 0.5, %v344_v6  ;;  %vm348_vm6 = vweird.f32 %v1010_v49  ;;  %vm340_vm8 = vmor %vm338_vm4, %vm339_vm3 }
  0xe0   :  { %v337_v59 = vmul.f32 %v587_v55, %v336_v40  ;;  %vm349_vm7 = vweird.f32 %v589_v23  ;;  %v363_v13 = vmul.f32 %v591_v27, %v1026_v5  ;;  %v430_v35 = vadd.f32 %v866_v29, %v410_v18 }
  0xe1   :  { %v411_v0 = vmul.f32 %v847_v30, %v391_v26  ;;  %v361_v33 = vsel %vm360_vm5, %v585_v53, %v357_v1  ;;  %v346_v20 = vsub.f32 1.5, %v345_v61  ;;  %v412_v7 = vmul.f32 %v847_v30, %v392_v10  ;;  %vm350_vm9 = vmor %vm348_vm6, %vm349_vm7 }
  0xe2   :  { %v593_v25 = vpop.eup %592  ;;  %v395_v37 = vmul.f32 %v361_v33, %v203_v15  ;;  %v341_v45 = vsel %vm340_vm8, %v587_v55, %v337_v59  ;;  %v364_v19 = vmul.f32 %v591_v27, %v363_v13  ;;  %v202_v38 = vsub.f32 %v678_v22, %v822_v9 }
  0xe3   :  { %v431_v63 = vadd.f32 %v866_v29, %v411_v0  ;;  %v393_v34 = vmul.f32 %v341_v45, %v201_v12  ;;  %v347_v8 = vmul.f32 %v589_v23, %v346_v20  ;;  %v373_v62 = vmul.f32 %v593_v25, %v1046_v57 }
  0xe4   :  { %v415_v56 = vmul.f32 %v847_v30, %v395_v37  ;;  %v365_v41 = vmul.f32 0.5, %v364_v19  ;;  %vm369_vm10 = vweird.f32 %v591_v27  ;;  %v432_v2 = vadd.f32 %v866_v29, %v412_v7 }
  0xe5   :  { %v529_v36 = vpack.c.bf16 %v431_v63, %v430_v35  ;;  %v413_v58 = vmul.f32 %v847_v30, %v393_v34  ;;  %v351_v54 = vsel %vm350_vm9, %v589_v23, %v347_v8  ;;  %v374_v53 = vmul.f32 %v593_v25, %v373_v62 }
  0xe6   :  { %v394_v31 = vmul.f32 %v351_v54, %v202_v38  ;;  %v366_v12 = vsub.f32 1.5, %v365_v41  ;;  %v435_v49 = vadd.f32 %v866_v29, %v415_v56  ;;  %vm368_vm11 = vweird.f32 %v1026_v5  ;;  %v1120_v5 = vld [vmem:[#allocation3_spill] sm:$0xff] }
  0xe7   :  { %556 = vst [vmem:[%s1103_s3 + $0x20] sm:$0xff] %v529_v36   ;;  %v433_v22 = vadd.f32 %v866_v29, %v413_v58  ;;  %v375_v9 = vmul.f32 0.5, %v374_v53  ;;  %v204_v11 = vsub.f32 %v1119_v60, %v794_v50  ;;  %vm370_vm12 = vmor %vm368_vm11, %vm369_vm10  ;;  %vm379_vm13 = vweird.f32 %v593_v25 }
  0xe8   :  { %v414_v39 = vmul.f32 %v847_v30, %v394_v31  ;;  %v367_v55 = vmul.f32 %v591_v27, %v366_v12  ;;  %vm378_vm14 = vweird.f32 %v1046_v57  ;;  %v205_v52 = vsub.f32 %v1120_v5, %v1005_v14 }
  0xe9   :  { %v534_v28 = vpack.c.bf16 %v433_v22, %v432_v2  ;;  %v376_v3 = vsub.f32 1.5, %v375_v9  ;;  %vm380_vm15 = vmor %vm378_vm14, %vm379_vm13 }
  0xea   :  { %v434_v15 = vadd.f32 %v866_v29, %v414_v39  ;;  %v371_v44 = vsel %vm370_vm12, %v591_v27, %v367_v55 }
  0xeb   :  { %557 = vst [vmem:[%s1103_s3 + $0x28] sm:$0xff] %v534_v28   ;;  %v396_v16 = vmul.f32 %v371_v44, %v204_v11  ;;  %v377_v48 = vmul.f32 %v593_v25, %v376_v3 }
  0xec   :  { %v539_v23 = vpack.c.bf16 %v435_v49, %v434_v15 }
  0xed   :  { %v416_v50 = vmul.f32 %v847_v30, %v396_v16  ;;  %v381_v43 = vsel %vm380_vm15, %v593_v25, %v377_v48 }
  0xee   :  { %558 = vst [vmem:[%s1103_s3 + $0x30] sm:$0xff] %v539_v23   ;;  %v397_v42 = vmul.f32 %v381_v43, %v205_v52 }
  0xef   :  { %v436_v17 = vadd.f32 %v866_v29, %v416_v50 }
  0xf0   :  { %v417_v21 = vmul.f32 %v847_v30, %v397_v42 }
  0xf2   :  { %v437_v32 = vadd.f32 %v866_v29, %v417_v21 }
  0xf4   :  { %v544_v57 = vpack.c.bf16 %v437_v32, %v436_v17 }
  0xf6   :  { %559 = vst [vmem:[%s1103_s3 + $0x38] sm:$0xff] %v544_v57  }

// kernel: swin_forward.25
= control target key start
LH: loop header
LB: loop body
LE: loop exit
PB: predicated region body
PF: predicated region fallthrough
CT: control target
= control target key end

     0   :  { %s581_s1 = inlined_call_operand.vmem [shape: bf16[128,128], index: 1, kind: input, shape index: {}]   ;;  %s582_s2 = inlined_call_operand.vmem [shape: f32[1,128], index: 2, kind: input, shape index: {}]   ;;  %s583_s0 = inlined_call_operand.vmem [shape: bf16[128,128], index: 0, kind: input, shape index: {}]   ;;  %s584_s3 = inlined_call_operand.vmem [shape: bf16[128,128], index: 3, kind: output, shape index: {}]  }
   0x1   :  { %v413_v0 = vld [vmem:[%s581_s1 + $0x38] sm:$0xff]  ;;  %v412_v1 = vld [vmem:[%s581_s1 + $0x30] sm:$0xff]  ;;  %v411_v2 = vld [vmem:[%s581_s1 + $0x28] sm:$0xff] }
   0x2   :  { %178 = vmatpush.bf16.msra.mxu0 %v413_v0  ;;  %461 = vmatpush.bf16.msra.mxu1 %v413_v0  ;;  %v410_v3 = vld [vmem:[%s581_s1 + $0x20] sm:$0xff]  ;;  %v409_v4 = vld [vmem:[%s581_s1 + $0x18] sm:$0xff]  ;;  %v408_v5 = vld [vmem:[%s581_s1 + $0x10] sm:$0xff] }
   0x3   :  { %462 = vmatpush.bf16.msra.mxu2 %v413_v0  ;;  %463 = vmatpush.bf16.msra.mxu3 %v413_v0  ;;  %v407_v6 = vld [vmem:[%s581_s1 + $0x8] sm:$0xff]  ;;  %v406_v7 = vld [vmem:[%s581_s1] sm:$0xff]  ;;  %v400_v9 = vld [vmem:[%s583_s0 + $0x10] sm:$0xff] }
   0x4   :  { %v398_v8 = vld [vmem:[%s583_s0] sm:$0xff]  ;;  %v404_v11 = vld [vmem:[%s583_s0 + $0x30] sm:$0xff]  ;;  %v399_v12 = vld [vmem:[%s583_s0 + $0x8] sm:$0xff] }
   0x5   :  { %v402_v10 = vld [vmem:[%s583_s0 + $0x20] sm:$0xff]  ;;  %v401_v13 = vld [vmem:[%s583_s0 + $0x18] sm:$0xff]  ;;  %v403_v14 = vld [vmem:[%s583_s0 + $0x28] sm:$0xff] }
   0x6   :  { %179 = vmatpush.bf16.msra.mxu0 %v412_v1  ;;  %464 = vmatpush.bf16.msra.mxu1 %v412_v1  ;;  %v405_v15 = vld [vmem:[%s583_s0 + $0x38] sm:$0xff]  ;;  %v485_v18 = vld [vmem:[%s582_s2] ss:$0 sm:$0xff] }
   0x7   :  { %465 = vmatpush.bf16.msra.mxu2 %v412_v1  ;;  %466 = vmatpush.bf16.msra.mxu3 %v412_v1 }
   0xa   :  { %180 = vmatpush.bf16.msra.mxu0 %v411_v2  ;;  %467 = vmatpush.bf16.msra.mxu1 %v411_v2 }
   0xb   :  { %468 = vmatpush.bf16.msra.mxu2 %v411_v2  ;;  %469 = vmatpush.bf16.msra.mxu3 %v411_v2 }
   0xe   :  { %181 = vmatpush.bf16.msra.mxu0 %v410_v3  ;;  %470 = vmatpush.bf16.msra.mxu1 %v410_v3 }
   0xf   :  { %471 = vmatpush.bf16.msra.mxu2 %v410_v3  ;;  %472 = vmatpush.bf16.msra.mxu3 %v410_v3 }
  0x12   :  { %182 = vmatpush.bf16.msra.mxu0 %v409_v4  ;;  %473 = vmatpush.bf16.msra.mxu1 %v409_v4 }
  0x13   :  { %474 = vmatpush.bf16.msra.mxu2 %v409_v4  ;;  %475 = vmatpush.bf16.msra.mxu3 %v409_v4 }
  0x16   :  { %183 = vmatpush.bf16.msra.mxu0 %v408_v5  ;;  %476 = vmatpush.bf16.msra.mxu1 %v408_v5 }
  0x17   :  { %477 = vmatpush.bf16.msra.mxu2 %v408_v5  ;;  %478 = vmatpush.bf16.msra.mxu3 %v408_v5 }
  0x1a   :  { %184 = vmatpush.bf16.msra.mxu0 %v407_v6  ;;  %479 = vmatpush.bf16.msra.mxu1 %v407_v6 }
  0x1b   :  { %480 = vmatpush.bf16.msra.mxu2 %v407_v6  ;;  %481 = vmatpush.bf16.msra.mxu3 %v407_v6 }
  0x1e   :  { %185 = vmatpush.bf16.msra.mxu0 %v406_v7  ;;  %482 = vmatpush.bf16.msra.mxu1 %v406_v7 }
  0x1f   :  { %483 = vmatpush.bf16.msra.mxu2 %v406_v7  ;;  %484 = vmatpush.bf16.msra.mxu3 %v406_v7 }
  0x21   :  { %186 = vmatmul.bf16.vlgmr.msra.gmra.mxu0 %v398_v8  ;;  %196 = vmatmul.bf16.vlgmr.msra.gmra.mxu1 %v400_v9 }
  0x22   :  { %206 = vmatmul.bf16.vlgmr.msra.gmra.mxu2 %v402_v10  ;;  %216 = vmatmul.bf16.vlgmr.msra.gmra.mxu3 %v404_v11 }
  0x31   :  { %191 = vmatmul.bf16.gmra.mxu0 %v399_v12  ;;  %201 = vmatmul.bf16.gmra.mxu1 %v401_v13 }
  0x32   :  { %211 = vmatmul.bf16.gmra.mxu2 %v403_v14  ;;  %221 = vmatmul.bf16.gmra.mxu3 %v405_v15 }
  0x9e   :  { %v187_v16 = vpop.f32.mrf.mxu0  ;;  %v197_v17 = vpop.f32.mrf.mxu1 }
  0x9f   :  { %v282_v23 = vadd.f32 %v485_v18, %v187_v16  ;;  %v286_v24 = vadd.f32 %v485_v18, %v197_v17 }
  0xa5   :  { %v207_v19 = vpop.f32.mrf.mxu2  ;;  %v217_v20 = vpop.f32.mrf.mxu3 }
  0xa6   :  { %v189_v21 = vpop.f32.mrf.mxu0  ;;  %v199_v22 = vpop.f32.mrf.mxu1  ;;  %v290_v31 = vadd.f32 %v485_v18, %v207_v19  ;;  %v294_v32 = vadd.f32 %v485_v18, %v217_v20 }
  0xa7   :  { %v283_v25 = vadd.f32 %v485_v18, %v189_v21  ;;  %v287_v26 = vadd.f32 %v485_v18, %v199_v22 }
  0xa9   :  { %v417_v27 = vpack.c.bf16 %v283_v25, %v282_v23  ;;  %v427_v28 = vpack.c.bf16 %v287_v26, %v286_v24 }
  0xab   :  { %418 = vst [vmem:[%s584_s3] sm:$0xff] %v417_v27  }
  0xac   :  { %455 = vst [vmem:[%s584_s3 + $0x10] sm:$0xff] %v427_v28  }
  0xad   :  { %v209_v29 = vpop.f32.mrf.mxu2  ;;  %v219_v30 = vpop.f32.mrf.mxu3 }
  0xae   :  { %v291_v33 = vadd.f32 %v485_v18, %v209_v29  ;;  %v295_v34 = vadd.f32 %v485_v18, %v219_v30  ;;  %v192_v35 = vpop.f32.mrf.mxu0  ;;  %v202_v36 = vpop.f32.mrf.mxu1 }
  0xaf   :  { %v284_v43 = vadd.f32 %v485_v18, %v192_v35  ;;  %v288_v44 = vadd.f32 %v485_v18, %v202_v36 }
  0xb0   :  { %v437_v37 = vpack.c.bf16 %v291_v33, %v290_v31  ;;  %v447_v38 = vpack.c.bf16 %v295_v34, %v294_v32 }
  0xb2   :  { %457 = vst [vmem:[%s584_s3 + $0x20] sm:$0xff] %v437_v37  }
  0xb3   :  { %459 = vst [vmem:[%s584_s3 + $0x30] sm:$0xff] %v447_v38  }
  0xb5   :  { %v212_v39 = vpop.f32.mrf.mxu2  ;;  %v222_v40 = vpop.f32.mrf.mxu3 }
  0xb6   :  { %v194_v41 = vpop.f32.mrf.mxu0  ;;  %v204_v42 = vpop.f32.mrf.mxu1  ;;  %v292_v51 = vadd.f32 %v485_v18, %v212_v39  ;;  %v296_v52 = vadd.f32 %v485_v18, %v222_v40 }
  0xb7   :  { %v285_v45 = vadd.f32 %v485_v18, %v194_v41  ;;  %v289_v46 = vadd.f32 %v485_v18, %v204_v42 }
  0xb9   :  { %v422_v47 = vpack.c.bf16 %v285_v45, %v284_v43  ;;  %v432_v48 = vpack.c.bf16 %v289_v46, %v288_v44 }
  0xbb   :  { %454 = vst [vmem:[%s584_s3 + $0x8] sm:$0xff] %v422_v47  }
  0xbc   :  { %456 = vst [vmem:[%s584_s3 + $0x18] sm:$0xff] %v432_v48  }
  0xbd   :  { %v214_v49 = vpop.f32.mrf.mxu2  ;;  %v224_v50 = vpop.f32.mrf.mxu3 }
  0xbe   :  { %v293_v53 = vadd.f32 %v485_v18, %v214_v49  ;;  %v297_v54 = vadd.f32 %v485_v18, %v224_v50 }
  0xc0   :  { %v442_v55 = vpack.c.bf16 %v293_v53, %v292_v51  ;;  %v452_v56 = vpack.c.bf16 %v297_v54, %v296_v52 }
  0xc2   :  { %458 = vst [vmem:[%s584_s3 + $0x28] sm:$0xff] %v442_v55  }
  0xc3   :  { %460 = vst [vmem:[%s584_s3 + $0x38] sm:$0xff] %v452_v56  }

// kernel: swin_forward.27
= control target key start
LH: loop header
LB: loop body
LE: loop exit
PB: predicated region body
PF: predicated region fallthrough
CT: control target
= control target key end

     0   :  { %s1387_s0 = inlined_call_operand.vmem [shape: bf16[128,128], index: 0, kind: input, shape index: {}]   ;;  %s1388_s3 = inlined_call_operand.vmem [shape: f32[1,128], index: 3, kind: input, shape index: {}]   ;;  %s1389_s4 = inlined_call_operand.vmem [shape: f32[1,128], index: 4, kind: input, shape index: {}]   ;;  %s1390_s1 = inlined_call_operand.vmem [shape: bf16[128,128], index: 1, kind: input, shape index: {}]   ;;  %s1391_s2 = inlined_call_operand.vmem [shape: f32[1,128], index: 2, kind: input, shape index: {}]   ;;  %s1392_s5 = inlined_call_operand.vmem [shape: bf16[128,128], index: 5, kind: output, shape index: {}]  }
   0x1   :  { %v825_v0 = vld [vmem:[%s1387_s0 + $0x30] sm:$0xff]   ;;  %v823_v1 = vld [vmem:[%s1387_s0 + $0x20] sm:$0xff]   ;;  %v824_v19 = vld [vmem:[%s1387_s0 + $0x28] sm:$0xff]  }
   0x2   :  { %v929_v2 = vunpack.c.l.bf16 %v825_v0  ;;  %v931_v3 = vunpack.c.l.bf16 %v823_v1  ;;  %v937_v5 = vunpack.c.h.bf16 %v823_v1  ;;  %v939_v6 = vunpack.c.h.bf16 %v825_v0  ;;  %v749_v8 = vld [vmem:[%s1387_s0] sm:$0xff]   ;;  %v821_v12 = vld [vmem:[%s1387_s0 + $0x10] sm:$0xff]   ;;  %v826_v23 = vld [vmem:[%s1387_s0 + $0x38] sm:$0xff]  }
   0x3   :  { %v952_v11 = vunpack.c.l.bf16 %v749_v8  ;;  %v958_v13 = vunpack.c.l.bf16 %v821_v12  ;;  %v960_v14 = vunpack.c.h.bf16 %v749_v8  ;;  %v962_v15 = vunpack.c.h.bf16 %v821_v12  ;;  %v820_v30 = vld [vmem:[%s1387_s0 + $0x8] sm:$0xff]   ;;  %v822_v31 = vld [vmem:[%s1387_s0 + $0x18] sm:$0xff]   ;;  %v746_v41 = vld [vmem:[%s1390_s1 + $0x30] sm:$0xff] }
   0x4   :  { %96 = vadd.xlane.f32.xlu1 %v929_v2  ;;  %88 = vadd.xlane.f32.xlu0 %v931_v3  ;;  %v128_v4 = vmul.f32 %v931_v3, %v931_v3  ;;  %v129_v7 = vmul.f32 %v937_v5, %v937_v5  ;;  %v133_v9 = vmul.f32 %v939_v6, %v939_v6  ;;  %v976_v20 = vunpack.c.l.bf16 %v824_v19  ;;  %v747_v40 = vld [vmem:[%s1390_s1 + $0x38] sm:$0xff]  ;;  %v745_v42 = vld [vmem:[%s1390_s1 + $0x28] sm:$0xff]  ;;  %v744_v43 = vld [vmem:[%s1390_s1 + $0x20] sm:$0xff] }
   0x5   :  { %v132_v10 = vmul.f32 %v929_v2, %v929_v2  ;;  %v121_v16 = vmul.f32 %v960_v14, %v960_v14  ;;  %v120_v17 = vmul.f32 %v952_v11, %v952_v11  ;;  %v124_v18 = vmul.f32 %v958_v13, %v958_v13  ;;  %835 = vmatpush.bf16.msra.mxu2 %v747_v40  ;;  %v743_v44 = vld [vmem:[%s1390_s1 + $0x18] sm:$0xff]  ;;  %v742_v45 = vld [vmem:[%s1390_s1 + $0x10] sm:$0xff]  ;;  %v741_v51 = vld [vmem:[%s1390_s1 + $0x8] sm:$0xff] }
   0x6   :  { %152 = vadd.xlane.f32.xlu2 %v128_v4  ;;  %v125_v21 = vmul.f32 %v962_v15, %v962_v15  ;;  %v980_v22 = vunpack.c.h.bf16 %v824_v19  ;;  %v987_v24 = vunpack.c.h.bf16 %v826_v23  ;;  %v989_v25 = vunpack.c.l.bf16 %v826_v23  ;;  %836 = vmatpush.bf16.msra.mxu3 %v747_v40  ;;  %v740_v54 = vld [vmem:[%s1390_s1] sm:$0xff] }
   0x7   :  { %v130_v26 = vmul.f32 %v976_v20, %v976_v20  ;;  %v1007_v32 = vunpack.c.h.bf16 %v820_v30  ;;  %v1009_v33 = vunpack.c.l.bf16 %v820_v30  ;;  %v1011_v34 = vunpack.c.l.bf16 %v822_v31  ;;  %552 = vmatpush.bf16.msra.mxu0 %v747_v40  ;;  %834 = vmatpush.bf16.msra.mxu1 %v747_v40 }
   0x8   :  { %v134_v27 = vmul.f32 %v989_v25, %v989_v25  ;;  %v131_v28 = vmul.f32 %v980_v22, %v980_v22  ;;  %v135_v29 = vmul.f32 %v987_v24, %v987_v24  ;;  %v1018_v36 = vunpack.c.h.bf16 %v822_v31 }
   0x9   :  { %v122_v35 = vmul.f32 %v1009_v33, %v1009_v33  ;;  %v123_v37 = vmul.f32 %v1007_v32, %v1007_v32  ;;  %v126_v39 = vmul.f32 %v1011_v34, %v1011_v34  ;;  %838 = vmatpush.bf16.msra.mxu2 %v746_v41 }
   0xa   :  { %v127_v38 = vmul.f32 %v1018_v36, %v1018_v36  ;;  %839 = vmatpush.bf16.msra.mxu3 %v746_v41 }
   0xb   :  { %553 = vmatpush.bf16.msra.mxu0 %v746_v41  ;;  %837 = vmatpush.bf16.msra.mxu1 %v746_v41 }
   0xc   :  { %98 = vadd.xlane.f32.xlu1 %v939_v6  ;;  %90 = vadd.xlane.f32.xlu0 %v937_v5 }
   0xd   :  { %841 = vmatpush.bf16.msra.mxu2 %v745_v42 }
   0xe   :  { %154 = vadd.xlane.f32.xlu2 %v129_v7  ;;  %842 = vmatpush.bf16.msra.mxu3 %v745_v42 }
   0xf   :  { %554 = vmatpush.bf16.msra.mxu0 %v745_v42  ;;  %840 = vmatpush.bf16.msra.mxu1 %v745_v42 }
  0x11   :  { %844 = vmatpush.bf16.msra.mxu2 %v744_v43 }
  0x12   :  { %845 = vmatpush.bf16.msra.mxu3 %v744_v43 }
  0x13   :  { %555 = vmatpush.bf16.msra.mxu0 %v744_v43  ;;  %843 = vmatpush.bf16.msra.mxu1 %v744_v43 }
  0x14   :  { %162 = vadd.xlane.f32.xlu1 %v133_v9  ;;  %160 = vadd.xlane.f32.xlu0 %v132_v10 }
  0x15   :  { %847 = vmatpush.bf16.msra.mxu2 %v743_v44 }
  0x16   :  { %72 = vadd.xlane.f32.xlu2 %v952_v11  ;;  %848 = vmatpush.bf16.msra.mxu3 %v743_v44 }
  0x17   :  { %556 = vmatpush.bf16.msra.mxu0 %v743_v44  ;;  %846 = vmatpush.bf16.msra.mxu1 %v743_v44 }
  0x19   :  { %850 = vmatpush.bf16.msra.mxu2 %v742_v45 }
  0x1a   :  { %851 = vmatpush.bf16.msra.mxu3 %v742_v45 }
  0x1b   :  { %557 = vmatpush.bf16.msra.mxu0 %v742_v45  ;;  %849 = vmatpush.bf16.msra.mxu1 %v742_v45 }
  0x1c   :  { %80 = vadd.xlane.f32.xlu1 %v958_v13  ;;  %74 = vadd.xlane.f32.xlu0 %v960_v14 }
  0x1d   :  { %853 = vmatpush.bf16.msra.mxu2 %v741_v51 }
  0x1e   :  { %82 = vadd.xlane.f32.xlu2 %v962_v15  ;;  %854 = vmatpush.bf16.msra.mxu3 %v741_v51 }
  0x1f   :  { %558 = vmatpush.bf16.msra.mxu0 %v741_v51  ;;  %852 = vmatpush.bf16.msra.mxu1 %v741_v51 }
  0x21   :  { %856 = vmatpush.bf16.msra.mxu2 %v740_v54 }
  0x22   :  { %857 = vmatpush.bf16.msra.mxu3 %v740_v54 }
  0x23   :  { %559 = vmatpush.bf16.msra.mxu0 %v740_v54  ;;  %855 = vmatpush.bf16.msra.mxu1 %v740_v54 }
  0x24   :  { %138 = vadd.xlane.f32.xlu1 %v121_v16  ;;  %136 = vadd.xlane.f32.xlu0 %v120_v17 }
  0x26   :  { %144 = vadd.xlane.f32.xlu2 %v124_v18 }
  0x2c   :  { %92 = vadd.xlane.f32.xlu1 %v976_v20  ;;  %146 = vadd.xlane.f32.xlu0 %v125_v21 }
  0x2e   :  { %94 = vadd.xlane.f32.xlu2 %v980_v22 }
  0x34   :  { %102 = vadd.xlane.f32.xlu1 %v987_v24  ;;  %100 = vadd.xlane.f32.xlu0 %v989_v25 }
  0x36   :  { %156 = vadd.xlane.f32.xlu2 %v130_v26 }
  0x3c   :  { %164 = vadd.xlane.f32.xlu1 %v134_v27  ;;  %158 = vadd.xlane.f32.xlu0 %v131_v28 }
  0x3e   :  { %166 = vadd.xlane.f32.xlu2 %v135_v29 }
  0x44   :  { %78 = vadd.xlane.f32.xlu1 %v1007_v32  ;;  %76 = vadd.xlane.f32.xlu0 %v1009_v33 }
  0x46   :  { %84 = vadd.xlane.f32.xlu2 %v1011_v34 }
  0x4c   :  { %140 = vadd.xlane.f32.xlu1 %v122_v35  ;;  %86 = vadd.xlane.f32.xlu0 %v1018_v36 }
  0x4e   :  { %142 = vadd.xlane.f32.xlu2 %v123_v37 }
  0x54   :  { %150 = vadd.xlane.f32.xlu1 %v127_v38  ;;  %148 = vadd.xlane.f32.xlu0 %v126_v39 }
  0x77   :  { %v97_v46 = vpop.xlane.xlu1 %96  ;;  %v89_v47 = vpop.xlane.xlu0 %88 }
  0x78   :  { %v1045_v48 = vmul.f32 0.03125, %v89_v47  ;;  %v1059_v61 = vmul.f32 0.03125, %v97_v46 }
  0x79   :  { %v153_v49 = vpop.xlane.xlu2 %152 }
  0x7a   :  { %v192_v50 = vmul.f32 %v1045_v48, %v1045_v48  ;;  %v176_v52 = vmul.f32 0.03125, %v153_v49  ;;  %v196_v4 = vmul.f32 %v1059_v61, %v1059_v61  ;;  %v228_v44 = vsub.f32 %v929_v2, %v1059_v61 }
  0x7b   :  { %v224_v47 = vsub.f32 %v931_v3, %v1045_v48 }
  0x7c   :  { %v208_v53 = vsub.f32 %v176_v52, %v192_v50 }
  0x7e   :  { %v240_v55 = vadd.f32 1e-05, %v208_v53 }
  0x7f   :  { %v99_v56 = vpop.xlane.xlu1 %98  ;;  %v91_v57 = vpop.xlane.xlu0 %90 }
  0x80   :  { %v1055_v58 = vmul.f32 0.03125, %v91_v57  ;;  %861 = vrsqrt.f32 %v240_v55  ;;  %v1061_v63 = vmul.f32 0.03125, %v99_v56  ;;  %vm334_vm1 = vweird.f32 %v240_v55 }
  0x81   :  { %v155_v59 = vpop.xlane.xlu2 %154 }
  0x82   :  { %v193_v60 = vmul.f32 %v1055_v58, %v1055_v58  ;;  %v177_v62 = vmul.f32 0.03125, %v155_v59  ;;  %v197_v12 = vmul.f32 %v1061_v63, %v1061_v63  ;;  %v225_v50 = vsub.f32 %v937_v5, %v1055_v58 }
  0x84   :  { %v209_v0 = vsub.f32 %v177_v62, %v193_v60 }
  0x86   :  { %v862_v1 = vpop.eup %861  ;;  %v241_v7 = vadd.f32 1e-05, %v209_v0 }
  0x87   :  { %v163_v8 = vpop.xlane.xlu1 %162  ;;  %v161_v9 = vpop.xlane.xlu0 %160  ;;  %v329_v10 = vmul.f32 %v862_v1, %v240_v55  ;;  %vm335_vm0 = vweird.f32 %v862_v1 }
  0x88   :  { %v181_v16 = vmul.f32 0.03125, %v163_v8  ;;  %v180_v17 = vmul.f32 0.03125, %v161_v9  ;;  %863 = vrsqrt.f32 %v241_v7  ;;  %vm1085_vm2 = vmor %vm334_vm1, %vm335_vm0  ;;  %vm344_vm3 = vweird.f32 %v241_v7 }
  0x89   :  { %v73_v18 = vpop.xlane.xlu2 %72  ;;  %v330_v19 = vmul.f32 %v862_v1, %v329_v10  ;;  %v1112_v10 = vld [vmem:[%s1388_s3] ss:$0 sm:$0xff] }
  0x8a   :  { %v213_v21 = vsub.f32 %v181_v16, %v197_v12  ;;  %v212_v23 = vsub.f32 %v180_v17, %v196_v4  ;;  %v1073_v41 = vmul.f32 0.03125, %v73_v18 }
  0x8b   :  { %v331_v26 = vmul.f32 0.5, %v330_v19 }
  0x8c   :  { %v1067_v27 = vadd.f32 1e-05, %v213_v21  ;;  %v1069_v28 = vadd.f32 1e-05, %v212_v23  ;;  %v184_v55 = vmul.f32 %v1073_v41, %v1073_v41 }
  0x8d   :  { %v332_v29 = vsub.f32 1.5, %v331_v26 }
  0x8e   :  { %865 = vrsqrt.f32 %v1067_v27  ;;  %v864_v30 = vpop.eup %863  ;;  %vm384_vm8 = vweird.f32 %v1067_v27  ;;  %vm374_vm10 = vweird.f32 %v1069_v28 }
  0x8f   :  { %867 = vrsqrt.f32 %v1069_v28  ;;  %v81_v31 = vpop.xlane.xlu1 %80  ;;  %v75_v35 = vpop.xlane.xlu0 %74  ;;  %v339_v37 = vmul.f32 %v864_v30, %v241_v7  ;;  %v333_v39 = vmul.f32 %v862_v1, %v332_v29  ;;  %vm345_vm4 = vweird.f32 %v864_v30 }
  0x90   :  { %v1075_v42 = vmul.f32 0.03125, %v75_v35  ;;  %v1093_v52 = vmul.f32 0.03125, %v81_v31  ;;  %vm346_vm5 = vmor %vm344_vm3, %vm345_vm4 }
  0x91   :  { %v83_v38 = vpop.xlane.xlu2 %82  ;;  %v340_v40 = vmul.f32 %v864_v30, %v339_v37  ;;  %v337_v3 = vsel %vm1085_vm2, %v862_v1, %v333_v39 }
  0x92   :  { %v185_v5 = vmul.f32 %v1075_v42, %v1075_v42  ;;  %v188_v1 = vmul.f32 %v1093_v52, %v1093_v52  ;;  %v1107_v4 = vmul.f32 0.03125, %v83_v38  ;;  %v416_v9 = vmul.f32 %v337_v3, %v224_v47  ;;  %v1128_v38 = vld [vmem:[%s1389_s4] ss:$0 sm:$0xff] }
  0x93   :  { %v341_v45 = vmul.f32 0.5, %v340_v40 }
  0x94   :  { %v1077_v43 = vpop.eup %865  ;;  %v436_v37 = vmul.f32 %v1112_v10, %v416_v9  ;;  %v216_v9 = vsub.f32 %v952_v11, %v1073_v41 }
  0x95   :  { %v1081_v46 = vpop.eup %867  ;;  %v379_v51 = vmul.f32 %v1077_v43, %v1067_v27  ;;  %v342_v53 = vsub.f32 1.5, %v341_v45  ;;  %vm385_vm6 = vweird.f32 %v1077_v43 }
  0x96   :  { %v369_v54 = vmul.f32 %v1081_v46, %v1069_v28  ;;  %vm375_vm7 = vweird.f32 %v1081_v46  ;;  %vm386_vm9 = vmor %vm384_vm8, %vm385_vm6 }
  0x97   :  { %v380_v48 = vmul.f32 %v1077_v43, %v379_v51  ;;  %v139_v56 = vpop.xlane.xlu1 %138  ;;  %v137_v57 = vpop.xlane.xlu0 %136  ;;  %v343_v58 = vmul.f32 %v864_v30, %v342_v53  ;;  %vm376_vm11 = vmor %vm374_vm10, %vm375_vm7  ;;  %v456_v53 = vadd.f32 %v1128_v38, %v436_v37 }
  0x98   :  { %v370_v59 = vmul.f32 %v1081_v46, %v369_v54  ;;  %v169_v60 = vmul.f32 0.03125, %v139_v56  ;;  %v168_v62 = vmul.f32 0.03125, %v137_v57 }
  0x99   :  { %v381_v0 = vmul.f32 0.5, %v380_v48  ;;  %v145_v8 = vpop.xlane.xlu2 %144  ;;  %v347_v21 = vsel %vm346_vm5, %v864_v30, %v343_v58  ;;  %v229_v30 = vsub.f32 %v939_v6, %v1061_v63  ;;  %v189_v63 = vmul.f32 %v1107_v4, %v1107_v4 }
  0x9a   :  { %v371_v12 = vmul.f32 0.5, %v370_v59  ;;  %v201_v16 = vsub.f32 %v169_v60, %v185_v5  ;;  %v200_v17 = vsub.f32 %v168_v62, %v184_v55  ;;  %v172_v18 = vmul.f32 0.03125, %v145_v8 }
  0x9b   :  { %v382_v19 = vsub.f32 1.5, %v381_v0  ;;  %v417_v7 = vmul.f32 %v347_v21, %v225_v50 }
  0x9c   :  { %v372_v23 = vsub.f32 1.5, %v371_v12  ;;  %v1118_v26 = vadd.f32 1e-05, %v201_v16  ;;  %v1120_v29 = vadd.f32 1e-05, %v200_v17  ;;  %v204_v31 = vsub.f32 %v172_v18, %v188_v1 }
  0x9d   :  { %v383_v35 = vmul.f32 %v1077_v43, %v382_v19  ;;  %v437_v47 = vmul.f32 %v1112_v10, %v417_v7  ;;  %v217_v17 = vsub.f32 %v960_v14, %v1075_v42 }
  0x9e   :  { %v373_v39 = vmul.f32 %v1081_v46, %v372_v23  ;;  %869 = vrsqrt.f32 %v1118_v26  ;;  %v1138_v27 = vadd.f32 1e-05, %v204_v31  ;;  %vm264_vm12 = vweird.f32 %v1118_v26 }
  0x9f   :  { %871 = vrsqrt.f32 %v1120_v29  ;;  %v93_v40 = vpop.xlane.xlu1 %92  ;;  %v147_v45 = vpop.xlane.xlu0 %146  ;;  %v387_v6 = vsel %vm386_vm9, %v1077_v43, %v383_v35  ;;  %v457_v54 = vadd.f32 %v1128_v38, %v437_v47  ;;  %vm254_vm13 = vweird.f32 %v1120_v29 }
  0xa0   :  { %v173_v49 = vmul.f32 0.03125, %v147_v45  ;;  %v377_v28 = vsel %vm376_vm11, %v1081_v46, %v373_v39  ;;  %v421_v50 = vmul.f32 %v387_v6, %v229_v30  ;;  %873 = vrsqrt.f32 %v1138_v27 }
  0xa1   :  { %v95_v51 = vpop.xlane.xlu2 %94  ;;  %v420_v3 = vmul.f32 %v377_v28, %v228_v44  ;;  %v468_v43 = vpack.c.bf16 %v457_v54, %v456_v53  ;;  %v1162_v44 = vmul.f32 0.03125, %v93_v40  ;;  %vm294_vm0 = vweird.f32 %v1138_v27 }
  0xa2   :  { %v205_v48 = vsub.f32 %v173_v49, %v189_v63  ;;  %v441_v5 = vmul.f32 %v1112_v10, %v421_v50  ;;  %v1179_v41 = vmul.f32 0.03125, %v95_v51 }
  0xa3   :  { %v440_v55 = vmul.f32 %v1112_v10, %v420_v3  ;;  %580 = vmatmul.bf16.vlgmr.msra.gmra.mxu2 %v468_v43  ;;  %v194_v11 = vmul.f32 %v1162_v44, %v1162_v44 }
  0xa4   :  { %v1153_v56 = vpop.eup %869  ;;  %v1155_v46 = vadd.f32 1e-05, %v205_v48  ;;  %v461_v2 = vadd.f32 %v1128_v38, %v441_v5  ;;  %v195_v49 = vmul.f32 %v1179_v41, %v1179_v41 }
  0xa5   :  { %v872_v57 = vpop.eup %871  ;;  %v259_v58 = vmul.f32 %v1153_v56, %v1118_v26  ;;  %v460_v59 = vadd.f32 %v1128_v38, %v440_v55  ;;  %vm265_vm14 = vweird.f32 %v1153_v56 }
  0xa6   :  { %v249_v61 = vmul.f32 %v872_v57, %v1120_v29  ;;  %875 = vrsqrt.f32 %v1155_v46  ;;  %v1165_v60 = vpop.eup %873  ;;  %vm255_vm15 = vweird.f32 %v872_v57  ;;  %vm1194_vm1 = vmor %vm264_vm12, %vm265_vm14  ;;  %vm304_vm6 = vweird.f32 %v1155_v46 }
  0xa7   :  { %v260_v62 = vmul.f32 %v1153_v56, %v259_v58  ;;  %v103_v0 = vpop.xlane.xlu1 %102  ;;  %v101_v1 = vpop.xlane.xlu0 %100  ;;  %v470_v8 = vpack.c.bf16 %v461_v2, %v460_v59  ;;  %v289_v16 = vmul.f32 %v1165_v60, %v1138_v27  ;;  %vm295_vm2 = vweird.f32 %v1165_v60  ;;  %vm256_vm3 = vmor %vm254_vm13, %vm255_vm15 }
  0xa8   :  { %v250_v12 = vmul.f32 %v872_v57, %v249_v61  ;;  %v1182_v35 = vmul.f32 0.03125, %v101_v1  ;;  %v1190_v40 = vmul.f32 0.03125, %v103_v0  ;;  %vm1219_vm4 = vmor %vm294_vm0, %vm295_vm2 }
  0xa9   :  { %v261_v18 = vmul.f32 0.5, %v260_v62  ;;  %590 = vmatmul.bf16.vlgmr.msra.gmra.mxu3 %v470_v8  ;;  %v157_v19 = vpop.xlane.xlu2 %156  ;;  %v290_v23 = vmul.f32 %v1165_v60, %v289_v16 }
  0xaa   :  { %v251_v21 = vmul.f32 0.5, %v250_v12  ;;  %v178_v14 = vmul.f32 0.03125, %v157_v19  ;;  %v198_v50 = vmul.f32 %v1182_v35, %v1182_v35  ;;  %v199_v5 = vmul.f32 %v1190_v40, %v1190_v40 }
  0xab   :  { %v262_v31 = vsub.f32 1.5, %v261_v18  ;;  %v291_v37 = vmul.f32 0.5, %v290_v23  ;;  %v220_v18 = vsub.f32 %v958_v13, %v1093_v52 }
  0xac   :  { %v1184_v42 = vpop.eup %875  ;;  %v252_v7 = vsub.f32 1.5, %v251_v21  ;;  %v210_v45 = vsub.f32 %v178_v14, %v194_v11  ;;  %v221_v21 = vsub.f32 %v962_v15, %v1107_v4 }
  0xad   :  { %v263_v30 = vmul.f32 %v1153_v56, %v262_v31  ;;  %v299_v39 = vmul.f32 %v1184_v42, %v1155_v46  ;;  %v292_v63 = vsub.f32 1.5, %v291_v37  ;;  %vm305_vm5 = vweird.f32 %v1184_v42 }
  0xae   :  { %v253_v6 = vmul.f32 %v872_v57, %v252_v7  ;;  %v1206_v26 = vadd.f32 1e-05, %v210_v45  ;;  %vm306_vm7 = vmor %vm304_vm6, %vm305_vm5 }
  0xaf   :  { %v300_v28 = vmul.f32 %v1184_v42, %v299_v39  ;;  %v165_v51 = vpop.xlane.xlu1 %164  ;;  %v159_v53 = vpop.xlane.xlu0 %158  ;;  %v267_v54 = vsel %vm1194_vm1, %v1153_v56, %v263_v30  ;;  %v293_v3 = vmul.f32 %v1165_v60, %v292_v63  ;;  %v226_v30 = vsub.f32 %v976_v20, %v1162_v44 }
  0xb0   :  { %v182_v48 = vmul.f32 0.03125, %v165_v51  ;;  %v179_v43 = vmul.f32 0.03125, %v159_v53  ;;  %v257_v55 = vsel %vm256_vm3, %v872_v57, %v253_v6  ;;  %877 = vrsqrt.f32 %v1206_v26 }
  0xb1   :  { %v301_v29 = vmul.f32 0.5, %v300_v28  ;;  %v167_v58 = vpop.xlane.xlu2 %166  ;;  %v408_v59 = vmul.f32 %v257_v55, %v216_v9  ;;  %v409_v57 = vmul.f32 %v267_v54, %v217_v17  ;;  %v297_v8 = vsel %vm1219_vm4, %v1165_v60, %v293_v3 }
  0xb2   :  { %v214_v56 = vsub.f32 %v182_v48, %v198_v50  ;;  %v211_v61 = vsub.f32 %v179_v43, %v195_v49  ;;  %v183_v62 = vmul.f32 0.03125, %v167_v58  ;;  %v412_v31 = vmul.f32 %v297_v8, %v220_v18 }
  0xb3   :  { %v302_v0 = vsub.f32 1.5, %v301_v29  ;;  %v428_v1 = vmul.f32 %v1112_v10, %v408_v59  ;;  %v429_v16 = vmul.f32 %v1112_v10, %v409_v57  ;;  %v227_v39 = vsub.f32 %v980_v22, %v1179_v41 }
  0xb4   :  { %v1228_v9 = vadd.f32 1e-05, %v214_v56  ;;  %v1230_v27 = vadd.f32 1e-05, %v211_v61  ;;  %v215_v12 = vsub.f32 %v183_v62, %v199_v5  ;;  %v432_v45 = vmul.f32 %v1112_v10, %v412_v31 }
  0xb5   :  { %v303_v17 = vmul.f32 %v1184_v42, %v302_v0  ;;  %v448_v19 = vadd.f32 %v1128_v38, %v428_v1  ;;  %v449_v52 = vadd.f32 %v1128_v38, %v429_v16  ;;  %v230_v6 = vsub.f32 %v989_v25, %v1182_v35 }
  0xb6   :  { %879 = vrsqrt.f32 %v1228_v9  ;;  %v1241_v60 = vadd.f32 1e-05, %v215_v12  ;;  %v1243_v23 = vpop.eup %877  ;;  %vm354_vm8 = vweird.f32 %v1206_v26  ;;  %vm394_vm9 = vweird.f32 %v1228_v9 }
  0xb7   :  { %881 = vrsqrt.f32 %v1230_v27  ;;  %v79_v11 = vpop.xlane.xlu1 %78  ;;  %v77_v13 = vpop.xlane.xlu0 %76  ;;  %v307_v46 = vsel %vm306_vm7, %v1184_v42, %v303_v17  ;;  %v349_v14 = vmul.f32 %v1243_v23, %v1206_v26  ;;  %v464_v15 = vpack.c.bf16 %v449_v52, %v448_v19 }
  0xb8   :  { %883 = vrsqrt.f32 %v1241_v60  ;;  %v413_v7 = vmul.f32 %v307_v46, %v221_v21  ;;  %v231_v42 = vsub.f32 %v987_v24, %v1190_v40  ;;  %v1263_v49 = vmul.f32 0.03125, %v77_v13 }
  0xb9   :  { %v85_v4 = vpop.xlane.xlu2 %84  ;;  %v350_v37 = vmul.f32 %v1243_v23, %v349_v14  ;;  %560 = vmatmul.bf16.vlgmr.msra.gmra.mxu0 %v464_v15  ;;  %v1270_v50 = vmul.f32 0.03125, %v79_v11  ;;  %vm355_vm10 = vweird.f32 %v1243_v23  ;;  %v452_v58 = vadd.f32 %v1128_v38, %v432_v45 }
  0xba   :  { %v433_v28 = vmul.f32 %v1112_v10, %v413_v7  ;;  %v1280_v55 = vmul.f32 0.03125, %v85_v4  ;;  %v186_v56 = vmul.f32 %v1263_v49, %v1263_v49  ;;  %vm1293_vm11 = vmor %vm354_vm8, %vm355_vm10  ;;  %vm364_vm0 = vweird.f32 %v1230_v27 }
  0xbb   :  { %v351_v63 = vmul.f32 0.5, %v350_v37  ;;  %v187_v0 = vmul.f32 %v1270_v50, %v1270_v50  ;;  %vm404_vm1 = vweird.f32 %v1241_v60 }
  0xbc   :  { %v1259_v47 = vpop.eup %879  ;;  %v453_v3 = vadd.f32 %v1128_v38, %v433_v28  ;;  %v190_v37 = vmul.f32 %v1280_v55, %v1280_v55 }
  0xbd   :  { %v882_v20 = vpop.eup %881  ;;  %v389_v44 = vmul.f32 %v1259_v47, %v1228_v9  ;;  %v352_v53 = vsub.f32 1.5, %v351_v63  ;;  %vm395_vm12 = vweird.f32 %v1259_v47 }
  0xbe   :  { %v1272_v51 = vpop.eup %883  ;;  %v359_v54 = vmul.f32 %v882_v20, %v1230_v27  ;;  %v466_v1 = vpack.c.bf16 %v453_v3, %v452_v58  ;;  %vm365_vm13 = vweird.f32 %v882_v20  ;;  %vm1309_vm15 = vmor %vm394_vm9, %vm395_vm12 }
  0xbf   :  { %v390_v48 = vmul.f32 %v1259_v47, %v389_v44  ;;  %v399_v43 = vmul.f32 %v1272_v51, %v1241_v60  ;;  %v141_v29 = vpop.xlane.xlu1 %140  ;;  %v87_v5 = vpop.xlane.xlu0 %86  ;;  %v353_v59 = vmul.f32 %v1243_v23, %v352_v53  ;;  %vm405_vm14 = vweird.f32 %v1272_v51  ;;  %vm366_vm2 = vmor %vm364_vm0, %vm365_vm13 }
  0xc0   :  { %v360_v2 = vmul.f32 %v882_v20, %v359_v54  ;;  %v170_v61 = vmul.f32 0.03125, %v141_v29  ;;  %570 = vmatmul.bf16.vlgmr.msra.gmra.mxu1 %v466_v1  ;;  %v1302_v52 = vmul.f32 0.03125, %v87_v5  ;;  %vm406_vm3 = vmor %vm404_vm1, %vm405_vm14 }
  0xc1   :  { %v391_v62 = vmul.f32 0.5, %v390_v48  ;;  %v400_v57 = vmul.f32 %v1272_v51, %v399_v43  ;;  %v143_v8 = vpop.xlane.xlu2 %142  ;;  %v357_v11 = vsel %vm1293_vm11, %v1243_v23, %v353_v59 }
  0xc2   :  { %v361_v16 = vmul.f32 0.5, %v360_v2  ;;  %v202_v18 = vsub.f32 %v170_v61, %v186_v56  ;;  %v171_v21 = vmul.f32 0.03125, %v143_v8  ;;  %v418_v15 = vmul.f32 %v357_v11, %v226_v30 }
  0xc3   :  { %v392_v17 = vsub.f32 1.5, %v391_v62  ;;  %v401_v19 = vmul.f32 0.5, %v400_v57  ;;  %v191_v27 = vmul.f32 %v1302_v52, %v1302_v52 }
  0xc4   :  { %v362_v13 = vsub.f32 1.5, %v361_v16  ;;  %v234_v26 = vadd.f32 1e-05, %v202_v18  ;;  %v203_v14 = vsub.f32 %v171_v21, %v187_v0  ;;  %v438_v54 = vmul.f32 %v1112_v10, %v418_v15 }
  0xc5   :  { %v393_v46 = vmul.f32 %v1259_v47, %v392_v17  ;;  %v402_v31 = vsub.f32 1.5, %v401_v19  ;;  %v218_v18 = vsub.f32 %v1009_v33, %v1263_v49 }
  0xc6   :  { %v363_v23 = vmul.f32 %v882_v20, %v362_v13  ;;  %885 = vrsqrt.f32 %v234_v26  ;;  %v235_v30 = vadd.f32 1e-05, %v203_v14  ;;  %v458_v59 = vadd.f32 %v1128_v38, %v438_v54 }
  0xc7   :  { %v403_v7 = vmul.f32 %v1272_v51, %v402_v31  ;;  %v151_v45 = vpop.xlane.xlu1 %150  ;;  %v149_v9 = vpop.xlane.xlu0 %148  ;;  %v397_v63 = vsel %vm1309_vm15, %v1259_v47, %v393_v46  ;;  %vm274_vm5 = vweird.f32 %v234_v26  ;;  %v219_v14 = vsub.f32 %v1007_v32, %v1270_v50 }
  0xc8   :  { %v175_v60 = vmul.f32 0.03125, %v151_v45  ;;  %v174_v28 = vmul.f32 0.03125, %v149_v9  ;;  %v367_v44 = vsel %vm366_vm2, %v882_v20, %v363_v23  ;;  %887 = vrsqrt.f32 %v235_v30 }
  0xc9   :  { %v419_v53 = vmul.f32 %v367_v44, %v227_v39  ;;  %v407_v3 = vsel %vm406_vm3, %v1272_v51, %v403_v7  ;;  %v422_v43 = vmul.f32 %v397_v63, %v230_v6  ;;  %vm284_vm8 = vweird.f32 %v235_v30 }
  0xca   :  { %v207_v48 = vsub.f32 %v175_v60, %v191_v27  ;;  %v206_v47 = vsub.f32 %v174_v28, %v190_v37  ;;  %v423_v29 = vmul.f32 %v407_v3, %v231_v42  ;;  %v223_v45 = vsub.f32 %v1018_v36, %v1302_v52 }
  0xcb   :  { %v439_v20 = vmul.f32 %v1112_v10, %v419_v53  ;;  %v442_v41 = vmul.f32 %v1112_v10, %v422_v43  ;;  %v222_v50 = vsub.f32 %v1011_v34, %v1280_v55 }
  0xcc   :  { %v886_v5 = vpop.eup %885  ;;  %v239_v58 = vadd.f32 1e-05, %v207_v48  ;;  %v238_v22 = vadd.f32 1e-05, %v206_v47  ;;  %v443_v39 = vmul.f32 %v1112_v10, %v423_v29  ;;  %v860_v47 = vld [vmem:[%s1391_s2] ss:$0 sm:$0xff] }
  0xcd   :  { %v269_v51 = vmul.f32 %v886_v5, %v234_v26  ;;  %v459_v2 = vadd.f32 %v1128_v38, %v439_v20  ;;  %v462_v25 = vadd.f32 %v1128_v38, %v442_v41  ;;  %vm275_vm4 = vweird.f32 %v886_v5 }
  0xce   :  { %889 = vrsqrt.f32 %v239_v58  ;;  %v888_v35 = vpop.eup %887  ;;  %v463_v42 = vadd.f32 %v1128_v38, %v443_v39  ;;  %vm276_vm6 = vmor %vm274_vm5, %vm275_vm4  ;;  %vm324_vm12 = vweird.f32 %v239_v58  ;;  %vm314_vm14 = vweird.f32 %v238_v22 }
  0xcf   :  { %v270_v24 = vmul.f32 %v886_v5, %v269_v51  ;;  %891 = vrsqrt.f32 %v238_v22  ;;  %v469_v40 = vpack.c.bf16 %v459_v2, %v458_v59  ;;  %v279_v6 = vmul.f32 %v888_v35, %v235_v30 }
  0xd0   :  { %v471_v61 = vpack.c.bf16 %v463_v42, %v462_v25  ;;  %vm285_vm7 = vweird.f32 %v888_v35 }
  0xd1   :  { %v271_v56 = vmul.f32 0.5, %v270_v24  ;;  %585 = vmatmul.bf16.gmra.mxu2 %v469_v40  ;;  %v280_v62 = vmul.f32 %v888_v35, %v279_v6  ;;  %vm286_vm9 = vmor %vm284_vm8, %vm285_vm7 }
  0xd2   :  { %595 = vmatmul.bf16.gmra.mxu3 %v471_v61 }
  0xd3   :  { %v272_v57 = vsub.f32 1.5, %v271_v56  ;;  %v281_v1 = vmul.f32 0.5, %v280_v62 }
  0xd4   :  { %v890_v0 = vpop.eup %889 }
  0xd5   :  { %v892_v8 = vpop.eup %891  ;;  %v273_v12 = vmul.f32 %v886_v5, %v272_v57  ;;  %v319_v16 = vmul.f32 %v890_v0, %v239_v58  ;;  %v282_v17 = vsub.f32 1.5, %v281_v1  ;;  %vm325_vm10 = vweird.f32 %v890_v0 }
  0xd6   :  { %v309_v19 = vmul.f32 %v892_v8, %v238_v22  ;;  %vm315_vm11 = vweird.f32 %v892_v8  ;;  %vm326_vm13 = vmor %vm324_vm12, %vm325_vm10 }
  0xd7   :  { %v320_v21 = vmul.f32 %v890_v0, %v319_v16  ;;  %v277_v11 = vsel %vm276_vm6, %v886_v5, %v273_v12  ;;  %v283_v13 = vmul.f32 %v888_v35, %v282_v17  ;;  %vm316_vm15 = vmor %vm314_vm14, %vm315_vm11 }
  0xd8   :  { %v310_v46 = vmul.f32 %v892_v8, %v309_v19  ;;  %v410_v31 = vmul.f32 %v277_v11, %v218_v18 }
  0xd9   :  { %v321_v15 = vmul.f32 0.5, %v320_v21  ;;  %v287_v4 = vsel %vm286_vm9, %v888_v35, %v283_v13 }
  0xda   :  { %v311_v26 = vmul.f32 0.5, %v310_v46  ;;  %v411_v33 = vmul.f32 %v287_v4, %v219_v14  ;;  %v430_v49 = vmul.f32 %v1112_v10, %v410_v31 }
  0xdb   :  { %v322_v23 = vsub.f32 1.5, %v321_v15 }
  0xdc   :  { %v312_v7 = vsub.f32 1.5, %v311_v26  ;;  %v431_v30 = vmul.f32 %v1112_v10, %v411_v33  ;;  %v450_v9 = vadd.f32 %v1128_v38, %v430_v49 }
  0xdd   :  { %v323_v37 = vmul.f32 %v890_v0, %v322_v23 }
  0xde   :  { %v313_v32 = vmul.f32 %v892_v8, %v312_v7  ;;  %v451_v63 = vadd.f32 %v1128_v38, %v431_v30 }
  0xdf   :  { %v327_v27 = vsel %vm326_vm13, %v890_v0, %v323_v37 }
  0xe0   :  { %v317_v60 = vsel %vm316_vm15, %v892_v8, %v313_v32  ;;  %v415_v28 = vmul.f32 %v327_v27, %v223_v45  ;;  %v465_v44 = vpack.c.bf16 %v451_v63, %v450_v9 }
  0xe1   :  { %v414_v53 = vmul.f32 %v317_v60, %v222_v50 }
  0xe2   :  { %v435_v54 = vmul.f32 %v1112_v10, %v415_v28  ;;  %565 = vmatmul.bf16.gmra.mxu0 %v465_v44 }
  0xe3   :  { %v434_v36 = vmul.f32 %v1112_v10, %v414_v53 }
  0xe4   :  { %v455_v52 = vadd.f32 %v1128_v38, %v435_v54 }
  0xe5   :  { %v454_v3 = vadd.f32 %v1128_v38, %v434_v36 }
  0xe7   :  { %v467_v34 = vpack.c.bf16 %v455_v52, %v454_v3 }
  0xe9   :  { %575 = vmatmul.bf16.gmra.mxu1 %v467_v34 }
 0x126   :  { %v581_v55 = vpop.f32.mrf.mxu2 }
 0x127   :  { %v664_v29 = vadd.f32 %v860_v47, %v581_v55 }
 0x12c   :  { %v591_v48 = vpop.f32.mrf.mxu3 }
 0x12d   :  { %v668_v22 = vadd.f32 %v860_v47, %v591_v48 }
 0x12e   :  { %v583_v43 = vpop.f32.mrf.mxu2 }
 0x12f   :  { %v665_v20 = vadd.f32 %v860_v47, %v583_v43 }
 0x131   :  { %v803_v5 = vpack.c.bf16 %v665_v20, %v664_v29 }
 0x133   :  { %830 = vst [vmem:[%s1392_s5 + $0x20] sm:$0xff] %v803_v5  }
 0x134   :  { %v593_v58 = vpop.f32.mrf.mxu3 }
 0x135   :  { %v669_v10 = vadd.f32 %v860_v47, %v593_v58 }
 0x136   :  { %v561_v41 = vpop.f32.mrf.mxu0 }
 0x137   :  { %v813_v38 = vpack.c.bf16 %v669_v10, %v668_v22  ;;  %v656_v59 = vadd.f32 %v860_v47, %v561_v41 }
 0x139   :  { %832 = vst [vmem:[%s1392_s5 + $0x30] sm:$0xff] %v813_v38  }
 0x13d   :  { %v571_v51 = vpop.f32.mrf.mxu1 }
 0x13e   :  { %v563_v39 = vpop.f32.mrf.mxu0  ;;  %v660_v24 = vadd.f32 %v860_v47, %v571_v51 }
 0x13f   :  { %v657_v2 = vadd.f32 %v860_v47, %v563_v39 }
 0x141   :  { %v783_v25 = vpack.c.bf16 %v657_v2, %v656_v59 }
 0x143   :  { %784 = vst [vmem:[%s1392_s5] sm:$0xff] %v783_v25  }
 0x145   :  { %v573_v35 = vpop.f32.mrf.mxu1 }
 0x146   :  { %v661_v40 = vadd.f32 %v860_v47, %v573_v35 }
 0x148   :  { %v793_v42 = vpack.c.bf16 %v661_v40, %v660_v24 }
 0x14a   :  { %828 = vst [vmem:[%s1392_s5 + $0x10] sm:$0xff] %v793_v42  }
 0x154   :  { %v586_v6 = vpop.f32.mrf.mxu2 }
 0x155   :  { %v596_v56 = vpop.f32.mrf.mxu3  ;;  %v666_v62 = vadd.f32 %v860_v47, %v586_v6 }
 0x156   :  { %v670_v1 = vadd.f32 %v860_v47, %v596_v56 }
 0x15c   :  { %v588_v61 = vpop.f32.mrf.mxu2 }
 0x15d   :  { %v667_v57 = vadd.f32 %v860_v47, %v588_v61  ;;  %v598_v0 = vpop.f32.mrf.mxu3 }
 0x15e   :  { %v671_v12 = vadd.f32 %v860_v47, %v598_v0 }
 0x15f   :  { %v808_v8 = vpack.c.bf16 %v667_v57, %v666_v62  ;;  %v566_v16 = vpop.f32.mrf.mxu0 }
 0x160   :  { %v818_v18 = vpack.c.bf16 %v671_v12, %v670_v1  ;;  %v658_v21 = vadd.f32 %v860_v47, %v566_v16 }
 0x161   :  { %831 = vst [vmem:[%s1392_s5 + $0x28] sm:$0xff] %v808_v8  }
 0x162   :  { %833 = vst [vmem:[%s1392_s5 + $0x38] sm:$0xff] %v818_v18  }
 0x166   :  { %v576_v17 = vpop.f32.mrf.mxu1 }
 0x167   :  { %v568_v19 = vpop.f32.mrf.mxu0  ;;  %v662_v31 = vadd.f32 %v860_v47, %v576_v17 }
 0x168   :  { %v659_v11 = vadd.f32 %v860_v47, %v568_v19 }
 0x16a   :  { %v788_v13 = vpack.c.bf16 %v659_v11, %v658_v21 }
 0x16c   :  { %827 = vst [vmem:[%s1392_s5 + $0x8] sm:$0xff] %v788_v13  }
 0x16e   :  { %v578_v46 = vpop.f32.mrf.mxu1 }
 0x16f   :  { %v663_v14 = vadd.f32 %v860_v47, %v578_v46 }
 0x171   :  { %v798_v15 = vpack.c.bf16 %v663_v14, %v662_v31 }
 0x173   :  { %829 = vst [vmem:[%s1392_s5 + $0x18] sm:$0xff] %v798_v15  }

// kernel: sub.22
= control target key start
LH: loop header
LB: loop body
LE: loop exit
PB: predicated region body
PF: predicated region fallthrough
CT: control target
= control target key end

     0   :  { %s29_s10 = smov 3  ;;  %s45_s11 = smov 12   ;;  %vm12_vm0 = vcmask 31744   ;;  %vm19_vm1 = vcmask 130144   ;;  %vm26_vm2 = vcmask 97344   ;;  %vm33_vm3 = vcmask 64544   ;;  %s67_s0 = inlined_call_operand.vmem [shape: s32[2,4,4], index: 0, kind: input, shape index: {}]   ;;  %s68_s1 = inlined_call_operand.vmem [shape: s32[2,16], index: 1, kind: output, shape index: {}]  }
   0x1   :  { %v41_v0 = vld [vmem:[%s67_s0 + $0x4] sm:$0xf]  ;;  %v8_v1 = vld [vmem:[%s67_s0] sm:$0xf]  ;;  %s15_s0 = smov 3  ;;  %s46_s12 = smov 4  }
   0x2   :  { %7 = vst [vmem:[#allocation1 + $0x8] sm:$0xf] %v41_v0  ;;  %s22_s13 = smov 3  ;;  %s47_s14 = smov 8  }
   0x3   :  { %9 = vst [vmem:[#allocation1] sm:$0xf] %v8_v1  ;;  %s10_s15 = smov 3 }
   0xa   :  { %v16_v2 = vld [vmem:[#allocation1 + $0x3] ss:$8 sm:%s15_s0]   ;;  %v30_v3 = vld [vmem:[#allocation1 + $0x1] ss:$8 sm:%s29_s10]   ;;  %v23_v4 = vld [vmem:[#allocation1 + $0x2] ss:$8 sm:%s22_s13]  }
   0xb   :  { %17 = vrot.lane.b32.xlu0 %v16_v2, %s45_s11  ;;  %31 = vrot.lane.b32.xlu1 %v30_v3, %s46_s12  ;;  %v11_v5 = vld [vmem:[#allocation1] ss:$8 sm:%s10_s15]  }
   0xc   :  { %13 = vst.msk [vmem:[#allocation0] sm:$0x3] %vm12_vm0, %v11_v5  }
  0x13   :  { %24 = vrot.lane.b32.xlu0 %v23_v4, %s47_s14 }
  0x7d   :  { %v18_v6 = vpop.permute.xlu0 %17   ;;  %v32_v7 = vpop.permute.xlu1 %31  }
  0x7e   :  { %20 = vst.msk [vmem:[#allocation0] sm:$0x3] %vm19_vm1, %v18_v6  }
  0x85   :  { %v25_v8 = vpop.permute.xlu0 %24  }
  0x86   :  { %27 = vst.msk [vmem:[#allocation0] sm:$0x3] %vm26_vm2, %v25_v8  }
  0x87   :  { %34 = vst.msk [vmem:[#allocation0] sm:$0x3] %vm33_vm3, %v32_v7  }
  0x8e   :  { %v37_v9 = vld [vmem:[#allocation0] sm:$0x3] }
  0x8f   :  { %40 = vst [vmem:[%s68_s1] sm:$0x3] %v37_v9 }

// kernel: swin_forward.28
= control target key start
LH: loop header
LB: loop body
LE: loop exit
PB: predicated region body
PF: predicated region fallthrough
CT: control target
= control target key end

     0   :  { %s1377_s15 = smov 0   ;;  %s1652_s0 = inlined_call_operand.vmem [shape: bf16[8,2,16,16], index: 0, kind: input, shape index: {}]   ;;  %s1653_s1 = inlined_call_operand.vmem [shape: bf16[8,2,16,16], index: 1, kind: input, shape index: {}]   ;;  %s1654_s2 = inlined_call_operand.vmem [shape: bf16[8,2,16,16], index: 2, kind: input, shape index: {}]   ;;  %s1655_s3 = inlined_call_operand.vmem [shape: f32[2,16,16], index: 3, kind: input, shape index: {}]   ;;  %s1656_s4 = inlined_call_operand.vmem [shape: bf16[8,2,16,16], index: 4, kind: output, shape index: {}]  }
   0x1 LB: > { %s1113_s16 = sadd.s32 4294967295, %s1350_s15   ;;  %p1117_p0 = scmp.ge.s32.totalorder %s1350_s15, 1  ;;  %s1350_s15 = sphi %s1377_s15, %s14_s15  }
   0x2   : > { %p188_p1 = scmp.lt.s32.totalorder %s1350_s15, 3 }
   0x4   : > { %p189_p2 = pnand %p1117_p0, %p188_p1 }
   0x5   : > { %s1118_s17 = sshll.u32 (!%p189_p2), %s1113_s16, 2 }
   0x6   : > { %192 = sbr.rel (%p189_p2) target bundleno = 594 (0x252), region = 36  ;;  %p229_p3 = scmp.lt.s32.totalorder (!%p189_p2), %s1118_s17, 7 }
   0xb   : > { %s1658_s17 = smov (!%p229_p3, %s1118_s17), 7  ;;  %vm299_vm0 = vcmask 130048   ;;  %v1414_v26 = vld [vmem:[%s1655_s3 + $0x10] sm:$0xff]  ;;  %v546_v27 = vld [vmem:[%s1655_s3] sm:$0xff]  ;;  %v547_v39 = vld [vmem:[%s1655_s3 + $0x8] sm:$0xff]  ;;  %vm1014_vm1 = vcmask 125952  }
   0xc   : > { %s1385_s18 = sshll.u32 %s1658_s17, 4  ;;  %v549_v52 = vld [vmem:[%s1655_s3 + $0x18] sm:$0xff] }
   0xd   : > { %s240_s21 = scalar_lea.vmem %s1653_s1, %s1385_s18  ;;  %s233_s24 = scalar_lea.vmem %s1652_s0, %s1385_s18 }
   0xe   : > { %v1256_v0 = vld [vmem:[%s240_s21] sm:$0xff]  ;;  %v1257_v1 = vld [vmem:[%s240_s21 + $0x8] sm:$0xff]  ;;  %v1258_v2 = vld [vmem:[%s240_s21 + $0x10] sm:$0xff]  ;;  %s1577_s9 = scalar_lea.vmem %s1654_s2, %s1385_s18  ;;  %s1615_s12 = scalar_lea.vmem %s1656_s4, %s1385_s18 }
   0xf   : > { %v1259_v3 = vld [vmem:[%s240_s21 + $0x18] sm:$0xff]  ;;  %v304_v4 = vsel %vm299_vm0, %v1256_v0, 0  ;;  %v334_v5 = vsel %vm299_vm0, %v1257_v1, 0  ;;  %v364_v6 = vsel %vm299_vm0, %v1258_v2, 0  ;;  %v1262_v7 = vld [vmem:[%s240_s21 + $0x30] sm:$0xff]  ;;  %v1260_v10 = vld [vmem:[%s240_s21 + $0x20] sm:$0xff] }
  0x10   : > { %313 = vmatpush.bf16.xpose.msra.mxu0 %v304_v4  ;;  %343 = vmatpush.bf16.xpose.msra.mxu1 %v334_v5  ;;  %v394_v8 = vsel %vm299_vm0, %v1259_v3, 0  ;;  %v1263_v9 = vld [vmem:[%s240_s21 + $0x38] sm:$0xff]  ;;  %v484_v11 = vsel %vm299_vm0, %v1262_v7, 0  ;;  %v1261_v12 = vld [vmem:[%s240_s21 + $0x28] sm:$0xff]  ;;  %v424_v14 = vsel %vm299_vm0, %v1260_v10, 0  ;;  %v1248_v15 = vld [vmem:[%s233_s24] sm:$0xff] }
  0x11   : > { %373 = vmatpush.bf16.xpose.msra.mxu2 %v364_v6  ;;  %403 = vmatpush.bf16.xpose.msra.mxu3 %v394_v8  ;;  %v514_v13 = vsel %vm299_vm0, %v1263_v9, 0  ;;  %v1249_v16 = vld [vmem:[%s233_s24 + $0x8] sm:$0xff]  ;;  %v454_v17 = vsel %vm299_vm0, %v1261_v12, 0  ;;  %v1250_v18 = vld [vmem:[%s233_s24 + $0x10] sm:$0xff]  ;;  %v1251_v19 = vld [vmem:[%s233_s24 + $0x18] sm:$0xff] }
  0x12   : > { %v1252_v20 = vld [vmem:[%s233_s24 + $0x20] sm:$0xff]  ;;  %v1253_v21 = vld [vmem:[%s233_s24 + $0x28] sm:$0xff]  ;;  %v1254_v22 = vld [vmem:[%s233_s24 + $0x30] sm:$0xff] }
  0x13   : > { %v1255_v23 = vld [vmem:[%s233_s24 + $0x38] sm:$0xff] }
  0x17   : > { %1138 = vmatmul.msk.bf16.vlgmr.msra.gmra.mxu0 %vm299_vm0, %v1248_v15  ;;  %1147 = vmatmul.msk.bf16.vlgmr.msra.gmra.mxu1 %vm299_vm0, %v1249_v16 }
  0x18   : > { %433 = vmatpush.bf16.xpose.msrb.mxu0 %v424_v14  ;;  %463 = vmatpush.bf16.xpose.msrb.mxu1 %v454_v17 }
  0x19   : > { %493 = vmatpush.bf16.xpose.msrb.mxu2 %v484_v11  ;;  %523 = vmatpush.bf16.xpose.msrb.mxu3 %v514_v13 }
  0x1a   : > { %1156 = vmatmul.msk.bf16.vlgmr.msra.gmra.mxu2 %vm299_vm0, %v1250_v18  ;;  %1165 = vmatmul.msk.bf16.vlgmr.msra.gmra.mxu3 %vm299_vm0, %v1251_v19 }
  0x27   : > { %1174 = vmatmul.msk.bf16.vlgmr.msrb.gmra.mxu0 %vm299_vm0, %v1252_v20  ;;  %1183 = vmatmul.msk.bf16.vlgmr.msrb.gmra.mxu1 %vm299_vm0, %v1253_v21 }
  0x2a   : > { %1192 = vmatmul.msk.bf16.vlgmr.msrb.gmra.mxu2 %vm299_vm0, %v1254_v22  ;;  %1201 = vmatmul.msk.bf16.vlgmr.msrb.gmra.mxu3 %vm299_vm0, %v1255_v23 }
  0x94   : > { %v315_v24 = vpop.f32.mrf.mxu0  ;;  %v345_v25 = vpop.f32.mrf.mxu1 }
  0x95   : > { %v530_v28 = vmul.f32 0.25, %v315_v24  ;;  %v532_v29 = vmul.f32 0.25, %v345_v25 }
  0x97   : > { %v1420_v30 = vadd.f32 %v1414_v26, %v532_v29  ;;  %v1422_v31 = vadd.f32 %v546_v27, %v530_v28 }
  0x99   : > { %v572_v32 = vsel %vm299_vm0, %v1420_v30, -inf  ;;  %v566_v33 = vsel %vm299_vm0, %v1422_v31, -inf }
  0x9a   : > { %573 = vmax.xlane.f32.xlu0 %v572_v32  ;;  %567 = vmax.xlane.f32.xlu2 %v566_v33 }
  0x9c   : > { %v317_v38 = vpop.f32.mrf.mxu0  ;;  %v347_v49 = vpop.f32.mrf.mxu1 }
  0x9d   : > { %v375_v34 = vpop.f32.mrf.mxu2  ;;  %v405_v35 = vpop.f32.mrf.mxu3  ;;  %v531_v40 = vmul.f32 0.25, %v317_v38  ;;  %v533_v57 = vmul.f32 0.25, %v347_v49 }
  0x9e   : > { %v534_v36 = vmul.f32 0.25, %v375_v34  ;;  %v536_v37 = vmul.f32 0.25, %v405_v35 }
  0x9f   : > { %v1436_v43 = vadd.f32 %v547_v39, %v531_v40  ;;  %v1457_v1 = vadd.f32 %v549_v52, %v533_v57 }
  0xa0   : > { %v1432_v41 = vadd.f32 %v1414_v26, %v536_v37  ;;  %v1434_v42 = vadd.f32 %v546_v27, %v534_v36 }
  0xa1   : > { %v569_v46 = vsel %vm299_vm0, %v1436_v43, -inf  ;;  %v575_v5 = vsel %vm299_vm0, %v1457_v1, -inf }
  0xa2   : > { %v584_v44 = vsel %vm299_vm0, %v1432_v41, -inf  ;;  %v578_v45 = vsel %vm299_vm0, %v1434_v42, -inf  ;;  %570 = vmax.xlane.f32.xlu2 %v569_v46 }
  0xa3   : > { %585 = vmax.xlane.f32.xlu1 %v584_v44  ;;  %579 = vmax.xlane.f32.xlu0 %v578_v45 }
  0xa4   : > { %v435_v53 = vpop.f32.mrf.mxu0  ;;  %v465_v0 = vpop.f32.mrf.mxu1 }
  0xa5   : > { %v377_v47 = vpop.f32.mrf.mxu2  ;;  %v407_v48 = vpop.f32.mrf.mxu3  ;;  %v538_v56 = vmul.f32 0.25, %v435_v53  ;;  %v540_v17 = vmul.f32 0.25, %v465_v0 }
  0xa6   : > { %v535_v50 = vmul.f32 0.25, %v377_v47  ;;  %v537_v51 = vmul.f32 0.25, %v407_v48 }
  0xa7   : > { %v1455_v62 = vadd.f32 %v546_v27, %v538_v56  ;;  %v1481_v22 = vadd.f32 %v1414_v26, %v540_v17 }
  0xa8   : > { %v1447_v54 = vadd.f32 %v549_v52, %v537_v51  ;;  %v1449_v55 = vadd.f32 %v547_v39, %v535_v50 }
  0xa9   : > { %v590_v3 = vsel %vm299_vm0, %v1455_v62, -inf  ;;  %v596_v25 = vsel %vm299_vm0, %v1481_v22, -inf }
  0xaa   : > { %v587_v58 = vsel %vm299_vm0, %v1447_v54, -inf  ;;  %v581_v59 = vsel %vm299_vm0, %v1449_v55, -inf }
  0xab   : > { %588 = vmax.xlane.f32.xlu1 %v587_v58  ;;  %582 = vmax.xlane.f32.xlu0 %v581_v59 }
  0xac   : > { %v437_v12 = vpop.f32.mrf.mxu0  ;;  %v467_v13 = vpop.f32.mrf.mxu1 }
  0xad   : > { %v495_v60 = vpop.f32.mrf.mxu2  ;;  %v525_v61 = vpop.f32.mrf.mxu3  ;;  %v539_v16 = vmul.f32 0.25, %v437_v12  ;;  %v541_v20 = vmul.f32 0.25, %v467_v13 }
  0xae   : > { %v542_v63 = vmul.f32 0.25, %v495_v60  ;;  %v544_v4 = vmul.f32 0.25, %v525_v61 }
  0xaf   : > { %v1483_v23 = vadd.f32 %v547_v39, %v539_v16  ;;  %v1485_v24 = vadd.f32 %v549_v52, %v541_v20 }
  0xb0   : > { %v1459_v2 = vadd.f32 %v546_v27, %v542_v63  ;;  %v1468_v11 = vadd.f32 %v1414_v26, %v544_v4 }
  0xb1   : > { %v593_v27 = vsel %vm299_vm0, %v1483_v23, -inf  ;;  %v599_v28 = vsel %vm299_vm0, %v1485_v24, -inf }
  0xb2   : > { %v602_v6 = vsel %vm299_vm0, %v1459_v2, -inf  ;;  %v608_v18 = vsel %vm299_vm0, %v1468_v11, -inf }
  0xb3   : > { %576 = vmax.xlane.f32.xlu1 %v575_v5  ;;  %603 = vmax.xlane.f32.xlu2 %v602_v6 }
  0xb4   : > { %591 = vmax.xlane.f32.xlu0 %v590_v3 }
  0xb5   : > { %v497_v7 = vpop.f32.mrf.mxu2  ;;  %v527_v8 = vpop.f32.mrf.mxu3 }
  0xb6   : > { %v543_v9 = vmul.f32 0.25, %v497_v7  ;;  %v545_v10 = vmul.f32 0.25, %v527_v8 }
  0xb8   : > { %v1470_v14 = vadd.f32 %v549_v52, %v545_v10  ;;  %v1472_v15 = vadd.f32 %v547_v39, %v543_v9 }
  0xba   : > { %v611_v19 = vsel %vm299_vm0, %v1470_v14, -inf  ;;  %v605_v21 = vsel %vm299_vm0, %v1472_v15, -inf }
  0xbb   : > { %609 = vmax.xlane.f32.xlu1 %v608_v18  ;;  %612 = vmax.xlane.f32.xlu2 %v611_v19 }
  0xbc   : > { %606 = vmax.xlane.f32.xlu0 %v605_v21 }
  0xc3   : > { %597 = vmax.xlane.f32.xlu2 %v596_v25  ;;  %594 = vmax.xlane.f32.xlu1 %v593_v27 }
  0xc4   : > { %600 = vmax.xlane.f32.xlu0 %v599_v28 }
 0x10d   : > { %v574_v29 = vpop.xlane.xlu0 %573  ;;  %v568_v32 = vpop.xlane.xlu2 %567 }
 0x10e   : > { %v616_v26 = vsub.f32 %v1420_v30, %v574_v29  ;;  %v614_v33 = vsub.f32 %v1422_v31, %v568_v32 }
 0x110   : > { %v634_v34 = vmul.f32 1.442695, %v616_v26  ;;  %v630_v35 = vmul.f32 1.442695, %v614_v33 }
 0x112   : > { %1280 = vpow2.f32 %v634_v34 }
 0x113   : > { %1282 = vpow2.f32 %v630_v35 }
 0x115   : > { %v571_v39 = vpop.xlane.xlu2 %570 }
 0x116   : > { %v586_v36 = vpop.xlane.xlu1 %585  ;;  %v580_v38 = vpop.xlane.xlu0 %579  ;;  %v615_v45 = vsub.f32 %v1436_v43, %v571_v39 }
 0x117   : > { %v620_v37 = vsub.f32 %v1432_v41, %v586_v36  ;;  %v618_v40 = vsub.f32 %v1434_v42, %v580_v38 }
 0x118   : > { %v1498_v46 = vpop.eup %1280  ;;  %v632_v48 = vmul.f32 1.442695, %v615_v45 }
 0x119   : > { %v642_v44 = vmul.f32 1.442695, %v620_v37  ;;  %v638_v47 = vmul.f32 1.442695, %v618_v40  ;;  %v1500_v30 = vpop.eup %1282  ;;  %v668_v31 = vsel %vm299_vm0, %v1498_v46, 0.0 }
 0x11a   : > { %v662_v41 = vsel %vm299_vm0, %v1500_v30, 0.0  ;;  %669 = vadd.xlane.f32.xlu1 %v668_v31 }
 0x11b   : > { %1284 = vpow2.f32 %v642_v44  ;;  %663 = vadd.xlane.f32.xlu2 %v662_v41 }
 0x11c   : > { %1286 = vpow2.f32 %v638_v47 }
 0x11d   : > { %1288 = vpow2.f32 %v632_v48  ;;  %v1264_v48 = vld [vmem:[%s1577_s9] sm:$0xff] }
 0x11e   : > { %v589_v42 = vpop.xlane.xlu1 %588  ;;  %v583_v43 = vpop.xlane.xlu0 %582  ;;  %795 = vmatpush.bf16.msra.mxu0 %v1264_v48 }
 0x11f   : > { %v621_v49 = vsub.f32 %v1447_v54, %v589_v42  ;;  %v619_v50 = vsub.f32 %v1449_v55, %v583_v43  ;;  %v1266_v42 = vld [vmem:[%s1577_s9 + $0x10] sm:$0xff] }
 0x120   : > { %851 = vmatpush.bf16.msra.mxu2 %v1266_v42 }
 0x121   : > { %v1508_v51 = vpop.eup %1284  ;;  %v644_v52 = vmul.f32 1.442695, %v621_v49  ;;  %v640_v56 = vmul.f32 1.442695, %v619_v50  ;;  %v1267_v49 = vld [vmem:[%s1577_s9 + $0x18] sm:$0xff]  ;;  %v1265_v50 = vld [vmem:[%s1577_s9 + $0x8] sm:$0xff] }
 0x122   : > { %v1510_v53 = vpop.eup %1286  ;;  %v680_v57 = vsel %vm299_vm0, %v1508_v51, 0.0  ;;  %879 = vmatpush.bf16.msra.mxu3 %v1267_v49  ;;  %823 = vmatpush.bf16.msra.mxu1 %v1265_v50 }
 0x123   : > { %1290 = vpow2.f32 %v644_v52  ;;  %681 = vadd.xlane.f32.xlu0 %v680_v57  ;;  %v674_v58 = vsel %vm299_vm0, %v1510_v53, 0.0  ;;  %v1516_v55 = vpop.eup %1288 }
 0x124   : > { %1292 = vpow2.f32 %v640_v56  ;;  %675 = vadd.xlane.f32.xlu1 %v674_v58  ;;  %v665_v8 = vsel %vm299_vm0, %v1516_v55, 0.0  ;;  %v1270_v58 = vld [vmem:[%s1577_s9 + $0x30] sm:$0xff] }
 0x125   : > { %963 = vmatpush.bf16.msrb.mxu2 %v1270_v58 }
 0x126   : > { %v577_v54 = vpop.xlane.xlu1 %576  ;;  %v604_v59 = vpop.xlane.xlu2 %603 }
 0x127   : > { %v617_v60 = vsub.f32 %v1457_v1, %v577_v54  ;;  %v626_v61 = vsub.f32 %v1459_v2, %v604_v59  ;;  %v592_v63 = vpop.xlane.xlu0 %591  ;;  %v1271_v54 = vld [vmem:[%s1577_s9 + $0x38] sm:$0xff] }
 0x128   : > { %v622_v0 = vsub.f32 %v1455_v62, %v592_v63  ;;  %991 = vmatpush.bf16.msrb.mxu3 %v1271_v54 }
 0x129   : > { %v1521_v3 = vpop.eup %1290  ;;  %v636_v4 = vmul.f32 1.442695, %v617_v60  ;;  %v654_v5 = vmul.f32 1.442695, %v626_v61 }
 0x12a   : > { %v1523_v6 = vpop.eup %1292  ;;  %v646_v7 = vmul.f32 1.442695, %v622_v0  ;;  %v683_v2 = vsel %vm299_vm0, %v1521_v3, 0.0 }
 0x12b   : > { %1294 = vpow2.f32 %v636_v4  ;;  %666 = vadd.xlane.f32.xlu0 %v665_v8  ;;  %v677_v1 = vsel %vm299_vm0, %v1523_v6, 0.0  ;;  %v1268_v8 = vld [vmem:[%s1577_s9 + $0x20] sm:$0xff] }
 0x12c   : > { %1296 = vpow2.f32 %v654_v5  ;;  %678 = vadd.xlane.f32.xlu2 %v677_v1  ;;  %684 = vadd.xlane.f32.xlu1 %v683_v2  ;;  %v1269_v1 = vld [vmem:[%s1577_s9 + $0x28] sm:$0xff] }
 0x12d   : > { %1298 = vpow2.f32 %v646_v7  ;;  %907 = vmatpush.bf16.msrb.mxu0 %v1268_v8  ;;  %935 = vmatpush.bf16.msrb.mxu1 %v1269_v1 }
 0x12e   : > { %v610_v62 = vpop.xlane.xlu1 %609  ;;  %v613_v9 = vpop.xlane.xlu2 %612 }
 0x12f   : > { %v628_v10 = vsub.f32 %v1468_v11, %v610_v62  ;;  %v629_v12 = vsub.f32 %v1470_v14, %v613_v9  ;;  %v607_v13 = vpop.xlane.xlu0 %606 }
 0x130   : > { %v627_v16 = vsub.f32 %v1472_v15, %v607_v13 }
 0x131   : > { %v1534_v17 = vpop.eup %1294  ;;  %v658_v18 = vmul.f32 1.442695, %v628_v10  ;;  %v660_v19 = vmul.f32 1.442695, %v629_v12 }
 0x132   : > { %v1536_v20 = vpop.eup %1296  ;;  %v656_v21 = vmul.f32 1.442695, %v627_v16  ;;  %v671_v11 = vsel %vm299_vm0, %v1534_v17, 0.0 }
 0x133   : > { %v1538_v25 = vpop.eup %1298  ;;  %1300 = vpow2.f32 %v658_v18  ;;  %v698_v27 = vsel %vm299_vm0, %v1536_v20, 0.0 }
 0x134   : > { %1302 = vpow2.f32 %v660_v19  ;;  %699 = vadd.xlane.f32.xlu0 %v698_v27  ;;  %672 = vadd.xlane.f32.xlu2 %v671_v11  ;;  %v686_v14 = vsel %vm299_vm0, %v1538_v25, 0.0 }
 0x135   : > { %1304 = vpow2.f32 %v656_v21  ;;  %687 = vadd.xlane.f32.xlu1 %v686_v14 }
 0x136   : > { %v598_v15 = vpop.xlane.xlu2 %597  ;;  %v595_v28 = vpop.xlane.xlu1 %594 }
 0x137   : > { %v624_v29 = vsub.f32 %v1481_v22, %v598_v15  ;;  %v623_v32 = vsub.f32 %v1483_v23, %v595_v28  ;;  %v601_v26 = vpop.xlane.xlu0 %600 }
 0x138   : > { %v625_v33 = vsub.f32 %v1485_v24, %v601_v26 }
 0x139   : > { %v1549_v34 = vpop.eup %1300  ;;  %v650_v35 = vmul.f32 1.442695, %v624_v29  ;;  %v648_v36 = vmul.f32 1.442695, %v623_v32 }
 0x13a   : > { %v1551_v37 = vpop.eup %1302  ;;  %v652_v38 = vmul.f32 1.442695, %v625_v33  ;;  %v704_v22 = vsel %vm299_vm0, %v1549_v34, 0.0 }
 0x13b   : > { %v1553_v39 = vpop.eup %1304  ;;  %1306 = vpow2.f32 %v650_v35  ;;  %v707_v40 = vsel %vm299_vm0, %v1551_v37, 0.0 }
 0x13c   : > { %1308 = vpow2.f32 %v648_v36  ;;  %708 = vadd.xlane.f32.xlu0 %v707_v40  ;;  %705 = vadd.xlane.f32.xlu2 %v704_v22  ;;  %v701_v23 = vsel %vm299_vm0, %v1553_v39, 0.0 }
 0x13d   : > { %1310 = vpow2.f32 %v652_v38  ;;  %702 = vadd.xlane.f32.xlu1 %v701_v23 }
 0x141   : > { %v1561_v24 = vpop.eup %1306 }
 0x142   : > { %v1563_v44 = vpop.eup %1308  ;;  %v692_v45 = vsel %vm299_vm0, %v1561_v24, 0.0 }
 0x143   : > { %v1567_v47 = vpop.eup %1310  ;;  %v689_v31 = vsel %vm299_vm0, %v1563_v44, 0.0 }
 0x144   : > { %693 = vadd.xlane.f32.xlu0 %v692_v45  ;;  %v695_v41 = vsel %vm299_vm0, %v1567_v47, 0.0  ;;  %690 = vadd.xlane.f32.xlu2 %v689_v31 }
 0x145   : > { %696 = vadd.xlane.f32.xlu1 %v695_v41 }
 0x18d   : > { %v670_v43 = vpop.xlane.xlu1 %669 }
 0x18e   : > { %v664_v52 = vpop.xlane.xlu2 %663 }
 0x18f   : > { %1312 = vrcp.f32 %v664_v52 }
 0x195   : > { %v1313_v60 = vpop.eup %1312 }
 0x196   : > { %v682_v56 = vpop.xlane.xlu0 %681  ;;  %v726_v5 = vmul.f32 %v1313_v60, %v1500_v30 }
 0x197   : > { %v676_v57 = vpop.xlane.xlu1 %675 }
 0x198   : > { %1314 = vrcp.f32 %v676_v57  ;;  %v742_v10 = vpack.c.bf16 %v726_v5, %v726_v5 }
 0x199   : > { %1316 = vrcp.f32 %v682_v56 }
 0x19a   : > { %v776_v15 = vunpack.c.l.b16 %v742_v10 }
 0x19e   : > { %v667_v59 = vpop.xlane.xlu0 %666  ;;  %v1315_v0 = vpop.eup %1314 }
 0x19f   : > { %1318 = vrcp.f32 %v667_v59  ;;  %v679_v61 = vpop.xlane.xlu2 %678  ;;  %v685_v63 = vpop.xlane.xlu1 %684  ;;  %v730_v7 = vmul.f32 %v1315_v0, %v1510_v53 }
 0x1a0   : > { %1320 = vrcp.f32 %v679_v61  ;;  %v1317_v4 = vpop.eup %1316 }
 0x1a1   : > { %1322 = vrcp.f32 %v685_v63  ;;  %v732_v2 = vmul.f32 %v1317_v4, %v1508_v51  ;;  %v746_v16 = vpack.c.bf16 %v730_v7, %v730_v7 }
 0x1a2   : > { %1324 = vrcp.f32 %v670_v43 }
 0x1a3   : > { %v748_v27 = vpack.c.bf16 %v732_v2, %v732_v2 }
 0x1a5   : > { %v1319_v62 = vpop.eup %1318  ;;  %v860_v33 = vunpack.c.l.b16 %v748_v27 }
 0x1a6   : > { %v1321_v9 = vpop.eup %1320  ;;  %v727_v12 = vmul.f32 %v1319_v62, %v1516_v55  ;;  %v832_v55 = vunpack.c.l.b16 %v746_v16 }
 0x1a7   : > { %v1323_v13 = vpop.eup %1322  ;;  %v731_v18 = vmul.f32 %v1321_v9, %v1523_v6  ;;  %v700_v19 = vpop.xlane.xlu0 %699 }
 0x1a8   : > { %v673_v30 = vpop.xlane.xlu2 %672  ;;  %v1325_v21 = vpop.eup %1324  ;;  %v743_v53 = vpack.c.bf16 %v727_v12, %v727_v12  ;;  %v733_v11 = vmul.f32 %v1323_v13, %v1521_v3 }
 0x1a9   : > { %v688_v14 = vpop.xlane.xlu1 %687  ;;  %v747_v51 = vpack.c.bf16 %v731_v18, %v731_v18  ;;  %1326 = vrcp.f32 %v673_v30  ;;  %v728_v32 = vmul.f32 %v1325_v21, %v1498_v46 }
 0x1aa   : > { %v777_v28 = vunpack.c.l.b16 %v743_v53  ;;  %v749_v29 = vpack.c.bf16 %v733_v11, %v733_v11  ;;  %1328 = vrcp.f32 %v700_v19 }
 0x1ab   : > { %v833_v26 = vunpack.c.l.b16 %v747_v51  ;;  %v744_v23 = vpack.c.bf16 %v728_v32, %v728_v32 }
 0x1ac   : > { %v778_v35 = vpack.c.b16 %v777_v28, %v776_v15  ;;  %v861_v6 = vunpack.c.l.b16 %v749_v29 }
 0x1ad   : > { %v834_v36 = vpack.c.b16 %v833_v26, %v832_v55  ;;  %v804_v48 = vunpack.c.l.b16 %v744_v23 }
 0x1ae   : > { %v862_v38 = vpack.c.b16 %v861_v6, %v860_v33  ;;  %1206 = vmatmul.msk.bf16.vlgmr.msra.gmra.mxu0 %vm299_vm0, %v778_v35 }
 0x1af   : > { %v1327_v40 = vpop.eup %1326  ;;  %v709_v3 = vpop.xlane.xlu0 %708  ;;  %1216 = vmatmul.msk.bf16.vlgmr.msra.gmra.mxu2 %vm299_vm0, %v834_v36 }
 0x1b0   : > { %v706_v22 = vpop.xlane.xlu2 %705  ;;  %v729_v45 = vmul.f32 %v1327_v40, %v1534_v17  ;;  %1330 = vrcp.f32 %v709_v3  ;;  %1221 = vmatmul.msk.bf16.vlgmr.msra.gmra.mxu3 %vm299_vm0, %v862_v38  ;;  %v1329_v31 = vpop.eup %1328 }
 0x1b1   : > { %v703_v46 = vpop.xlane.xlu1 %702  ;;  %1332 = vrcp.f32 %v706_v22  ;;  %v738_v49 = vmul.f32 %v1329_v31, %v1536_v20 }
 0x1b2   : > { %v745_v41 = vpack.c.bf16 %v729_v45, %v729_v45  ;;  %1334 = vrcp.f32 %v703_v46 }
 0x1b3   : > { %1336 = vrcp.f32 %v688_v14  ;;  %v754_v61 = vpack.c.bf16 %v738_v49, %v738_v49 }
 0x1b4   : > { %v805_v42 = vunpack.c.l.b16 %v745_v41 }
 0x1b5   : > { %v944_v8 = vunpack.c.l.b16 %v754_v61 }
 0x1b6   : > { %v1331_v43 = vpop.eup %1330  ;;  %v806_v50 = vpack.c.b16 %v805_v42, %v804_v48 }
 0x1b7   : > { %v1333_v52 = vpop.eup %1332  ;;  %v741_v56 = vmul.f32 %v1331_v43, %v1551_v37  ;;  %v694_v57 = vpop.xlane.xlu0 %693 }
 0x1b8   : > { %v691_v17 = vpop.xlane.xlu2 %690  ;;  %v1335_v58 = vpop.eup %1334  ;;  %v740_v54 = vmul.f32 %v1333_v52, %v1549_v34  ;;  %1338 = vrcp.f32 %v694_v57  ;;  %1211 = vmatmul.msk.bf16.vlgmr.msra.gmra.mxu1 %vm299_vm0, %v806_v50 }
 0x1b9   : > { %v697_v59 = vpop.xlane.xlu1 %696  ;;  %v1337_v60 = vpop.eup %1336  ;;  %v757_v63 = vpack.c.bf16 %v741_v56, %v741_v56  ;;  %v739_v0 = vmul.f32 %v1335_v58, %v1553_v39  ;;  %1340 = vrcp.f32 %v691_v17 }
 0x1ba   : > { %v756_v20 = vpack.c.bf16 %v740_v54, %v740_v54  ;;  %1342 = vrcp.f32 %v697_v59  ;;  %v734_v37 = vmul.f32 %v1337_v60, %v1538_v25 }
 0x1bb   : > { %v755_v4 = vpack.c.bf16 %v739_v0, %v739_v0  ;;  %v973_v5 = vunpack.c.l.b16 %v757_v63 }
 0x1bc   : > { %v972_v7 = vunpack.c.l.b16 %v756_v20  ;;  %v750_v13 = vpack.c.bf16 %v734_v37, %v734_v37 }
 0x1bd   : > { %v945_v1 = vunpack.c.l.b16 %v755_v4 }
 0x1be   : > { %v1339_v34 = vpop.eup %1338  ;;  %v974_v2 = vpack.c.b16 %v973_v5, %v972_v7  ;;  %v888_v30 = vunpack.c.l.b16 %v750_v13 }
 0x1bf   : > { %v1341_v62 = vpop.eup %1340  ;;  %v946_v9 = vpack.c.b16 %v945_v1, %v944_v8  ;;  %v736_v10 = vmul.f32 %v1339_v34, %v1561_v24 }
 0x1c0   : > { %v1343_v12 = vpop.eup %1342  ;;  %v735_v39 = vmul.f32 %v1341_v62, %v1563_v44  ;;  %1241 = vmatmul.msk.bf16.vlgmr.msrb.gmra.mxu3 %vm299_vm0, %v974_v2 }
 0x1c1   : > { %v752_v16 = vpack.c.bf16 %v736_v10, %v736_v10  ;;  %v737_v25 = vmul.f32 %v1343_v12, %v1567_v47  ;;  %1236 = vmatmul.msk.bf16.vlgmr.msrb.gmra.mxu2 %vm299_vm0, %v946_v9 }
 0x1c2   : > { %v751_v18 = vpack.c.bf16 %v735_v39, %v735_v39 }
 0x1c3   : > { %v753_v19 = vpack.c.bf16 %v737_v25, %v737_v25  ;;  %v916_v27 = vunpack.c.l.b16 %v752_v16 }
 0x1c4   : > { %v889_v21 = vunpack.c.l.b16 %v751_v18 }
 0x1c5   : > { %v917_v53 = vunpack.c.l.b16 %v753_v19 }
 0x1c6   : > { %v890_v11 = vpack.c.b16 %v889_v21, %v888_v30 }
 0x1c7   : > { %v918_v24 = vpack.c.b16 %v917_v53, %v916_v27 }
 0x1c8   : > { %1226 = vmatmul.msk.bf16.vlgmr.msrb.gmra.mxu0 %vm299_vm0, %v890_v11 }
 0x1c9   : > { %1231 = vmatmul.msk.bf16.vlgmr.msrb.gmra.mxu1 %vm299_vm0, %v918_v24 }
 0x22b   : > { %v797_v44 = vpop.f32.mrf.mxu0 }
 0x22c   : > { %v998_v47 = vpack.c.bf16 %v797_v44, %v797_v44 }
 0x22e   : > { %1015 = vst.msk [vmem:[%s1615_s12] sm:$0xf] %vm1014_vm1, %v998_v47 }
 0x232   : > { %v853_v14 = vpop.f32.mrf.mxu2 }
 0x233   : > { %v799_v51 = vpop.f32.mrf.mxu0  ;;  %v1002_v15 = vpack.c.bf16 %v853_v14, %v853_v14  ;;  %v881_v28 = vpop.f32.mrf.mxu3 }
 0x234   : > { %v999_v29 = vpack.c.bf16 %v799_v51, %v799_v51  ;;  %v1004_v26 = vpack.c.bf16 %v881_v28, %v881_v28 }
 0x235   : > { %1019 = vst.msk [vmem:[%s1615_s12 + $0x10] sm:$0xf] %vm1014_vm1, %v1002_v15  ;;  %v825_v32 = vpop.f32.mrf.mxu1 }
 0x236   : > { %1016 = vst.msk [vmem:[%s1615_s12 + $0x4] sm:$0xf] %vm1014_vm1, %v999_v29  ;;  %v1000_v55 = vpack.c.bf16 %v825_v32, %v825_v32 }
 0x237   : > { %1021 = vst.msk [vmem:[%s1615_s12 + $0x18] sm:$0xf] %vm1014_vm1, %v1004_v26 }
 0x238   : > { %1017 = vst.msk [vmem:[%s1615_s12 + $0x8] sm:$0xf] %vm1014_vm1, %v1000_v55 }
 0x23a   : > { %v855_v33 = vpop.f32.mrf.mxu2 }
 0x23b   : > { %v1003_v35 = vpack.c.bf16 %v855_v33, %v855_v33  ;;  %v883_v6 = vpop.f32.mrf.mxu3 }
 0x23c   : > { %v1005_v40 = vpack.c.bf16 %v883_v6, %v883_v6 }
 0x23d   : > { %1020 = vst.msk [vmem:[%s1615_s12 + $0x14] sm:$0xf] %vm1014_vm1, %v1003_v35  ;;  %v827_v36 = vpop.f32.mrf.mxu1 }
 0x23e   : > { %v1001_v38 = vpack.c.bf16 %v827_v36, %v827_v36  ;;  %1022 = vst.msk [vmem:[%s1615_s12 + $0x1c] sm:$0xf] %vm1014_vm1, %v1005_v40 }
 0x240   : > { %1018 = vst.msk [vmem:[%s1615_s12 + $0xc] sm:$0xf] %vm1014_vm1, %v1001_v38 }
 0x243   : > { %v993_v22 = vpop.f32.mrf.mxu3 }
 0x244   : > { %v965_v3 = vpop.f32.mrf.mxu2  ;;  %v1012_v48 = vpack.c.bf16 %v993_v22, %v993_v22 }
 0x245   : > { %v909_v23 = vpop.f32.mrf.mxu0  ;;  %v1010_v31 = vpack.c.bf16 %v965_v3, %v965_v3 }
 0x246   : > { %v1006_v45 = vpack.c.bf16 %v909_v23, %v909_v23  ;;  %v937_v46 = vpop.f32.mrf.mxu1  ;;  %1029 = vst.msk [vmem:[%s1615_s12 + $0x38] sm:$0xf] %vm1014_vm1, %v1012_v48 }
 0x247   : > { %v1008_v41 = vpack.c.bf16 %v937_v46, %v937_v46  ;;  %1027 = vst.msk [vmem:[%s1615_s12 + $0x30] sm:$0xf] %vm1014_vm1, %v1010_v31 }
 0x248   : > { %1023 = vst.msk [vmem:[%s1615_s12 + $0x20] sm:$0xf] %vm1014_vm1, %v1006_v45 }
 0x249   : > { %1025 = vst.msk [vmem:[%s1615_s12 + $0x28] sm:$0xf] %vm1014_vm1, %v1008_v41 }
 0x24b   : > { %v995_v43 = vpop.f32.mrf.mxu3 }
 0x24c   : > { %v967_v42 = vpop.f32.mrf.mxu2  ;;  %v1013_v17 = vpack.c.bf16 %v995_v43, %v995_v43 }
 0x24d   : > { %v911_v49 = vpop.f32.mrf.mxu0  ;;  %v1011_v56 = vpack.c.bf16 %v967_v42, %v967_v42 }
 0x24e   : > { %v1007_v50 = vpack.c.bf16 %v911_v49, %v911_v49  ;;  %v939_v52 = vpop.f32.mrf.mxu1  ;;  %1030 = vst.msk [vmem:[%s1615_s12 + $0x3c] sm:$0xf] %vm1014_vm1, %v1013_v17 }
 0x24f   : > { %v1009_v57 = vpack.c.bf16 %v939_v52, %v939_v52  ;;  %1028 = vst.msk [vmem:[%s1615_s12 + $0x34] sm:$0xf] %vm1014_vm1, %v1011_v56 }
 0x250   : > { %1024 = vst.msk [vmem:[%s1615_s12 + $0x24] sm:$0xf] %vm1014_vm1, %v1007_v50 }
 0x251   : > { %1026 = vst.msk [vmem:[%s1615_s12 + $0x2c] sm:$0xf] %vm1014_vm1, %v1009_v57 }
 0x252 PF: > { %s14_s15 = sadd.s32 1, %s1350_s15  }
 0x253   : > { %p11_p4 = scmp.ge.s32.totalorder %s14_s15, 4  }
 0x255   :  { %13 = sbr.rel (!%p11_p4) target bundleno = 1 (0x1), region = 72 }

// kernel: swin_forward.30
= control target key start
LH: loop header
LB: loop body
LE: loop exit
PB: predicated region body
PF: predicated region fallthrough
CT: control target
= control target key end

     0   :  { %s2689_s0 = inlined_call_operand.vmem [shape: bf16[128,128], index: 0, kind: input, shape index: {}]   ;;  %s2690_s3 = inlined_call_operand.vmem [shape: f32[1,128], index: 3, kind: input, shape index: {}]   ;;  %s2691_s4 = inlined_call_operand.vmem [shape: f32[1,128], index: 4, kind: input, shape index: {}]   ;;  %s2692_s1 = inlined_call_operand.vmem [shape: bf16[128,128], index: 1, kind: input, shape index: {}]   ;;  %s2693_s2 = inlined_call_operand.vmem [shape: f32[1,128], index: 2, kind: input, shape index: {}]   ;;  %s2694_s5 = inlined_call_operand.vmem [shape: bf16[128,128], index: 5, kind: output, shape index: {}]  }
   0x1   :  { %v1545_v0 = vld [vmem:[%s2689_s0 + $0x30] sm:$0xff]   ;;  %v1543_v1 = vld [vmem:[%s2689_s0 + $0x20] sm:$0xff]   ;;  %v1544_v19 = vld [vmem:[%s2689_s0 + $0x28] sm:$0xff]  }
   0x2   :  { %v1682_v2 = vunpack.c.l.bf16 %v1545_v0  ;;  %v1684_v3 = vunpack.c.l.bf16 %v1543_v1  ;;  %v1690_v5 = vunpack.c.h.bf16 %v1543_v1  ;;  %v1692_v6 = vunpack.c.h.bf16 %v1545_v0  ;;  %v1469_v8 = vld [vmem:[%s2689_s0] sm:$0xff]   ;;  %v1541_v12 = vld [vmem:[%s2689_s0 + $0x10] sm:$0xff]   ;;  %v1546_v23 = vld [vmem:[%s2689_s0 + $0x38] sm:$0xff]  }
   0x3   :  { %v1705_v11 = vunpack.c.l.bf16 %v1469_v8  ;;  %v1711_v13 = vunpack.c.l.bf16 %v1541_v12  ;;  %v1713_v14 = vunpack.c.h.bf16 %v1469_v8  ;;  %v1715_v15 = vunpack.c.h.bf16 %v1541_v12  ;;  %v1540_v30 = vld [vmem:[%s2689_s0 + $0x8] sm:$0xff]   ;;  %v1542_v31 = vld [vmem:[%s2689_s0 + $0x18] sm:$0xff]   ;;  %v1466_v41 = vld [vmem:[%s2692_s1 + $0x30] sm:$0xff] }
   0x4   :  { %96 = vadd.xlane.f32.xlu1 %v1682_v2  ;;  %88 = vadd.xlane.f32.xlu0 %v1684_v3  ;;  %v128_v4 = vmul.f32 %v1684_v3, %v1684_v3  ;;  %v129_v7 = vmul.f32 %v1690_v5, %v1690_v5  ;;  %v133_v9 = vmul.f32 %v1692_v6, %v1692_v6  ;;  %v1729_v20 = vunpack.c.l.bf16 %v1544_v19  ;;  %v1467_v40 = vld [vmem:[%s2692_s1 + $0x38] sm:$0xff]  ;;  %v1465_v42 = vld [vmem:[%s2692_s1 + $0x28] sm:$0xff]  ;;  %v1464_v43 = vld [vmem:[%s2692_s1 + $0x20] sm:$0xff] }
   0x5   :  { %v132_v10 = vmul.f32 %v1682_v2, %v1682_v2  ;;  %v121_v16 = vmul.f32 %v1713_v14, %v1713_v14  ;;  %v120_v17 = vmul.f32 %v1705_v11, %v1705_v11  ;;  %v124_v18 = vmul.f32 %v1711_v13, %v1711_v13  ;;  %1555 = vmatpush.bf16.msra.mxu2 %v1467_v40  ;;  %v1463_v44 = vld [vmem:[%s2692_s1 + $0x18] sm:$0xff]  ;;  %v1462_v45 = vld [vmem:[%s2692_s1 + $0x10] sm:$0xff]  ;;  %v1461_v51 = vld [vmem:[%s2692_s1 + $0x8] sm:$0xff] }
   0x6   :  { %152 = vadd.xlane.f32.xlu2 %v128_v4  ;;  %v125_v21 = vmul.f32 %v1715_v15, %v1715_v15  ;;  %v1733_v22 = vunpack.c.h.bf16 %v1544_v19  ;;  %v1740_v24 = vunpack.c.h.bf16 %v1546_v23  ;;  %v1742_v25 = vunpack.c.l.bf16 %v1546_v23  ;;  %1556 = vmatpush.bf16.msra.mxu3 %v1467_v40  ;;  %v1460_v54 = vld [vmem:[%s2692_s1] sm:$0xff] }
   0x7   :  { %v130_v26 = vmul.f32 %v1729_v20, %v1729_v20  ;;  %v1760_v32 = vunpack.c.h.bf16 %v1540_v30  ;;  %v1762_v33 = vunpack.c.l.bf16 %v1540_v30  ;;  %v1764_v34 = vunpack.c.l.bf16 %v1542_v31  ;;  %552 = vmatpush.bf16.msra.mxu0 %v1467_v40  ;;  %1554 = vmatpush.bf16.msra.mxu1 %v1467_v40 }
   0x8   :  { %v134_v27 = vmul.f32 %v1742_v25, %v1742_v25  ;;  %v131_v28 = vmul.f32 %v1733_v22, %v1733_v22  ;;  %v135_v29 = vmul.f32 %v1740_v24, %v1740_v24  ;;  %v1771_v36 = vunpack.c.h.bf16 %v1542_v31 }
   0x9   :  { %v122_v35 = vmul.f32 %v1762_v33, %v1762_v33  ;;  %v123_v37 = vmul.f32 %v1760_v32, %v1760_v32  ;;  %v126_v39 = vmul.f32 %v1764_v34, %v1764_v34  ;;  %1558 = vmatpush.bf16.msra.mxu2 %v1466_v41 }
   0xa   :  { %v127_v38 = vmul.f32 %v1771_v36, %v1771_v36  ;;  %1559 = vmatpush.bf16.msra.mxu3 %v1466_v41 }
   0xb   :  { %553 = vmatpush.bf16.msra.mxu0 %v1466_v41  ;;  %1557 = vmatpush.bf16.msra.mxu1 %v1466_v41 }
   0xc   :  { %98 = vadd.xlane.f32.xlu1 %v1692_v6  ;;  %90 = vadd.xlane.f32.xlu0 %v1690_v5 }
   0xd   :  { %1561 = vmatpush.bf16.msra.mxu2 %v1465_v42 }
   0xe   :  { %154 = vadd.xlane.f32.xlu2 %v129_v7  ;;  %1562 = vmatpush.bf16.msra.mxu3 %v1465_v42 }
   0xf   :  { %554 = vmatpush.bf16.msra.mxu0 %v1465_v42  ;;  %1560 = vmatpush.bf16.msra.mxu1 %v1465_v42 }
  0x11   :  { %1564 = vmatpush.bf16.msra.mxu2 %v1464_v43 }
  0x12   :  { %1565 = vmatpush.bf16.msra.mxu3 %v1464_v43 }
  0x13   :  { %555 = vmatpush.bf16.msra.mxu0 %v1464_v43  ;;  %1563 = vmatpush.bf16.msra.mxu1 %v1464_v43 }
  0x14   :  { %162 = vadd.xlane.f32.xlu1 %v133_v9  ;;  %160 = vadd.xlane.f32.xlu0 %v132_v10 }
  0x15   :  { %1567 = vmatpush.bf16.msra.mxu2 %v1463_v44 }
  0x16   :  { %72 = vadd.xlane.f32.xlu2 %v1705_v11  ;;  %1568 = vmatpush.bf16.msra.mxu3 %v1463_v44 }
  0x17   :  { %556 = vmatpush.bf16.msra.mxu0 %v1463_v44  ;;  %1566 = vmatpush.bf16.msra.mxu1 %v1463_v44 }
  0x19   :  { %1570 = vmatpush.bf16.msra.mxu2 %v1462_v45 }
  0x1a   :  { %1571 = vmatpush.bf16.msra.mxu3 %v1462_v45 }
  0x1b   :  { %557 = vmatpush.bf16.msra.mxu0 %v1462_v45  ;;  %1569 = vmatpush.bf16.msra.mxu1 %v1462_v45 }
  0x1c   :  { %80 = vadd.xlane.f32.xlu1 %v1711_v13  ;;  %74 = vadd.xlane.f32.xlu0 %v1713_v14 }
  0x1d   :  { %1573 = vmatpush.bf16.msra.mxu2 %v1461_v51 }
  0x1e   :  { %82 = vadd.xlane.f32.xlu2 %v1715_v15  ;;  %1574 = vmatpush.bf16.msra.mxu3 %v1461_v51 }
  0x1f   :  { %558 = vmatpush.bf16.msra.mxu0 %v1461_v51  ;;  %1572 = vmatpush.bf16.msra.mxu1 %v1461_v51 }
  0x21   :  { %1576 = vmatpush.bf16.msra.mxu2 %v1460_v54 }
  0x22   :  { %1577 = vmatpush.bf16.msra.mxu3 %v1460_v54 }
  0x23   :  { %559 = vmatpush.bf16.msra.mxu0 %v1460_v54  ;;  %1575 = vmatpush.bf16.msra.mxu1 %v1460_v54 }
  0x24   :  { %138 = vadd.xlane.f32.xlu1 %v121_v16  ;;  %136 = vadd.xlane.f32.xlu0 %v120_v17 }
  0x26   :  { %144 = vadd.xlane.f32.xlu2 %v124_v18 }
  0x2c   :  { %92 = vadd.xlane.f32.xlu1 %v1729_v20  ;;  %146 = vadd.xlane.f32.xlu0 %v125_v21 }
  0x2e   :  { %94 = vadd.xlane.f32.xlu2 %v1733_v22 }
  0x34   :  { %102 = vadd.xlane.f32.xlu1 %v1740_v24  ;;  %100 = vadd.xlane.f32.xlu0 %v1742_v25 }
  0x36   :  { %156 = vadd.xlane.f32.xlu2 %v130_v26 }
  0x3c   :  { %164 = vadd.xlane.f32.xlu1 %v134_v27  ;;  %158 = vadd.xlane.f32.xlu0 %v131_v28 }
  0x3e   :  { %166 = vadd.xlane.f32.xlu2 %v135_v29 }
  0x44   :  { %78 = vadd.xlane.f32.xlu1 %v1760_v32  ;;  %76 = vadd.xlane.f32.xlu0 %v1762_v33 }
  0x46   :  { %84 = vadd.xlane.f32.xlu2 %v1764_v34 }
  0x4c   :  { %140 = vadd.xlane.f32.xlu1 %v122_v35  ;;  %86 = vadd.xlane.f32.xlu0 %v1771_v36 }
  0x4e   :  { %142 = vadd.xlane.f32.xlu2 %v123_v37 }
  0x54   :  { %150 = vadd.xlane.f32.xlu1 %v127_v38  ;;  %148 = vadd.xlane.f32.xlu0 %v126_v39 }
  0x77   :  { %v97_v46 = vpop.xlane.xlu1 %96  ;;  %v89_v47 = vpop.xlane.xlu0 %88 }
  0x78   :  { %v1798_v48 = vmul.f32 0.03125, %v89_v47  ;;  %v1812_v61 = vmul.f32 0.03125, %v97_v46 }
  0x79   :  { %v153_v49 = vpop.xlane.xlu2 %152 }
  0x7a   :  { %v192_v50 = vmul.f32 %v1798_v48, %v1798_v48  ;;  %v176_v52 = vmul.f32 0.03125, %v153_v49  ;;  %v196_v4 = vmul.f32 %v1812_v61, %v1812_v61  ;;  %v228_v44 = vsub.f32 %v1682_v2, %v1812_v61 }
  0x7b   :  { %v224_v47 = vsub.f32 %v1684_v3, %v1798_v48 }
  0x7c   :  { %v208_v53 = vsub.f32 %v176_v52, %v192_v50 }
  0x7e   :  { %v240_v55 = vadd.f32 1e-05, %v208_v53 }
  0x7f   :  { %v99_v56 = vpop.xlane.xlu1 %98  ;;  %v91_v57 = vpop.xlane.xlu0 %90 }
  0x80   :  { %v1808_v58 = vmul.f32 0.03125, %v91_v57  ;;  %1581 = vrsqrt.f32 %v240_v55  ;;  %v1814_v63 = vmul.f32 0.03125, %v99_v56  ;;  %vm334_vm1 = vweird.f32 %v240_v55 }
  0x81   :  { %v155_v59 = vpop.xlane.xlu2 %154 }
  0x82   :  { %v193_v60 = vmul.f32 %v1808_v58, %v1808_v58  ;;  %v177_v62 = vmul.f32 0.03125, %v155_v59  ;;  %v197_v12 = vmul.f32 %v1814_v63, %v1814_v63  ;;  %v225_v50 = vsub.f32 %v1690_v5, %v1808_v58 }
  0x84   :  { %v209_v0 = vsub.f32 %v177_v62, %v193_v60 }
  0x86   :  { %v1582_v1 = vpop.eup %1581  ;;  %v241_v7 = vadd.f32 1e-05, %v209_v0 }
  0x87   :  { %v163_v8 = vpop.xlane.xlu1 %162  ;;  %v161_v9 = vpop.xlane.xlu0 %160  ;;  %v329_v10 = vmul.f32 %v1582_v1, %v240_v55  ;;  %vm335_vm0 = vweird.f32 %v1582_v1 }
  0x88   :  { %v181_v16 = vmul.f32 0.03125, %v163_v8  ;;  %v180_v17 = vmul.f32 0.03125, %v161_v9  ;;  %1583 = vrsqrt.f32 %v241_v7  ;;  %vm1838_vm2 = vmor %vm334_vm1, %vm335_vm0  ;;  %vm344_vm3 = vweird.f32 %v241_v7 }
  0x89   :  { %v73_v18 = vpop.xlane.xlu2 %72  ;;  %v330_v19 = vmul.f32 %v1582_v1, %v329_v10  ;;  %v1865_v10 = vld [vmem:[%s2690_s3] ss:$0 sm:$0xff] }
  0x8a   :  { %v213_v21 = vsub.f32 %v181_v16, %v197_v12  ;;  %v212_v23 = vsub.f32 %v180_v17, %v196_v4  ;;  %v1826_v41 = vmul.f32 0.03125, %v73_v18 }
  0x8b   :  { %v331_v26 = vmul.f32 0.5, %v330_v19 }
  0x8c   :  { %v1820_v27 = vadd.f32 1e-05, %v213_v21  ;;  %v1822_v28 = vadd.f32 1e-05, %v212_v23  ;;  %v184_v55 = vmul.f32 %v1826_v41, %v1826_v41 }
  0x8d   :  { %v332_v29 = vsub.f32 1.5, %v331_v26 }
  0x8e   :  { %1585 = vrsqrt.f32 %v1820_v27  ;;  %v1584_v30 = vpop.eup %1583  ;;  %vm384_vm8 = vweird.f32 %v1820_v27  ;;  %vm374_vm10 = vweird.f32 %v1822_v28 }
  0x8f   :  { %1587 = vrsqrt.f32 %v1822_v28  ;;  %v81_v31 = vpop.xlane.xlu1 %80  ;;  %v75_v35 = vpop.xlane.xlu0 %74  ;;  %v339_v37 = vmul.f32 %v1584_v30, %v241_v7  ;;  %v333_v39 = vmul.f32 %v1582_v1, %v332_v29  ;;  %vm345_vm4 = vweird.f32 %v1584_v30 }
  0x90   :  { %v1828_v42 = vmul.f32 0.03125, %v75_v35  ;;  %v1846_v52 = vmul.f32 0.03125, %v81_v31  ;;  %vm346_vm5 = vmor %vm344_vm3, %vm345_vm4 }
  0x91   :  { %v83_v38 = vpop.xlane.xlu2 %82  ;;  %v340_v40 = vmul.f32 %v1584_v30, %v339_v37  ;;  %v337_v3 = vsel %vm1838_vm2, %v1582_v1, %v333_v39 }
  0x92   :  { %v185_v5 = vmul.f32 %v1828_v42, %v1828_v42  ;;  %v188_v1 = vmul.f32 %v1846_v52, %v1846_v52  ;;  %v1860_v4 = vmul.f32 0.03125, %v83_v38  ;;  %v416_v9 = vmul.f32 %v337_v3, %v224_v47  ;;  %v1881_v38 = vld [vmem:[%s2691_s4] ss:$0 sm:$0xff] }
  0x93   :  { %v341_v45 = vmul.f32 0.5, %v340_v40 }
  0x94   :  { %v1830_v43 = vpop.eup %1585  ;;  %v436_v37 = vmul.f32 %v1865_v10, %v416_v9  ;;  %v216_v9 = vsub.f32 %v1705_v11, %v1826_v41 }
  0x95   :  { %v1834_v46 = vpop.eup %1587  ;;  %v379_v51 = vmul.f32 %v1830_v43, %v1820_v27  ;;  %v342_v53 = vsub.f32 1.5, %v341_v45  ;;  %vm385_vm6 = vweird.f32 %v1830_v43 }
  0x96   :  { %v369_v54 = vmul.f32 %v1834_v46, %v1822_v28  ;;  %vm375_vm7 = vweird.f32 %v1834_v46  ;;  %vm386_vm9 = vmor %vm384_vm8, %vm385_vm6 }
  0x97   :  { %v380_v48 = vmul.f32 %v1830_v43, %v379_v51  ;;  %v139_v56 = vpop.xlane.xlu1 %138  ;;  %v137_v57 = vpop.xlane.xlu0 %136  ;;  %v343_v58 = vmul.f32 %v1584_v30, %v342_v53  ;;  %vm376_vm11 = vmor %vm374_vm10, %vm375_vm7  ;;  %v456_v53 = vadd.f32 %v1881_v38, %v436_v37 }
  0x98   :  { %v370_v59 = vmul.f32 %v1834_v46, %v369_v54  ;;  %v169_v60 = vmul.f32 0.03125, %v139_v56  ;;  %v168_v62 = vmul.f32 0.03125, %v137_v57 }
  0x99   :  { %v381_v0 = vmul.f32 0.5, %v380_v48  ;;  %v145_v8 = vpop.xlane.xlu2 %144  ;;  %v347_v21 = vsel %vm346_vm5, %v1584_v30, %v343_v58  ;;  %v229_v30 = vsub.f32 %v1692_v6, %v1814_v63  ;;  %v189_v63 = vmul.f32 %v1860_v4, %v1860_v4 }
  0x9a   :  { %v371_v12 = vmul.f32 0.5, %v370_v59  ;;  %v201_v16 = vsub.f32 %v169_v60, %v185_v5  ;;  %v200_v17 = vsub.f32 %v168_v62, %v184_v55  ;;  %v172_v18 = vmul.f32 0.03125, %v145_v8 }
  0x9b   :  { %v382_v19 = vsub.f32 1.5, %v381_v0  ;;  %v417_v7 = vmul.f32 %v347_v21, %v225_v50 }
  0x9c   :  { %v372_v23 = vsub.f32 1.5, %v371_v12  ;;  %v1871_v26 = vadd.f32 1e-05, %v201_v16  ;;  %v1873_v29 = vadd.f32 1e-05, %v200_v17  ;;  %v204_v31 = vsub.f32 %v172_v18, %v188_v1 }
  0x9d   :  { %v383_v35 = vmul.f32 %v1830_v43, %v382_v19  ;;  %v437_v47 = vmul.f32 %v1865_v10, %v417_v7  ;;  %v217_v17 = vsub.f32 %v1713_v14, %v1828_v42 }
  0x9e   :  { %v373_v39 = vmul.f32 %v1834_v46, %v372_v23  ;;  %1589 = vrsqrt.f32 %v1871_v26  ;;  %v1891_v27 = vadd.f32 1e-05, %v204_v31  ;;  %vm264_vm12 = vweird.f32 %v1871_v26 }
  0x9f   :  { %1591 = vrsqrt.f32 %v1873_v29  ;;  %v93_v40 = vpop.xlane.xlu1 %92  ;;  %v147_v45 = vpop.xlane.xlu0 %146  ;;  %v387_v6 = vsel %vm386_vm9, %v1830_v43, %v383_v35  ;;  %v457_v54 = vadd.f32 %v1881_v38, %v437_v47  ;;  %vm254_vm13 = vweird.f32 %v1873_v29 }
  0xa0   :  { %v173_v49 = vmul.f32 0.03125, %v147_v45  ;;  %v377_v28 = vsel %vm376_vm11, %v1834_v46, %v373_v39  ;;  %v421_v50 = vmul.f32 %v387_v6, %v229_v30  ;;  %1593 = vrsqrt.f32 %v1891_v27 }
  0xa1   :  { %v95_v51 = vpop.xlane.xlu2 %94  ;;  %v420_v3 = vmul.f32 %v377_v28, %v228_v44  ;;  %v468_v43 = vpack.c.bf16 %v457_v54, %v456_v53  ;;  %v1915_v44 = vmul.f32 0.03125, %v93_v40  ;;  %vm294_vm0 = vweird.f32 %v1891_v27 }
  0xa2   :  { %v205_v48 = vsub.f32 %v173_v49, %v189_v63  ;;  %v441_v5 = vmul.f32 %v1865_v10, %v421_v50  ;;  %v1932_v41 = vmul.f32 0.03125, %v95_v51 }
  0xa3   :  { %v440_v55 = vmul.f32 %v1865_v10, %v420_v3  ;;  %580 = vmatmul.bf16.vlgmr.msra.gmra.mxu2 %v468_v43  ;;  %v194_v11 = vmul.f32 %v1915_v44, %v1915_v44 }
  0xa4   :  { %v1906_v56 = vpop.eup %1589  ;;  %v1908_v46 = vadd.f32 1e-05, %v205_v48  ;;  %v461_v2 = vadd.f32 %v1881_v38, %v441_v5  ;;  %v195_v49 = vmul.f32 %v1932_v41, %v1932_v41 }
  0xa5   :  { %v1592_v57 = vpop.eup %1591  ;;  %v259_v58 = vmul.f32 %v1906_v56, %v1871_v26  ;;  %v460_v59 = vadd.f32 %v1881_v38, %v440_v55  ;;  %vm265_vm14 = vweird.f32 %v1906_v56 }
  0xa6   :  { %v249_v61 = vmul.f32 %v1592_v57, %v1873_v29  ;;  %1595 = vrsqrt.f32 %v1908_v46  ;;  %v1918_v60 = vpop.eup %1593  ;;  %vm255_vm15 = vweird.f32 %v1592_v57  ;;  %vm1947_vm1 = vmor %vm264_vm12, %vm265_vm14  ;;  %vm304_vm6 = vweird.f32 %v1908_v46 }
  0xa7   :  { %v260_v62 = vmul.f32 %v1906_v56, %v259_v58  ;;  %v103_v0 = vpop.xlane.xlu1 %102  ;;  %v101_v1 = vpop.xlane.xlu0 %100  ;;  %v470_v8 = vpack.c.bf16 %v461_v2, %v460_v59  ;;  %v289_v16 = vmul.f32 %v1918_v60, %v1891_v27  ;;  %vm295_vm2 = vweird.f32 %v1918_v60  ;;  %vm256_vm3 = vmor %vm254_vm13, %vm255_vm15 }
  0xa8   :  { %v250_v12 = vmul.f32 %v1592_v57, %v249_v61  ;;  %v1935_v35 = vmul.f32 0.03125, %v101_v1  ;;  %v1943_v40 = vmul.f32 0.03125, %v103_v0  ;;  %vm1972_vm4 = vmor %vm294_vm0, %vm295_vm2 }
  0xa9   :  { %v261_v18 = vmul.f32 0.5, %v260_v62  ;;  %590 = vmatmul.bf16.vlgmr.msra.gmra.mxu3 %v470_v8  ;;  %v157_v19 = vpop.xlane.xlu2 %156  ;;  %v290_v23 = vmul.f32 %v1918_v60, %v289_v16 }
  0xaa   :  { %v251_v21 = vmul.f32 0.5, %v250_v12  ;;  %v178_v14 = vmul.f32 0.03125, %v157_v19  ;;  %v198_v50 = vmul.f32 %v1935_v35, %v1935_v35  ;;  %v199_v5 = vmul.f32 %v1943_v40, %v1943_v40 }
  0xab   :  { %v262_v31 = vsub.f32 1.5, %v261_v18  ;;  %v291_v37 = vmul.f32 0.5, %v290_v23  ;;  %v220_v18 = vsub.f32 %v1711_v13, %v1846_v52 }
  0xac   :  { %v1937_v42 = vpop.eup %1595  ;;  %v252_v7 = vsub.f32 1.5, %v251_v21  ;;  %v210_v45 = vsub.f32 %v178_v14, %v194_v11  ;;  %v221_v21 = vsub.f32 %v1715_v15, %v1860_v4 }
  0xad   :  { %v263_v30 = vmul.f32 %v1906_v56, %v262_v31  ;;  %v299_v39 = vmul.f32 %v1937_v42, %v1908_v46  ;;  %v292_v63 = vsub.f32 1.5, %v291_v37  ;;  %vm305_vm5 = vweird.f32 %v1937_v42 }
  0xae   :  { %v253_v6 = vmul.f32 %v1592_v57, %v252_v7  ;;  %v1959_v26 = vadd.f32 1e-05, %v210_v45  ;;  %vm306_vm7 = vmor %vm304_vm6, %vm305_vm5 }
  0xaf   :  { %v300_v28 = vmul.f32 %v1937_v42, %v299_v39  ;;  %v165_v51 = vpop.xlane.xlu1 %164  ;;  %v159_v53 = vpop.xlane.xlu0 %158  ;;  %v267_v54 = vsel %vm1947_vm1, %v1906_v56, %v263_v30  ;;  %v293_v3 = vmul.f32 %v1918_v60, %v292_v63  ;;  %v226_v30 = vsub.f32 %v1729_v20, %v1915_v44 }
  0xb0   :  { %v182_v48 = vmul.f32 0.03125, %v165_v51  ;;  %v179_v43 = vmul.f32 0.03125, %v159_v53  ;;  %v257_v55 = vsel %vm256_vm3, %v1592_v57, %v253_v6  ;;  %1597 = vrsqrt.f32 %v1959_v26 }
  0xb1   :  { %v301_v29 = vmul.f32 0.5, %v300_v28  ;;  %v167_v58 = vpop.xlane.xlu2 %166  ;;  %v408_v59 = vmul.f32 %v257_v55, %v216_v9  ;;  %v409_v57 = vmul.f32 %v267_v54, %v217_v17  ;;  %v297_v8 = vsel %vm1972_vm4, %v1918_v60, %v293_v3 }
  0xb2   :  { %v214_v56 = vsub.f32 %v182_v48, %v198_v50  ;;  %v211_v61 = vsub.f32 %v179_v43, %v195_v49  ;;  %v183_v62 = vmul.f32 0.03125, %v167_v58  ;;  %v412_v31 = vmul.f32 %v297_v8, %v220_v18 }
  0xb3   :  { %v302_v0 = vsub.f32 1.5, %v301_v29  ;;  %v428_v1 = vmul.f32 %v1865_v10, %v408_v59  ;;  %v429_v16 = vmul.f32 %v1865_v10, %v409_v57  ;;  %v227_v39 = vsub.f32 %v1733_v22, %v1932_v41 }
  0xb4   :  { %v1981_v9 = vadd.f32 1e-05, %v214_v56  ;;  %v1983_v27 = vadd.f32 1e-05, %v211_v61  ;;  %v215_v12 = vsub.f32 %v183_v62, %v199_v5  ;;  %v432_v45 = vmul.f32 %v1865_v10, %v412_v31 }
  0xb5   :  { %v303_v17 = vmul.f32 %v1937_v42, %v302_v0  ;;  %v448_v19 = vadd.f32 %v1881_v38, %v428_v1  ;;  %v449_v52 = vadd.f32 %v1881_v38, %v429_v16  ;;  %v230_v6 = vsub.f32 %v1742_v25, %v1935_v35 }
  0xb6   :  { %1599 = vrsqrt.f32 %v1981_v9  ;;  %v1994_v60 = vadd.f32 1e-05, %v215_v12  ;;  %v1996_v23 = vpop.eup %1597  ;;  %vm354_vm8 = vweird.f32 %v1959_v26  ;;  %vm394_vm9 = vweird.f32 %v1981_v9 }
  0xb7   :  { %1601 = vrsqrt.f32 %v1983_v27  ;;  %v79_v11 = vpop.xlane.xlu1 %78  ;;  %v77_v13 = vpop.xlane.xlu0 %76  ;;  %v307_v46 = vsel %vm306_vm7, %v1937_v42, %v303_v17  ;;  %v349_v14 = vmul.f32 %v1996_v23, %v1959_v26  ;;  %v464_v15 = vpack.c.bf16 %v449_v52, %v448_v19 }
  0xb8   :  { %1603 = vrsqrt.f32 %v1994_v60  ;;  %v413_v7 = vmul.f32 %v307_v46, %v221_v21  ;;  %v231_v42 = vsub.f32 %v1740_v24, %v1943_v40  ;;  %v2016_v49 = vmul.f32 0.03125, %v77_v13 }
  0xb9   :  { %v85_v4 = vpop.xlane.xlu2 %84  ;;  %v350_v37 = vmul.f32 %v1996_v23, %v349_v14  ;;  %560 = vmatmul.bf16.vlgmr.msra.gmra.mxu0 %v464_v15  ;;  %v2023_v50 = vmul.f32 0.03125, %v79_v11  ;;  %vm355_vm10 = vweird.f32 %v1996_v23  ;;  %v452_v58 = vadd.f32 %v1881_v38, %v432_v45 }
  0xba   :  { %v433_v28 = vmul.f32 %v1865_v10, %v413_v7  ;;  %v2033_v55 = vmul.f32 0.03125, %v85_v4  ;;  %v186_v56 = vmul.f32 %v2016_v49, %v2016_v49  ;;  %vm2046_vm11 = vmor %vm354_vm8, %vm355_vm10  ;;  %vm364_vm0 = vweird.f32 %v1983_v27 }
  0xbb   :  { %v351_v63 = vmul.f32 0.5, %v350_v37  ;;  %v187_v0 = vmul.f32 %v2023_v50, %v2023_v50  ;;  %vm404_vm1 = vweird.f32 %v1994_v60 }
  0xbc   :  { %v2012_v47 = vpop.eup %1599  ;;  %v453_v3 = vadd.f32 %v1881_v38, %v433_v28  ;;  %v190_v37 = vmul.f32 %v2033_v55, %v2033_v55 }
  0xbd   :  { %v1602_v20 = vpop.eup %1601  ;;  %v389_v44 = vmul.f32 %v2012_v47, %v1981_v9  ;;  %v352_v53 = vsub.f32 1.5, %v351_v63  ;;  %vm395_vm12 = vweird.f32 %v2012_v47 }
  0xbe   :  { %v2025_v51 = vpop.eup %1603  ;;  %v359_v54 = vmul.f32 %v1602_v20, %v1983_v27  ;;  %v466_v1 = vpack.c.bf16 %v453_v3, %v452_v58  ;;  %vm365_vm13 = vweird.f32 %v1602_v20  ;;  %vm2062_vm15 = vmor %vm394_vm9, %vm395_vm12 }
  0xbf   :  { %v390_v48 = vmul.f32 %v2012_v47, %v389_v44  ;;  %v399_v43 = vmul.f32 %v2025_v51, %v1994_v60  ;;  %v141_v29 = vpop.xlane.xlu1 %140  ;;  %v87_v5 = vpop.xlane.xlu0 %86  ;;  %v353_v59 = vmul.f32 %v1996_v23, %v352_v53  ;;  %vm405_vm14 = vweird.f32 %v2025_v51  ;;  %vm366_vm2 = vmor %vm364_vm0, %vm365_vm13 }
  0xc0   :  { %v360_v2 = vmul.f32 %v1602_v20, %v359_v54  ;;  %v170_v61 = vmul.f32 0.03125, %v141_v29  ;;  %570 = vmatmul.bf16.vlgmr.msra.gmra.mxu1 %v466_v1  ;;  %v2055_v52 = vmul.f32 0.03125, %v87_v5  ;;  %vm406_vm3 = vmor %vm404_vm1, %vm405_vm14 }
  0xc1   :  { %v391_v62 = vmul.f32 0.5, %v390_v48  ;;  %v400_v57 = vmul.f32 %v2025_v51, %v399_v43  ;;  %v143_v8 = vpop.xlane.xlu2 %142  ;;  %v357_v11 = vsel %vm2046_vm11, %v1996_v23, %v353_v59 }
  0xc2   :  { %v361_v16 = vmul.f32 0.5, %v360_v2  ;;  %v202_v18 = vsub.f32 %v170_v61, %v186_v56  ;;  %v171_v21 = vmul.f32 0.03125, %v143_v8  ;;  %v418_v15 = vmul.f32 %v357_v11, %v226_v30 }
  0xc3   :  { %v392_v17 = vsub.f32 1.5, %v391_v62  ;;  %v401_v19 = vmul.f32 0.5, %v400_v57  ;;  %v191_v27 = vmul.f32 %v2055_v52, %v2055_v52 }
  0xc4   :  { %v362_v13 = vsub.f32 1.5, %v361_v16  ;;  %v234_v26 = vadd.f32 1e-05, %v202_v18  ;;  %v203_v14 = vsub.f32 %v171_v21, %v187_v0  ;;  %v438_v54 = vmul.f32 %v1865_v10, %v418_v15 }
  0xc5   :  { %v393_v46 = vmul.f32 %v2012_v47, %v392_v17  ;;  %v402_v31 = vsub.f32 1.5, %v401_v19  ;;  %v218_v18 = vsub.f32 %v1762_v33, %v2016_v49 }
  0xc6   :  { %v363_v23 = vmul.f32 %v1602_v20, %v362_v13  ;;  %1605 = vrsqrt.f32 %v234_v26  ;;  %v235_v30 = vadd.f32 1e-05, %v203_v14  ;;  %v458_v59 = vadd.f32 %v1881_v38, %v438_v54 }
  0xc7   :  { %v403_v7 = vmul.f32 %v2025_v51, %v402_v31  ;;  %v151_v45 = vpop.xlane.xlu1 %150  ;;  %v149_v9 = vpop.xlane.xlu0 %148  ;;  %v397_v63 = vsel %vm2062_vm15, %v2012_v47, %v393_v46  ;;  %vm274_vm5 = vweird.f32 %v234_v26  ;;  %v219_v14 = vsub.f32 %v1760_v32, %v2023_v50 }
  0xc8   :  { %v175_v60 = vmul.f32 0.03125, %v151_v45  ;;  %v174_v28 = vmul.f32 0.03125, %v149_v9  ;;  %v367_v44 = vsel %vm366_vm2, %v1602_v20, %v363_v23  ;;  %1607 = vrsqrt.f32 %v235_v30 }
  0xc9   :  { %v419_v53 = vmul.f32 %v367_v44, %v227_v39  ;;  %v407_v3 = vsel %vm406_vm3, %v2025_v51, %v403_v7  ;;  %v422_v43 = vmul.f32 %v397_v63, %v230_v6  ;;  %vm284_vm8 = vweird.f32 %v235_v30 }
  0xca   :  { %v207_v48 = vsub.f32 %v175_v60, %v191_v27  ;;  %v206_v47 = vsub.f32 %v174_v28, %v190_v37  ;;  %v423_v29 = vmul.f32 %v407_v3, %v231_v42  ;;  %v223_v45 = vsub.f32 %v1771_v36, %v2055_v52 }
  0xcb   :  { %v439_v20 = vmul.f32 %v1865_v10, %v419_v53  ;;  %v442_v41 = vmul.f32 %v1865_v10, %v422_v43  ;;  %v222_v50 = vsub.f32 %v1764_v34, %v2033_v55  ;;  %v2116_v55 = vld [vmem:[%s2693_s2] ss:$0 sm:$0xff] }
  0xcc   :  { %v1606_v5 = vpop.eup %1605  ;;  %v239_v58 = vadd.f32 1e-05, %v207_v48  ;;  %v238_v22 = vadd.f32 1e-05, %v206_v47  ;;  %v443_v39 = vmul.f32 %v1865_v10, %v423_v29 }
  0xcd   :  { %v269_v51 = vmul.f32 %v1606_v5, %v234_v26  ;;  %v459_v2 = vadd.f32 %v1881_v38, %v439_v20  ;;  %v462_v25 = vadd.f32 %v1881_v38, %v442_v41  ;;  %vm275_vm4 = vweird.f32 %v1606_v5 }
  0xce   :  { %1609 = vrsqrt.f32 %v239_v58  ;;  %v1608_v35 = vpop.eup %1607  ;;  %v463_v42 = vadd.f32 %v1881_v38, %v443_v39  ;;  %vm276_vm6 = vmor %vm274_vm5, %vm275_vm4  ;;  %vm324_vm12 = vweird.f32 %v239_v58  ;;  %vm314_vm14 = vweird.f32 %v238_v22 }
  0xcf   :  { %v270_v24 = vmul.f32 %v1606_v5, %v269_v51  ;;  %1611 = vrsqrt.f32 %v238_v22  ;;  %v469_v40 = vpack.c.bf16 %v459_v2, %v458_v59  ;;  %v279_v6 = vmul.f32 %v1608_v35, %v235_v30 }
  0xd0   :  { %v471_v61 = vpack.c.bf16 %v463_v42, %v462_v25  ;;  %vm285_vm7 = vweird.f32 %v1608_v35 }
  0xd1   :  { %v271_v56 = vmul.f32 0.5, %v270_v24  ;;  %585 = vmatmul.bf16.gmra.mxu2 %v469_v40  ;;  %v280_v62 = vmul.f32 %v1608_v35, %v279_v6  ;;  %vm286_vm9 = vmor %vm284_vm8, %vm285_vm7 }
  0xd2   :  { %595 = vmatmul.bf16.gmra.mxu3 %v471_v61 }
  0xd3   :  { %v272_v57 = vsub.f32 1.5, %v271_v56  ;;  %v281_v1 = vmul.f32 0.5, %v280_v62 }
  0xd4   :  { %v1610_v0 = vpop.eup %1609 }
  0xd5   :  { %v1612_v8 = vpop.eup %1611  ;;  %v273_v12 = vmul.f32 %v1606_v5, %v272_v57  ;;  %v319_v16 = vmul.f32 %v1610_v0, %v239_v58  ;;  %v282_v17 = vsub.f32 1.5, %v281_v1  ;;  %vm325_vm10 = vweird.f32 %v1610_v0 }
  0xd6   :  { %v309_v19 = vmul.f32 %v1612_v8, %v238_v22  ;;  %vm315_vm11 = vweird.f32 %v1612_v8  ;;  %vm326_vm13 = vmor %vm324_vm12, %vm325_vm10 }
  0xd7   :  { %v320_v21 = vmul.f32 %v1610_v0, %v319_v16  ;;  %v277_v11 = vsel %vm276_vm6, %v1606_v5, %v273_v12  ;;  %v283_v13 = vmul.f32 %v1608_v35, %v282_v17  ;;  %vm316_vm15 = vmor %vm314_vm14, %vm315_vm11 }
  0xd8   :  { %v310_v46 = vmul.f32 %v1612_v8, %v309_v19  ;;  %v410_v31 = vmul.f32 %v277_v11, %v218_v18 }
  0xd9   :  { %v321_v15 = vmul.f32 0.5, %v320_v21  ;;  %v287_v4 = vsel %vm286_vm9, %v1608_v35, %v283_v13 }
  0xda   :  { %v311_v26 = vmul.f32 0.5, %v310_v46  ;;  %v411_v33 = vmul.f32 %v287_v4, %v219_v14  ;;  %v430_v49 = vmul.f32 %v1865_v10, %v410_v31 }
  0xdb   :  { %v322_v23 = vsub.f32 1.5, %v321_v15 }
  0xdc   :  { %v312_v7 = vsub.f32 1.5, %v311_v26  ;;  %v431_v30 = vmul.f32 %v1865_v10, %v411_v33  ;;  %v450_v9 = vadd.f32 %v1881_v38, %v430_v49 }
  0xdd   :  { %v323_v37 = vmul.f32 %v1610_v0, %v322_v23 }
  0xde   :  { %v313_v32 = vmul.f32 %v1612_v8, %v312_v7  ;;  %v451_v63 = vadd.f32 %v1881_v38, %v431_v30 }
  0xdf   :  { %v327_v27 = vsel %vm326_vm13, %v1610_v0, %v323_v37 }
  0xe0   :  { %v317_v60 = vsel %vm316_vm15, %v1612_v8, %v313_v32  ;;  %v415_v28 = vmul.f32 %v327_v27, %v223_v45  ;;  %v465_v44 = vpack.c.bf16 %v451_v63, %v450_v9 }
  0xe1   :  { %v414_v53 = vmul.f32 %v317_v60, %v222_v50 }
  0xe2   :  { %v435_v54 = vmul.f32 %v1865_v10, %v415_v28  ;;  %565 = vmatmul.bf16.gmra.mxu0 %v465_v44 }
  0xe3   :  { %v434_v36 = vmul.f32 %v1865_v10, %v414_v53 }
  0xe4   :  { %v455_v52 = vadd.f32 %v1881_v38, %v435_v54 }
  0xe5   :  { %v454_v3 = vadd.f32 %v1881_v38, %v434_v36 }
  0xe7   :  { %v467_v34 = vpack.c.bf16 %v455_v52, %v454_v3 }
  0xe9   :  { %575 = vmatmul.bf16.gmra.mxu1 %v467_v34 }
 0x126   :  { %v581_v48 = vpop.f32.mrf.mxu2 }
 0x127   :  { %v2119_v47 = vadd.f32 %v2116_v55, %v581_v48 }
 0x129   :  { %v2122_v43 = vmul.f32 0.70710677, %v2119_v47 }
 0x12b   :  { %v1024_v10 = vmul.f32 %v2122_v43, %v2122_v43 }
 0x12c   :  { %v591_v29 = vpop.f32.mrf.mxu3 }
 0x12d   :  { %v2127_v38 = vadd.f32 %v2116_v55, %v591_v29  ;;  %v1025_v20 = vmin.f32 %v1024_v10, 16.0 }
 0x12e   :  { %v583_v58 = vpop.f32.mrf.mxu2 }
 0x12f   :  { %v2130_v5 = vmul.f32 0.70710677, %v2127_v38  ;;  %v1026_v22 = vmul.f32 2.1237322e-06, %v1025_v20  ;;  %v1037_v41 = vmul.f32 3.8918573e-05, %v1025_v20  ;;  %v2135_v51 = vadd.f32 %v2116_v55, %v583_v58 }
 0x131   :  { %v1184_v39 = vmul.f32 %v2130_v5, %v2130_v5  ;;  %v1027_v59 = vadd.f32 0.00028619796, %v1026_v22  ;;  %v1038_v2 = vadd.f32 0.001143296, %v1037_v41  ;;  %v2140_v35 = vmul.f32 0.70710677, %v2135_v51 }
 0x133   :  { %v2137_v25 = vmin.f32 %v1184_v39, 16.0  ;;  %v1028_v40 = vmul.f32 %v1027_v59, %v1025_v20  ;;  %v1039_v42 = vmul.f32 %v1038_v2, %v1025_v20  ;;  %v1064_v61 = vmul.f32 %v2140_v35, %v2140_v35 }
 0x134   :  { %v593_v24 = vpop.f32.mrf.mxu3 }
 0x135   :  { %v1186_v6 = vmul.f32 2.1237322e-06, %v2137_v25  ;;  %v1197_v56 = vmul.f32 3.8918573e-05, %v2137_v25  ;;  %v2147_v62 = vadd.f32 %v2116_v55, %v593_v24  ;;  %v1029_v57 = vadd.f32 0.0036580483, %v1028_v40 }
 0x136   :  { %v1040_v0 = vadd.f32 0.014752088, %v1039_v42  ;;  %v2149_v12 = vmin.f32 %v1064_v61, 16.0  ;;  %v561_v27 = vpop.f32.mrf.mxu0 }
 0x137   :  { %v1187_v1 = vadd.f32 0.00028619796, %v1186_v6  ;;  %v1198_v8 = vadd.f32 0.001143296, %v1197_v56  ;;  %v2152_v16 = vmul.f32 0.70710677, %v2147_v62  ;;  %v1030_v18 = vmul.f32 %v1029_v57, %v1025_v20 }
 0x138   :  { %v1041_v17 = vmul.f32 %v1040_v0, %v1025_v20  ;;  %v1066_v11 = vmul.f32 2.1237322e-06, %v2149_v12  ;;  %v1077_v13 = vmul.f32 3.8918573e-05, %v2149_v12  ;;  %v2174_v59 = vadd.f32 %v2116_v55, %v561_v27 }
 0x139   :  { %v1188_v19 = vmul.f32 %v1187_v1, %v2137_v25  ;;  %v1199_v21 = vmul.f32 %v1198_v8, %v2137_v25  ;;  %v1224_v46 = vmul.f32 %v2152_v16, %v2152_v16  ;;  %v1031_v31 = vadd.f32 0.05243302, %v1030_v18 }
 0x13a   :  { %v1042_v14 = vadd.f32 0.112945676, %v1041_v17  ;;  %v1067_v4 = vadd.f32 0.00028619796, %v1066_v11  ;;  %v1078_v23 = vadd.f32 0.001143296, %v1077_v13 }
 0x13b   :  { %v1189_v15 = vadd.f32 0.0036580483, %v1188_v19  ;;  %v1200_v26 = vadd.f32 0.014752088, %v1199_v21  ;;  %v1032_v33 = vmul.f32 %v1031_v31, %v1025_v20  ;;  %v2164_v32 = vmin.f32 %v1224_v46, 16.0 }
 0x13c   :  { %v1043_v49 = vmul.f32 %v1042_v14, %v1025_v20  ;;  %v1068_v30 = vmul.f32 %v1067_v4, %v2149_v12  ;;  %v1079_v45 = vmul.f32 %v1078_v23, %v2149_v12  ;;  %v2178_v6 = vmul.f32 0.5, %v2119_v47 }
 0x13d   :  { %v1190_v7 = vmul.f32 %v1189_v15, %v2137_v25  ;;  %v1201_v37 = vmul.f32 %v1200_v26, %v2137_v25  ;;  %v1033_v50 = vadd.f32 0.18741608, %v1032_v33  ;;  %v1226_v48 = vmul.f32 2.1237322e-06, %v2164_v32  ;;  %v571_v18 = vpop.f32.mrf.mxu1 }
 0x13e   :  { %v1044_v9 = vadd.f32 0.4994258, %v1043_v49  ;;  %v1069_v28 = vadd.f32 0.0036580483, %v1068_v30  ;;  %v1080_v44 = vadd.f32 0.014752088, %v1079_v45  ;;  %v563_v8 = vpop.f32.mrf.mxu0  ;;  %v2198_v26 = vadd.f32 %v2116_v55, %v571_v18 }
 0x13f   :  { %v1191_v63 = vadd.f32 0.05243302, %v1190_v7  ;;  %v1202_v60 = vadd.f32 0.112945676, %v1201_v37  ;;  %v1237_v29 = vmul.f32 3.8918573e-05, %v2164_v32  ;;  %v1034_v10 = vmul.f32 %v1033_v50, %v1025_v20 }
 0x140   :  { %v1045_v53 = vmul.f32 %v1044_v9, %v1025_v20  ;;  %v1081_v52 = vmul.f32 %v1080_v44, %v2149_v12  ;;  %v1070_v34 = vmul.f32 %v1069_v28, %v2149_v12  ;;  %v1227_v40 = vadd.f32 0.00028619796, %v1226_v48 }
 0x141   :  { %v1192_v54 = vmul.f32 %v1191_v63, %v2137_v25  ;;  %v1203_v36 = vmul.f32 %v1202_v60, %v2137_v25  ;;  %v1238_v42 = vadd.f32 0.001143296, %v1237_v29  ;;  %v1035_v56 = vadd.f32 1.1283791, %v1034_v10 }
 0x142   :  { %v1046_v3 = vadd.f32 1.0, %v1045_v53  ;;  %v1082_v22 = vadd.f32 0.112945676, %v1081_v52  ;;  %v1071_v2 = vadd.f32 0.05243302, %v1070_v34  ;;  %v1228_v0 = vmul.f32 %v1227_v40, %v2164_v32 }
 0x143   :  { %v1204_v58 = vadd.f32 0.4994258, %v1203_v36  ;;  %v1193_v41 = vadd.f32 0.18741608, %v1192_v54  ;;  %v1239_v1 = vmul.f32 %v1238_v42, %v2164_v32  ;;  %v2187_v19 = vmul.f32 0.5, %v2135_v51 }
 0x144   :  { %1613 = vrcp.f32 %v1046_v3  ;;  %v1083_v24 = vmul.f32 %v1082_v22, %v2149_v12  ;;  %v1056_v17 = vand.u32 2147483647, %v1046_v3  ;;  %v2190_v47 = vmul.f32 0.70710677, %v2174_v59 }
 0x145   :  { %v1205_v39 = vmul.f32 %v1204_v58, %v2137_v25  ;;  %v1194_v20 = vmul.f32 %v1193_v41, %v2137_v25  ;;  %v1058_v11 = vand.u32 2147483648, %v1046_v3  ;;  %v1072_v25 = vmul.f32 %v1071_v2, %v2149_v12 }
 0x146   :  { %v1084_v57 = vadd.f32 0.4994258, %v1083_v24  ;;  %v1229_v46 = vadd.f32 0.0036580483, %v1228_v0  ;;  %v1240_v14 = vadd.f32 0.014752088, %v1239_v1  ;;  %v2195_v15 = vadd.f32 %v2116_v55, %v563_v8 }
 0x147   :  { %v2180_v61 = vadd.f32 1.0, %v1205_v39  ;;  %v1036_v51 = vmul.f32 %v1035_v56, %v2122_v43  ;;  %v1195_v4 = vadd.f32 1.1283791, %v1194_v20  ;;  %vm1052_vm0 = vweird.f32 %v1046_v3 }
 0x148   :  { %v1085_v13 = vmul.f32 %v1084_v57, %v2149_v12  ;;  %v1230_v33 = vmul.f32 %v1229_v46, %v2164_v32  ;;  %v1241_v7 = vmul.f32 %v1240_v14, %v2164_v32  ;;  %v704_v37 = vmul.f32 %v2190_v47, %v2190_v47 }
 0x149   :  { %1615 = vrcp.f32 %v2180_v61  ;;  %vm2207_vm1 = vcmp.eq.f32.partialorder %v1056_v17, 8.507059e+37  ;;  %v1059_v45 = vor.u32 1.1754944e-38, %v1058_v11  ;;  %v1073_v50 = vadd.f32 0.18741608, %v1072_v25 }
 0x14a   :  { %v1614_v21 = vpop.eup %1613  ;;  %v2201_v23 = vadd.f32 1.0, %v1085_v13  ;;  %v1231_v63 = vadd.f32 0.05243302, %v1230_v33  ;;  %v1242_v27 = vadd.f32 0.112945676, %v1241_v7  ;;  %v2215_v60 = vmul.f32 %v1195_v4, %v2130_v5 }
 0x14b   :  { %v1048_v31 = vmul.f32 %v1614_v21, %v1046_v3  ;;  %vm1053_vm2 = vweird.f32 %v1614_v21  ;;  %vm1212_vm3 = vweird.f32 %v2180_v61  ;;  %v2220_v44 = vmin.f32 %v704_v37, 16.0 }
 0x14c   :  { %1617 = vrcp.f32 %v2201_v23  ;;  %v1216_v54 = vand.u32 2147483647, %v2180_v61  ;;  %v1232_v36 = vmul.f32 %v1231_v63, %v2164_v32  ;;  %v1243_v52 = vmul.f32 %v1242_v27, %v2164_v32  ;;  %vm1054_vm4 = vmor %vm1052_vm0, %vm1053_vm2 }
 0x14d   :  { %v1049_v49 = vsub.f32 1.0, %v1048_v31  ;;  %v1074_v5 = vmul.f32 %v1073_v50, %v2149_v12  ;;  %v706_v48 = vmul.f32 2.1237322e-06, %v2220_v44  ;;  %v717_v29 = vmul.f32 3.8918573e-05, %v2220_v44 }
 0x14e   :  { %v1233_v58 = vadd.f32 0.18741608, %v1232_v36  ;;  %v1244_v22 = vadd.f32 0.4994258, %v1243_v52  ;;  %v2230_v41 = vmul.f32 0.70710677, %v2195_v15  ;;  %vm1092_vm9 = vweird.f32 %v2201_v23 }
 0x14f   :  { %v2212_v43 = vpop.eup %1615  ;;  %v1050_v9 = vmul.f32 %v1614_v21, %v1049_v49  ;;  %v707_v24 = vadd.f32 0.00028619796, %v706_v48  ;;  %v718_v40 = vadd.f32 0.001143296, %v717_v29  ;;  %v1218_v12 = vand.u32 2147483648, %v2180_v61 }
 0x150   :  { %v1208_v28 = vmul.f32 %v2212_v43, %v2180_v61  ;;  %vm1213_vm5 = vweird.f32 %v2212_v43  ;;  %v1234_v57 = vmul.f32 %v1233_v58, %v2164_v32  ;;  %v1245_v0 = vmul.f32 %v1244_v22, %v2164_v32 }
 0x151   :  { %v1051_v53 = vadd.f32 %v1614_v21, %v1050_v9  ;;  %v719_v1 = vmul.f32 %v718_v40, %v2220_v44  ;;  %v1075_v8 = vadd.f32 1.1283791, %v1074_v5  ;;  %v1096_v17 = vand.u32 2147483647, %v2201_v23  ;;  %vm2253_vm6 = vmor %vm1212_vm3, %vm1213_vm5 }
 0x152   :  { %v1209_v34 = vsub.f32 1.0, %v1208_v28  ;;  %v1618_v39 = vpop.eup %1617  ;;  %v1098_v11 = vand.u32 2147483648, %v2201_v23  ;;  %v2245_v25 = vadd.f32 1.0, %v1245_v0  ;;  %v744_v46 = vmul.f32 %v2230_v41, %v2230_v41 }
 0x153   :  { %v1055_v10 = vsel %vm1054_vm4, %v1614_v21, %v1051_v53  ;;  %v1088_v56 = vmul.f32 %v1618_v39, %v2201_v23  ;;  %v708_v21 = vmul.f32 %v707_v24, %v2220_v44  ;;  %v720_v13 = vadd.f32 0.014752088, %v719_v1 }
 0x154   :  { %v1060_v2 = vsel %vm2207_vm1, %v1059_v45, %v1055_v10  ;;  %v1210_v3 = vmul.f32 %v2212_v43, %v1209_v34  ;;  %vm2257_vm7 = vcmp.eq.f32.partialorder %v1216_v54, 8.507059e+37  ;;  %vm1093_vm8 = vweird.f32 %v1618_v39 }
 0x155   :  { %v1061_v42 = vmul.f32 %v1060_v2, %v1036_v51  ;;  %v1089_v18 = vsub.f32 1.0, %v1088_v56  ;;  %v1219_v33 = vor.u32 1.1754944e-38, %v1218_v12  ;;  %v1235_v49 = vadd.f32 1.1283791, %v1234_v57  ;;  %vm1094_vm10 = vmor %vm1092_vm9, %vm1093_vm8 }
 0x156   :  { %v1211_v20 = vadd.f32 %v2212_v43, %v1210_v3  ;;  %1619 = vrcp.f32 %v2245_v25  ;;  %v1076_v61 = vmul.f32 %v1075_v8, %v2140_v35  ;;  %v709_v37 = vadd.f32 0.0036580483, %v708_v21 }
 0x157   :  { %v1452_v31 = vclamps-f32 %v1061_v42, 1.0  ;;  %v1090_v51 = vmul.f32 %v1618_v39, %v1089_v18  ;;  %vm1097_vm11 = vcmp.eq.f32.partialorder %v1096_v17, 8.507059e+37  ;;  %v1099_v30 = vor.u32 1.1754944e-38, %v1098_v11  ;;  %v573_v17 = vpop.f32.mrf.mxu1 }
 0x158   :  { %v1215_v4 = vsel %vm2253_vm6, %v2212_v43, %v1211_v20  ;;  %v721_v45 = vmul.f32 %v720_v13, %v2220_v44  ;;  %v2268_v50 = vmin.f32 %v744_v46, 16.0  ;;  %v2273_v27 = vmul.f32 0.70710677, %v2198_v26 }
 0x159   :  { %v1091_v7 = vadd.f32 %v1618_v39, %v1090_v51  ;;  %v1352_v9 = vadd.f32 1.0, %v1452_v31  ;;  %v1220_v43 = vsel %vm2257_vm7, %v1219_v33, %v1215_v4  ;;  %v1236_v28 = vmul.f32 %v1235_v49, %v2152_v16 }
 0x15a   :  { %v722_v23 = vadd.f32 0.112945676, %v721_v45  ;;  %v746_v53 = vmul.f32 2.1237322e-06, %v2268_v50  ;;  %v710_v36 = vmul.f32 %v709_v37, %v2220_v44  ;;  %v757_v52 = vmul.f32 3.8918573e-05, %v2268_v50  ;;  %v586_v37 = vpop.f32.mrf.mxu2 }
 0x15b   :  { %v1095_v63 = vsel %vm1094_vm10, %v1618_v39, %v1091_v7  ;;  %v864_v34 = vmul.f32 %v2273_v27, %v2273_v27  ;;  %v1221_v48 = vmul.f32 %v1220_v43, %v2215_v60  ;;  %vm1252_vm12 = vweird.f32 %v2245_v25 }
 0x15c   :  { %v1100_v35 = vsel %vm1097_vm11, %v1099_v30, %v1095_v63  ;;  %v1620_v5 = vpop.eup %1619  ;;  %v723_v29 = vmul.f32 %v722_v23, %v2220_v44  ;;  %v747_v10 = vadd.f32 0.00028619796, %v746_v53  ;;  %v1368_v16 = vmul.f32 %v1352_v9, %v2178_v6 }
 0x15d   :  { %v1101_v54 = vmul.f32 %v1100_v35, %v1076_v61  ;;  %v1248_v22 = vmul.f32 %v1620_v5, %v2245_v25  ;;  %v1256_v39 = vand.u32 2147483647, %v2245_v25  ;;  %v758_v24 = vadd.f32 0.001143296, %v757_v52 }
 0x15e   :  { %v724_v2 = vadd.f32 0.4994258, %v723_v29  ;;  %v748_v3 = vmul.f32 %v747_v10, %v2268_v50  ;;  %v2288_v40 = vmin.f32 %v864_v34, 16.0  ;;  %v1258_v12 = vand.u32 2147483648, %v2245_v25 }
 0x15f   :  { %v1453_v58 = vclamps-f32 %v1101_v54, 1.0  ;;  %v1249_v60 = vsub.f32 1.0, %v1248_v22  ;;  %v711_v56 = vadd.f32 0.05243302, %v710_v36  ;;  %v759_v6 = vmul.f32 %v758_v24, %v2268_v50 }
 0x160   :  { %v725_v20 = vmul.f32 %v724_v2, %v2220_v44  ;;  %v749_v57 = vadd.f32 0.0036580483, %v748_v3  ;;  %v866_v0 = vmul.f32 2.1237322e-06, %v2288_v40  ;;  %vm1253_vm13 = vweird.f32 %v1620_v5 }
 0x161   :  { %v1353_v42 = vadd.f32 1.0, %v1453_v58  ;;  %v1250_v8 = vmul.f32 %v1620_v5, %v1249_v60  ;;  %v877_v18 = vmul.f32 3.8918573e-05, %v2288_v40  ;;  %v760_v13 = vadd.f32 0.014752088, %v759_v6  ;;  %vm1254_vm14 = vmor %vm1252_vm12, %vm1253_vm13 }
 0x162   :  { %v2296_v21 = vadd.f32 1.0, %v725_v20  ;;  %v750_v11 = vmul.f32 %v749_v57, %v2268_v50  ;;  %v867_v46 = vadd.f32 0.00028619796, %v866_v0  ;;  %v1456_v31 = vclamps-f32 %v1221_v48, 1.0 }
 0x163   :  { %v1369_v1 = vmul.f32 %v1353_v42, %v2187_v19  ;;  %v1251_v14 = vadd.f32 %v1620_v5, %v1250_v8  ;;  %v878_v51 = vadd.f32 0.001143296, %v877_v18  ;;  %v1259_v4 = vor.u32 1.1754944e-38, %v1258_v12 }
 0x164   :  { %v712_v19 = vmul.f32 %v711_v56, %v2220_v44  ;;  %1621 = vrcp.f32 %v2296_v21  ;;  %v2304_v33 = vadd.f32 %v2116_v55, %v573_v17  ;;  %vm1257_vm15 = vcmp.eq.f32.partialorder %v1256_v39, 8.507059e+37 }
 0x165   :  { %v1523_v32 = vpack.c.bf16 %v1369_v1, %v1368_v16  ;;  %v1255_v49 = vsel %vm1254_vm14, %v1620_v5, %v1251_v14  ;;  %v751_v61 = vadd.f32 0.05243302, %v750_v11  ;;  %v761_v7 = vmul.f32 %v760_v13, %v2268_v50 }
 0x166   :  { %v1260_v25 = vsel %vm1257_vm15, %v1259_v4, %v1255_v49  ;;  %v868_v30 = vmul.f32 %v867_v46, %v2288_v40  ;;  %v879_v45 = vmul.f32 %v878_v51, %v2288_v40  ;;  %v1356_v9 = vadd.f32 1.0, %v1456_v31  ;;  %v596_v46 = vpop.f32.mrf.mxu3 }
 0x167   :  { %1550 = vst [vmem:[%s2694_s5 + $0x20] sm:$0xff] %v1523_v32   ;;  %v1261_v43 = vmul.f32 %v1260_v25, %v1236_v28  ;;  %v762_v63 = vadd.f32 0.112945676, %v761_v7  ;;  %v713_v35 = vadd.f32 0.18741608, %v712_v19  ;;  %v2316_v54 = vadd.f32 %v2116_v55, %v586_v37 }
 0x168   :  { %v880_v23 = vadd.f32 0.014752088, %v879_v45  ;;  %v2313_v53 = vmul.f32 0.70710677, %v2304_v33  ;;  %v684_v36 = vmul.f32 0.5, %v2127_v38  ;;  %v752_v34 = vmul.f32 %v751_v61, %v2268_v50 }
 0x169   :  { %v1457_v52 = vclamps-f32 %v1261_v43, 1.0  ;;  %v763_v5 = vmul.f32 %v762_v63, %v2268_v50  ;;  %v869_v29 = vadd.f32 0.0036580483, %v868_v30  ;;  %v2327_v16 = vmul.f32 0.70710677, %v2316_v54 }
 0x16a   :  { %v2321_v48 = vpop.eup %1621  ;;  %v881_v28 = vmul.f32 %v880_v23, %v2288_v40  ;;  %v904_v10 = vmul.f32 %v2313_v53, %v2313_v53  ;;  %v685_v58 = vmul.f32 0.5, %v2147_v62  ;;  %v1372_v39 = vmul.f32 %v1356_v9, %v684_v36 }
 0x16b   :  { %v1357_v22 = vadd.f32 1.0, %v1457_v52  ;;  %v728_v38 = vmul.f32 %v2321_v48, %v2296_v21  ;;  %v714_v2 = vmul.f32 %v713_v35, %v2220_v44  ;;  %v764_v3 = vadd.f32 0.4994258, %v763_v5 }
 0x16c   :  { %v882_v24 = vadd.f32 0.112945676, %v881_v28  ;;  %v753_v12 = vadd.f32 0.18741608, %v752_v34  ;;  %v2333_v56 = vmin.f32 %v904_v10, 16.0  ;;  %v870_v57 = vmul.f32 %v869_v29, %v2288_v40  ;;  %v588_v29 = vpop.f32.mrf.mxu2 }
 0x16d   :  { %v1373_v42 = vmul.f32 %v1357_v22, %v685_v58  ;;  %v729_v60 = vsub.f32 1.0, %v728_v38  ;;  %v765_v20 = vmul.f32 %v764_v3, %v2268_v50  ;;  %v1104_v6 = vmul.f32 %v2327_v16, %v2327_v16 }
 0x16e   :  { %v883_v62 = vmul.f32 %v882_v24, %v2288_v40  ;;  %v906_v44 = vmul.f32 2.1237322e-06, %v2333_v56  ;;  %v754_v17 = vmul.f32 %v753_v12, %v2268_v50  ;;  %v917_v13 = vmul.f32 3.8918573e-05, %v2333_v56 }
 0x16f   :  { %v1533_v0 = vpack.c.bf16 %v1373_v42, %v1372_v39  ;;  %v730_v1 = vmul.f32 %v2321_v48, %v729_v60  ;;  %v2342_v8 = vadd.f32 1.0, %v765_v20  ;;  %v715_v31 = vadd.f32 1.1283791, %v714_v2 }
 0x170   :  { %v884_v18 = vadd.f32 0.4994258, %v883_v62  ;;  %v907_v11 = vadd.f32 0.00028619796, %v906_v44  ;;  %v871_v32 = vadd.f32 0.05243302, %v870_v57  ;;  %vm733_vm0 = vweird.f32 %v2321_v48 }
 0x171   :  { %1552 = vst [vmem:[%s2694_s5 + $0x30] sm:$0xff] %v1533_v0   ;;  %1623 = vrcp.f32 %v2342_v8  ;;  %v2350_v14 = vmin.f32 %v1104_v6, 16.0  ;;  %v731_v51 = vadd.f32 %v2321_v48, %v730_v1  ;;  %v736_v50 = vand.u32 2147483647, %v2296_v21 }
 0x172   :  { %v885_v4 = vmul.f32 %v884_v18, %v2288_v40  ;;  %v908_v19 = vmul.f32 %v907_v11, %v2333_v56  ;;  %v738_v49 = vand.u32 2147483648, %v2296_v21  ;;  %v918_v61 = vadd.f32 0.001143296, %v917_v13 }
 0x173   :  { %v2359_v7 = vadd.f32 %v2116_v55, %v596_v46  ;;  %vm732_vm1 = vweird.f32 %v2296_v21  ;;  %v755_v37 = vadd.f32 1.1283791, %v754_v17  ;;  %v872_v9 = vmul.f32 %v871_v32, %v2288_v40 }
 0x174   :  { %v2362_v25 = vadd.f32 1.0, %v885_v4  ;;  %v909_v30 = vadd.f32 0.0036580483, %v908_v19  ;;  %vm2364_vm2 = vmor %vm732_vm1, %vm733_vm0  ;;  %v919_v43 = vmul.f32 %v918_v61, %v2333_v56  ;;  %v1106_v63 = vmul.f32 2.1237322e-06, %v2350_v14 }
 0x175   :  { %v735_v35 = vsel %vm2364_vm2, %v2321_v48, %v731_v51  ;;  %v1117_v21 = vmul.f32 3.8918573e-05, %v2350_v14  ;;  %v739_v36 = vor.u32 1.1754944e-38, %v738_v49  ;;  %v2378_v5 = vmul.f32 0.70710677, %v2359_v7 }
 0x176   :  { %1625 = vrcp.f32 %v2362_v25  ;;  %v910_v52 = vmul.f32 %v909_v30, %v2333_v56  ;;  %v920_v34 = vadd.f32 0.014752088, %v919_v43  ;;  %v716_v28 = vmul.f32 %v715_v31, %v2190_v47 }
 0x177   :  { %v1624_v23 = vpop.eup %1623  ;;  %vm737_vm3 = vcmp.eq.f32.partialorder %v736_v50, 8.507059e+37  ;;  %v756_v10 = vmul.f32 %v755_v37, %v2230_v41  ;;  %v873_v22 = vadd.f32 0.18741608, %v872_v9  ;;  %v1107_v39 = vadd.f32 0.00028619796, %v1106_v63 }
 0x178   :  { %v768_v48 = vmul.f32 %v1624_v23, %v2342_v8  ;;  %v740_v58 = vsel %vm737_vm3, %v739_v36, %v735_v35  ;;  %v921_v38 = vmul.f32 %v920_v34, %v2333_v56  ;;  %v776_v3 = vand.u32 2147483647, %v2342_v8 }
 0x179   :  { %v1118_v24 = vadd.f32 0.001143296, %v1117_v21  ;;  %v2386_v42 = vadd.f32 %v2116_v55, %v588_v29  ;;  %v778_v60 = vand.u32 2147483648, %v2342_v8  ;;  %v911_v47 = vadd.f32 0.05243302, %v910_v52 }
 0x17a   :  { %v769_v2 = vsub.f32 1.0, %v768_v48  ;;  %v922_v12 = vadd.f32 0.112945676, %v921_v38  ;;  %v1264_v41 = vmul.f32 %v2378_v5, %v2378_v5  ;;  %v741_v57 = vmul.f32 %v740_v58, %v716_v28 }
 0x17b   :  { %vm773_vm4 = vweird.f32 %v1624_v23  ;;  %v1119_v6 = vmul.f32 %v1118_v24, %v2350_v14  ;;  %vm772_vm5 = vweird.f32 %v2342_v8  ;;  %v1108_v44 = vmul.f32 %v1107_v39, %v2350_v14 }
 0x17c   :  { %v2391_v20 = vpop.eup %1625  ;;  %v770_v62 = vmul.f32 %v1624_v23, %v769_v2  ;;  %v923_v1 = vmul.f32 %v922_v12, %v2333_v56  ;;  %v874_v17 = vmul.f32 %v873_v22, %v2288_v40  ;;  %v2400_v13 = vmin.f32 %v1264_v41, 16.0  ;;  %vm774_vm6 = vmor %vm772_vm5, %vm773_vm4 }
 0x17d   :  { %v888_v0 = vmul.f32 %v2391_v20, %v2362_v25  ;;  %v1120_v11 = vadd.f32 0.014752088, %v1119_v6  ;;  %v779_v46 = vor.u32 1.1754944e-38, %v778_v60  ;;  %v912_v32 = vmul.f32 %v911_v47, %v2333_v56 }
 0x17e   :  { %v771_v18 = vadd.f32 %v1624_v23, %v770_v62  ;;  %v924_v51 = vadd.f32 0.4994258, %v923_v1  ;;  %v1444_v8 = vclamps-f32 %v741_v57, 1.0  ;;  %vm777_vm7 = vcmp.eq.f32.partialorder %v776_v3, 8.507059e+37 }
 0x17f   :  { %v889_v31 = vsub.f32 1.0, %v888_v0  ;;  %v1121_v19 = vmul.f32 %v1120_v11, %v2350_v14  ;;  %v1109_v61 = vadd.f32 0.0036580483, %v1108_v44  ;;  %v2406_v40 = vmul.f32 0.70710677, %v2386_v42  ;;  %v598_v0 = vpop.f32.mrf.mxu3 }
 0x180   :  { %v775_v4 = vsel %vm774_vm6, %v1624_v23, %v771_v18  ;;  %v925_v49 = vmul.f32 %v924_v51, %v2333_v56  ;;  %v1266_v9 = vmul.f32 2.1237322e-06, %v2400_v13  ;;  %v672_v43 = vmul.f32 0.5, %v2174_v59 }
 0x181   :  { %v780_v50 = vsel %vm777_vm7, %v779_v46, %v775_v4  ;;  %v890_v30 = vmul.f32 %v2391_v20, %v889_v31  ;;  %v1122_v45 = vadd.f32 0.112945676, %v1121_v19  ;;  %v673_v63 = vmul.f32 0.5, %v2195_v15 }
 0x182   :  { %v781_v37 = vmul.f32 %v780_v50, %v756_v10  ;;  %v913_v35 = vadd.f32 0.18741608, %v912_v32  ;;  %v2412_v21 = vadd.f32 1.0, %v925_v49  ;;  %v1344_v23 = vadd.f32 1.0, %v1444_v8 }
 0x183   :  { %v1123_v52 = vmul.f32 %v1122_v45, %v2350_v14  ;;  %v1277_v34 = vmul.f32 3.8918573e-05, %v2400_v13  ;;  %v875_v29 = vadd.f32 1.1283791, %v874_v17  ;;  %v1110_v28 = vmul.f32 %v1109_v61, %v2350_v14 }
 0x184   :  { %v1445_v36 = vclamps-f32 %v781_v37, 1.0  ;;  %1627 = vrcp.f32 %v2412_v21  ;;  %v1144_v10 = vmul.f32 %v2406_v40, %v2406_v40  ;;  %v891_v15 = vadd.f32 %v2391_v20, %v890_v30 }
 0x185   :  { %vm893_vm8 = vweird.f32 %v2391_v20  ;;  %v1267_v48 = vadd.f32 0.00028619796, %v1266_v9  ;;  %vm892_vm9 = vweird.f32 %v2362_v25  ;;  %v898_v58 = vand.u32 2147483648, %v2362_v25 }
 0x186   :  { %v1345_v59 = vadd.f32 1.0, %v1445_v36  ;;  %v914_v22 = vmul.f32 %v913_v35, %v2333_v56  ;;  %v1124_v38 = vadd.f32 0.4994258, %v1123_v52  ;;  %v1360_v39 = vmul.f32 %v1344_v23, %v672_v43  ;;  %vm2427_vm10 = vmor %vm892_vm9, %vm893_vm8 }
 0x187   :  { %v896_v3 = vand.u32 2147483647, %v2362_v25  ;;  %v1278_v24 = vadd.f32 0.001143296, %v1277_v34  ;;  %v876_v60 = vmul.f32 %v875_v29, %v2273_v27  ;;  %v1111_v12 = vadd.f32 0.05243302, %v1110_v28 }
 0x188   :  { %v1361_v2 = vmul.f32 %v1345_v59, %v673_v63  ;;  %v1125_v41 = vmul.f32 %v1124_v38, %v2350_v14  ;;  %v2432_v57 = vmin.f32 %v1144_v10, 16.0  ;;  %v895_v56 = vsel %vm2427_vm10, %v2391_v20, %v891_v15  ;;  %v566_v63 = vpop.f32.mrf.mxu0 }
 0x189   :  { %v1268_v6 = vmul.f32 %v1267_v48, %v2400_v13  ;;  %v1279_v25 = vmul.f32 %v1278_v24, %v2400_v13  ;;  %v899_v1 = vor.u32 1.1754944e-38, %v898_v58  ;;  %v915_v44 = vadd.f32 1.1283791, %v914_v22 }
 0x18a   :  { %v1503_v62 = vpack.c.bf16 %v1361_v2, %v1360_v39  ;;  %v1628_v27 = vpop.eup %1627  ;;  %v2439_v18 = vadd.f32 1.0, %v1125_v41  ;;  %v1146_v17 = vmul.f32 2.1237322e-06, %v2432_v57  ;;  %vm897_vm11 = vcmp.eq.f32.partialorder %v896_v3, 8.507059e+37 }
 0x18b   :  { %v928_v11 = vmul.f32 %v1628_v27, %v2412_v21  ;;  %v1280_v20 = vadd.f32 0.014752088, %v1279_v25  ;;  %v1157_v46 = vmul.f32 3.8918573e-05, %v2432_v57  ;;  %v900_v31 = vsel %vm897_vm11, %v899_v1, %v895_v56 }
 0x18c   :  { %1504 = vst [vmem:[%s2694_s5] sm:$0xff] %v1503_v62   ;;  %v1112_v32 = vmul.f32 %v1111_v12, %v2350_v14  ;;  %1629 = vrcp.f32 %v2439_v18  ;;  %v2450_v51 = vadd.f32 %v2116_v55, %v598_v0  ;;  %v938_v4 = vand.u32 2147483648, %v2412_v21 }
 0x18d   :  { %v929_v8 = vsub.f32 1.0, %v928_v11  ;;  %v1269_v19 = vadd.f32 0.0036580483, %v1268_v6  ;;  %v1281_v50 = vmul.f32 %v1280_v20, %v2400_v13  ;;  %v916_v49 = vmul.f32 %v915_v44, %v2313_v53 }
 0x18e   :  { %v936_v61 = vand.u32 2147483647, %v2412_v21  ;;  %v1147_v37 = vadd.f32 0.00028619796, %v1146_v17  ;;  %v1158_v30 = vadd.f32 0.001143296, %v1157_v46  ;;  %v901_v45 = vmul.f32 %v900_v31, %v876_v60 }
 0x18f   :  { %v930_v9 = vmul.f32 %v1628_v27, %v929_v8  ;;  %vm933_vm12 = vweird.f32 %v1628_v27  ;;  %v1282_v43 = vadd.f32 0.112945676, %v1281_v50  ;;  %vm932_vm13 = vweird.f32 %v2412_v21 }
 0x190   :  { %v1148_v35 = vmul.f32 %v1147_v37, %v2432_v57  ;;  %v1159_v23 = vmul.f32 %v1158_v30, %v2432_v57  ;;  %v2460_v36 = vmul.f32 0.70710677, %v2450_v51  ;;  %v939_v53 = vor.u32 1.1754944e-38, %v938_v4  ;;  %vm934_vm14 = vmor %vm932_vm13, %vm933_vm12 }
 0x191   :  { %v931_v52 = vadd.f32 %v1628_v27, %v930_v9  ;;  %v1270_v34 = vmul.f32 %v1269_v19, %v2400_v13  ;;  %v1283_v29 = vmul.f32 %v1282_v43, %v2400_v13  ;;  %v2469_v15 = vadd.f32 %v2116_v55, %v566_v63 }
 0x192   :  { %v2464_v28 = vpop.eup %1629  ;;  %v1149_v10 = vadd.f32 0.0036580483, %v1148_v35  ;;  %v1160_v59 = vadd.f32 0.014752088, %v1159_v23  ;;  %v1304_v21 = vmul.f32 %v2460_v36, %v2460_v36  ;;  %v1448_v48 = vclamps-f32 %v901_v45, 1.0  ;;  %v576_v23 = vpop.f32.mrf.mxu1 }
 0x193   :  { %v935_v58 = vsel %vm934_vm14, %v1628_v27, %v931_v52  ;;  %vm937_vm15 = vcmp.eq.f32.partialorder %v936_v61, 8.507059e+37  ;;  %v1128_v22 = vmul.f32 %v2464_v28, %v2439_v18  ;;  %v1113_v39 = vadd.f32 0.18741608, %v1112_v32 }
 0x194   :  { %v940_v38 = vsel %vm937_vm15, %v939_v53, %v935_v58  ;;  %v1284_v2 = vadd.f32 0.4994258, %v1283_v29  ;;  %v1161_v3 = vmul.f32 %v1160_v59, %v2432_v57  ;;  %v1150_v47 = vmul.f32 %v1149_v10, %v2432_v57  ;;  %v568_v29 = vpop.f32.mrf.mxu0 }
 0x195   :  { %v941_v24 = vmul.f32 %v940_v38, %v916_v49  ;;  %v1129_v60 = vsub.f32 1.0, %v1128_v22  ;;  %v2475_v12 = vmin.f32 %v1304_v21, 16.0  ;;  %v1271_v41 = vadd.f32 0.05243302, %v1270_v34 }
 0x196   :  { %v1285_v62 = vmul.f32 %v1284_v2, %v2400_v13  ;;  %v1162_v56 = vadd.f32 0.112945676, %v1161_v3  ;;  %v2479_v6 = vmul.f32 0.70710677, %v2469_v15  ;;  %v1348_v25 = vadd.f32 1.0, %v1448_v48 }
 0x197   :  { %v1449_v0 = vclamps-f32 %v941_v24, 1.0  ;;  %v1306_v27 = vmul.f32 2.1237322e-06, %v2475_v12  ;;  %v1317_v1 = vmul.f32 3.8918573e-05, %v2475_v12  ;;  %v676_v44 = vmul.f32 0.5, %v2198_v26 }
 0x198   :  { %v1114_v17 = vmul.f32 %v1113_v39, %v2350_v14  ;;  %v2485_v11 = vadd.f32 1.0, %v1285_v62  ;;  %v1163_v20 = vmul.f32 %v1162_v56, %v2432_v57  ;;  %v677_v46 = vmul.f32 0.5, %v2304_v33 }
 0x199   :  { %v1349_v31 = vadd.f32 1.0, %v1449_v0  ;;  %v1130_v32 = vmul.f32 %v2464_v28, %v1129_v60  ;;  %v1151_v8 = vadd.f32 0.05243302, %v1150_v47  ;;  %v1307_v4 = vadd.f32 0.00028619796, %v1306_v27 }
 0x19a   :  { %1631 = vrcp.f32 %v2485_v11  ;;  %v1318_v19 = vadd.f32 0.001143296, %v1317_v1  ;;  %v784_v50 = vmul.f32 %v2479_v6, %v2479_v6  ;;  %v1364_v26 = vmul.f32 %v1348_v25, %v676_v44 }
 0x19b   :  { %v1365_v49 = vmul.f32 %v1349_v31, %v677_v46  ;;  %v1272_v14 = vmul.f32 %v1271_v41, %v2400_v13  ;;  %v1164_v61 = vadd.f32 0.4994258, %v1163_v20  ;;  %v1115_v37 = vadd.f32 1.1283791, %v1114_v17 }
 0x19c   :  { %v1131_v33 = vadd.f32 %v2464_v28, %v1130_v32  ;;  %vm1133_vm0 = vweird.f32 %v2464_v28  ;;  %v1152_v9 = vmul.f32 %v1151_v8, %v2432_v57  ;;  %v1308_v43 = vmul.f32 %v1307_v4, %v2475_v12 }
 0x19d   :  { %v1513_v30 = vpack.c.bf16 %v1365_v49, %v1364_v26  ;;  %v1165_v45 = vmul.f32 %v1164_v61, %v2432_v57  ;;  %v1319_v63 = vmul.f32 %v1318_v19, %v2475_v12  ;;  %v2500_v35 = vmin.f32 %v784_v50, 16.0 }
 0x19e   :  { %vm1132_vm1 = vweird.f32 %v2439_v18  ;;  %v1138_v52 = vand.u32 2147483648, %v2439_v18  ;;  %v1273_v53 = vadd.f32 0.18741608, %v1272_v14  ;;  %v1136_v21 = vand.u32 2147483647, %v2439_v18 }
 0x19f   :  { %1548 = vst [vmem:[%s2694_s5 + $0x10] sm:$0xff] %v1513_v30   ;;  %v2507_v34 = vadd.f32 1.0, %v1165_v45  ;;  %vm2511_vm2 = vmor %vm1132_vm1, %vm1133_vm0  ;;  %v1320_v48 = vadd.f32 0.014752088, %v1319_v63  ;;  %v797_v58 = vmul.f32 3.8918573e-05, %v2500_v35  ;;  %v2523_v39 = vadd.f32 %v2116_v55, %v576_v23 }
 0x1a0   :  { %v2509_v10 = vpop.eup %1631  ;;  %v1135_v22 = vsel %vm2511_vm2, %v2464_v28, %v1131_v33  ;;  %v1153_v2 = vadd.f32 0.18741608, %v1152_v9  ;;  %v1309_v3 = vadd.f32 0.0036580483, %v1308_v43  ;;  %v2527_v24 = vadd.f32 %v2116_v55, %v568_v29 }
 0x1a1   :  { %v1288_v38 = vmul.f32 %v2509_v10, %v2485_v11  ;;  %1633 = vrcp.f32 %v2507_v34  ;;  %v1139_v18 = vor.u32 1.1754944e-38, %v1138_v52  ;;  %v1274_v60 = vmul.f32 %v1273_v53, %v2400_v13 }
 0x1a2   :  { %v1321_v47 = vmul.f32 %v1320_v48, %v2475_v12  ;;  %v1116_v28 = vmul.f32 %v1115_v37, %v2327_v16  ;;  %vm1137_vm3 = vcmp.eq.f32.partialorder %v1136_v21, 8.507059e+37  ;;  %v798_v41 = vadd.f32 0.001143296, %v797_v58 }
 0x1a3   :  { %v1140_v62 = vsel %vm1137_vm3, %v1139_v18, %v1135_v22  ;;  %v1289_v56 = vsub.f32 1.0, %v1288_v38  ;;  %v2533_v0 = vmul.f32 0.70710677, %v2523_v39  ;;  %v1154_v27 = vmul.f32 %v1153_v2, %v2432_v57 }
 0x1a4   :  { %v1322_v25 = vadd.f32 0.112945676, %v1321_v47  ;;  %v1310_v55 = vmul.f32 %v1309_v3, %v2475_v12  ;;  %v799_v1 = vmul.f32 %v798_v41, %v2500_v35  ;;  %v2539_v13 = vmul.f32 0.70710677, %v2527_v24 }
 0x1a5   :  { %v2541_v44 = vadd.f32 1.1283791, %v1274_v60  ;;  %v1296_v16 = vand.u32 2147483647, %v2485_v11  ;;  %v944_v20 = vmul.f32 %v2533_v0, %v2533_v0  ;;  %vm1292_vm4 = vweird.f32 %v2485_v11 }
 0x1a6   :  { %v1323_v17 = vmul.f32 %v1322_v25, %v2475_v12  ;;  %v1298_v57 = vand.u32 2147483648, %v2485_v11  ;;  %v786_v31 = vmul.f32 2.1237322e-06, %v2500_v35  ;;  %v800_v32 = vadd.f32 0.014752088, %v799_v1 }
 0x1a7   :  { %v1634_v46 = vpop.eup %1633  ;;  %v1141_v8 = vmul.f32 %v1140_v62, %v1116_v28  ;;  %v1290_v4 = vmul.f32 %v2509_v10, %v1289_v56  ;;  %v824_v50 = vmul.f32 %v2539_v13, %v2539_v13  ;;  %v1155_v26 = vadd.f32 1.1283791, %v1154_v27 }
 0x1a8   :  { %v1168_v19 = vmul.f32 %v1634_v46, %v2507_v34  ;;  %v1311_v49 = vadd.f32 0.05243302, %v1310_v55  ;;  %v1324_v14 = vadd.f32 0.4994258, %v1323_v17  ;;  %v801_v61 = vmul.f32 %v800_v32, %v2500_v35 }
 0x1a9   :  { %vm1293_vm5 = vweird.f32 %v2509_v10  ;;  %v1176_v30 = vand.u32 2147483647, %v2507_v34  ;;  %v2557_v33 = vmin.f32 %v944_v20, 16.0  ;;  %v1178_v45 = vand.u32 2147483648, %v2507_v34 }
 0x1aa   :  { %v1169_v37 = vsub.f32 1.0, %v1168_v19  ;;  %v1325_v9 = vmul.f32 %v1324_v14, %v2475_v12  ;;  %v787_v43 = vadd.f32 0.00028619796, %v786_v31  ;;  %v802_v63 = vadd.f32 0.112945676, %v801_v61  ;;  %vm2572_vm7 = vmor %vm1292_vm4, %vm1293_vm5 }
 0x1ab   :  { %v1291_v23 = vadd.f32 %v2509_v10, %v1290_v4  ;;  %vm1173_vm6 = vweird.f32 %v1634_v46  ;;  %v2562_v53 = vmin.f32 %v824_v50, 16.0  ;;  %v1454_v29 = vclamps-f32 %v1141_v8, 1.0 }
 0x1ac   :  { %v1170_v52 = vmul.f32 %v1634_v46, %v1169_v37  ;;  %v1312_v59 = vmul.f32 %v1311_v49, %v2475_v12  ;;  %v2565_v21 = vadd.f32 1.0, %v1325_v9  ;;  %v803_v48 = vmul.f32 %v802_v63, %v2500_v35  ;;  %v1645_v37 = vld [vmem:[%s2693_s2] ss:$0 sm:$0xff] }
 0x1ad   :  { %v1156_v22 = vmul.f32 %v1155_v26, %v2406_v40  ;;  %vm1172_vm8 = vweird.f32 %v2507_v34  ;;  %v957_v2 = vmul.f32 3.8918573e-05, %v2557_v33  ;;  %vm1177_vm10 = vcmp.eq.f32.partialorder %v1176_v30, 8.507059e+37 }
 0x1ae   :  { %v1171_v38 = vadd.f32 %v1634_v46, %v1170_v52  ;;  %vm1174_vm9 = vmor %vm1172_vm8, %vm1173_vm6  ;;  %v1179_v3 = vor.u32 1.1754944e-38, %v1178_v45  ;;  %1635 = vrcp.f32 %v2565_v21  ;;  %v788_v18 = vmul.f32 %v787_v43, %v2500_v35 }
 0x1af   :  { %v1295_v11 = vsel %vm2572_vm7, %v2509_v10, %v1291_v23  ;;  %v804_v47 = vadd.f32 0.4994258, %v803_v48  ;;  %v826_v40 = vmul.f32 2.1237322e-06, %v2562_v53  ;;  %vm1297_vm11 = vcmp.eq.f32.partialorder %v1296_v16, 8.507059e+37 }
 0x1b0   :  { %v1175_v60 = vsel %vm1174_vm9, %v1634_v46, %v1171_v38  ;;  %v1299_v28 = vor.u32 1.1754944e-38, %v1298_v57  ;;  %v1313_v41 = vadd.f32 0.18741608, %v1312_v59  ;;  %v1354_v62 = vadd.f32 1.0, %v1454_v29  ;;  %v578_v57 = vpop.f32.mrf.mxu1 }
 0x1b1   :  { %v1180_v34 = vsel %vm1177_vm10, %v1179_v3, %v1175_v60  ;;  %v805_v25 = vmul.f32 %v804_v47, %v2500_v35  ;;  %v958_v27 = vadd.f32 0.001143296, %v957_v2  ;;  %v682_v55 = vmul.f32 0.5, %v2316_v54 }
 0x1b2   :  { %v1181_v56 = vmul.f32 %v1180_v34, %v1156_v22  ;;  %v1300_v1 = vsel %vm1297_vm11, %v1299_v28, %v1295_v11  ;;  %v789_v17 = vadd.f32 0.0036580483, %v788_v18  ;;  %v837_v20 = vmul.f32 3.8918573e-05, %v2562_v53 }
 0x1b3   :  { %v2588_v46 = vadd.f32 1.0, %v805_v25  ;;  %v959_v31 = vmul.f32 %v958_v27, %v2557_v33  ;;  %v827_v16 = vadd.f32 0.00028619796, %v826_v40  ;;  %v1276_v8 = vmul.f32 %v2541_v44, %v2378_v5 }
 0x1b4   :  { %v1455_v10 = vclamps-f32 %v1181_v56, 1.0  ;;  %v1636_v32 = vpop.eup %1635  ;;  %v1314_v4 = vmul.f32 %v1313_v41, %v2475_v12  ;;  %v838_v19 = vadd.f32 0.001143296, %v837_v20  ;;  %v1370_v50 = vmul.f32 %v1354_v62, %v682_v55 }
 0x1b5   :  { %v683_v54 = vmul.f32 0.5, %v2386_v42  ;;  %v1328_v49 = vmul.f32 %v1636_v32, %v2565_v21  ;;  %v1301_v14 = vmul.f32 %v1300_v1, %v1276_v8  ;;  %v790_v61 = vmul.f32 %v789_v17, %v2500_v35 }
 0x1b6   :  { %v1355_v26 = vadd.f32 1.0, %v1455_v10  ;;  %1637 = vrcp.f32 %v2588_v46  ;;  %v2601_v30 = vadd.f32 %v1645_v37, %v578_v57  ;;  %v960_v44 = vadd.f32 0.014752088, %v959_v31 }
 0x1b7   :  { %v1329_v12 = vsub.f32 1.0, %v1328_v49  ;;  %v828_v45 = vmul.f32 %v827_v16, %v2562_v53  ;;  %v1315_v42 = vadd.f32 1.1283791, %v1314_v4  ;;  %v1336_v9 = vand.u32 2147483647, %v2565_v21 }
 0x1b8   :  { %v1371_v5 = vmul.f32 %v1355_v26, %v683_v54  ;;  %v1338_v43 = vand.u32 2147483648, %v2565_v21  ;;  %v839_v63 = vmul.f32 %v838_v19, %v2562_v53  ;;  %vm1333_vm12 = vweird.f32 %v1636_v32 }
 0x1b9   :  { %v1330_v52 = vmul.f32 %v1636_v32, %v1329_v12  ;;  %v961_v29 = vmul.f32 %v960_v44, %v2557_v33  ;;  %v946_v59 = vmul.f32 2.1237322e-06, %v2557_v33  ;;  %v2610_v58 = vmul.f32 0.70710677, %v2601_v30 }
 0x1ba   :  { %v1528_v23 = vpack.c.bf16 %v1371_v5, %v1370_v50  ;;  %v840_v48 = vadd.f32 0.014752088, %v839_v63  ;;  %vm1332_vm13 = vweird.f32 %v2565_v21  ;;  %v829_v2 = vadd.f32 0.0036580483, %v828_v45 }
 0x1bb   :  { %v1331_v22 = vadd.f32 %v1636_v32, %v1330_v52  ;;  %v962_v38 = vadd.f32 0.112945676, %v961_v29  ;;  %vm1334_vm14 = vmor %vm1332_vm13, %vm1333_vm12  ;;  %v1339_v18 = vor.u32 1.1754944e-38, %v1338_v43  ;;  %v791_v11 = vadd.f32 0.05243302, %v790_v61 }
 0x1bc   :  { %1551 = vst [vmem:[%s2694_s5 + $0x28] sm:$0xff] %v1528_v23   ;;  %v2616_v3 = vpop.eup %1637  ;;  %v841_v60 = vmul.f32 %v840_v48, %v2562_v53  ;;  %v984_v47 = vmul.f32 %v2610_v58, %v2610_v58  ;;  %v1458_v40 = vclamps-f32 %v1301_v14, 1.0  ;;  %v1316_v28 = vmul.f32 %v1315_v42, %v2460_v36 }
 0x1bd   :  { %v1335_v34 = vsel %vm1334_vm14, %v1636_v32, %v1331_v22  ;;  %vm1337_vm15 = vcmp.eq.f32.partialorder %v1336_v9, 8.507059e+37  ;;  %v947_v62 = vadd.f32 0.00028619796, %v946_v59  ;;  %v963_v21 = vmul.f32 %v962_v38, %v2557_v33 }
 0x1be   :  { %v1340_v41 = vsel %vm1337_vm15, %v1339_v18, %v1335_v34  ;;  %v842_v56 = vadd.f32 0.112945676, %v841_v60  ;;  %v808_v27 = vmul.f32 %v2616_v3, %v2588_v46  ;;  %v830_v55 = vmul.f32 %v829_v2, %v2562_v53 }
 0x1bf   :  { %v1341_v25 = vmul.f32 %v1340_v41, %v1316_v28  ;;  %v2626_v1 = vmin.f32 %v984_v47, 16.0  ;;  %v686_v17 = vmul.f32 0.5, %v2359_v7  ;;  %v964_v20 = vadd.f32 0.4994258, %v963_v21 }
 0x1c0   :  { %v843_v36 = vmul.f32 %v842_v56, %v2562_v53  ;;  %v1358_v10 = vadd.f32 1.0, %v1458_v40  ;;  %v792_v16 = vmul.f32 %v791_v11, %v2500_v35  ;;  %v948_v32 = vmul.f32 %v947_v62, %v2557_v33 }
 0x1c1   :  { %v1459_v31 = vclamps-f32 %v1341_v25, 1.0  ;;  %v986_v57 = vmul.f32 2.1237322e-06, %v2626_v1  ;;  %v965_v8 = vmul.f32 %v964_v20, %v2557_v33  ;;  %v997_v19 = vmul.f32 3.8918573e-05, %v2626_v1 }
 0x1c2   :  { %v844_v4 = vadd.f32 0.4994258, %v843_v36  ;;  %v687_v50 = vmul.f32 0.5, %v2450_v51  ;;  %v809_v7 = vsub.f32 1.0, %v808_v27  ;;  %v831_v26 = vadd.f32 0.05243302, %v830_v55 }
 0x1c3   :  { %v1359_v54 = vadd.f32 1.0, %v1459_v31  ;;  %v2636_v49 = vadd.f32 1.0, %v965_v8  ;;  %v987_v61 = vadd.f32 0.00028619796, %v986_v57  ;;  %v998_v37 = vadd.f32 0.001143296, %v997_v19 }
 0x1c4   :  { %v845_v14 = vmul.f32 %v844_v4, %v2562_v53  ;;  %v1374_v5 = vmul.f32 %v1358_v10, %v686_v17  ;;  %v793_v44 = vadd.f32 0.18741608, %v792_v16  ;;  %v949_v45 = vadd.f32 0.0036580483, %v948_v32 }
 0x1c5   :  { %v1375_v12 = vmul.f32 %v1359_v54, %v687_v50  ;;  %1639 = vrcp.f32 %v2636_v49  ;;  %v810_v9 = vmul.f32 %v2616_v3, %v809_v7  ;;  %v832_v51 = vmul.f32 %v831_v26, %v2562_v53 }
 0x1c6   :  { %v846_v43 = vadd.f32 1.0, %v845_v14  ;;  %v988_v63 = vmul.f32 %v987_v61, %v2626_v1  ;;  %v999_v23 = vmul.f32 %v998_v37, %v2626_v1  ;;  %v794_v52 = vmul.f32 %v793_v44, %v2500_v35 }
 0x1c7   :  { %v1538_v42 = vpack.c.bf16 %v1375_v12, %v1374_v5  ;;  %v950_v29 = vmul.f32 %v949_v45, %v2557_v33  ;;  %v811_v59 = vadd.f32 %v2616_v3, %v810_v9  ;;  %vm813_vm0 = vweird.f32 %v2616_v3 }
 0x1c8   :  { %1641 = vrcp.f32 %v846_v43  ;;  %v833_v48 = vadd.f32 0.18741608, %v832_v51  ;;  %v1000_v22 = vadd.f32 0.014752088, %v999_v23  ;;  %v818_v2 = vand.u32 2147483648, %v2588_v46 }
 0x1c9   :  { %1553 = vst [vmem:[%s2694_s5 + $0x38] sm:$0xff] %v1538_v42   ;;  %v989_v18 = vadd.f32 0.0036580483, %v988_v63  ;;  %vm812_vm1 = vweird.f32 %v2588_v46  ;;  %v816_v11 = vand.u32 2147483647, %v2588_v46  ;;  %v858_v10 = vand.u32 2147483648, %v846_v43 }
 0x1ca   :  { %v795_v60 = vadd.f32 1.1283791, %v794_v52  ;;  %vm814_vm2 = vmor %vm812_vm1, %vm813_vm0  ;;  %v1001_v35 = vmul.f32 %v1000_v22, %v2626_v1  ;;  %v951_v40 = vadd.f32 0.05243302, %v950_v29  ;;  %v834_v34 = vmul.f32 %v833_v48, %v2562_v53 }
 0x1cb   :  { %v2651_v38 = vpop.eup %1639  ;;  %v815_v47 = vsel %vm814_vm2, %v2616_v3, %v811_v59  ;;  %v819_v62 = vor.u32 1.1754944e-38, %v818_v2  ;;  %v990_v21 = vmul.f32 %v989_v18, %v2626_v1  ;;  %vm817_vm3 = vcmp.eq.f32.partialorder %v816_v11, 8.507059e+37 }
 0x1cc   :  { %v968_v28 = vmul.f32 %v2651_v38, %v2636_v49  ;;  %v1002_v56 = vadd.f32 0.112945676, %v1001_v35  ;;  %v796_v46 = vmul.f32 %v795_v60, %v2479_v6  ;;  %v952_v3 = vmul.f32 %v951_v40, %v2557_v33 }
 0x1cd   :  { %v820_v27 = vsel %vm817_vm3, %v819_v62, %v815_v47  ;;  %v835_v20 = vadd.f32 1.1283791, %v834_v34  ;;  %v991_v31 = vadd.f32 0.05243302, %v990_v21  ;;  %v856_v32 = vand.u32 2147483647, %v846_v43 }
 0x1ce   :  { %v1642_v41 = vpop.eup %1641  ;;  %v1003_v55 = vmul.f32 %v1002_v56, %v2626_v1  ;;  %v969_v17 = vsub.f32 1.0, %v968_v28  ;;  %v821_v16 = vmul.f32 %v820_v27, %v796_v46  ;;  %v953_v4 = vadd.f32 0.18741608, %v952_v3 }
 0x1cf   :  { %v848_v25 = vmul.f32 %v1642_v41, %v846_v43  ;;  %vm853_vm4 = vweird.f32 %v1642_v41  ;;  %vm852_vm5 = vweird.f32 %v846_v43  ;;  %v859_v50 = vor.u32 1.1754944e-38, %v858_v10 }
 0x1d0   :  { %v1004_v53 = vadd.f32 0.4994258, %v1003_v55  ;;  %v970_v6 = vmul.f32 %v2651_v38, %v969_v17  ;;  %vm854_vm6 = vmor %vm852_vm5, %vm853_vm4  ;;  %v992_v54 = vmul.f32 %v991_v31, %v2626_v1  ;;  %v1446_v26 = vclamps-f32 %v821_v16, 1.0 }
 0x1d1   :  { %v849_v36 = vsub.f32 1.0, %v848_v25  ;;  %v836_v14 = vmul.f32 %v835_v20, %v2539_v13  ;;  %vm857_vm7 = vcmp.eq.f32.partialorder %v856_v32, 8.507059e+37  ;;  %v954_v5 = vmul.f32 %v953_v4, %v2557_v33 }
 0x1d2   :  { %v1005_v8 = vmul.f32 %v1004_v53, %v2626_v1  ;;  %v971_v12 = vadd.f32 %v2651_v38, %v970_v6  ;;  %vm973_vm8 = vweird.f32 %v2651_v38  ;;  %v978_v45 = vand.u32 2147483648, %v2636_v49 }
 0x1d3   :  { %v850_v57 = vmul.f32 %v1642_v41, %v849_v36  ;;  %v993_v42 = vadd.f32 0.18741608, %v992_v54  ;;  %v1346_v9 = vadd.f32 1.0, %v1446_v26  ;;  %vm972_vm9 = vweird.f32 %v2636_v49 }
 0x1d4   :  { %v1006_v7 = vadd.f32 1.0, %v1005_v8  ;;  %v976_v51 = vand.u32 2147483647, %v2636_v49  ;;  %v674_v43 = vmul.f32 0.5, %v2469_v15  ;;  %vm974_vm10 = vmor %vm972_vm9, %vm973_vm8  ;;  %v955_v63 = vadd.f32 1.1283791, %v954_v5 }
 0x1d5   :  { %v851_v19 = vadd.f32 %v1642_v41, %v850_v57  ;;  %v975_v33 = vsel %vm974_vm10, %v2651_v38, %v971_v12  ;;  %v675_v23 = vmul.f32 0.5, %v2527_v24  ;;  %v979_v59 = vor.u32 1.1754944e-38, %v978_v45 }
 0x1d6   :  { %1643 = vrcp.f32 %v1006_v7  ;;  %v994_v48 = vmul.f32 %v993_v42, %v2626_v1  ;;  %v1362_v22 = vmul.f32 %v1346_v9, %v674_v43  ;;  %vm977_vm11 = vcmp.eq.f32.partialorder %v976_v51, 8.507059e+37 }
 0x1d7   :  { %v855_v61 = vsel %vm854_vm6, %v1642_v41, %v851_v19  ;;  %v980_v11 = vsel %vm977_vm11, %v979_v59, %v975_v33  ;;  %v956_v49 = vmul.f32 %v955_v63, %v2533_v0  ;;  %v1018_v47 = vand.u32 2147483648, %v1006_v7 }
 0x1d8   :  { %v860_v37 = vsel %vm857_vm7, %v859_v50, %v855_v61  ;;  %v995_v35 = vadd.f32 1.1283791, %v994_v48  ;;  %v1016_v38 = vand.u32 2147483647, %v1006_v7  ;;  %vm1012_vm13 = vweird.f32 %v1006_v7 }
 0x1d9   :  { %v861_v44 = vmul.f32 %v860_v37, %v836_v14  ;;  %v981_v40 = vmul.f32 %v980_v11, %v956_v49  ;;  %v1019_v28 = vor.u32 1.1754944e-38, %v1018_v47  ;;  %v678_v46 = vmul.f32 0.5, %v2523_v39 }
 0x1da   :  { %v996_v41 = vmul.f32 %v995_v35, %v2610_v58  ;;  %vm1017_vm15 = vcmp.eq.f32.partialorder %v1016_v38, 8.507059e+37  ;;  %v679_v27 = vmul.f32 0.5, %v2601_v30 }
 0x1db   :  { %v1447_v13 = vclamps-f32 %v861_v44, 1.0  ;;  %v1450_v34 = vclamps-f32 %v981_v40, 1.0 }
 0x1dc   :  { %v1644_v29 = vpop.eup %1643 }
 0x1dd   :  { %v1347_v52 = vadd.f32 1.0, %v1447_v13  ;;  %v1008_v18 = vmul.f32 %v1644_v29, %v1006_v7  ;;  %vm1013_vm12 = vweird.f32 %v1644_v29  ;;  %v1350_v56 = vadd.f32 1.0, %v1450_v34 }
 0x1de   :  { %vm1014_vm14 = vmor %vm1012_vm13, %vm1013_vm12 }
 0x1df   :  { %v1363_v2 = vmul.f32 %v1347_v52, %v675_v23  ;;  %v1009_v15 = vsub.f32 1.0, %v1008_v18  ;;  %v1366_v3 = vmul.f32 %v1350_v56, %v678_v46 }
 0x1e1   :  { %v1508_v60 = vpack.c.bf16 %v1363_v2, %v1362_v22  ;;  %v1010_v24 = vmul.f32 %v1644_v29, %v1009_v15 }
 0x1e3   :  { %1547 = vst [vmem:[%s2694_s5 + $0x8] sm:$0xff] %v1508_v60   ;;  %v1011_v1 = vadd.f32 %v1644_v29, %v1010_v24 }
 0x1e5   :  { %v1015_v0 = vsel %vm1014_vm14, %v1644_v29, %v1011_v1 }
 0x1e6   :  { %v1020_v62 = vsel %vm1017_vm15, %v1019_v28, %v1015_v0 }
 0x1e7   :  { %v1021_v21 = vmul.f32 %v1020_v62, %v996_v41 }
 0x1e9   :  { %v1451_v25 = vclamps-f32 %v1021_v21, 1.0 }
 0x1eb   :  { %v1351_v55 = vadd.f32 1.0, %v1451_v25 }
 0x1ed   :  { %v1367_v17 = vmul.f32 %v1351_v55, %v679_v27 }
 0x1ef   :  { %v1518_v20 = vpack.c.bf16 %v1367_v17, %v1366_v3 }
 0x1f1   :  { %1549 = vst [vmem:[%s2694_s5 + $0x18] sm:$0xff] %v1518_v20  }

// kernel: swin_forward.31
= control target key start
LH: loop header
LB: loop body
LE: loop exit
PB: predicated region body
PF: predicated region fallthrough
CT: control target
= control target key end

     0   :  { %s718_s1 = inlined_call_operand.vmem [shape: bf16[128,128], index: 1, kind: input, shape index: {}]   ;;  %s719_s2 = inlined_call_operand.vmem [shape: f32[1,128], index: 2, kind: input, shape index: {}]   ;;  %s720_s0 = inlined_call_operand.vmem [shape: bf16[128,128], index: 0, kind: input, shape index: {}]   ;;  %s721_s3 = inlined_call_operand.vmem [shape: bf16[128,128], index: 3, kind: input, shape index: {}]   ;;  %s722_s4 = inlined_call_operand.vmem [shape: bf16[128,128], index: 4, kind: output, shape index: {}]  }
   0x1   :  { %v464_v0 = vld [vmem:[%s718_s1 + $0x38] sm:$0xff]  ;;  %v463_v1 = vld [vmem:[%s718_s1 + $0x30] sm:$0xff]  ;;  %v462_v2 = vld [vmem:[%s718_s1 + $0x28] sm:$0xff] }
   0x2   :  { %181 = vmatpush.bf16.msra.mxu0 %v464_v0  ;;  %551 = vmatpush.bf16.msra.mxu1 %v464_v0  ;;  %v461_v3 = vld [vmem:[%s718_s1 + $0x20] sm:$0xff]  ;;  %v460_v4 = vld [vmem:[%s718_s1 + $0x18] sm:$0xff]  ;;  %v459_v5 = vld [vmem:[%s718_s1 + $0x10] sm:$0xff] }
   0x3   :  { %552 = vmatpush.bf16.msra.mxu2 %v464_v0  ;;  %553 = vmatpush.bf16.msra.mxu3 %v464_v0  ;;  %v458_v6 = vld [vmem:[%s718_s1 + $0x8] sm:$0xff]  ;;  %v457_v7 = vld [vmem:[%s718_s1] sm:$0xff]  ;;  %v451_v9 = vld [vmem:[%s720_s0 + $0x10] sm:$0xff] }
   0x4   :  { %v449_v8 = vld [vmem:[%s720_s0] sm:$0xff]  ;;  %v455_v11 = vld [vmem:[%s720_s0 + $0x30] sm:$0xff]  ;;  %v450_v12 = vld [vmem:[%s720_s0 + $0x8] sm:$0xff] }
   0x5   :  { %v453_v10 = vld [vmem:[%s720_s0 + $0x20] sm:$0xff]  ;;  %v452_v13 = vld [vmem:[%s720_s0 + $0x18] sm:$0xff]  ;;  %v454_v14 = vld [vmem:[%s720_s0 + $0x28] sm:$0xff] }
   0x6   :  { %182 = vmatpush.bf16.msra.mxu0 %v463_v1  ;;  %554 = vmatpush.bf16.msra.mxu1 %v463_v1  ;;  %v456_v15 = vld [vmem:[%s720_s0 + $0x38] sm:$0xff]  ;;  %v652_v18 = vld [vmem:[%s719_s2] ss:$0 sm:$0xff]  ;;  %v538_v20 = vld [vmem:[%s721_s3 + $0x10] sm:$0xff]  }
   0x7   :  { %555 = vmatpush.bf16.msra.mxu2 %v463_v1  ;;  %556 = vmatpush.bf16.msra.mxu3 %v463_v1  ;;  %v466_v19 = vld [vmem:[%s721_s3] sm:$0xff]   ;;  %v475_v22 = vunpack.c.l.bf16 %v538_v20  ;;  %v476_v28 = vunpack.c.h.bf16 %v538_v20  ;;  %v542_v34 = vld [vmem:[%s721_s3 + $0x30] sm:$0xff]   ;;  %v537_v57 = vld [vmem:[%s721_s3 + $0x8] sm:$0xff]  }
   0x8   :  { %v467_v21 = vunpack.c.l.bf16 %v466_v19  ;;  %v468_v27 = vunpack.c.h.bf16 %v466_v19  ;;  %v540_v33 = vld [vmem:[%s721_s3 + $0x20] sm:$0xff]   ;;  %v491_v40 = vunpack.c.l.bf16 %v542_v34  ;;  %v492_v46 = vunpack.c.h.bf16 %v542_v34  ;;  %v539_v58 = vld [vmem:[%s721_s3 + $0x18] sm:$0xff]  }
   0x9   :  { %v483_v39 = vunpack.c.l.bf16 %v540_v33  ;;  %v484_v45 = vunpack.c.h.bf16 %v540_v33  ;;  %v471_v61 = vunpack.c.l.bf16 %v537_v57  ;;  %v479_v62 = vunpack.c.l.bf16 %v539_v58 }
   0xa   :  { %183 = vmatpush.bf16.msra.mxu0 %v462_v2  ;;  %557 = vmatpush.bf16.msra.mxu1 %v462_v2 }
   0xb   :  { %558 = vmatpush.bf16.msra.mxu2 %v462_v2  ;;  %559 = vmatpush.bf16.msra.mxu3 %v462_v2 }
   0xe   :  { %184 = vmatpush.bf16.msra.mxu0 %v461_v3  ;;  %560 = vmatpush.bf16.msra.mxu1 %v461_v3 }
   0xf   :  { %561 = vmatpush.bf16.msra.mxu2 %v461_v3  ;;  %562 = vmatpush.bf16.msra.mxu3 %v461_v3  ;;  %v472_v3 = vunpack.c.h.bf16 %v537_v57 }
  0x12   :  { %185 = vmatpush.bf16.msra.mxu0 %v460_v4  ;;  %563 = vmatpush.bf16.msra.mxu1 %v460_v4 }
  0x13   :  { %564 = vmatpush.bf16.msra.mxu2 %v460_v4  ;;  %565 = vmatpush.bf16.msra.mxu3 %v460_v4  ;;  %v480_v4 = vunpack.c.h.bf16 %v539_v58 }
  0x16   :  { %186 = vmatpush.bf16.msra.mxu0 %v459_v5  ;;  %566 = vmatpush.bf16.msra.mxu1 %v459_v5 }
  0x17   :  { %567 = vmatpush.bf16.msra.mxu2 %v459_v5  ;;  %568 = vmatpush.bf16.msra.mxu3 %v459_v5 }
  0x1a   :  { %187 = vmatpush.bf16.msra.mxu0 %v458_v6  ;;  %569 = vmatpush.bf16.msra.mxu1 %v458_v6 }
  0x1b   :  { %570 = vmatpush.bf16.msra.mxu2 %v458_v6  ;;  %571 = vmatpush.bf16.msra.mxu3 %v458_v6 }
  0x1e   :  { %188 = vmatpush.bf16.msra.mxu0 %v457_v7  ;;  %572 = vmatpush.bf16.msra.mxu1 %v457_v7 }
  0x1f   :  { %573 = vmatpush.bf16.msra.mxu2 %v457_v7  ;;  %574 = vmatpush.bf16.msra.mxu3 %v457_v7 }
  0x21   :  { %189 = vmatmul.bf16.vlgmr.msra.gmra.mxu0 %v449_v8  ;;  %199 = vmatmul.bf16.vlgmr.msra.gmra.mxu1 %v451_v9  ;;  %v541_v9 = vld [vmem:[%s721_s3 + $0x28] sm:$0xff]  }
  0x22   :  { %209 = vmatmul.bf16.vlgmr.msra.gmra.mxu2 %v453_v10  ;;  %219 = vmatmul.bf16.vlgmr.msra.gmra.mxu3 %v455_v11  ;;  %v543_v10 = vld [vmem:[%s721_s3 + $0x38] sm:$0xff]  }
  0x31   :  { %194 = vmatmul.bf16.gmra.mxu0 %v450_v12  ;;  %204 = vmatmul.bf16.gmra.mxu1 %v452_v13 }
  0x32   :  { %214 = vmatmul.bf16.gmra.mxu2 %v454_v14  ;;  %224 = vmatmul.bf16.gmra.mxu3 %v456_v15  ;;  %v487_v15 = vunpack.c.l.bf16 %v541_v9 }
  0x9e   :  { %v190_v16 = vpop.f32.mrf.mxu0  ;;  %v200_v17 = vpop.f32.mrf.mxu1 }
  0x9f   :  { %v285_v23 = vadd.f32 %v652_v18, %v190_v16  ;;  %v289_v24 = vadd.f32 %v652_v18, %v200_v17  ;;  %v495_v16 = vunpack.c.l.bf16 %v543_v10 }
  0xa1   :  { %v333_v35 = vadd.f32 %v467_v21, %v285_v23  ;;  %v337_v36 = vadd.f32 %v475_v22, %v289_v24  ;;  %v488_v22 = vunpack.c.h.bf16 %v541_v9  ;;  %v496_v23 = vunpack.c.h.bf16 %v543_v10 }
  0xa5   :  { %v210_v25 = vpop.f32.mrf.mxu2  ;;  %v220_v26 = vpop.f32.mrf.mxu3 }
  0xa6   :  { %v192_v29 = vpop.f32.mrf.mxu0  ;;  %v202_v30 = vpop.f32.mrf.mxu1  ;;  %v293_v43 = vadd.f32 %v652_v18, %v210_v25  ;;  %v297_v44 = vadd.f32 %v652_v18, %v220_v26 }
  0xa7   :  { %v286_v31 = vadd.f32 %v652_v18, %v192_v29  ;;  %v290_v32 = vadd.f32 %v652_v18, %v202_v30 }
  0xa8   :  { %v341_v53 = vadd.f32 %v483_v39, %v293_v43  ;;  %v345_v54 = vadd.f32 %v491_v40, %v297_v44 }
  0xa9   :  { %v334_v37 = vadd.f32 %v468_v27, %v286_v31  ;;  %v338_v38 = vadd.f32 %v476_v28, %v290_v32 }
  0xab   :  { %v500_v41 = vpack.c.bf16 %v334_v37, %v333_v35  ;;  %v510_v42 = vpack.c.bf16 %v338_v38, %v337_v36 }
  0xad   :  { %501 = vst [vmem:[%s722_s4] sm:$0xff] %v500_v41   ;;  %v212_v47 = vpop.f32.mrf.mxu2  ;;  %v222_v48 = vpop.f32.mrf.mxu3 }
  0xae   :  { %545 = vst [vmem:[%s722_s4 + $0x10] sm:$0xff] %v510_v42   ;;  %v294_v49 = vadd.f32 %v652_v18, %v212_v47  ;;  %v298_v50 = vadd.f32 %v652_v18, %v222_v48  ;;  %v195_v51 = vpop.f32.mrf.mxu0  ;;  %v205_v52 = vpop.f32.mrf.mxu1 }
  0xaf   :  { %v287_v63 = vadd.f32 %v652_v18, %v195_v51  ;;  %v291_v0 = vadd.f32 %v652_v18, %v205_v52 }
  0xb0   :  { %v342_v55 = vadd.f32 %v484_v45, %v294_v49  ;;  %v346_v56 = vadd.f32 %v492_v46, %v298_v50 }
  0xb1   :  { %v335_v11 = vadd.f32 %v471_v61, %v287_v63  ;;  %v339_v12 = vadd.f32 %v479_v62, %v291_v0 }
  0xb2   :  { %v520_v59 = vpack.c.bf16 %v342_v55, %v341_v53  ;;  %v530_v60 = vpack.c.bf16 %v346_v56, %v345_v54 }
  0xb4   :  { %547 = vst [vmem:[%s722_s4 + $0x20] sm:$0xff] %v520_v59  }
  0xb5   :  { %549 = vst [vmem:[%s722_s4 + $0x30] sm:$0xff] %v530_v60   ;;  %v215_v1 = vpop.f32.mrf.mxu2  ;;  %v225_v2 = vpop.f32.mrf.mxu3 }
  0xb6   :  { %v197_v5 = vpop.f32.mrf.mxu0  ;;  %v207_v6 = vpop.f32.mrf.mxu1  ;;  %v295_v20 = vadd.f32 %v652_v18, %v215_v1  ;;  %v299_v21 = vadd.f32 %v652_v18, %v225_v2 }
  0xb7   :  { %v288_v7 = vadd.f32 %v652_v18, %v197_v5  ;;  %v292_v8 = vadd.f32 %v652_v18, %v207_v6 }
  0xb8   :  { %v343_v28 = vadd.f32 %v487_v15, %v295_v20  ;;  %v347_v29 = vadd.f32 %v495_v16, %v299_v21 }
  0xb9   :  { %v336_v13 = vadd.f32 %v472_v3, %v288_v7  ;;  %v340_v14 = vadd.f32 %v480_v4, %v292_v8 }
  0xbb   :  { %v505_v17 = vpack.c.bf16 %v336_v13, %v335_v11  ;;  %v515_v19 = vpack.c.bf16 %v340_v14, %v339_v12 }
  0xbd   :  { %544 = vst [vmem:[%s722_s4 + $0x8] sm:$0xff] %v505_v17   ;;  %v217_v24 = vpop.f32.mrf.mxu2  ;;  %v227_v25 = vpop.f32.mrf.mxu3 }
  0xbe   :  { %546 = vst [vmem:[%s722_s4 + $0x18] sm:$0xff] %v515_v19   ;;  %v296_v26 = vadd.f32 %v652_v18, %v217_v24  ;;  %v300_v27 = vadd.f32 %v652_v18, %v227_v25 }
  0xc0   :  { %v344_v30 = vadd.f32 %v488_v22, %v296_v26  ;;  %v348_v31 = vadd.f32 %v496_v23, %v300_v27 }
  0xc2   :  { %v525_v32 = vpack.c.bf16 %v344_v30, %v343_v28  ;;  %v535_v33 = vpack.c.bf16 %v348_v31, %v347_v29 }
  0xc4   :  { %548 = vst [vmem:[%s722_s4 + $0x28] sm:$0xff] %v525_v32  }
  0xc5   :  { %550 = vst [vmem:[%s722_s4 + $0x38] sm:$0xff] %v535_v33  }

// kernel: sub.29
= control target key start
LH: loop header
LB: loop body
LE: loop exit
PB: predicated region body
PF: predicated region fallthrough
CT: control target
= control target key end

     0   :  { %s52_s14 = smov 4   ;;  %s53_s15 = smov 8   ;;  %vm19_vm0 = vcmask 31744   ;;  %vm25_vm1 = vcmask 130144   ;;  %vm31_vm2 = vcmask 97344   ;;  %vm37_vm3 = vcmask 64544   ;;  %s79_s0 = inlined_call_operand.vmem [shape: f32[1,2,2,4,4,1], index: 0, kind: input, shape index: {}]   ;;  %s80_s1 = inlined_call_operand.vmem [shape: f32[4,16], index: 1, kind: output, shape index: {}]  }
   0x1   :  { %v45_v0 = vld [vmem:[%s79_s0 + $0xc] sm:$0xf]  ;;  %v46_v1 = vld [vmem:[%s79_s0 + $0x8] sm:$0xf]  ;;  %v47_v2 = vld [vmem:[%s79_s0 + $0x4] sm:$0xf] }
   0x2   :  { %7 = vst [vmem:[#allocation1 + $0x18] sm:$0xf] %v45_v0  ;;  %v16_v3 = vld [vmem:[%s79_s0] sm:$0xf]  ;;  %s51_s0 = smov 12  }
   0x3   :  { %11 = vst [vmem:[#allocation1 + $0x10] sm:$0xf] %v46_v1 }
   0x4   :  { %15 = vst [vmem:[#allocation1 + $0x8] sm:$0xf] %v47_v2 }
   0x5   :  { %17 = vst [vmem:[#allocation1] sm:$0xf] %v16_v3 }
   0xc   :  { %v22_v4 = vld [vmem:[#allocation1 + $0x3] ss:$8 sm:$0xf]   ;;  %v34_v5 = vld [vmem:[#allocation1 + $0x1] ss:$8 sm:$0xf]  }
   0xd   :  { %23 = vrot.lane.b32.xlu0 %v22_v4, %s51_s0  ;;  %35 = vrot.lane.b32.xlu1 %v34_v5, %s52_s14  ;;  %v28_v6 = vld [vmem:[#allocation1 + $0x2] ss:$8 sm:$0xf]   ;;  %v18_v7 = vld [vmem:[#allocation1] ss:$8 sm:$0xf]  }
   0xe   :  { %20 = vst.msk [vmem:[#allocation0] sm:$0xf] %vm19_vm0, %v18_v7  }
  0x15   :  { %29 = vrot.lane.b32.xlu0 %v28_v6, %s53_s15 }
  0x7f   :  { %v24_v8 = vpop.permute.xlu0 %23   ;;  %v36_v9 = vpop.permute.xlu1 %35  }
  0x80   :  { %26 = vst.msk [vmem:[#allocation0] sm:$0xf] %vm25_vm1, %v24_v8  }
  0x87   :  { %v30_v10 = vpop.permute.xlu0 %29  }
  0x88   :  { %32 = vst.msk [vmem:[#allocation0] sm:$0xf] %vm31_vm2, %v30_v10  }
  0x89   :  { %38 = vst.msk [vmem:[#allocation0] sm:$0xf] %vm37_vm3, %v36_v9  }
  0x90   :  { %v41_v11 = vld [vmem:[#allocation0] sm:$0xf] }
  0x91   :  { %44 = vst [vmem:[%s80_s1] sm:$0xf] %v41_v11 }

// kernel: swin_forward.33
= control target key start
LH: loop header
LB: loop body
LE: loop exit
PB: predicated region body
PF: predicated region fallthrough
CT: control target
= control target key end

     0   :  { %s1433_s18 = smov 0   ;;  %s1738_s0 = inlined_call_operand.vmem [shape: bf16[8,2,16,16], index: 0, kind: input, shape index: {}]   ;;  %s1739_s1 = inlined_call_operand.vmem [shape: bf16[8,2,16,16], index: 1, kind: input, shape index: {}]   ;;  %s1740_s2 = inlined_call_operand.vmem [shape: bf16[8,2,16,16], index: 2, kind: input, shape index: {}]   ;;  %s1741_s3 = inlined_call_operand.vmem [shape: f32[2,16,16], index: 3, kind: input, shape index: {}]   ;;  %s1742_s4 = inlined_call_operand.vmem [shape: f32[4,16,16], index: 4, kind: input, shape index: {}]   ;;  %s1743_s5 = inlined_call_operand.vmem [shape: bf16[8,2,16,16], index: 5, kind: output, shape index: {}]  }
   0x1 LB: > { %s1164_s19 = sadd.s32 4294967295, %s1401_s18   ;;  %p1168_p0 = scmp.ge.s32.totalorder %s1401_s18, 1  ;;  %s1401_s18 = sphi %s1433_s18, %s15_s18  }
   0x2   : > { %p213_p1 = scmp.lt.s32.totalorder %s1401_s18, 3 }
   0x4   : > { %p214_p2 = pnand %p1168_p0, %p213_p1 }
   0x5   : > { %s1169_s20 = sshll.u32 (!%p214_p2), %s1164_s19, 2 }
   0x6   : > { %217 = sbr.rel (%p214_p2) target bundleno = 596 (0x254), region = 40  ;;  %p256_p3 = scmp.lt.s32.totalorder (!%p214_p2), %s1169_s20, 7 }
   0xb   : > { %s1745_s20 = smov (!%p256_p3, %s1169_s20), 7  ;;  %vm326_vm0 = vcmask 130048   ;;  %v573_v25 = vld [vmem:[%s1741_s3] sm:$0xff]  ;;  %v1473_v27 = vld [vmem:[%s1741_s3 + $0x10] sm:$0xff]  ;;  %v1490_v42 = vld [vmem:[%s1741_s3 + $0x8] sm:$0xff]  ;;  %vm1065_vm1 = vcmask 125952  }
   0xc   : > { %s1441_s21 = sshll.u32 %s1745_s20, 4  ;;  %v593_v30 = vld [vmem:[%s1742_s4] sm:$0xff]  ;;  %v595_v44 = vld [vmem:[%s1742_s4 + $0x10] sm:$0xff]  ;;  %v594_v47 = vld [vmem:[%s1742_s4 + $0x8] sm:$0xff] }
   0xd   : > { %s267_s24 = scalar_lea.vmem %s1739_s1, %s1441_s21  ;;  %s260_s27 = scalar_lea.vmem %s1738_s0, %s1441_s21  ;;  %v576_v61 = vld [vmem:[%s1741_s3 + $0x18] sm:$0xff] }
   0xe   : > { %v1307_v0 = vld [vmem:[%s267_s24] sm:$0xff]  ;;  %v1308_v1 = vld [vmem:[%s267_s24 + $0x8] sm:$0xff]  ;;  %v1309_v2 = vld [vmem:[%s267_s24 + $0x10] sm:$0xff]  ;;  %s1663_s6 = scalar_lea.vmem %s1740_s2, %s1441_s21  ;;  %s1701_s9 = scalar_lea.vmem %s1743_s5, %s1441_s21 }
   0xf   : > { %v1310_v3 = vld [vmem:[%s267_s24 + $0x18] sm:$0xff]  ;;  %v331_v4 = vsel %vm326_vm0, %v1307_v0, 0  ;;  %v361_v5 = vsel %vm326_vm0, %v1308_v1, 0  ;;  %v391_v6 = vsel %vm326_vm0, %v1309_v2, 0  ;;  %v1313_v7 = vld [vmem:[%s267_s24 + $0x30] sm:$0xff]  ;;  %v1311_v10 = vld [vmem:[%s267_s24 + $0x20] sm:$0xff] }
  0x10   : > { %340 = vmatpush.bf16.xpose.msra.mxu0 %v331_v4  ;;  %370 = vmatpush.bf16.xpose.msra.mxu1 %v361_v5  ;;  %v421_v8 = vsel %vm326_vm0, %v1310_v3, 0  ;;  %v1314_v9 = vld [vmem:[%s267_s24 + $0x38] sm:$0xff]  ;;  %v511_v11 = vsel %vm326_vm0, %v1313_v7, 0  ;;  %v1312_v12 = vld [vmem:[%s267_s24 + $0x28] sm:$0xff]  ;;  %v451_v14 = vsel %vm326_vm0, %v1311_v10, 0  ;;  %v1299_v15 = vld [vmem:[%s260_s27] sm:$0xff] }
  0x11   : > { %400 = vmatpush.bf16.xpose.msra.mxu2 %v391_v6  ;;  %430 = vmatpush.bf16.xpose.msra.mxu3 %v421_v8  ;;  %v541_v13 = vsel %vm326_vm0, %v1314_v9, 0  ;;  %v1300_v16 = vld [vmem:[%s260_s27 + $0x8] sm:$0xff]  ;;  %v481_v17 = vsel %vm326_vm0, %v1312_v12, 0  ;;  %v1301_v18 = vld [vmem:[%s260_s27 + $0x10] sm:$0xff]  ;;  %v1302_v19 = vld [vmem:[%s260_s27 + $0x18] sm:$0xff] }
  0x12   : > { %v1303_v20 = vld [vmem:[%s260_s27 + $0x20] sm:$0xff]  ;;  %v1304_v21 = vld [vmem:[%s260_s27 + $0x28] sm:$0xff]  ;;  %v1305_v22 = vld [vmem:[%s260_s27 + $0x30] sm:$0xff] }
  0x13   : > { %v1306_v23 = vld [vmem:[%s260_s27 + $0x38] sm:$0xff]  ;;  %v597_v9 = vld [vmem:[%s1742_s4 + $0x20] sm:$0xff] }
  0x14   : > { %v596_v63 = vld [vmem:[%s1742_s4 + $0x18] sm:$0xff] }
  0x17   : > { %1189 = vmatmul.msk.bf16.vlgmr.msra.gmra.mxu0 %vm326_vm0, %v1299_v15  ;;  %1198 = vmatmul.msk.bf16.vlgmr.msra.gmra.mxu1 %vm326_vm0, %v1300_v16 }
  0x18   : > { %460 = vmatpush.bf16.xpose.msrb.mxu0 %v451_v14  ;;  %490 = vmatpush.bf16.xpose.msrb.mxu1 %v481_v17  ;;  %v599_v14 = vld [vmem:[%s1742_s4 + $0x30] sm:$0xff] }
  0x19   : > { %520 = vmatpush.bf16.xpose.msrb.mxu2 %v511_v11  ;;  %550 = vmatpush.bf16.xpose.msrb.mxu3 %v541_v13 }
  0x1a   : > { %1207 = vmatmul.msk.bf16.vlgmr.msra.gmra.mxu2 %vm326_vm0, %v1301_v18  ;;  %1216 = vmatmul.msk.bf16.vlgmr.msra.gmra.mxu3 %vm326_vm0, %v1302_v19 }
  0x27   : > { %1225 = vmatmul.msk.bf16.vlgmr.msrb.gmra.mxu0 %vm326_vm0, %v1303_v20  ;;  %1234 = vmatmul.msk.bf16.vlgmr.msrb.gmra.mxu1 %vm326_vm0, %v1304_v21 }
  0x2a   : > { %1243 = vmatmul.msk.bf16.vlgmr.msrb.gmra.mxu2 %vm326_vm0, %v1305_v22  ;;  %1252 = vmatmul.msk.bf16.vlgmr.msrb.gmra.mxu3 %vm326_vm0, %v1306_v23 }
  0x94   : > { %v342_v24 = vpop.f32.mrf.mxu0  ;;  %v372_v26 = vpop.f32.mrf.mxu1 }
  0x95   : > { %v557_v28 = vmul.f32 0.25, %v342_v24  ;;  %v559_v29 = vmul.f32 0.25, %v372_v26 }
  0x97   : > { %v577_v31 = vadd.f32 %v573_v25, %v557_v28  ;;  %v579_v32 = vadd.f32 %v1473_v27, %v559_v29 }
  0x99   : > { %v1479_v33 = vadd.f32 %v593_v30, %v579_v32  ;;  %v1481_v34 = vadd.f32 %v593_v30, %v577_v31  ;;  %v600_v32 = vld [vmem:[%s1742_s4 + $0x38] sm:$0xff] }
  0x9b   : > { %v623_v37 = vsel %vm326_vm0, %v1479_v33, -inf  ;;  %v617_v38 = vsel %vm326_vm0, %v1481_v34, -inf }
  0x9c   : > { %624 = vmax.xlane.f32.xlu0 %v623_v37  ;;  %618 = vmax.xlane.f32.xlu2 %v617_v38  ;;  %v344_v41 = vpop.f32.mrf.mxu0  ;;  %v374_v52 = vpop.f32.mrf.mxu1 }
  0x9d   : > { %v402_v35 = vpop.f32.mrf.mxu2  ;;  %v432_v36 = vpop.f32.mrf.mxu3  ;;  %v558_v43 = vmul.f32 0.25, %v344_v41  ;;  %v560_v0 = vmul.f32 0.25, %v374_v52  ;;  %v598_v52 = vld [vmem:[%s1742_s4 + $0x28] sm:$0xff] }
  0x9e   : > { %v561_v39 = vmul.f32 0.25, %v402_v35  ;;  %v563_v40 = vmul.f32 0.25, %v432_v36 }
  0x9f   : > { %v578_v48 = vadd.f32 %v1490_v42, %v558_v43  ;;  %v580_v6 = vadd.f32 %v576_v61, %v560_v0 }
  0xa0   : > { %v581_v45 = vadd.f32 %v573_v25, %v561_v39  ;;  %v583_v46 = vadd.f32 %v1473_v27, %v563_v40 }
  0xa1   : > { %v1504_v51 = vadd.f32 %v594_v47, %v578_v48  ;;  %v1535_v18 = vadd.f32 %v594_v47, %v580_v6 }
  0xa2   : > { %v1500_v49 = vadd.f32 %v595_v44, %v583_v46  ;;  %v1502_v50 = vadd.f32 %v595_v44, %v581_v45 }
  0xa3   : > { %v620_v57 = vsel %vm326_vm0, %v1504_v51, -inf  ;;  %v626_v23 = vsel %vm326_vm0, %v1535_v18, -inf }
  0xa4   : > { %v635_v53 = vsel %vm326_vm0, %v1500_v49, -inf  ;;  %v629_v54 = vsel %vm326_vm0, %v1502_v50, -inf  ;;  %621 = vmax.xlane.f32.xlu2 %v620_v57  ;;  %v462_v60 = vpop.f32.mrf.mxu0  ;;  %v492_v8 = vpop.f32.mrf.mxu1 }
  0xa5   : > { %636 = vmax.xlane.f32.xlu1 %v635_v53  ;;  %v404_v55 = vpop.f32.mrf.mxu2  ;;  %v434_v56 = vpop.f32.mrf.mxu3  ;;  %630 = vmax.xlane.f32.xlu0 %v629_v54  ;;  %v565_v62 = vmul.f32 0.25, %v462_v60  ;;  %v567_v31 = vmul.f32 0.25, %v492_v8 }
  0xa6   : > { %v562_v58 = vmul.f32 0.25, %v404_v55  ;;  %v564_v59 = vmul.f32 0.25, %v434_v56 }
  0xa7   : > { %v585_v5 = vadd.f32 %v573_v25, %v565_v62  ;;  %v587_v44 = vadd.f32 %v1473_v27, %v567_v31 }
  0xa8   : > { %v582_v1 = vadd.f32 %v1490_v42, %v562_v58  ;;  %v584_v2 = vadd.f32 %v576_v61, %v564_v59 }
  0xa9   : > { %v1533_v15 = vadd.f32 %v597_v9, %v585_v5 }
  0xaa   : > { %v1519_v3 = vadd.f32 %v596_v63, %v584_v2  ;;  %v1521_v4 = vadd.f32 %v596_v63, %v582_v1 }
  0xab   : > { %v641_v20 = vsel %vm326_vm0, %v1533_v15, -inf }
  0xac   : > { %v638_v7 = vsel %vm326_vm0, %v1519_v3, -inf  ;;  %v632_v12 = vsel %vm326_vm0, %v1521_v4, -inf  ;;  %v464_v22 = vpop.f32.mrf.mxu0  ;;  %v494_v30 = vpop.f32.mrf.mxu1 }
  0xad   : > { %639 = vmax.xlane.f32.xlu1 %v638_v7  ;;  %v522_v10 = vpop.f32.mrf.mxu2  ;;  %v552_v11 = vpop.f32.mrf.mxu3  ;;  %633 = vmax.xlane.f32.xlu0 %v632_v12  ;;  %v566_v35 = vmul.f32 0.25, %v464_v22  ;;  %v568_v39 = vmul.f32 0.25, %v494_v30 }
  0xae   : > { %v569_v13 = vmul.f32 0.25, %v522_v10  ;;  %v571_v17 = vmul.f32 0.25, %v552_v11 }
  0xaf   : > { %v586_v43 = vadd.f32 %v1490_v42, %v566_v35  ;;  %v588_v47 = vadd.f32 %v576_v61, %v568_v39 }
  0xb0   : > { %v589_v16 = vadd.f32 %v573_v25, %v569_v13  ;;  %v591_v21 = vadd.f32 %v1473_v27, %v571_v17 }
  0xb1   : > { %v1569_v27 = vadd.f32 %v598_v52, %v586_v43  ;;  %v1571_v53 = vadd.f32 %v598_v52, %v588_v47 }
  0xb2   : > { %v1537_v19 = vadd.f32 %v599_v14, %v589_v16  ;;  %v1550_v38 = vadd.f32 %v599_v14, %v591_v21 }
  0xb3   : > { %v644_v55 = vsel %vm326_vm0, %v1569_v27, -inf  ;;  %v650_v56 = vsel %vm326_vm0, %v1571_v53, -inf }
  0xb4   : > { %v653_v24 = vsel %vm326_vm0, %v1537_v19, -inf  ;;  %v659_v45 = vsel %vm326_vm0, %v1550_v38, -inf }
  0xb5   : > { %v524_v26 = vpop.f32.mrf.mxu2  ;;  %v554_v28 = vpop.f32.mrf.mxu3  ;;  %627 = vmax.xlane.f32.xlu1 %v626_v23  ;;  %654 = vmax.xlane.f32.xlu2 %v653_v24 }
  0xb6   : > { %v570_v25 = vmul.f32 0.25, %v524_v26  ;;  %v572_v29 = vmul.f32 0.25, %v554_v28  ;;  %642 = vmax.xlane.f32.xlu0 %v641_v20 }
  0xb8   : > { %v590_v36 = vadd.f32 %v1490_v42, %v570_v25  ;;  %v592_v37 = vadd.f32 %v576_v61, %v572_v29  ;;  %v1567_v42 = vadd.f32 %v597_v9, %v587_v44 }
  0xba   : > { %v1552_v40 = vadd.f32 %v600_v32, %v592_v37  ;;  %v1554_v41 = vadd.f32 %v600_v32, %v590_v36  ;;  %v647_v54 = vsel %vm326_vm0, %v1567_v42, -inf }
  0xbc   : > { %v662_v46 = vsel %vm326_vm0, %v1552_v40, -inf  ;;  %v656_v48 = vsel %vm326_vm0, %v1554_v41, -inf }
  0xbd   : > { %660 = vmax.xlane.f32.xlu1 %v659_v45  ;;  %663 = vmax.xlane.f32.xlu2 %v662_v46 }
  0xbe   : > { %657 = vmax.xlane.f32.xlu0 %v656_v48 }
  0xc5   : > { %648 = vmax.xlane.f32.xlu2 %v647_v54  ;;  %645 = vmax.xlane.f32.xlu1 %v644_v55 }
  0xc6   : > { %651 = vmax.xlane.f32.xlu0 %v650_v56 }
 0x10f   : > { %v625_v57 = vpop.xlane.xlu0 %624  ;;  %v619_v58 = vpop.xlane.xlu2 %618 }
 0x110   : > { %v667_v59 = vsub.f32 %v1479_v33, %v625_v57  ;;  %v665_v60 = vsub.f32 %v1481_v34, %v619_v58 }
 0x112   : > { %v685_v61 = vmul.f32 1.442695, %v667_v59  ;;  %v681_v62 = vmul.f32 1.442695, %v665_v60 }
 0x114   : > { %1331 = vpow2.f32 %v685_v61 }
 0x115   : > { %1333 = vpow2.f32 %v681_v62 }
 0x117   : > { %v622_v2 = vpop.xlane.xlu2 %621 }
 0x118   : > { %v637_v63 = vpop.xlane.xlu1 %636  ;;  %v631_v1 = vpop.xlane.xlu0 %630  ;;  %v666_v7 = vsub.f32 %v1504_v51, %v622_v2 }
 0x119   : > { %v671_v0 = vsub.f32 %v1500_v49, %v637_v63  ;;  %v669_v5 = vsub.f32 %v1502_v50, %v631_v1 }
 0x11a   : > { %v1584_v8 = vpop.eup %1331  ;;  %v683_v10 = vmul.f32 1.442695, %v666_v7 }
 0x11b   : > { %v693_v6 = vmul.f32 1.442695, %v671_v0  ;;  %v689_v9 = vmul.f32 1.442695, %v669_v5  ;;  %v1586_v33 = vpop.eup %1333  ;;  %v719_v34 = vsel %vm326_vm0, %v1584_v8, 0.0 }
 0x11c   : > { %v713_v49 = vsel %vm326_vm0, %v1586_v33, 0.0  ;;  %720 = vadd.xlane.f32.xlu1 %v719_v34 }
 0x11d   : > { %1335 = vpow2.f32 %v693_v6  ;;  %714 = vadd.xlane.f32.xlu2 %v713_v49 }
 0x11e   : > { %1337 = vpow2.f32 %v689_v9 }
 0x11f   : > { %1339 = vpow2.f32 %v683_v10  ;;  %v1315_v10 = vld [vmem:[%s1663_s6] sm:$0xff] }
 0x120   : > { %v640_v50 = vpop.xlane.xlu1 %639  ;;  %v634_v51 = vpop.xlane.xlu0 %633  ;;  %846 = vmatpush.bf16.msra.mxu0 %v1315_v10 }
 0x121   : > { %v672_v11 = vsub.f32 %v1519_v3, %v640_v50  ;;  %v670_v12 = vsub.f32 %v1521_v4, %v634_v51  ;;  %v1317_v50 = vld [vmem:[%s1663_s6 + $0x10] sm:$0xff] }
 0x122   : > { %902 = vmatpush.bf16.msra.mxu2 %v1317_v50 }
 0x123   : > { %v1594_v13 = vpop.eup %1335  ;;  %v695_v14 = vmul.f32 1.442695, %v672_v11  ;;  %v691_v17 = vmul.f32 1.442695, %v670_v12  ;;  %v1318_v11 = vld [vmem:[%s1663_s6 + $0x18] sm:$0xff]  ;;  %v1316_v12 = vld [vmem:[%s1663_s6 + $0x8] sm:$0xff] }
 0x124   : > { %v1596_v16 = vpop.eup %1337  ;;  %v731_v20 = vsel %vm326_vm0, %v1594_v13, 0.0  ;;  %930 = vmatpush.bf16.msra.mxu3 %v1318_v11  ;;  %874 = vmatpush.bf16.msra.mxu1 %v1316_v12 }
 0x125   : > { %1341 = vpow2.f32 %v695_v14  ;;  %732 = vadd.xlane.f32.xlu0 %v731_v20  ;;  %v725_v21 = vsel %vm326_vm0, %v1596_v16, 0.0  ;;  %v1602_v4 = vpop.eup %1339 }
 0x126   : > { %1343 = vpow2.f32 %v691_v17  ;;  %726 = vadd.xlane.f32.xlu1 %v725_v21  ;;  %v716_v35 = vsel %vm326_vm0, %v1602_v4, 0.0  ;;  %v1321_v21 = vld [vmem:[%s1663_s6 + $0x30] sm:$0xff] }
 0x127   : > { %1014 = vmatpush.bf16.msrb.mxu2 %v1321_v21 }
 0x128   : > { %v628_v3 = vpop.xlane.xlu1 %627  ;;  %v655_v22 = vpop.xlane.xlu2 %654 }
 0x129   : > { %v668_v23 = vsub.f32 %v1535_v18, %v628_v3  ;;  %v677_v24 = vsub.f32 %v1537_v19, %v655_v22  ;;  %v643_v26 = vpop.xlane.xlu0 %642  ;;  %v1322_v3 = vld [vmem:[%s1663_s6 + $0x38] sm:$0xff] }
 0x12a   : > { %v673_v28 = vsub.f32 %v1533_v15, %v643_v26  ;;  %1042 = vmatpush.bf16.msrb.mxu3 %v1322_v3 }
 0x12b   : > { %v1607_v25 = vpop.eup %1341  ;;  %v687_v29 = vmul.f32 1.442695, %v668_v23  ;;  %v705_v30 = vmul.f32 1.442695, %v677_v24 }
 0x12c   : > { %v1609_v31 = vpop.eup %1343  ;;  %v697_v32 = vmul.f32 1.442695, %v673_v28  ;;  %v734_v19 = vsel %vm326_vm0, %v1607_v25, 0.0 }
 0x12d   : > { %1345 = vpow2.f32 %v687_v29  ;;  %717 = vadd.xlane.f32.xlu0 %v716_v35  ;;  %v728_v18 = vsel %vm326_vm0, %v1609_v31, 0.0  ;;  %v1319_v35 = vld [vmem:[%s1663_s6 + $0x20] sm:$0xff] }
 0x12e   : > { %1347 = vpow2.f32 %v705_v30  ;;  %729 = vadd.xlane.f32.xlu2 %v728_v18  ;;  %735 = vadd.xlane.f32.xlu1 %v734_v19  ;;  %v1320_v18 = vld [vmem:[%s1663_s6 + $0x28] sm:$0xff] }
 0x12f   : > { %1349 = vpow2.f32 %v697_v32  ;;  %958 = vmatpush.bf16.msrb.mxu0 %v1319_v35  ;;  %986 = vmatpush.bf16.msrb.mxu1 %v1320_v18 }
 0x130   : > { %v661_v15 = vpop.xlane.xlu1 %660  ;;  %v664_v36 = vpop.xlane.xlu2 %663 }
 0x131   : > { %v679_v37 = vsub.f32 %v1550_v38, %v661_v15  ;;  %v680_v39 = vsub.f32 %v1552_v40, %v664_v36  ;;  %v658_v43 = vpop.xlane.xlu0 %657 }
 0x132   : > { %v678_v44 = vsub.f32 %v1554_v41, %v658_v43 }
 0x133   : > { %v1620_v45 = vpop.eup %1345  ;;  %v709_v46 = vmul.f32 1.442695, %v679_v37  ;;  %v711_v47 = vmul.f32 1.442695, %v680_v39 }
 0x134   : > { %v1622_v48 = vpop.eup %1347  ;;  %v707_v52 = vmul.f32 1.442695, %v678_v44  ;;  %v722_v38 = vsel %vm326_vm0, %v1620_v45, 0.0 }
 0x135   : > { %v1624_v54 = vpop.eup %1349  ;;  %1351 = vpow2.f32 %v709_v46  ;;  %v749_v55 = vsel %vm326_vm0, %v1622_v48, 0.0 }
 0x136   : > { %1353 = vpow2.f32 %v711_v47  ;;  %750 = vadd.xlane.f32.xlu0 %v749_v55  ;;  %723 = vadd.xlane.f32.xlu2 %v722_v38  ;;  %v737_v40 = vsel %vm326_vm0, %v1624_v54, 0.0 }
 0x137   : > { %1355 = vpow2.f32 %v707_v52  ;;  %738 = vadd.xlane.f32.xlu1 %v737_v40 }
 0x138   : > { %v649_v41 = vpop.xlane.xlu2 %648  ;;  %v646_v56 = vpop.xlane.xlu1 %645 }
 0x139   : > { %v675_v57 = vsub.f32 %v1567_v42, %v649_v41  ;;  %v674_v58 = vsub.f32 %v1569_v27, %v646_v56  ;;  %v652_v59 = vpop.xlane.xlu0 %651 }
 0x13a   : > { %v676_v60 = vsub.f32 %v1571_v53, %v652_v59 }
 0x13b   : > { %v1635_v61 = vpop.eup %1351  ;;  %v701_v62 = vmul.f32 1.442695, %v675_v57  ;;  %v699_v63 = vmul.f32 1.442695, %v674_v58 }
 0x13c   : > { %v1637_v0 = vpop.eup %1353  ;;  %v703_v1 = vmul.f32 1.442695, %v676_v60  ;;  %v755_v42 = vsel %vm326_vm0, %v1635_v61, 0.0 }
 0x13d   : > { %v1639_v2 = vpop.eup %1355  ;;  %1357 = vpow2.f32 %v701_v62  ;;  %v758_v5 = vsel %vm326_vm0, %v1637_v0, 0.0 }
 0x13e   : > { %1359 = vpow2.f32 %v699_v63  ;;  %759 = vadd.xlane.f32.xlu0 %v758_v5  ;;  %756 = vadd.xlane.f32.xlu2 %v755_v42  ;;  %v752_v27 = vsel %vm326_vm0, %v1639_v2, 0.0 }
 0x13f   : > { %1361 = vpow2.f32 %v703_v1  ;;  %753 = vadd.xlane.f32.xlu1 %v752_v27 }
 0x143   : > { %v1647_v53 = vpop.eup %1357 }
 0x144   : > { %v1649_v6 = vpop.eup %1359  ;;  %v743_v7 = vsel %vm326_vm0, %v1647_v53, 0.0 }
 0x145   : > { %v1653_v9 = vpop.eup %1361  ;;  %v740_v34 = vsel %vm326_vm0, %v1649_v6, 0.0 }
 0x146   : > { %744 = vadd.xlane.f32.xlu0 %v743_v7  ;;  %v746_v49 = vsel %vm326_vm0, %v1653_v9, 0.0  ;;  %741 = vadd.xlane.f32.xlu2 %v740_v34 }
 0x147   : > { %747 = vadd.xlane.f32.xlu1 %v746_v49 }
 0x18f   : > { %v721_v51 = vpop.xlane.xlu1 %720 }
 0x190   : > { %v715_v14 = vpop.xlane.xlu2 %714 }
 0x191   : > { %1363 = vrcp.f32 %v715_v14 }
 0x197   : > { %v1364_v23 = vpop.eup %1363 }
 0x198   : > { %v733_v17 = vpop.xlane.xlu0 %732  ;;  %v777_v30 = vmul.f32 %v1364_v23, %v1586_v33 }
 0x199   : > { %v727_v20 = vpop.xlane.xlu1 %726 }
 0x19a   : > { %1365 = vrcp.f32 %v727_v20  ;;  %v793_v37 = vpack.c.bf16 %v777_v30, %v777_v30 }
 0x19b   : > { %1367 = vrcp.f32 %v733_v17 }
 0x19c   : > { %v827_v41 = vunpack.c.l.b16 %v793_v37 }
 0x1a0   : > { %v718_v22 = vpop.xlane.xlu0 %717  ;;  %v1366_v28 = vpop.eup %1365 }
 0x1a1   : > { %1369 = vrcp.f32 %v718_v22  ;;  %v730_v24 = vpop.xlane.xlu2 %729  ;;  %v736_v26 = vpop.xlane.xlu1 %735  ;;  %v781_v32 = vmul.f32 %v1366_v28, %v1596_v16 }
 0x1a2   : > { %1371 = vrcp.f32 %v730_v24  ;;  %v1368_v29 = vpop.eup %1367 }
 0x1a3   : > { %1373 = vrcp.f32 %v736_v26  ;;  %v783_v19 = vmul.f32 %v1368_v29, %v1594_v13  ;;  %v797_v44 = vpack.c.bf16 %v781_v32, %v781_v32 }
 0x1a4   : > { %1375 = vrcp.f32 %v721_v51 }
 0x1a5   : > { %v799_v55 = vpack.c.bf16 %v783_v19, %v783_v19 }
 0x1a7   : > { %v1370_v15 = vpop.eup %1369  ;;  %v911_v60 = vunpack.c.l.b16 %v799_v55 }
 0x1a8   : > { %v1372_v36 = vpop.eup %1371  ;;  %v778_v39 = vmul.f32 %v1370_v15, %v1602_v4  ;;  %v883_v4 = vunpack.c.l.b16 %v797_v44 }
 0x1a9   : > { %v1374_v43 = vpop.eup %1373  ;;  %v782_v46 = vmul.f32 %v1372_v36, %v1609_v31  ;;  %v751_v47 = vpop.xlane.xlu0 %750 }
 0x1aa   : > { %v724_v33 = vpop.xlane.xlu2 %723  ;;  %v1376_v52 = vpop.eup %1375  ;;  %v794_v16 = vpack.c.bf16 %v778_v39, %v778_v39  ;;  %v784_v38 = vmul.f32 %v1374_v43, %v1607_v25 }
 0x1ab   : > { %v739_v40 = vpop.xlane.xlu1 %738  ;;  %v798_v13 = vpack.c.bf16 %v782_v46, %v782_v46  ;;  %1377 = vrcp.f32 %v724_v33  ;;  %v779_v58 = vmul.f32 %v1376_v52, %v1584_v8 }
 0x1ac   : > { %v828_v56 = vunpack.c.l.b16 %v794_v16  ;;  %v800_v57 = vpack.c.bf16 %v784_v38, %v784_v38  ;;  %1379 = vrcp.f32 %v751_v47 }
 0x1ad   : > { %v884_v59 = vunpack.c.l.b16 %v798_v13  ;;  %v795_v27 = vpack.c.bf16 %v779_v58, %v779_v58 }
 0x1ae   : > { %v829_v62 = vpack.c.b16 %v828_v56, %v827_v41  ;;  %v912_v31 = vunpack.c.l.b16 %v800_v57 }
 0x1af   : > { %v885_v63 = vpack.c.b16 %v884_v59, %v883_v4  ;;  %v855_v10 = vunpack.c.l.b16 %v795_v27 }
 0x1b0   : > { %v913_v1 = vpack.c.b16 %v912_v31, %v911_v60  ;;  %1257 = vmatmul.msk.bf16.vlgmr.msra.gmra.mxu0 %vm326_vm0, %v829_v62 }
 0x1b1   : > { %v1378_v5 = vpop.eup %1377  ;;  %v760_v25 = vpop.xlane.xlu0 %759  ;;  %1267 = vmatmul.msk.bf16.vlgmr.msra.gmra.mxu2 %vm326_vm0, %v885_v63 }
 0x1b2   : > { %v757_v42 = vpop.xlane.xlu2 %756  ;;  %v780_v7 = vmul.f32 %v1378_v5, %v1620_v45  ;;  %1381 = vrcp.f32 %v760_v25  ;;  %1272 = vmatmul.msk.bf16.vlgmr.msra.gmra.mxu3 %vm326_vm0, %v913_v1  ;;  %v1380_v34 = vpop.eup %1379 }
 0x1b3   : > { %v754_v8 = vpop.xlane.xlu1 %753  ;;  %1383 = vrcp.f32 %v757_v42  ;;  %v789_v11 = vmul.f32 %v1380_v34, %v1622_v48 }
 0x1b4   : > { %v796_v49 = vpack.c.bf16 %v780_v7, %v780_v7  ;;  %1385 = vrcp.f32 %v754_v8 }
 0x1b5   : > { %1387 = vrcp.f32 %v739_v40  ;;  %v805_v24 = vpack.c.bf16 %v789_v11, %v789_v11 }
 0x1b6   : > { %v856_v50 = vunpack.c.l.b16 %v796_v49 }
 0x1b7   : > { %v995_v35 = vunpack.c.l.b16 %v805_v24 }
 0x1b8   : > { %v1382_v51 = vpop.eup %1381  ;;  %v857_v12 = vpack.c.b16 %v856_v50, %v855_v10 }
 0x1b9   : > { %v1384_v14 = vpop.eup %1383  ;;  %v792_v17 = vmul.f32 %v1382_v51, %v1637_v0  ;;  %v745_v20 = vpop.xlane.xlu0 %744 }
 0x1ba   : > { %v742_v45 = vpop.xlane.xlu2 %741  ;;  %v1386_v21 = vpop.eup %1385  ;;  %v791_v3 = vmul.f32 %v1384_v14, %v1635_v61  ;;  %1389 = vrcp.f32 %v745_v20  ;;  %1262 = vmatmul.msk.bf16.vlgmr.msra.gmra.mxu1 %vm326_vm0, %v857_v12 }
 0x1bb   : > { %v748_v22 = vpop.xlane.xlu1 %747  ;;  %v1388_v23 = vpop.eup %1387  ;;  %v808_v26 = vpack.c.bf16 %v792_v17, %v792_v17  ;;  %v790_v28 = vmul.f32 %v1386_v21, %v1639_v2  ;;  %1391 = vrcp.f32 %v742_v45 }
 0x1bc   : > { %v807_v48 = vpack.c.bf16 %v791_v3, %v791_v3  ;;  %1393 = vrcp.f32 %v748_v22  ;;  %v785_v0 = vmul.f32 %v1388_v23, %v1624_v54 }
 0x1bd   : > { %v806_v29 = vpack.c.bf16 %v790_v28, %v790_v28  ;;  %v1024_v30 = vunpack.c.l.b16 %v808_v26 }
 0x1be   : > { %v1023_v32 = vunpack.c.l.b16 %v807_v48  ;;  %v801_v43 = vpack.c.bf16 %v785_v0, %v785_v0 }
 0x1bf   : > { %v996_v18 = vunpack.c.l.b16 %v806_v29 }
 0x1c0   : > { %v1390_v61 = vpop.eup %1389  ;;  %v1025_v19 = vpack.c.b16 %v1024_v30, %v1023_v32  ;;  %v939_v33 = vunpack.c.l.b16 %v801_v43 }
 0x1c1   : > { %v1392_v15 = vpop.eup %1391  ;;  %v997_v36 = vpack.c.b16 %v996_v18, %v995_v35  ;;  %v787_v37 = vmul.f32 %v1390_v61, %v1647_v53 }
 0x1c2   : > { %v1394_v39 = vpop.eup %1393  ;;  %v786_v2 = vmul.f32 %v1392_v15, %v1649_v6  ;;  %1292 = vmatmul.msk.bf16.vlgmr.msrb.gmra.mxu3 %vm326_vm0, %v1025_v19 }
 0x1c3   : > { %v803_v44 = vpack.c.bf16 %v787_v37, %v787_v37  ;;  %v788_v54 = vmul.f32 %v1394_v39, %v1653_v9  ;;  %1287 = vmatmul.msk.bf16.vlgmr.msrb.gmra.mxu2 %vm326_vm0, %v997_v36 }
 0x1c4   : > { %v802_v46 = vpack.c.bf16 %v786_v2, %v786_v2 }
 0x1c5   : > { %v804_v47 = vpack.c.bf16 %v788_v54, %v788_v54  ;;  %v967_v55 = vunpack.c.l.b16 %v803_v44 }
 0x1c6   : > { %v940_v52 = vunpack.c.l.b16 %v802_v46 }
 0x1c7   : > { %v968_v16 = vunpack.c.l.b16 %v804_v47 }
 0x1c8   : > { %v941_v38 = vpack.c.b16 %v940_v52, %v939_v33 }
 0x1c9   : > { %v969_v53 = vpack.c.b16 %v968_v16, %v967_v55 }
 0x1ca   : > { %1277 = vmatmul.msk.bf16.vlgmr.msrb.gmra.mxu0 %vm326_vm0, %v941_v38 }
 0x1cb   : > { %1282 = vmatmul.msk.bf16.vlgmr.msrb.gmra.mxu1 %vm326_vm0, %v969_v53 }
 0x22d   : > { %v848_v6 = vpop.f32.mrf.mxu0 }
 0x22e   : > { %v1049_v9 = vpack.c.bf16 %v848_v6, %v848_v6 }
 0x230   : > { %1066 = vst.msk [vmem:[%s1701_s9] sm:$0xf] %vm1065_vm1, %v1049_v9 }
 0x234   : > { %v904_v40 = vpop.f32.mrf.mxu2 }
 0x235   : > { %v850_v13 = vpop.f32.mrf.mxu0  ;;  %v1053_v41 = vpack.c.bf16 %v904_v40, %v904_v40  ;;  %v932_v56 = vpop.f32.mrf.mxu3 }
 0x236   : > { %v1050_v57 = vpack.c.bf16 %v850_v13, %v850_v13  ;;  %v1055_v59 = vpack.c.bf16 %v932_v56, %v932_v56 }
 0x237   : > { %1070 = vst.msk [vmem:[%s1701_s9 + $0x10] sm:$0xf] %vm1065_vm1, %v1053_v41  ;;  %v876_v58 = vpop.f32.mrf.mxu1 }
 0x238   : > { %1067 = vst.msk [vmem:[%s1701_s9 + $0x4] sm:$0xf] %vm1065_vm1, %v1050_v57  ;;  %v1051_v4 = vpack.c.bf16 %v876_v58, %v876_v58 }
 0x239   : > { %1072 = vst.msk [vmem:[%s1701_s9 + $0x18] sm:$0xf] %vm1065_vm1, %v1055_v59 }
 0x23a   : > { %1068 = vst.msk [vmem:[%s1701_s9 + $0x8] sm:$0xf] %vm1065_vm1, %v1051_v4 }
 0x23c   : > { %v906_v60 = vpop.f32.mrf.mxu2 }
 0x23d   : > { %v1054_v62 = vpack.c.bf16 %v906_v60, %v906_v60  ;;  %v934_v31 = vpop.f32.mrf.mxu3 }
 0x23e   : > { %v1056_v5 = vpack.c.bf16 %v934_v31, %v934_v31 }
 0x23f   : > { %1071 = vst.msk [vmem:[%s1701_s9 + $0x14] sm:$0xf] %vm1065_vm1, %v1054_v62  ;;  %v878_v63 = vpop.f32.mrf.mxu1 }
 0x240   : > { %v1052_v1 = vpack.c.bf16 %v878_v63, %v878_v63  ;;  %1073 = vst.msk [vmem:[%s1701_s9 + $0x1c] sm:$0xf] %vm1065_vm1, %v1056_v5 }
 0x242   : > { %1069 = vst.msk [vmem:[%s1701_s9 + $0xc] sm:$0xf] %vm1065_vm1, %v1052_v1 }
 0x245   : > { %v1044_v42 = vpop.f32.mrf.mxu3 }
 0x246   : > { %v1016_v25 = vpop.f32.mrf.mxu2  ;;  %v1063_v10 = vpack.c.bf16 %v1044_v42, %v1044_v42 }
 0x247   : > { %v960_v27 = vpop.f32.mrf.mxu0  ;;  %v1061_v34 = vpack.c.bf16 %v1016_v25, %v1016_v25 }
 0x248   : > { %v1057_v7 = vpack.c.bf16 %v960_v27, %v960_v27  ;;  %v988_v8 = vpop.f32.mrf.mxu1  ;;  %1080 = vst.msk [vmem:[%s1701_s9 + $0x38] sm:$0xf] %vm1065_vm1, %v1063_v10 }
 0x249   : > { %v1059_v49 = vpack.c.bf16 %v988_v8, %v988_v8  ;;  %1078 = vst.msk [vmem:[%s1701_s9 + $0x30] sm:$0xf] %vm1065_vm1, %v1061_v34 }
 0x24a   : > { %1074 = vst.msk [vmem:[%s1701_s9 + $0x20] sm:$0xf] %vm1065_vm1, %v1057_v7 }
 0x24b   : > { %1076 = vst.msk [vmem:[%s1701_s9 + $0x28] sm:$0xf] %vm1065_vm1, %v1059_v49 }
 0x24d   : > { %v1046_v51 = vpop.f32.mrf.mxu3 }
 0x24e   : > { %v1018_v50 = vpop.f32.mrf.mxu2  ;;  %v1064_v45 = vpack.c.bf16 %v1046_v51, %v1046_v51 }
 0x24f   : > { %v962_v11 = vpop.f32.mrf.mxu0  ;;  %v1062_v17 = vpack.c.bf16 %v1018_v50, %v1018_v50 }
 0x250   : > { %v1058_v12 = vpack.c.bf16 %v962_v11, %v962_v11  ;;  %v990_v14 = vpop.f32.mrf.mxu1  ;;  %1081 = vst.msk [vmem:[%s1701_s9 + $0x3c] sm:$0xf] %vm1065_vm1, %v1064_v45 }
 0x251   : > { %v1060_v20 = vpack.c.bf16 %v990_v14, %v990_v14  ;;  %1079 = vst.msk [vmem:[%s1701_s9 + $0x34] sm:$0xf] %vm1065_vm1, %v1062_v17 }
 0x252   : > { %1075 = vst.msk [vmem:[%s1701_s9 + $0x24] sm:$0xf] %vm1065_vm1, %v1058_v12 }
 0x253   : > { %1077 = vst.msk [vmem:[%s1701_s9 + $0x2c] sm:$0xf] %vm1065_vm1, %v1060_v20 }
 0x254 PF: > { %s15_s18 = sadd.s32 1, %s1401_s18  }
 0x255   : > { %p12_p4 = scmp.ge.s32.totalorder %s15_s18, 4  }
 0x257   :  { %14 = sbr.rel (!%p12_p4) target bundleno = 1 (0x1), region = 76 }

// kernel: swin_forward.37
= control target key start
LH: loop header
LB: loop body
LE: loop exit
PB: predicated region body
PF: predicated region fallthrough
CT: control target
= control target key end

     0   :  { %s452_s0 = inlined_call_operand.vmem [shape: bf16[32,128], index: 0, kind: input, shape index: {}]   ;;  %s453_s3 = inlined_call_operand.vmem [shape: f32[1,128], index: 3, kind: input, shape index: {}]   ;;  %s454_s4 = inlined_call_operand.vmem [shape: f32[1,128], index: 4, kind: input, shape index: {}]   ;;  %s455_s2 = inlined_call_operand.vmem [shape: f32[1,128], index: 2, kind: input, shape index: {}]   ;;  %s456_s1 = inlined_call_operand.vmem [shape: bf16[128,128], index: 1, kind: input, shape index: {}]   ;;  %s457_s5 = inlined_call_operand.vmem [shape: bf16[32,128], index: 5, kind: output, shape index: {}]  }
   0x1   :  { %v322_v0 = vld [vmem:[%s452_s0 + $0x8] sm:$0xff]   ;;  %v305_v1 = vld [vmem:[%s452_s0] sm:$0xff]   ;;  %v303_v10 = vld [vmem:[%s456_s1 + $0x38] sm:$0xff] }
   0x2   :  { %v379_v2 = vunpack.c.l.bf16 %v322_v0  ;;  %v381_v3 = vunpack.c.l.bf16 %v305_v1  ;;  %v387_v5 = vunpack.c.h.bf16 %v305_v1  ;;  %v389_v6 = vunpack.c.h.bf16 %v322_v0  ;;  %210 = vmatpush.bf16.msra.mxu0 %v303_v10  ;;  %324 = vmatpush.bf16.msra.mxu1 %v303_v10  ;;  %v302_v11 = vld [vmem:[%s456_s1 + $0x30] sm:$0xff]  ;;  %v301_v12 = vld [vmem:[%s456_s1 + $0x28] sm:$0xff]  ;;  %v300_v13 = vld [vmem:[%s456_s1 + $0x20] sm:$0xff] }
   0x3   :  { %v299_v14 = vld [vmem:[%s456_s1 + $0x18] sm:$0xff]  ;;  %v298_v15 = vld [vmem:[%s456_s1 + $0x10] sm:$0xff]  ;;  %v297_v21 = vld [vmem:[%s456_s1 + $0x8] sm:$0xff] }
   0x4   :  { %40 = vadd.xlane.f32.xlu1 %v379_v2  ;;  %36 = vadd.xlane.f32.xlu0 %v381_v3  ;;  %v48_v4 = vmul.f32 %v381_v3, %v381_v3  ;;  %v49_v7 = vmul.f32 %v387_v5, %v387_v5  ;;  %v51_v8 = vmul.f32 %v389_v6, %v389_v6  ;;  %v296_v24 = vld [vmem:[%s456_s1] sm:$0xff] }
   0x5   :  { %v50_v9 = vmul.f32 %v379_v2, %v379_v2  ;;  %v332_v1 = vld [vmem:[%s453_s3] ss:$0 sm:$0xff] }
   0x6   :  { %52 = vadd.xlane.f32.xlu2 %v48_v4  ;;  %211 = vmatpush.bf16.msra.mxu0 %v302_v11 }
   0x7   :  { %325 = vmatpush.bf16.msra.mxu1 %v302_v11 }
   0xa   :  { %212 = vmatpush.bf16.msra.mxu0 %v301_v12 }
   0xb   :  { %326 = vmatpush.bf16.msra.mxu1 %v301_v12 }
   0xc   :  { %42 = vadd.xlane.f32.xlu1 %v389_v6  ;;  %38 = vadd.xlane.f32.xlu0 %v387_v5 }
   0xe   :  { %54 = vadd.xlane.f32.xlu2 %v49_v7  ;;  %213 = vmatpush.bf16.msra.mxu0 %v300_v13 }
   0xf   :  { %327 = vmatpush.bf16.msra.mxu1 %v300_v13 }
  0x12   :  { %214 = vmatpush.bf16.msra.mxu0 %v299_v14 }
  0x13   :  { %328 = vmatpush.bf16.msra.mxu1 %v299_v14  ;;  %v333_v14 = vld [vmem:[%s454_s4] ss:$0 sm:$0xff] }
  0x14   :  { %58 = vadd.xlane.f32.xlu1 %v51_v8  ;;  %56 = vadd.xlane.f32.xlu0 %v50_v9 }
  0x16   :  { %215 = vmatpush.bf16.msra.mxu0 %v298_v15 }
  0x17   :  { %329 = vmatpush.bf16.msra.mxu1 %v298_v15 }
  0x1a   :  { %216 = vmatpush.bf16.msra.mxu0 %v297_v21 }
  0x1b   :  { %330 = vmatpush.bf16.msra.mxu1 %v297_v21 }
  0x1e   :  { %217 = vmatpush.bf16.msra.mxu0 %v296_v24 }
  0x1f   :  { %331 = vmatpush.bf16.msra.mxu1 %v296_v24 }
  0x77   :  { %v41_v16 = vpop.xlane.xlu1 %40  ;;  %v37_v17 = vpop.xlane.xlu0 %36 }
  0x78   :  { %v44_v18 = vmul.f32 0.0078125, %v37_v17  ;;  %v423_v31 = vmul.f32 0.0078125, %v41_v16 }
  0x79   :  { %v53_v19 = vpop.xlane.xlu2 %52 }
  0x7a   :  { %v64_v20 = vmul.f32 %v44_v18, %v44_v18  ;;  %v60_v22 = vmul.f32 0.0078125, %v53_v19  ;;  %v66_v36 = vmul.f32 %v423_v31, %v423_v31  ;;  %v72_v59 = vsub.f32 %v381_v3, %v44_v18 }
  0x7b   :  { %v74_v19 = vsub.f32 %v379_v2, %v423_v31  ;;  %v334_v2 = vld [vmem:[%s455_s2] ss:$0 sm:$0xff] }
  0x7c   :  { %v68_v23 = vsub.f32 %v60_v22, %v64_v20 }
  0x7e   :  { %v76_v25 = vadd.f32 1e-05, %v68_v23 }
  0x7f   :  { %v43_v26 = vpop.xlane.xlu1 %42  ;;  %v39_v27 = vpop.xlane.xlu0 %38 }
  0x80   :  { %v45_v28 = vmul.f32 0.0078125, %v39_v27  ;;  %335 = vrsqrt.f32 %v76_v25  ;;  %v425_v33 = vmul.f32 0.0078125, %v43_v26  ;;  %vm86_vm1 = vweird.f32 %v76_v25 }
  0x81   :  { %v55_v29 = vpop.xlane.xlu2 %54 }
  0x82   :  { %v65_v30 = vmul.f32 %v45_v28, %v45_v28  ;;  %v61_v32 = vmul.f32 0.0078125, %v55_v29  ;;  %v67_v41 = vmul.f32 %v425_v33, %v425_v33  ;;  %v73_v8 = vsub.f32 %v387_v5, %v45_v28 }
  0x83   :  { %v75_v5 = vsub.f32 %v389_v6, %v425_v33 }
  0x84   :  { %v69_v34 = vsub.f32 %v61_v32, %v65_v30 }
  0x86   :  { %v336_v35 = vpop.eup %335  ;;  %v77_v37 = vadd.f32 1e-05, %v69_v34 }
  0x87   :  { %v59_v38 = vpop.xlane.xlu1 %58  ;;  %v57_v39 = vpop.xlane.xlu0 %56  ;;  %v81_v40 = vmul.f32 %v336_v35, %v76_v25  ;;  %vm87_vm0 = vweird.f32 %v336_v35 }
  0x88   :  { %v63_v42 = vmul.f32 0.0078125, %v59_v38  ;;  %v62_v43 = vmul.f32 0.0078125, %v57_v39  ;;  %337 = vrsqrt.f32 %v77_v37  ;;  %vm88_vm2 = vmor %vm86_vm1, %vm87_vm0  ;;  %vm96_vm4 = vweird.f32 %v77_v37 }
  0x89   :  { %v82_v44 = vmul.f32 %v336_v35, %v81_v40 }
  0x8a   :  { %v71_v45 = vsub.f32 %v63_v42, %v67_v41  ;;  %v70_v46 = vsub.f32 %v62_v43, %v66_v36 }
  0x8b   :  { %v83_v47 = vmul.f32 0.5, %v82_v44 }
  0x8c   :  { %v79_v48 = vadd.f32 1e-05, %v71_v45  ;;  %v78_v49 = vadd.f32 1e-05, %v70_v46 }
  0x8d   :  { %v84_v50 = vsub.f32 1.5, %v83_v47 }
  0x8e   :  { %339 = vrsqrt.f32 %v79_v48  ;;  %v338_v51 = vpop.eup %337  ;;  %vm116_vm8 = vweird.f32 %v79_v48  ;;  %vm106_vm10 = vweird.f32 %v78_v49 }
  0x8f   :  { %341 = vrsqrt.f32 %v78_v49  ;;  %v85_v52 = vmul.f32 %v336_v35, %v84_v50  ;;  %v91_v53 = vmul.f32 %v338_v51, %v77_v37  ;;  %vm97_vm3 = vweird.f32 %v338_v51 }
  0x90   :  { %vm98_vm5 = vmor %vm96_vm4, %vm97_vm3 }
  0x91   :  { %v92_v54 = vmul.f32 %v338_v51, %v91_v53  ;;  %v89_v57 = vsel %vm88_vm2, %v336_v35, %v85_v52 }
  0x92   :  { %v120_v0 = vmul.f32 %v89_v57, %v72_v59 }
  0x93   :  { %v93_v56 = vmul.f32 0.5, %v92_v54 }
  0x94   :  { %v340_v55 = vpop.eup %339  ;;  %v128_v13 = vmul.f32 %v332_v1, %v120_v0 }
  0x95   :  { %v342_v58 = vpop.eup %341  ;;  %v111_v60 = vmul.f32 %v340_v55, %v79_v48  ;;  %v94_v61 = vsub.f32 1.5, %v93_v56  ;;  %vm117_vm6 = vweird.f32 %v340_v55 }
  0x96   :  { %v101_v62 = vmul.f32 %v342_v58, %v78_v49  ;;  %vm107_vm7 = vweird.f32 %v342_v58  ;;  %vm118_vm9 = vmor %vm116_vm8, %vm117_vm6  ;;  %v136_v20 = vadd.f32 %v333_v14, %v128_v13 }
  0x97   :  { %v112_v63 = vmul.f32 %v340_v55, %v111_v60  ;;  %v95_v4 = vmul.f32 %v338_v51, %v94_v61  ;;  %vm108_vm11 = vmor %vm106_vm10, %vm107_vm7 }
  0x98   :  { %v102_v7 = vmul.f32 %v342_v58, %v101_v62 }
  0x99   :  { %v113_v9 = vmul.f32 0.5, %v112_v63  ;;  %v99_v11 = vsel %vm98_vm5, %v338_v51, %v95_v4 }
  0x9a   :  { %v103_v10 = vmul.f32 0.5, %v102_v7  ;;  %v121_v12 = vmul.f32 %v99_v11, %v73_v8 }
  0x9b   :  { %v114_v3 = vsub.f32 1.5, %v113_v9 }
  0x9c   :  { %v104_v15 = vsub.f32 1.5, %v103_v10  ;;  %v129_v17 = vmul.f32 %v332_v1, %v121_v12 }
  0x9d   :  { %v115_v16 = vmul.f32 %v340_v55, %v114_v3 }
  0x9e   :  { %v105_v18 = vmul.f32 %v342_v58, %v104_v15  ;;  %v137_v21 = vadd.f32 %v333_v14, %v129_v17 }
  0x9f   :  { %v119_v22 = vsel %vm118_vm9, %v340_v55, %v115_v16 }
  0xa0   :  { %v109_v23 = vsel %vm108_vm11, %v342_v58, %v105_v18  ;;  %v123_v24 = vmul.f32 %v119_v22, %v75_v5  ;;  %v140_v25 = vpack.c.bf16 %v137_v21, %v136_v20 }
  0xa1   :  { %v122_v26 = vmul.f32 %v109_v23, %v74_v19 }
  0xa2   :  { %v131_v27 = vmul.f32 %v332_v1, %v123_v24  ;;  %218 = vmatmul.bf16.vlgmr.msra.gmra.mxu0 %v140_v25 }
  0xa3   :  { %v130_v28 = vmul.f32 %v332_v1, %v122_v26 }
  0xa4   :  { %v139_v29 = vadd.f32 %v333_v14, %v131_v27 }
  0xa5   :  { %v138_v30 = vadd.f32 %v333_v14, %v130_v28 }
  0xa7   :  { %v141_v6 = vpack.c.bf16 %v139_v29, %v138_v30 }
  0xa9   :  { %223 = vmatmul.bf16.vlgmr.msra.gmra.mxu1 %v141_v6 }
 0x11f   :  { %v219_v32 = vpop.f32.mrf.mxu0 }
 0x120   :  { %v248_v34 = vadd.f32 %v334_v2, %v219_v32 }
 0x126   :  { %v224_v31 = vpop.f32.mrf.mxu1 }
 0x127   :  { %v221_v33 = vpop.f32.mrf.mxu0  ;;  %v250_v38 = vadd.f32 %v334_v2, %v224_v31 }
 0x128   :  { %v249_v35 = vadd.f32 %v334_v2, %v221_v33 }
 0x12a   :  { %v315_v36 = vpack.c.bf16 %v249_v35, %v248_v34 }
 0x12c   :  { %316 = vst [vmem:[%s457_s5] sm:$0xff] %v315_v36  }
 0x12e   :  { %v226_v37 = vpop.f32.mrf.mxu1 }
 0x12f   :  { %v251_v39 = vadd.f32 %v334_v2, %v226_v37 }
 0x131   :  { %v320_v40 = vpack.c.bf16 %v251_v39, %v250_v38 }
 0x133   :  { %323 = vst [vmem:[%s457_s5 + $0x8] sm:$0xff] %v320_v40  }

// kernel: swin_forward.38
= control target key start
LH: loop header
LB: loop body
LE: loop exit
PB: predicated region body
PF: predicated region fallthrough
CT: control target
= control target key end

     0   :  { %s648_s0 = inlined_call_operand.vmem [shape: bf16[32,128], index: 0, kind: input, shape index: {}]   ;;  %s649_s3 = inlined_call_operand.vmem [shape: f32[1,128], index: 3, kind: input, shape index: {}]   ;;  %s650_s4 = inlined_call_operand.vmem [shape: f32[1,128], index: 4, kind: input, shape index: {}]   ;;  %s651_s1 = inlined_call_operand.vmem [shape: bf16[128,256], index: 1, kind: input, shape index: {}]   ;;  %s652_s2 = inlined_call_operand.vmem [shape: f32[1,256], index: 2, kind: input, shape index: {}]   ;;  %s653_s5 = inlined_call_operand.vmem [shape: bf16[32,256], index: 5, kind: output, shape index: {}]  }
   0x1   :  { %v429_v0 = vld [vmem:[%s648_s0 + $0x8] sm:$0xff]   ;;  %v422_v1 = vld [vmem:[%s648_s0] sm:$0xff]   ;;  %v399_v10 = vld [vmem:[%s651_s1 + $0x70] sm:$0xf] }
   0x2   :  { %v492_v2 = vunpack.c.l.bf16 %v429_v0  ;;  %v494_v3 = vunpack.c.l.bf16 %v422_v1  ;;  %v500_v5 = vunpack.c.h.bf16 %v429_v0  ;;  %v502_v6 = vunpack.c.h.bf16 %v422_v1  ;;  %v420_v11 = vld [vmem:[%s651_s1 + $0x74] sm:$0xf0]  ;;  %v419_v12 = vld [vmem:[%s651_s1 + $0x74] sm:$0xf]  ;;  %v401_v14 = vld [vmem:[%s651_s1 + $0x78] sm:$0xf0] }
   0x3   :  { %v400_v13 = vor.u32 %v420_v11, %v399_v10  ;;  %v404_v15 = vor.u32 %v419_v12, %v401_v14  ;;  %v391_v16 = vld [vmem:[%s651_s1 + $0x60] sm:$0xf]  ;;  %v418_v17 = vld [vmem:[%s651_s1 + $0x64] sm:$0xf0]  ;;  %v417_v18 = vld [vmem:[%s651_s1 + $0x64] sm:$0xf] }
   0x4   :  { %44 = vadd.xlane.f32.xlu0 %v492_v2  ;;  %v54_v4 = vmul.f32 %v492_v2, %v492_v2  ;;  %40 = vadd.xlane.f32.xlu2 %v494_v3  ;;  %v55_v7 = vmul.f32 %v500_v5, %v500_v5  ;;  %v52_v8 = vmul.f32 %v494_v3, %v494_v3  ;;  %v393_v20 = vld [vmem:[%s651_s1 + $0x68] sm:$0xf0]  ;;  %v383_v22 = vld [vmem:[%s651_s1 + $0x50] sm:$0xf]  ;;  %v416_v23 = vld [vmem:[%s651_s1 + $0x54] sm:$0xf0] }
   0x5   :  { %v53_v9 = vmul.f32 %v502_v6, %v502_v6  ;;  %430 = vmatpush.bf16.msra.mxu2 %v400_v13  ;;  %250 = vmatpush.bf16.msra.mxu0 %v400_v13  ;;  %v392_v19 = vor.u32 %v418_v17, %v391_v16  ;;  %v396_v21 = vor.u32 %v417_v18, %v393_v20  ;;  %v415_v24 = vld [vmem:[%s651_s1 + $0x54] sm:$0xf]  ;;  %v385_v26 = vld [vmem:[%s651_s1 + $0x58] sm:$0xf0]  ;;  %v375_v28 = vld [vmem:[%s651_s1 + $0x40] sm:$0xf] }
   0x6   :  { %60 = vadd.xlane.f32.xlu1 %v54_v4  ;;  %438 = vmatpush.bf16.msra.mxu3 %v404_v15  ;;  %v384_v25 = vor.u32 %v416_v23, %v383_v22  ;;  %v388_v27 = vor.u32 %v415_v24, %v385_v26  ;;  %v414_v29 = vld [vmem:[%s651_s1 + $0x44] sm:$0xf0]  ;;  %v413_v30 = vld [vmem:[%s651_s1 + $0x44] sm:$0xf]  ;;  %v377_v32 = vld [vmem:[%s651_s1 + $0x48] sm:$0xf0] }
   0x7   :  { %269 = vmatpush.bf16.msra.mxu1 %v404_v15  ;;  %v376_v31 = vor.u32 %v414_v29, %v375_v28  ;;  %v380_v33 = vor.u32 %v413_v30, %v377_v32  ;;  %v367_v34 = vld [vmem:[%s651_s1 + $0x30] sm:$0xf]  ;;  %v412_v35 = vld [vmem:[%s651_s1 + $0x34] sm:$0xf0]  ;;  %v411_v36 = vld [vmem:[%s651_s1 + $0x34] sm:$0xf] }
   0x8   :  { %v368_v37 = vor.u32 %v412_v35, %v367_v34  ;;  %v369_v38 = vld [vmem:[%s651_s1 + $0x38] sm:$0xf0]  ;;  %v359_v40 = vld [vmem:[%s651_s1 + $0x20] sm:$0xf]  ;;  %v410_v41 = vld [vmem:[%s651_s1 + $0x24] sm:$0xf0] }
   0x9   :  { %431 = vmatpush.bf16.msra.mxu2 %v392_v19  ;;  %251 = vmatpush.bf16.msra.mxu0 %v392_v19  ;;  %v372_v39 = vor.u32 %v411_v36, %v369_v38  ;;  %v409_v42 = vld [vmem:[%s651_s1 + $0x24] sm:$0xf]  ;;  %v360_v43 = vor.u32 %v410_v41, %v359_v40  ;;  %v361_v44 = vld [vmem:[%s651_s1 + $0x28] sm:$0xf0]  ;;  %v351_v49 = vld [vmem:[%s651_s1 + $0x10] sm:$0xf] }
   0xa   :  { %439 = vmatpush.bf16.msra.mxu3 %v396_v21  ;;  %v364_v45 = vor.u32 %v409_v42, %v361_v44  ;;  %v408_v50 = vld [vmem:[%s651_s1 + $0x14] sm:$0xf0]  ;;  %v407_v53 = vld [vmem:[%s651_s1 + $0x14] sm:$0xf]  ;;  %v353_v54 = vld [vmem:[%s651_s1 + $0x18] sm:$0xf0] }
   0xb   :  { %270 = vmatpush.bf16.msra.mxu1 %v396_v21  ;;  %v352_v52 = vor.u32 %v408_v50, %v351_v49  ;;  %v356_v57 = vor.u32 %v407_v53, %v353_v54  ;;  %v343_v59 = vld [vmem:[%s651_s1] sm:$0xf]  ;;  %v406_v60 = vld [vmem:[%s651_s1 + $0x4] sm:$0xf0]  ;;  %v405_v61 = vld [vmem:[%s651_s1 + $0x4] sm:$0xf] }
   0xc   :  { %46 = vadd.xlane.f32.xlu0 %v500_v5  ;;  %42 = vadd.xlane.f32.xlu2 %v502_v6  ;;  %v344_v62 = vor.u32 %v406_v60, %v343_v59  ;;  %v345_v63 = vld [vmem:[%s651_s1 + $0x8] sm:$0xf0] }
   0xd   :  { %432 = vmatpush.bf16.msra.mxu2 %v384_v25  ;;  %252 = vmatpush.bf16.msra.mxu0 %v384_v25  ;;  %v348_v1 = vor.u32 %v405_v61, %v345_v63 }
   0xe   :  { %62 = vadd.xlane.f32.xlu1 %v55_v7  ;;  %440 = vmatpush.bf16.msra.mxu3 %v388_v27 }
   0xf   :  { %271 = vmatpush.bf16.msra.mxu1 %v388_v27 }
  0x11   :  { %433 = vmatpush.bf16.msra.mxu2 %v376_v31  ;;  %253 = vmatpush.bf16.msra.mxu0 %v376_v31 }
  0x12   :  { %441 = vmatpush.bf16.msra.mxu3 %v380_v33 }
  0x13   :  { %272 = vmatpush.bf16.msra.mxu1 %v380_v33 }
  0x14   :  { %56 = vadd.xlane.f32.xlu0 %v52_v8 }
  0x15   :  { %434 = vmatpush.bf16.msra.mxu2 %v368_v37  ;;  %254 = vmatpush.bf16.msra.mxu0 %v368_v37 }
  0x16   :  { %58 = vadd.xlane.f32.xlu1 %v53_v9  ;;  %442 = vmatpush.bf16.msra.mxu3 %v372_v39 }
  0x17   :  { %273 = vmatpush.bf16.msra.mxu1 %v372_v39 }
  0x19   :  { %435 = vmatpush.bf16.msra.mxu2 %v360_v43  ;;  %255 = vmatpush.bf16.msra.mxu0 %v360_v43  ;;  %v446_v43 = vld [vmem:[%s649_s3] ss:$0 sm:$0xff] }
  0x1a   :  { %443 = vmatpush.bf16.msra.mxu3 %v364_v45 }
  0x1b   :  { %274 = vmatpush.bf16.msra.mxu1 %v364_v45 }
  0x1d   :  { %436 = vmatpush.bf16.msra.mxu2 %v352_v52  ;;  %256 = vmatpush.bf16.msra.mxu0 %v352_v52  ;;  %v447_v52 = vld [vmem:[%s650_s4] ss:$0 sm:$0xff] }
  0x1e   :  { %444 = vmatpush.bf16.msra.mxu3 %v356_v57 }
  0x1f   :  { %275 = vmatpush.bf16.msra.mxu1 %v356_v57 }
  0x21   :  { %437 = vmatpush.bf16.msra.mxu2 %v344_v62  ;;  %257 = vmatpush.bf16.msra.mxu0 %v344_v62 }
  0x22   :  { %445 = vmatpush.bf16.msra.mxu3 %v348_v1 }
  0x23   :  { %276 = vmatpush.bf16.msra.mxu1 %v348_v1 }
  0x77   :  { %v45_v46 = vpop.xlane.xlu0 %44  ;;  %v41_v47 = vpop.xlane.xlu2 %40 }
  0x78   :  { %v584_v48 = vmul.f32 0.015625, %v45_v46  ;;  %v612_v12 = vmul.f32 0.015625, %v41_v47 }
  0x79   :  { %v61_v51 = vpop.xlane.xlu1 %60 }
  0x7a   :  { %v70_v55 = vmul.f32 %v584_v48, %v584_v48  ;;  %v66_v56 = vmul.f32 0.015625, %v61_v51  ;;  %v68_v19 = vmul.f32 %v612_v12, %v612_v12  ;;  %v78_v38 = vsub.f32 %v492_v2, %v584_v48 }
  0x7c   :  { %v74_v58 = vsub.f32 %v66_v56, %v70_v55 }
  0x7e   :  { %v82_v0 = vadd.f32 1e-05, %v74_v58 }
  0x7f   :  { %v47_v4 = vpop.xlane.xlu0 %46  ;;  %v43_v9 = vpop.xlane.xlu2 %42 }
  0x80   :  { %448 = vrsqrt.f32 %v82_v0  ;;  %v51_v7 = vmul.f32 0.015625, %v47_v4  ;;  %v614_v14 = vmul.f32 0.015625, %v43_v9  ;;  %vm110_vm1 = vweird.f32 %v82_v0 }
  0x81   :  { %v63_v8 = vpop.xlane.xlu1 %62 }
  0x82   :  { %v71_v10 = vmul.f32 %v51_v7, %v51_v7  ;;  %v67_v11 = vmul.f32 0.015625, %v63_v8  ;;  %v69_v20 = vmul.f32 %v614_v14, %v614_v14  ;;  %v79_v47 = vsub.f32 %v500_v5, %v51_v7 }
  0x83   :  { %v76_v5 = vsub.f32 %v494_v3, %v612_v12  ;;  %v77_v62 = vsub.f32 %v502_v6, %v614_v14 }
  0x84   :  { %v75_v13 = vsub.f32 %v67_v11, %v71_v10  ;;  %v315_v11 = vld [vmem:[%s652_s2] sm:$0x3] }
  0x85   :  { %v317_v12 = vperm.slane %v315_v11, 0  ;;  %v318_v6 = vperm.slane %v315_v11, 1 }
  0x86   :  { %v449_v15 = vpop.eup %448  ;;  %v83_v16 = vadd.f32 1e-05, %v75_v13 }
  0x87   :  { %v105_v17 = vmul.f32 %v449_v15, %v82_v0  ;;  %v57_v18 = vpop.xlane.xlu0 %56  ;;  %vm111_vm0 = vweird.f32 %v449_v15 }
  0x88   :  { %450 = vrsqrt.f32 %v83_v16  ;;  %v64_v21 = vmul.f32 0.015625, %v57_v18  ;;  %vm112_vm2 = vmor %vm110_vm1, %vm111_vm0  ;;  %vm120_vm4 = vweird.f32 %v83_v16 }
  0x89   :  { %v106_v22 = vmul.f32 %v449_v15, %v105_v17  ;;  %v59_v23 = vpop.xlane.xlu1 %58 }
  0x8a   :  { %v72_v24 = vsub.f32 %v64_v21, %v68_v19  ;;  %v65_v25 = vmul.f32 0.015625, %v59_v23 }
  0x8b   :  { %v107_v26 = vmul.f32 0.5, %v106_v22 }
  0x8c   :  { %v80_v27 = vadd.f32 1e-05, %v72_v24  ;;  %v73_v28 = vsub.f32 %v65_v25, %v69_v20 }
  0x8d   :  { %v108_v29 = vsub.f32 1.5, %v107_v26 }
  0x8e   :  { %v451_v30 = vpop.eup %450  ;;  %452 = vrsqrt.f32 %v80_v27  ;;  %v81_v31 = vadd.f32 1e-05, %v73_v28  ;;  %vm90_vm7 = vweird.f32 %v80_v27 }
  0x8f   :  { %v109_v32 = vmul.f32 %v449_v15, %v108_v29  ;;  %v115_v33 = vmul.f32 %v451_v30, %v83_v16  ;;  %vm121_vm3 = vweird.f32 %v451_v30 }
  0x90   :  { %454 = vrsqrt.f32 %v81_v31  ;;  %vm122_vm5 = vmor %vm120_vm4, %vm121_vm3  ;;  %vm100_vm10 = vweird.f32 %v81_v31 }
  0x91   :  { %v116_v34 = vmul.f32 %v451_v30, %v115_v33  ;;  %v113_v36 = vsel %vm112_vm2, %v449_v15, %v109_v32 }
  0x92   :  { %v126_v42 = vmul.f32 %v113_v36, %v78_v38 }
  0x93   :  { %v117_v35 = vmul.f32 0.5, %v116_v34 }
  0x94   :  { %v453_v37 = vpop.eup %452  ;;  %v134_v48 = vmul.f32 %v446_v43, %v126_v42 }
  0x95   :  { %v118_v39 = vsub.f32 1.5, %v117_v35  ;;  %v85_v40 = vmul.f32 %v453_v37, %v80_v27  ;;  %vm91_vm6 = vweird.f32 %v453_v37 }
  0x96   :  { %v455_v41 = vpop.eup %454  ;;  %vm92_vm9 = vmor %vm90_vm7, %vm91_vm6  ;;  %v142_v58 = vadd.f32 %v447_v52, %v134_v48 }
  0x97   :  { %v119_v44 = vmul.f32 %v451_v30, %v118_v39  ;;  %v86_v45 = vmul.f32 %v453_v37, %v85_v40  ;;  %v95_v46 = vmul.f32 %v455_v41, %v81_v31  ;;  %vm101_vm8 = vweird.f32 %v455_v41 }
  0x98   :  { %vm102_vm11 = vmor %vm100_vm10, %vm101_vm8 }
  0x99   :  { %v87_v49 = vmul.f32 0.5, %v86_v45  ;;  %v96_v50 = vmul.f32 %v455_v41, %v95_v46  ;;  %v123_v51 = vsel %vm122_vm5, %v451_v30, %v119_v44 }
  0x9a   :  { %v127_v2 = vmul.f32 %v123_v51, %v79_v47 }
  0x9b   :  { %v88_v53 = vsub.f32 1.5, %v87_v49  ;;  %v97_v54 = vmul.f32 0.5, %v96_v50 }
  0x9c   :  { %v135_v55 = vmul.f32 %v446_v43, %v127_v2 }
  0x9d   :  { %v89_v56 = vmul.f32 %v453_v37, %v88_v53  ;;  %v98_v57 = vsub.f32 1.5, %v97_v54 }
  0x9e   :  { %v143_v59 = vadd.f32 %v447_v52, %v135_v55 }
  0x9f   :  { %v99_v60 = vmul.f32 %v455_v41, %v98_v57  ;;  %v93_v61 = vsel %vm92_vm9, %v453_v37, %v89_v56 }
  0xa0   :  { %v145_v63 = vpack.c.bf16 %v143_v59, %v142_v58  ;;  %v124_v0 = vmul.f32 %v93_v61, %v76_v5 }
  0xa1   :  { %v103_v1 = vsel %vm102_vm11, %v455_v41, %v99_v60 }
  0xa2   :  { %263 = vmatmul.bf16.vlgmr.msra.gmra.mxu2 %v145_v63  ;;  %282 = vmatmul.bf16.vlgmr.msra.gmra.mxu3 %v145_v63  ;;  %v125_v4 = vmul.f32 %v103_v1, %v77_v62  ;;  %v132_v7 = vmul.f32 %v446_v43, %v124_v0 }
  0xa4   :  { %v133_v8 = vmul.f32 %v446_v43, %v125_v4  ;;  %v140_v9 = vadd.f32 %v447_v52, %v132_v7 }
  0xa6   :  { %v141_v3 = vadd.f32 %v447_v52, %v133_v8 }
  0xa8   :  { %v144_v10 = vpack.c.bf16 %v141_v3, %v140_v9 }
  0xaa   :  { %258 = vmatmul.bf16.vlgmr.msra.gmra.mxu0 %v144_v10  ;;  %277 = vmatmul.bf16.vlgmr.msra.gmra.mxu1 %v144_v10 }
 0x125   :  { %v264_v13 = vpop.f32.mrf.mxu2  ;;  %v283_v14 = vpop.f32.mrf.mxu3 }
 0x126   :  { %v325_v15 = vadd.f32 %v317_v12, %v264_v13  ;;  %v326_v16 = vadd.f32 %v318_v6, %v283_v14 }
 0x127   :  { %v259_v17 = vpop.f32.mrf.mxu0  ;;  %v278_v18 = vpop.f32.mrf.mxu1 }
 0x128   :  { %v331_v19 = vpack.c.bf16 %v326_v16, %v325_v15  ;;  %v321_v20 = vadd.f32 %v317_v12, %v259_v17  ;;  %v322_v21 = vadd.f32 %v318_v6, %v278_v18 }
 0x12a   :  { %335 = vst [vmem:[%s653_s5 + $0x10] sm:$0xff] %v331_v19  ;;  %v329_v22 = vpack.c.bf16 %v322_v21, %v321_v20 }
 0x12c   :  { %333 = vst [vmem:[%s653_s5] sm:$0xff] %v329_v22 }
 0x12d   :  { %v266_v23 = vpop.f32.mrf.mxu2  ;;  %v285_v24 = vpop.f32.mrf.mxu3 }
 0x12e   :  { %v327_v25 = vadd.f32 %v317_v12, %v266_v23  ;;  %v328_v26 = vadd.f32 %v318_v6, %v285_v24 }
 0x12f   :  { %v261_v27 = vpop.f32.mrf.mxu0  ;;  %v280_v28 = vpop.f32.mrf.mxu1 }
 0x130   :  { %v332_v29 = vpack.c.bf16 %v328_v26, %v327_v25  ;;  %v323_v30 = vadd.f32 %v317_v12, %v261_v27  ;;  %v324_v31 = vadd.f32 %v318_v6, %v280_v28 }
 0x132   :  { %336 = vst [vmem:[%s653_s5 + $0x18] sm:$0xff] %v332_v29  ;;  %v330_v32 = vpack.c.bf16 %v324_v31, %v323_v30 }
 0x134   :  { %334 = vst [vmem:[%s653_s5 + $0x8] sm:$0xff] %v330_v32 }

// kernel: swin_forward.39
= control target key start
LH: loop header
LB: loop body
LE: loop exit
PB: predicated region body
PF: predicated region fallthrough
CT: control target
= control target key end

     0   :  { %s872_s15 = smov 0   ;;  %s969_s0 = inlined_call_operand.vmem [shape: bf16[2,4,16,16], index: 0, kind: input, shape index: {}]   ;;  %s970_s1 = inlined_call_operand.vmem [shape: bf16[2,4,16,16], index: 1, kind: input, shape index: {}]   ;;  %s971_s2 = inlined_call_operand.vmem [shape: bf16[2,4,16,16], index: 2, kind: input, shape index: {}]   ;;  %s972_s3 = inlined_call_operand.vmem [shape: f32[4,16,16], index: 3, kind: input, shape index: {}]   ;;  %s973_s4 = inlined_call_operand.vmem [shape: bf16[2,4,16,16], index: 4, kind: output, shape index: {}]  }
   0x1 LB: > { %s712_s16 = sadd.s32 4294967295, %s845_s15   ;;  %p716_p0 = scmp.ge.s32.totalorder %s845_s15, 1  ;;  %s845_s15 = sphi %s872_s15, %s14_s15  }
   0x2   : > { %p182_p1 = scmp.lt.s32.totalorder %s845_s15, 3 }
   0x4   : > { %p183_p2 = pnand %p716_p0, %p182_p1 }
   0x5   : > { %p218_p3 = scmp.lt.s32.totalorder (!%p183_p2), %s712_s16, 1 }
   0x6   : > { %186 = sbr.rel (%p183_p2) target bundleno = 574 (0x23e), region = 36 }
   0xb   : > { %s975_s16 = smov (!%p218_p3, %s712_s16), 1  ;;  %vm265_vm0 = vcmask 130048   ;;  %v384_v13 = vld [vmem:[%s972_s3] sm:$0xff]  ;;  %v390_v22 = vld [vmem:[%s972_s3 + $0x30] sm:$0xff]  ;;  %v385_v25 = vld [vmem:[%s972_s3 + $0x8] sm:$0xff]  ;;  %vm624_vm1 = vcmask 125952  }
   0xc   : > { %s880_s17 = sshll.u32 %s975_s16, 5  ;;  %v388_v18 = vld [vmem:[%s972_s3 + $0x20] sm:$0xff]  ;;  %v389_v34 = vld [vmem:[%s972_s3 + $0x28] sm:$0xff]  ;;  %v391_v37 = vld [vmem:[%s972_s3 + $0x38] sm:$0xff] }
   0xd   : > { %s227_s20 = scalar_lea.vmem %s970_s1, %s880_s17  ;;  %s222_s23 = scalar_lea.vmem %s969_s0, %s880_s17  ;;  %v386_v46 = vld [vmem:[%s972_s3 + $0x10] sm:$0xff]  ;;  %v387_v47 = vld [vmem:[%s972_s3 + $0x18] sm:$0xff] }
   0xe   : > { %v791_v0 = vld [vmem:[%s227_s20] sm:$0xff]  ;;  %v793_v1 = vld [vmem:[%s227_s20 + $0x10] sm:$0xff]  ;;  %v794_v2 = vld [vmem:[%s227_s20 + $0x18] sm:$0xff]  ;;  %s232_s18 = scalar_lea.vmem %s971_s2, %s880_s17  ;;  %s237_s21 = scalar_lea.vmem %s973_s4, %s880_s17 }
   0xf   : > { %v792_v3 = vld [vmem:[%s227_s20 + $0x8] sm:$0xff]  ;;  %v270_v4 = vsel %vm265_vm0, %v791_v0, 0  ;;  %v330_v5 = vsel %vm265_vm0, %v793_v1, 0  ;;  %v360_v6 = vsel %vm265_vm0, %v794_v2, 0  ;;  %v787_v8 = vld [vmem:[%s222_s23] sm:$0xff]  ;;  %v789_v9 = vld [vmem:[%s222_s23 + $0x10] sm:$0xff] }
  0x10   : > { %279 = vmatpush.bf16.xpose.msra.mxu0 %v270_v4  ;;  %339 = vmatpush.bf16.xpose.msra.mxu2 %v330_v5  ;;  %v300_v7 = vsel %vm265_vm0, %v792_v3, 0  ;;  %v790_v10 = vld [vmem:[%s222_s23 + $0x18] sm:$0xff]  ;;  %v788_v11 = vld [vmem:[%s222_s23 + $0x8] sm:$0xff] }
  0x11   : > { %369 = vmatpush.bf16.xpose.msra.mxu3 %v360_v6  ;;  %309 = vmatpush.bf16.xpose.msra.mxu1 %v300_v7 }
  0x17   : > { %733 = vmatmul.msk.bf16.vlgmr.msra.gmra.mxu0 %vm265_vm0, %v787_v8  ;;  %751 = vmatmul.msk.bf16.vlgmr.msra.gmra.mxu2 %vm265_vm0, %v789_v9 }
  0x18   : > { %760 = vmatmul.msk.bf16.vlgmr.msra.gmra.mxu3 %vm265_vm0, %v790_v10  ;;  %742 = vmatmul.msk.bf16.vlgmr.msra.gmra.mxu1 %vm265_vm0, %v788_v11 }
  0x94   : > { %v281_v12 = vpop.f32.mrf.mxu0 }
  0x95   : > { %v376_v14 = vmul.f32 0.25, %v281_v12  ;;  %v311_v19 = vpop.f32.mrf.mxu1 }
  0x96   : > { %v378_v42 = vmul.f32 0.25, %v311_v19 }
  0x97   : > { %v392_v15 = vadd.f32 %v384_v13, %v376_v14 }
  0x98   : > { %v394_v48 = vadd.f32 %v386_v46, %v378_v42 }
  0x99   : > { %v400_v16 = vsel %vm265_vm0, %v392_v15, -inf }
  0x9a   : > { %v341_v17 = vpop.f32.mrf.mxu2  ;;  %401 = vmax.xlane.f32.xlu2 %v400_v16  ;;  %v406_v50 = vsel %vm265_vm0, %v394_v48, -inf }
  0x9b   : > { %v380_v20 = vmul.f32 0.25, %v341_v17  ;;  %v371_v21 = vpop.f32.mrf.mxu3 }
  0x9c   : > { %v382_v23 = vmul.f32 0.25, %v371_v21  ;;  %v283_v24 = vpop.f32.mrf.mxu0 }
  0x9d   : > { %v377_v26 = vmul.f32 0.25, %v283_v24  ;;  %v396_v27 = vadd.f32 %v388_v18, %v380_v20  ;;  %v313_v39 = vpop.f32.mrf.mxu1 }
  0x9e   : > { %v398_v28 = vadd.f32 %v390_v22, %v382_v23  ;;  %v379_v44 = vmul.f32 0.25, %v313_v39 }
  0x9f   : > { %v412_v29 = vsel %vm265_vm0, %v396_v27, -inf  ;;  %v393_v30 = vadd.f32 %v385_v25, %v377_v26 }
  0xa0   : > { %v418_v31 = vsel %vm265_vm0, %v398_v28, -inf  ;;  %413 = vmax.xlane.f32.xlu0 %v412_v29  ;;  %v395_v49 = vadd.f32 %v387_v47, %v379_v44  ;;  %v798_v29 = vld [vmem:[%s232_s18 + $0x18] sm:$0xff] }
  0xa1   : > { %419 = vmax.xlane.f32.xlu1 %v418_v31  ;;  %v403_v32 = vsel %vm265_vm0, %v393_v30, -inf  ;;  %v796_v31 = vld [vmem:[%s232_s18 + $0x8] sm:$0xff]  ;;  %609 = vmatpush.bf16.msrb.mxu3 %v798_v29 }
  0xa2   : > { %v343_v33 = vpop.f32.mrf.mxu2  ;;  %404 = vmax.xlane.f32.xlu2 %v403_v32  ;;  %v409_v51 = vsel %vm265_vm0, %v395_v49, -inf  ;;  %553 = vmatpush.bf16.msrb.mxu1 %v796_v31 }
  0xa3   : > { %v381_v35 = vmul.f32 0.25, %v343_v33  ;;  %v373_v36 = vpop.f32.mrf.mxu3 }
  0xa4   : > { %v383_v38 = vmul.f32 0.25, %v373_v36 }
  0xa5   : > { %v397_v40 = vadd.f32 %v389_v34, %v381_v35 }
  0xa6   : > { %v399_v41 = vadd.f32 %v391_v37, %v383_v38 }
  0xa7   : > { %v415_v43 = vsel %vm265_vm0, %v397_v40, -inf }
  0xa8   : > { %v421_v45 = vsel %vm265_vm0, %v399_v41, -inf  ;;  %416 = vmax.xlane.f32.xlu0 %v415_v43 }
  0xa9   : > { %422 = vmax.xlane.f32.xlu1 %v421_v45 }
  0xb0   : > { %407 = vmax.xlane.f32.xlu0 %v406_v50 }
  0xb1   : > { %410 = vmax.xlane.f32.xlu1 %v409_v51 }
 0x10d   : > { %v402_v52 = vpop.xlane.xlu2 %401 }
 0x10e   : > { %v424_v53 = vsub.f32 %v392_v15, %v402_v52 }
 0x110   : > { %v432_v54 = vmul.f32 1.442695, %v424_v53 }
 0x112   : > { %807 = vpow2.f32 %v432_v54 }
 0x113   : > { %v414_v55 = vpop.xlane.xlu0 %413 }
 0x114   : > { %v420_v56 = vpop.xlane.xlu1 %419  ;;  %v428_v57 = vsub.f32 %v396_v27, %v414_v55 }
 0x115   : > { %v430_v58 = vsub.f32 %v398_v28, %v420_v56  ;;  %v405_v59 = vpop.xlane.xlu2 %404  ;;  %v797_v28 = vld [vmem:[%s232_s18 + $0x10] sm:$0xff] }
 0x116   : > { %v440_v60 = vmul.f32 1.442695, %v428_v57  ;;  %v425_v62 = vsub.f32 %v393_v30, %v405_v59  ;;  %v795_v30 = vld [vmem:[%s232_s18] sm:$0xff]  ;;  %581 = vmatpush.bf16.msrb.mxu2 %v797_v28 }
 0x117   : > { %v444_v61 = vmul.f32 1.442695, %v430_v58  ;;  %525 = vmatpush.bf16.msrb.mxu0 %v795_v30 }
 0x118   : > { %v930_v63 = vpop.eup %807  ;;  %809 = vpow2.f32 %v440_v60  ;;  %v434_v1 = vmul.f32 1.442695, %v425_v62 }
 0x119   : > { %811 = vpow2.f32 %v444_v61  ;;  %v448_v0 = vsel %vm265_vm0, %v930_v63, 0.0 }
 0x11a   : > { %449 = vadd.xlane.f32.xlu0 %v448_v0  ;;  %813 = vpow2.f32 %v434_v1 }
 0x11b   : > { %v417_v2 = vpop.xlane.xlu0 %416 }
 0x11c   : > { %v423_v3 = vpop.xlane.xlu1 %422  ;;  %v429_v4 = vsub.f32 %v397_v40, %v417_v2 }
 0x11d   : > { %v431_v5 = vsub.f32 %v399_v41, %v423_v3 }
 0x11e   : > { %v810_v6 = vpop.eup %809  ;;  %v442_v7 = vmul.f32 1.442695, %v429_v4 }
 0x11f   : > { %v812_v8 = vpop.eup %811  ;;  %v446_v9 = vmul.f32 1.442695, %v431_v5  ;;  %v460_v10 = vsel %vm265_vm0, %v810_v6, 0.0 }
 0x120   : > { %815 = vpow2.f32 %v442_v7  ;;  %v466_v11 = vsel %vm265_vm0, %v812_v8, 0.0  ;;  %461 = vadd.xlane.f32.xlu2 %v460_v10  ;;  %v814_v15 = vpop.eup %813 }
 0x121   : > { %817 = vpow2.f32 %v446_v9  ;;  %467 = vadd.xlane.f32.xlu1 %v466_v11  ;;  %v451_v23 = vsel %vm265_vm0, %v814_v15, 0.0 }
 0x123   : > { %v408_v12 = vpop.xlane.xlu0 %407 }
 0x124   : > { %v426_v13 = vsub.f32 %v394_v48, %v408_v12  ;;  %v411_v14 = vpop.xlane.xlu1 %410 }
 0x125   : > { %v427_v16 = vsub.f32 %v395_v49, %v411_v14 }
 0x126   : > { %v816_v17 = vpop.eup %815  ;;  %v436_v18 = vmul.f32 1.442695, %v426_v13 }
 0x127   : > { %v818_v19 = vpop.eup %817  ;;  %v438_v20 = vmul.f32 1.442695, %v427_v16  ;;  %v463_v21 = vsel %vm265_vm0, %v816_v17, 0.0 }
 0x128   : > { %819 = vpow2.f32 %v436_v18  ;;  %464 = vadd.xlane.f32.xlu0 %v463_v21  ;;  %v469_v22 = vsel %vm265_vm0, %v818_v19, 0.0 }
 0x129   : > { %821 = vpow2.f32 %v438_v20  ;;  %470 = vadd.xlane.f32.xlu2 %v469_v22  ;;  %452 = vadd.xlane.f32.xlu1 %v451_v23 }
 0x12e   : > { %v939_v24 = vpop.eup %819 }
 0x12f   : > { %v822_v25 = vpop.eup %821  ;;  %v454_v26 = vsel %vm265_vm0, %v939_v24, 0.0 }
 0x130   : > { %v457_v27 = vsel %vm265_vm0, %v822_v25, 0.0 }
 0x131   : > { %458 = vadd.xlane.f32.xlu0 %v457_v27  ;;  %455 = vadd.xlane.f32.xlu2 %v454_v26 }
 0x18d   : > { %v450_v32 = vpop.xlane.xlu0 %449 }
 0x193   : > { %v462_v33 = vpop.xlane.xlu2 %461 }
 0x194   : > { %v468_v34 = vpop.xlane.xlu1 %467  ;;  %823 = vrcp.f32 %v462_v33 }
 0x195   : > { %825 = vrcp.f32 %v450_v32 }
 0x196   : > { %827 = vrcp.f32 %v468_v34 }
 0x19a   : > { %v824_v36 = vpop.eup %823 }
 0x19b   : > { %v465_v35 = vpop.xlane.xlu0 %464  ;;  %v826_v39 = vpop.eup %825  ;;  %v484_v41 = vmul.f32 %v824_v36, %v810_v6 }
 0x19c   : > { %829 = vrcp.f32 %v465_v35  ;;  %v453_v37 = vpop.xlane.xlu1 %452  ;;  %v471_v38 = vpop.xlane.xlu2 %470  ;;  %v480_v42 = vmul.f32 %v826_v39, %v930_v63 }
 0x19d   : > { %831 = vrcp.f32 %v453_v37  ;;  %v828_v40 = vpop.eup %827  ;;  %v492_v46 = vpack.c.bf16 %v484_v41, %v484_v41 }
 0x19e   : > { %833 = vrcp.f32 %v471_v38  ;;  %v486_v43 = vmul.f32 %v828_v40, %v812_v8  ;;  %v488_v49 = vpack.c.bf16 %v480_v42, %v480_v42 }
 0x19f   : > { %v562_v57 = vunpack.c.l.b16 %v492_v46 }
 0x1a0   : > { %v494_v53 = vpack.c.bf16 %v486_v43, %v486_v43  ;;  %v506_v60 = vunpack.c.l.b16 %v488_v49 }
 0x1a2   : > { %v830_v44 = vpop.eup %829  ;;  %v590_v62 = vunpack.c.l.b16 %v494_v53 }
 0x1a3   : > { %v832_v45 = vpop.eup %831  ;;  %v485_v47 = vmul.f32 %v830_v44, %v816_v17 }
 0x1a4   : > { %v834_v48 = vpop.eup %833  ;;  %v481_v50 = vmul.f32 %v832_v45, %v814_v15  ;;  %v459_v51 = vpop.xlane.xlu0 %458 }
 0x1a5   : > { %v456_v52 = vpop.xlane.xlu2 %455  ;;  %v493_v54 = vpack.c.bf16 %v485_v47, %v485_v47  ;;  %v487_v55 = vmul.f32 %v834_v48, %v818_v19  ;;  %835 = vrcp.f32 %v459_v51 }
 0x1a6   : > { %v489_v56 = vpack.c.bf16 %v481_v50, %v481_v50  ;;  %837 = vrcp.f32 %v456_v52 }
 0x1a7   : > { %v563_v58 = vunpack.c.l.b16 %v493_v54  ;;  %v495_v59 = vpack.c.bf16 %v487_v55, %v487_v55 }
 0x1a8   : > { %v507_v61 = vunpack.c.l.b16 %v489_v56 }
 0x1a9   : > { %v591_v63 = vunpack.c.l.b16 %v495_v59  ;;  %v564_v0 = vpack.c.b16 %v563_v58, %v562_v57 }
 0x1aa   : > { %v508_v1 = vpack.c.b16 %v507_v61, %v506_v60 }
 0x1ab   : > { %v836_v2 = vpop.eup %835  ;;  %775 = vmatmul.msk.bf16.vlgmr.msrb.gmra.mxu2 %vm265_vm0, %v564_v0  ;;  %v592_v3 = vpack.c.b16 %v591_v63, %v590_v62 }
 0x1ac   : > { %v838_v4 = vpop.eup %837  ;;  %v483_v5 = vmul.f32 %v836_v2, %v822_v25  ;;  %765 = vmatmul.msk.bf16.vlgmr.msrb.gmra.mxu0 %vm265_vm0, %v508_v1 }
 0x1ad   : > { %v482_v6 = vmul.f32 %v838_v4, %v939_v24  ;;  %780 = vmatmul.msk.bf16.vlgmr.msrb.gmra.mxu3 %vm265_vm0, %v592_v3 }
 0x1ae   : > { %v491_v7 = vpack.c.bf16 %v483_v5, %v483_v5 }
 0x1af   : > { %v490_v8 = vpack.c.bf16 %v482_v6, %v482_v6 }
 0x1b0   : > { %v535_v9 = vunpack.c.l.b16 %v491_v7 }
 0x1b1   : > { %v534_v10 = vunpack.c.l.b16 %v490_v8 }
 0x1b3   : > { %v536_v11 = vpack.c.b16 %v535_v9, %v534_v10 }
 0x1b5   : > { %770 = vmatmul.msk.bf16.vlgmr.msrb.gmra.mxu1 %vm265_vm0, %v536_v11 }
 0x229   : > { %v527_v12 = vpop.f32.mrf.mxu0 }
 0x22a   : > { %v616_v13 = vpack.c.bf16 %v527_v12, %v527_v12 }
 0x22c   : > { %625 = vst.msk [vmem:[%s237_s21] sm:$0xf] %vm624_vm1, %v616_v13 }
 0x22e   : > { %v583_v14 = vpop.f32.mrf.mxu2 }
 0x22f   : > { %v620_v15 = vpack.c.bf16 %v583_v14, %v583_v14 }
 0x230   : > { %v611_v16 = vpop.f32.mrf.mxu3 }
 0x231   : > { %629 = vst.msk [vmem:[%s237_s21 + $0x10] sm:$0xf] %vm624_vm1, %v620_v15  ;;  %v622_v17 = vpack.c.bf16 %v611_v16, %v611_v16  ;;  %v529_v18 = vpop.f32.mrf.mxu0 }
 0x232   : > { %v617_v19 = vpack.c.bf16 %v529_v18, %v529_v18  ;;  %v555_v20 = vpop.f32.mrf.mxu1 }
 0x233   : > { %631 = vst.msk [vmem:[%s237_s21 + $0x18] sm:$0xf] %vm624_vm1, %v622_v17  ;;  %v618_v21 = vpack.c.bf16 %v555_v20, %v555_v20 }
 0x234   : > { %626 = vst.msk [vmem:[%s237_s21 + $0x4] sm:$0xf] %vm624_vm1, %v617_v19 }
 0x235   : > { %627 = vst.msk [vmem:[%s237_s21 + $0x8] sm:$0xf] %vm624_vm1, %v618_v21 }
 0x236   : > { %v585_v22 = vpop.f32.mrf.mxu2 }
 0x237   : > { %v621_v23 = vpack.c.bf16 %v585_v22, %v585_v22 }
 0x238   : > { %v613_v24 = vpop.f32.mrf.mxu3 }
 0x239   : > { %630 = vst.msk [vmem:[%s237_s21 + $0x14] sm:$0xf] %vm624_vm1, %v621_v23  ;;  %v623_v25 = vpack.c.bf16 %v613_v24, %v613_v24 }
 0x23a   : > { %v557_v26 = vpop.f32.mrf.mxu1 }
 0x23b   : > { %632 = vst.msk [vmem:[%s237_s21 + $0x1c] sm:$0xf] %vm624_vm1, %v623_v25  ;;  %v619_v27 = vpack.c.bf16 %v557_v26, %v557_v26 }
 0x23d   : > { %628 = vst.msk [vmem:[%s237_s21 + $0xc] sm:$0xf] %vm624_vm1, %v619_v27 }
 0x23e PF: > { %s14_s15 = sadd.s32 1, %s845_s15  }
 0x23f   : > { %p11_p4 = scmp.ge.s32.totalorder %s14_s15, 4  }
 0x241   :  { %13 = sbr.rel (!%p11_p4) target bundleno = 1 (0x1), region = 72 }

// kernel: swin_forward.40
= control target key start
LH: loop header
LB: loop body
LE: loop exit
PB: predicated region body
PF: predicated region fallthrough
CT: control target
= control target key end

     0   :  { %s289_s1 = inlined_call_operand.vmem [shape: bf16[128,128], index: 1, kind: input, shape index: {}]   ;;  %s290_s2 = inlined_call_operand.vmem [shape: f32[1,128], index: 2, kind: input, shape index: {}]   ;;  %s291_s0 = inlined_call_operand.vmem [shape: bf16[32,128], index: 0, kind: input, shape index: {}]   ;;  %s292_s3 = inlined_call_operand.vmem [shape: bf16[32,128], index: 3, kind: output, shape index: {}]  }
   0x1   :  { %v209_v0 = vld [vmem:[%s289_s1 + $0x38] sm:$0xff]  ;;  %v208_v1 = vld [vmem:[%s289_s1 + $0x30] sm:$0xff]  ;;  %v207_v2 = vld [vmem:[%s289_s1 + $0x28] sm:$0xff] }
   0x2   :  { %106 = vmatpush.bf16.msra.mxu0 %v209_v0  ;;  %221 = vmatpush.bf16.msra.mxu1 %v209_v0  ;;  %v206_v3 = vld [vmem:[%s289_s1 + $0x20] sm:$0xff]  ;;  %v205_v4 = vld [vmem:[%s289_s1 + $0x18] sm:$0xff]  ;;  %v204_v5 = vld [vmem:[%s289_s1 + $0x10] sm:$0xff] }
   0x3   :  { %v203_v6 = vld [vmem:[%s289_s1 + $0x8] sm:$0xff]  ;;  %v202_v7 = vld [vmem:[%s289_s1] sm:$0xff] }
   0x4   :  { %v200_v8 = vld [vmem:[%s291_s0] sm:$0xff]  ;;  %v201_v9 = vld [vmem:[%s291_s0 + $0x8] sm:$0xff] }
   0x5   :  { %v229_v12 = vld [vmem:[%s290_s2] ss:$0 sm:$0xff] }
   0x6   :  { %107 = vmatpush.bf16.msra.mxu0 %v208_v1  ;;  %222 = vmatpush.bf16.msra.mxu1 %v208_v1 }
   0xa   :  { %108 = vmatpush.bf16.msra.mxu0 %v207_v2  ;;  %223 = vmatpush.bf16.msra.mxu1 %v207_v2 }
   0xe   :  { %109 = vmatpush.bf16.msra.mxu0 %v206_v3  ;;  %224 = vmatpush.bf16.msra.mxu1 %v206_v3 }
  0x12   :  { %110 = vmatpush.bf16.msra.mxu0 %v205_v4  ;;  %225 = vmatpush.bf16.msra.mxu1 %v205_v4 }
  0x16   :  { %111 = vmatpush.bf16.msra.mxu0 %v204_v5  ;;  %226 = vmatpush.bf16.msra.mxu1 %v204_v5 }
  0x1a   :  { %112 = vmatpush.bf16.msra.mxu0 %v203_v6  ;;  %227 = vmatpush.bf16.msra.mxu1 %v203_v6 }
  0x1e   :  { %113 = vmatpush.bf16.msra.mxu0 %v202_v7  ;;  %228 = vmatpush.bf16.msra.mxu1 %v202_v7 }
  0x21   :  { %114 = vmatmul.bf16.vlgmr.msra.gmra.mxu0 %v200_v8  ;;  %119 = vmatmul.bf16.vlgmr.msra.gmra.mxu1 %v201_v9 }
  0x9e   :  { %v115_v10 = vpop.f32.mrf.mxu0  ;;  %v120_v11 = vpop.f32.mrf.mxu1 }
  0x9f   :  { %v144_v15 = vadd.f32 %v229_v12, %v115_v10  ;;  %v146_v16 = vadd.f32 %v229_v12, %v120_v11 }
  0xa6   :  { %v117_v13 = vpop.f32.mrf.mxu0  ;;  %v122_v14 = vpop.f32.mrf.mxu1 }
  0xa7   :  { %v145_v17 = vadd.f32 %v229_v12, %v117_v13  ;;  %v147_v18 = vadd.f32 %v229_v12, %v122_v14 }
  0xa9   :  { %v213_v19 = vpack.c.bf16 %v145_v17, %v144_v15  ;;  %v218_v20 = vpack.c.bf16 %v147_v18, %v146_v16 }
  0xab   :  { %214 = vst [vmem:[%s292_s3] sm:$0xff] %v213_v19  }
  0xac   :  { %220 = vst [vmem:[%s292_s3 + $0x8] sm:$0xff] %v218_v20  }

// kernel: swin_forward.41
= control target key start
LH: loop header
LB: loop body
LE: loop exit
PB: predicated region body
PF: predicated region fallthrough
CT: control target
= control target key end

     0   :  { %s1270_s0 = inlined_call_operand.vmem [shape: bf16[32,128], index: 0, kind: input, shape index: {}]   ;;  %s1271_s3 = inlined_call_operand.vmem [shape: f32[1,128], index: 3, kind: input, shape index: {}]   ;;  %s1272_s4 = inlined_call_operand.vmem [shape: f32[1,128], index: 4, kind: input, shape index: {}]   ;;  %s1273_s1 = inlined_call_operand.vmem [shape: bf16[128,256], index: 1, kind: input, shape index: {}]   ;;  %s1274_s2 = inlined_call_operand.vmem [shape: f32[1,256], index: 2, kind: input, shape index: {}]   ;;  %s1275_s5 = inlined_call_operand.vmem [shape: bf16[32,256], index: 5, kind: output, shape index: {}]  }
   0x1   :  { %v789_v0 = vld [vmem:[%s1270_s0 + $0x8] sm:$0xff]   ;;  %v782_v1 = vld [vmem:[%s1270_s0] sm:$0xff]   ;;  %v751_v10 = vld [vmem:[%s1273_s1 + $0x70] sm:$0xf] }
   0x2   :  { %v868_v2 = vunpack.c.l.bf16 %v789_v0  ;;  %v870_v3 = vunpack.c.l.bf16 %v782_v1  ;;  %v876_v5 = vunpack.c.h.bf16 %v789_v0  ;;  %v878_v6 = vunpack.c.h.bf16 %v782_v1  ;;  %v780_v11 = vld [vmem:[%s1273_s1 + $0x74] sm:$0xf0]  ;;  %v779_v12 = vld [vmem:[%s1273_s1 + $0x74] sm:$0xf]  ;;  %v753_v14 = vld [vmem:[%s1273_s1 + $0x78] sm:$0xf0] }
   0x3   :  { %v752_v13 = vor.u32 %v780_v11, %v751_v10  ;;  %v756_v15 = vor.u32 %v779_v12, %v753_v14  ;;  %v743_v16 = vld [vmem:[%s1273_s1 + $0x60] sm:$0xf]  ;;  %v778_v17 = vld [vmem:[%s1273_s1 + $0x64] sm:$0xf0]  ;;  %v777_v18 = vld [vmem:[%s1273_s1 + $0x64] sm:$0xf] }
   0x4   :  { %44 = vadd.xlane.f32.xlu0 %v868_v2  ;;  %v54_v4 = vmul.f32 %v868_v2, %v868_v2  ;;  %40 = vadd.xlane.f32.xlu2 %v870_v3  ;;  %v55_v7 = vmul.f32 %v876_v5, %v876_v5  ;;  %v52_v8 = vmul.f32 %v870_v3, %v870_v3  ;;  %v745_v20 = vld [vmem:[%s1273_s1 + $0x68] sm:$0xf0]  ;;  %v735_v22 = vld [vmem:[%s1273_s1 + $0x50] sm:$0xf]  ;;  %v776_v23 = vld [vmem:[%s1273_s1 + $0x54] sm:$0xf0] }
   0x5   :  { %v53_v9 = vmul.f32 %v878_v6, %v878_v6  ;;  %790 = vmatpush.bf16.msra.mxu2 %v752_v13  ;;  %250 = vmatpush.bf16.msra.mxu0 %v752_v13  ;;  %v744_v19 = vor.u32 %v778_v17, %v743_v16  ;;  %v748_v21 = vor.u32 %v777_v18, %v745_v20  ;;  %v775_v24 = vld [vmem:[%s1273_s1 + $0x54] sm:$0xf]  ;;  %v737_v26 = vld [vmem:[%s1273_s1 + $0x58] sm:$0xf0]  ;;  %v727_v28 = vld [vmem:[%s1273_s1 + $0x40] sm:$0xf] }
   0x6   :  { %60 = vadd.xlane.f32.xlu1 %v54_v4  ;;  %798 = vmatpush.bf16.msra.mxu3 %v756_v15  ;;  %v736_v25 = vor.u32 %v776_v23, %v735_v22  ;;  %v740_v27 = vor.u32 %v775_v24, %v737_v26  ;;  %v774_v29 = vld [vmem:[%s1273_s1 + $0x44] sm:$0xf0]  ;;  %v773_v30 = vld [vmem:[%s1273_s1 + $0x44] sm:$0xf]  ;;  %v729_v32 = vld [vmem:[%s1273_s1 + $0x48] sm:$0xf0] }
   0x7   :  { %269 = vmatpush.bf16.msra.mxu1 %v756_v15  ;;  %v728_v31 = vor.u32 %v774_v29, %v727_v28  ;;  %v732_v33 = vor.u32 %v773_v30, %v729_v32  ;;  %v719_v34 = vld [vmem:[%s1273_s1 + $0x30] sm:$0xf]  ;;  %v772_v35 = vld [vmem:[%s1273_s1 + $0x34] sm:$0xf0]  ;;  %v771_v36 = vld [vmem:[%s1273_s1 + $0x34] sm:$0xf] }
   0x8   :  { %v720_v37 = vor.u32 %v772_v35, %v719_v34  ;;  %v721_v38 = vld [vmem:[%s1273_s1 + $0x38] sm:$0xf0]  ;;  %v711_v40 = vld [vmem:[%s1273_s1 + $0x20] sm:$0xf]  ;;  %v770_v41 = vld [vmem:[%s1273_s1 + $0x24] sm:$0xf0] }
   0x9   :  { %791 = vmatpush.bf16.msra.mxu2 %v744_v19  ;;  %251 = vmatpush.bf16.msra.mxu0 %v744_v19  ;;  %v724_v39 = vor.u32 %v771_v36, %v721_v38  ;;  %v769_v42 = vld [vmem:[%s1273_s1 + $0x24] sm:$0xf]  ;;  %v712_v43 = vor.u32 %v770_v41, %v711_v40  ;;  %v713_v44 = vld [vmem:[%s1273_s1 + $0x28] sm:$0xf0]  ;;  %v703_v49 = vld [vmem:[%s1273_s1 + $0x10] sm:$0xf] }
   0xa   :  { %799 = vmatpush.bf16.msra.mxu3 %v748_v21  ;;  %v716_v45 = vor.u32 %v769_v42, %v713_v44  ;;  %v768_v50 = vld [vmem:[%s1273_s1 + $0x14] sm:$0xf0]  ;;  %v767_v53 = vld [vmem:[%s1273_s1 + $0x14] sm:$0xf]  ;;  %v705_v54 = vld [vmem:[%s1273_s1 + $0x18] sm:$0xf0] }
   0xb   :  { %270 = vmatpush.bf16.msra.mxu1 %v748_v21  ;;  %v704_v52 = vor.u32 %v768_v50, %v703_v49  ;;  %v708_v57 = vor.u32 %v767_v53, %v705_v54  ;;  %v695_v59 = vld [vmem:[%s1273_s1] sm:$0xf]  ;;  %v766_v60 = vld [vmem:[%s1273_s1 + $0x4] sm:$0xf0]  ;;  %v765_v61 = vld [vmem:[%s1273_s1 + $0x4] sm:$0xf] }
   0xc   :  { %46 = vadd.xlane.f32.xlu0 %v876_v5  ;;  %42 = vadd.xlane.f32.xlu2 %v878_v6  ;;  %v696_v62 = vor.u32 %v766_v60, %v695_v59  ;;  %v697_v63 = vld [vmem:[%s1273_s1 + $0x8] sm:$0xf0] }
   0xd   :  { %792 = vmatpush.bf16.msra.mxu2 %v736_v25  ;;  %252 = vmatpush.bf16.msra.mxu0 %v736_v25  ;;  %v700_v1 = vor.u32 %v765_v61, %v697_v63 }
   0xe   :  { %62 = vadd.xlane.f32.xlu1 %v55_v7  ;;  %800 = vmatpush.bf16.msra.mxu3 %v740_v27 }
   0xf   :  { %271 = vmatpush.bf16.msra.mxu1 %v740_v27 }
  0x11   :  { %793 = vmatpush.bf16.msra.mxu2 %v728_v31  ;;  %253 = vmatpush.bf16.msra.mxu0 %v728_v31 }
  0x12   :  { %801 = vmatpush.bf16.msra.mxu3 %v732_v33 }
  0x13   :  { %272 = vmatpush.bf16.msra.mxu1 %v732_v33 }
  0x14   :  { %56 = vadd.xlane.f32.xlu0 %v52_v8 }
  0x15   :  { %794 = vmatpush.bf16.msra.mxu2 %v720_v37  ;;  %254 = vmatpush.bf16.msra.mxu0 %v720_v37 }
  0x16   :  { %58 = vadd.xlane.f32.xlu1 %v53_v9  ;;  %802 = vmatpush.bf16.msra.mxu3 %v724_v39 }
  0x17   :  { %273 = vmatpush.bf16.msra.mxu1 %v724_v39 }
  0x19   :  { %795 = vmatpush.bf16.msra.mxu2 %v712_v43  ;;  %255 = vmatpush.bf16.msra.mxu0 %v712_v43  ;;  %v806_v43 = vld [vmem:[%s1271_s3] ss:$0 sm:$0xff] }
  0x1a   :  { %803 = vmatpush.bf16.msra.mxu3 %v716_v45 }
  0x1b   :  { %274 = vmatpush.bf16.msra.mxu1 %v716_v45 }
  0x1d   :  { %796 = vmatpush.bf16.msra.mxu2 %v704_v52  ;;  %256 = vmatpush.bf16.msra.mxu0 %v704_v52  ;;  %v807_v52 = vld [vmem:[%s1272_s4] ss:$0 sm:$0xff] }
  0x1e   :  { %804 = vmatpush.bf16.msra.mxu3 %v708_v57 }
  0x1f   :  { %275 = vmatpush.bf16.msra.mxu1 %v708_v57 }
  0x21   :  { %797 = vmatpush.bf16.msra.mxu2 %v696_v62  ;;  %257 = vmatpush.bf16.msra.mxu0 %v696_v62 }
  0x22   :  { %805 = vmatpush.bf16.msra.mxu3 %v700_v1 }
  0x23   :  { %276 = vmatpush.bf16.msra.mxu1 %v700_v1 }
  0x77   :  { %v45_v46 = vpop.xlane.xlu0 %44  ;;  %v41_v47 = vpop.xlane.xlu2 %40 }
  0x78   :  { %v960_v48 = vmul.f32 0.015625, %v45_v46  ;;  %v988_v12 = vmul.f32 0.015625, %v41_v47 }
  0x79   :  { %v61_v51 = vpop.xlane.xlu1 %60 }
  0x7a   :  { %v70_v55 = vmul.f32 %v960_v48, %v960_v48  ;;  %v66_v56 = vmul.f32 0.015625, %v61_v51  ;;  %v68_v19 = vmul.f32 %v988_v12, %v988_v12  ;;  %v78_v38 = vsub.f32 %v868_v2, %v960_v48 }
  0x7c   :  { %v74_v58 = vsub.f32 %v66_v56, %v70_v55 }
  0x7e   :  { %v82_v0 = vadd.f32 1e-05, %v74_v58 }
  0x7f   :  { %v47_v4 = vpop.xlane.xlu0 %46  ;;  %v43_v9 = vpop.xlane.xlu2 %42 }
  0x80   :  { %808 = vrsqrt.f32 %v82_v0  ;;  %v51_v7 = vmul.f32 0.015625, %v47_v4  ;;  %v990_v14 = vmul.f32 0.015625, %v43_v9  ;;  %vm110_vm1 = vweird.f32 %v82_v0 }
  0x81   :  { %v63_v8 = vpop.xlane.xlu1 %62 }
  0x82   :  { %v71_v10 = vmul.f32 %v51_v7, %v51_v7  ;;  %v67_v11 = vmul.f32 0.015625, %v63_v8  ;;  %v69_v20 = vmul.f32 %v990_v14, %v990_v14  ;;  %v79_v47 = vsub.f32 %v876_v5, %v51_v7 }
  0x83   :  { %v76_v5 = vsub.f32 %v870_v3, %v988_v12  ;;  %v77_v62 = vsub.f32 %v878_v6, %v990_v14 }
  0x84   :  { %v75_v13 = vsub.f32 %v67_v11, %v71_v10  ;;  %v315_v11 = vld [vmem:[%s1274_s2] sm:$0x3] }
  0x85   :  { %v1012_v12 = vperm.slane %v315_v11, 0  ;;  %v1014_v6 = vperm.slane %v315_v11, 1 }
  0x86   :  { %v809_v15 = vpop.eup %808  ;;  %v83_v16 = vadd.f32 1e-05, %v75_v13 }
  0x87   :  { %v105_v17 = vmul.f32 %v809_v15, %v82_v0  ;;  %v57_v18 = vpop.xlane.xlu0 %56  ;;  %vm111_vm0 = vweird.f32 %v809_v15 }
  0x88   :  { %810 = vrsqrt.f32 %v83_v16  ;;  %v64_v21 = vmul.f32 0.015625, %v57_v18  ;;  %vm112_vm2 = vmor %vm110_vm1, %vm111_vm0  ;;  %vm120_vm4 = vweird.f32 %v83_v16 }
  0x89   :  { %v106_v22 = vmul.f32 %v809_v15, %v105_v17  ;;  %v59_v23 = vpop.xlane.xlu1 %58 }
  0x8a   :  { %v72_v24 = vsub.f32 %v64_v21, %v68_v19  ;;  %v65_v25 = vmul.f32 0.015625, %v59_v23 }
  0x8b   :  { %v107_v26 = vmul.f32 0.5, %v106_v22 }
  0x8c   :  { %v80_v27 = vadd.f32 1e-05, %v72_v24  ;;  %v73_v28 = vsub.f32 %v65_v25, %v69_v20 }
  0x8d   :  { %v108_v29 = vsub.f32 1.5, %v107_v26 }
  0x8e   :  { %v811_v30 = vpop.eup %810  ;;  %812 = vrsqrt.f32 %v80_v27  ;;  %v81_v31 = vadd.f32 1e-05, %v73_v28  ;;  %vm90_vm7 = vweird.f32 %v80_v27 }
  0x8f   :  { %v109_v32 = vmul.f32 %v809_v15, %v108_v29  ;;  %v115_v33 = vmul.f32 %v811_v30, %v83_v16  ;;  %vm121_vm3 = vweird.f32 %v811_v30 }
  0x90   :  { %814 = vrsqrt.f32 %v81_v31  ;;  %vm122_vm5 = vmor %vm120_vm4, %vm121_vm3  ;;  %vm100_vm10 = vweird.f32 %v81_v31 }
  0x91   :  { %v116_v34 = vmul.f32 %v811_v30, %v115_v33  ;;  %v113_v36 = vsel %vm112_vm2, %v809_v15, %v109_v32 }
  0x92   :  { %v126_v42 = vmul.f32 %v113_v36, %v78_v38 }
  0x93   :  { %v117_v35 = vmul.f32 0.5, %v116_v34 }
  0x94   :  { %v813_v37 = vpop.eup %812  ;;  %v134_v48 = vmul.f32 %v806_v43, %v126_v42 }
  0x95   :  { %v118_v39 = vsub.f32 1.5, %v117_v35  ;;  %v85_v40 = vmul.f32 %v813_v37, %v80_v27  ;;  %vm91_vm6 = vweird.f32 %v813_v37 }
  0x96   :  { %v815_v41 = vpop.eup %814  ;;  %vm92_vm9 = vmor %vm90_vm7, %vm91_vm6  ;;  %v142_v58 = vadd.f32 %v807_v52, %v134_v48 }
  0x97   :  { %v119_v44 = vmul.f32 %v811_v30, %v118_v39  ;;  %v86_v45 = vmul.f32 %v813_v37, %v85_v40  ;;  %v95_v46 = vmul.f32 %v815_v41, %v81_v31  ;;  %vm101_vm8 = vweird.f32 %v815_v41 }
  0x98   :  { %vm102_vm11 = vmor %vm100_vm10, %vm101_vm8 }
  0x99   :  { %v87_v49 = vmul.f32 0.5, %v86_v45  ;;  %v96_v50 = vmul.f32 %v815_v41, %v95_v46  ;;  %v123_v51 = vsel %vm122_vm5, %v811_v30, %v119_v44 }
  0x9a   :  { %v127_v2 = vmul.f32 %v123_v51, %v79_v47 }
  0x9b   :  { %v88_v53 = vsub.f32 1.5, %v87_v49  ;;  %v97_v54 = vmul.f32 0.5, %v96_v50 }
  0x9c   :  { %v135_v55 = vmul.f32 %v806_v43, %v127_v2 }
  0x9d   :  { %v89_v56 = vmul.f32 %v813_v37, %v88_v53  ;;  %v98_v57 = vsub.f32 1.5, %v97_v54 }
  0x9e   :  { %v143_v59 = vadd.f32 %v807_v52, %v135_v55 }
  0x9f   :  { %v99_v60 = vmul.f32 %v815_v41, %v98_v57  ;;  %v93_v61 = vsel %vm92_vm9, %v813_v37, %v89_v56 }
  0xa0   :  { %v145_v63 = vpack.c.bf16 %v143_v59, %v142_v58  ;;  %v124_v0 = vmul.f32 %v93_v61, %v76_v5 }
  0xa1   :  { %v103_v1 = vsel %vm102_vm11, %v815_v41, %v99_v60 }
  0xa2   :  { %263 = vmatmul.bf16.vlgmr.msra.gmra.mxu2 %v145_v63  ;;  %282 = vmatmul.bf16.vlgmr.msra.gmra.mxu3 %v145_v63  ;;  %v125_v4 = vmul.f32 %v103_v1, %v77_v62  ;;  %v132_v7 = vmul.f32 %v806_v43, %v124_v0 }
  0xa4   :  { %v133_v8 = vmul.f32 %v806_v43, %v125_v4  ;;  %v140_v9 = vadd.f32 %v807_v52, %v132_v7 }
  0xa6   :  { %v141_v3 = vadd.f32 %v807_v52, %v133_v8 }
  0xa8   :  { %v144_v10 = vpack.c.bf16 %v141_v3, %v140_v9 }
  0xaa   :  { %258 = vmatmul.bf16.vlgmr.msra.gmra.mxu0 %v144_v10  ;;  %277 = vmatmul.bf16.vlgmr.msra.gmra.mxu1 %v144_v10 }
 0x125   :  { %v264_v13 = vpop.f32.mrf.mxu2  ;;  %v283_v14 = vpop.f32.mrf.mxu3 }
 0x126   :  { %v1017_v15 = vadd.f32 %v1012_v12, %v264_v13  ;;  %v1020_v16 = vadd.f32 %v1014_v6, %v283_v14 }
 0x127   :  { %v259_v17 = vpop.f32.mrf.mxu0  ;;  %v278_v18 = vpop.f32.mrf.mxu1 }
 0x128   :  { %v1023_v19 = vmul.f32 0.70710677, %v1017_v15  ;;  %v1026_v20 = vmul.f32 0.70710677, %v1020_v16  ;;  %v1029_v21 = vadd.f32 %v1012_v12, %v259_v17  ;;  %v1032_v22 = vadd.f32 %v1014_v6, %v278_v18 }
 0x12a   :  { %v505_v23 = vmul.f32 %v1023_v19, %v1023_v19  ;;  %v545_v24 = vmul.f32 %v1026_v20, %v1026_v20  ;;  %v1039_v25 = vmul.f32 0.70710677, %v1029_v21  ;;  %v1042_v26 = vmul.f32 0.70710677, %v1032_v22 }
 0x12c   :  { %v1044_v27 = vmin.f32 %v505_v23, 16.0  ;;  %v1046_v28 = vmin.f32 %v545_v24, 16.0  ;;  %v345_v29 = vmul.f32 %v1039_v25, %v1039_v25  ;;  %v385_v30 = vmul.f32 %v1042_v26, %v1042_v26 }
 0x12e   :  { %v507_v31 = vmul.f32 2.1237322e-06, %v1044_v27  ;;  %v518_v32 = vmul.f32 3.8918573e-05, %v1044_v27  ;;  %v547_v33 = vmul.f32 2.1237322e-06, %v1046_v28 }
 0x12f   :  { %v558_v34 = vmul.f32 3.8918573e-05, %v1046_v28  ;;  %v1056_v35 = vmin.f32 %v345_v29, 16.0  ;;  %v1058_v36 = vmin.f32 %v385_v30, 16.0 }
 0x130   :  { %v508_v37 = vadd.f32 0.00028619796, %v507_v31  ;;  %v519_v38 = vadd.f32 0.001143296, %v518_v32  ;;  %v548_v39 = vadd.f32 0.00028619796, %v547_v33 }
 0x131   :  { %v559_v40 = vadd.f32 0.001143296, %v558_v34  ;;  %v347_v41 = vmul.f32 2.1237322e-06, %v1056_v35  ;;  %v358_v42 = vmul.f32 3.8918573e-05, %v1056_v35 }
 0x132   :  { %v509_v43 = vmul.f32 %v508_v37, %v1044_v27  ;;  %v520_v44 = vmul.f32 %v519_v38, %v1044_v27  ;;  %v549_v45 = vmul.f32 %v548_v39, %v1046_v28  ;;  %v387_v46 = vmul.f32 2.1237322e-06, %v1058_v36 }
 0x133   :  { %v560_v47 = vmul.f32 %v559_v40, %v1046_v28  ;;  %v348_v49 = vadd.f32 0.00028619796, %v347_v41  ;;  %v359_v50 = vadd.f32 0.001143296, %v358_v42  ;;  %v398_v51 = vmul.f32 3.8918573e-05, %v1058_v36 }
 0x134   :  { %v510_v2 = vadd.f32 0.0036580483, %v509_v43  ;;  %v521_v48 = vadd.f32 0.014752088, %v520_v44  ;;  %v550_v52 = vadd.f32 0.0036580483, %v549_v45 }
 0x135   :  { %v561_v53 = vadd.f32 0.014752088, %v560_v47  ;;  %v349_v54 = vmul.f32 %v348_v49, %v1056_v35  ;;  %v360_v55 = vmul.f32 %v359_v50, %v1056_v35  ;;  %v388_v56 = vadd.f32 0.00028619796, %v387_v46 }
 0x136   :  { %v511_v57 = vmul.f32 %v510_v2, %v1044_v27  ;;  %v522_v5 = vmul.f32 %v521_v48, %v1044_v27  ;;  %v551_v58 = vmul.f32 %v550_v52, %v1046_v28  ;;  %v399_v59 = vadd.f32 0.001143296, %v398_v51  ;;  %v266_v48 = vpop.f32.mrf.mxu2 }
 0x137   :  { %v562_v60 = vmul.f32 %v561_v53, %v1046_v28  ;;  %v350_v61 = vadd.f32 0.0036580483, %v349_v54  ;;  %v361_v62 = vadd.f32 0.014752088, %v360_v55  ;;  %v389_v63 = vmul.f32 %v388_v56, %v1058_v36  ;;  %v285_v55 = vpop.f32.mrf.mxu3 }
 0x138   :  { %v512_v0 = vadd.f32 0.05243302, %v511_v57  ;;  %v523_v1 = vadd.f32 0.112945676, %v522_v5  ;;  %v552_v4 = vadd.f32 0.05243302, %v551_v58  ;;  %v400_v7 = vmul.f32 %v399_v59, %v1058_v36 }
 0x139   :  { %v563_v8 = vadd.f32 0.112945676, %v562_v60  ;;  %v351_v9 = vmul.f32 %v350_v61, %v1056_v35  ;;  %v362_v3 = vmul.f32 %v361_v62, %v1056_v35  ;;  %v390_v10 = vadd.f32 0.0036580483, %v389_v63 }
 0x13a   :  { %v513_v11 = vmul.f32 %v512_v0, %v1044_v27  ;;  %v524_v13 = vmul.f32 %v523_v1, %v1044_v27  ;;  %v553_v14 = vmul.f32 %v552_v4, %v1046_v28  ;;  %v401_v17 = vadd.f32 0.014752088, %v400_v7 }
 0x13b   :  { %v564_v18 = vmul.f32 %v563_v8, %v1046_v28  ;;  %v352_v23 = vadd.f32 0.05243302, %v351_v9  ;;  %v363_v24 = vadd.f32 0.112945676, %v362_v3  ;;  %v391_v29 = vmul.f32 %v390_v10, %v1058_v36 }
 0x13c   :  { %v514_v30 = vadd.f32 0.18741608, %v513_v11  ;;  %v525_v31 = vadd.f32 0.4994258, %v524_v13  ;;  %v554_v32 = vadd.f32 0.18741608, %v553_v14  ;;  %v402_v33 = vmul.f32 %v401_v17, %v1058_v36 }
 0x13d   :  { %v565_v34 = vadd.f32 0.4994258, %v564_v18  ;;  %v353_v37 = vmul.f32 %v352_v23, %v1056_v35  ;;  %v364_v38 = vmul.f32 %v363_v24, %v1056_v35  ;;  %v392_v39 = vadd.f32 0.05243302, %v391_v29 }
 0x13e   :  { %v515_v40 = vmul.f32 %v514_v30, %v1044_v27  ;;  %v526_v41 = vmul.f32 %v525_v31, %v1044_v27  ;;  %v403_v42 = vadd.f32 0.112945676, %v402_v33  ;;  %v555_v49 = vmul.f32 %v554_v32, %v1046_v28 }
 0x13f   :  { %v566_v43 = vmul.f32 %v565_v34, %v1046_v28  ;;  %v354_v44 = vadd.f32 0.18741608, %v353_v37  ;;  %v365_v45 = vadd.f32 0.4994258, %v364_v38  ;;  %v393_v46 = vmul.f32 %v392_v39, %v1058_v36  ;;  %v261_v28 = vpop.f32.mrf.mxu0 }
 0x140   :  { %v1090_v47 = vadd.f32 1.0, %v526_v41  ;;  %v404_v2 = vmul.f32 %v403_v42, %v1058_v36  ;;  %v1099_v52 = vmul.f32 0.5, %v1017_v15  ;;  %v516_v53 = vadd.f32 1.1283791, %v515_v40 }
 0x141   :  { %v1093_v50 = vadd.f32 1.0, %v566_v43  ;;  %v366_v51 = vmul.f32 %v365_v45, %v1056_v35  ;;  %v394_v27 = vadd.f32 0.18741608, %v393_v46  ;;  %v355_v54 = vmul.f32 %v354_v44, %v1056_v35 }
 0x142   :  { %816 = vrcp.f32 %v1090_v47  ;;  %v537_v56 = vand.u32 2147483647, %v1090_v47  ;;  %v1105_v57 = vmul.f32 0.5, %v1020_v16  ;;  %v556_v5 = vadd.f32 1.1283791, %v555_v49 }
 0x143   :  { %818 = vrcp.f32 %v1093_v50  ;;  %v1108_v58 = vadd.f32 %v1012_v12, %v266_v48  ;;  %v539_v59 = vand.u32 2147483648, %v1090_v47  ;;  %v579_v15 = vand.u32 2147483648, %v1093_v50 }
 0x144   :  { %v1112_v60 = vadd.f32 1.0, %v366_v51  ;;  %v405_v61 = vadd.f32 0.4994258, %v404_v2  ;;  %v577_v35 = vand.u32 2147483647, %v1093_v50  ;;  %v395_v62 = vmul.f32 %v394_v27, %v1058_v36 }
 0x145   :  { %v1117_v63 = vadd.f32 %v1014_v6, %v285_v55  ;;  %v1120_v16 = vadd.f32 %v1012_v12, %v261_v28  ;;  %v517_v0 = vmul.f32 %v516_v53, %v1023_v19  ;;  %vm533_vm12 = vweird.f32 %v1090_v47 }
 0x146   :  { %v356_v1 = vadd.f32 1.1283791, %v355_v54  ;;  %820 = vrcp.f32 %v1112_v60  ;;  %v557_v7 = vmul.f32 %v556_v5, %v1026_v20  ;;  %vm573_vm13 = vweird.f32 %v1093_v50 }
 0x147   :  { %v406_v8 = vmul.f32 %v405_v61, %v1058_v36  ;;  %v1129_v9 = vmul.f32 0.70710677, %v1108_v58  ;;  %vm1132_vm14 = vcmp.eq.f32.partialorder %v537_v56, 8.507059e+37  ;;  %v540_v10 = vor.u32 1.1754944e-38, %v539_v59 }
 0x148   :  { %v817_v4 = vpop.eup %816  ;;  %v580_v11 = vor.u32 1.1754944e-38, %v579_v15  ;;  %v379_v13 = vand.u32 2147483648, %v1112_v60  ;;  %vm1138_vm15 = vcmp.eq.f32.partialorder %v577_v35, 8.507059e+37  ;;  %v377_v36 = vand.u32 2147483647, %v1112_v60 }
 0x149   :  { %v819_v3 = vpop.eup %818  ;;  %v529_v12 = vmul.f32 %v817_v4, %v1090_v47  ;;  %v396_v17 = vadd.f32 1.1283791, %v395_v62  ;;  %v1143_v18 = vadd.f32 1.0, %v406_v8  ;;  %v357_v24 = vmul.f32 %v356_v1, %v1039_v25 }
 0x14a   :  { %v569_v20 = vmul.f32 %v819_v3, %v1093_v50  ;;  %v585_v29 = vmul.f32 %v1129_v9, %v1129_v9  ;;  %v1149_v30 = vmul.f32 0.70710677, %v1117_v63  ;;  %vm534_vm0 = vweird.f32 %v817_v4 }
 0x14b   :  { %v530_v23 = vsub.f32 1.0, %v529_v12  ;;  %vm373_vm1 = vweird.f32 %v1112_v60  ;;  %822 = vrcp.f32 %v1143_v18  ;;  %v380_v34 = vor.u32 1.1754944e-38, %v379_v13  ;;  %vm535_vm4 = vmor %vm533_vm12, %vm534_vm0 }
 0x14c   :  { %v570_v31 = vsub.f32 1.0, %v569_v20  ;;  %v821_v32 = vpop.eup %820  ;;  %v1153_v37 = vmin.f32 %v585_v29, 16.0  ;;  %v625_v25 = vmul.f32 %v1149_v30, %v1149_v30  ;;  %vm574_vm2 = vweird.f32 %v819_v3 }
 0x14d   :  { %v531_v33 = vmul.f32 %v817_v4, %v530_v23  ;;  %v369_v39 = vmul.f32 %v821_v32, %v1112_v60  ;;  %vm1158_vm3 = vcmp.eq.f32.partialorder %v377_v36, 8.507059e+37  ;;  %v1163_v41 = vmul.f32 %v396_v17, %v1042_v26  ;;  %vm575_vm5 = vmor %vm573_vm13, %vm574_vm2 }
 0x14e   :  { %v571_v38 = vmul.f32 %v819_v3, %v570_v31  ;;  %v417_v43 = vand.u32 2147483647, %v1143_v18  ;;  %v587_v44 = vmul.f32 2.1237322e-06, %v1153_v37  ;;  %v598_v45 = vmul.f32 3.8918573e-05, %v1153_v37  ;;  %v280_v31 = vpop.f32.mrf.mxu1 }
 0x14f   :  { %v532_v42 = vadd.f32 %v817_v4, %v531_v33  ;;  %v370_v49 = vsub.f32 1.0, %v369_v39  ;;  %v419_v51 = vand.u32 2147483648, %v1143_v18  ;;  %v1172_v2 = vmin.f32 %v625_v25, 16.0 }
 0x150   :  { %v572_v46 = vadd.f32 %v819_v3, %v571_v38  ;;  %vm374_vm6 = vweird.f32 %v821_v32  ;;  %vm413_vm7 = vweird.f32 %v1143_v18  ;;  %v588_v26 = vadd.f32 0.00028619796, %v587_v44 }
 0x151   :  { %v536_v48 = vsel %vm535_vm4, %v817_v4, %v532_v42  ;;  %v599_v27 = vadd.f32 0.001143296, %v598_v45  ;;  %v823_v53 = vpop.eup %822  ;;  %v371_v55 = vmul.f32 %v821_v32, %v370_v49  ;;  %v627_v28 = vmul.f32 2.1237322e-06, %v1172_v2  ;;  %vm375_vm8 = vmor %vm373_vm1, %vm374_vm6 }
 0x152   :  { %v541_v47 = vsel %vm1132_vm14, %v540_v10, %v536_v48  ;;  %v576_v54 = vsel %vm575_vm5, %v819_v3, %v572_v46  ;;  %v409_v50 = vmul.f32 %v823_v53, %v1143_v18  ;;  %v1184_v59 = vmul.f32 0.70710677, %v1120_v16 }
 0x153   :  { %v542_v56 = vmul.f32 %v541_v47, %v517_v0  ;;  %v581_v5 = vsel %vm1138_vm15, %v580_v11, %v576_v54  ;;  %v372_v61 = vadd.f32 %v821_v32, %v371_v55  ;;  %v589_v35 = vmul.f32 %v588_v26, %v1153_v37 }
 0x154   :  { %v582_v15 = vmul.f32 %v581_v5, %v557_v7  ;;  %v600_v62 = vmul.f32 %v599_v27, %v1153_v37  ;;  %v410_v0 = vsub.f32 1.0, %v409_v50  ;;  %v628_v4 = vadd.f32 0.00028619796, %v627_v28 }
 0x155   :  { %v761_v1 = vclamps-f32 %v542_v56, 1.0  ;;  %v638_v8 = vmul.f32 3.8918573e-05, %v1172_v2  ;;  %v376_v12 = vsel %vm375_vm8, %v821_v32, %v372_v61  ;;  %vm414_vm9 = vweird.f32 %v823_v53 }
 0x156   :  { %v762_v3 = vclamps-f32 %v582_v15, 1.0  ;;  %v601_v19 = vadd.f32 0.014752088, %v600_v62  ;;  %v381_v7 = vsel %vm1158_vm3, %v380_v34, %v376_v12  ;;  %v411_v11 = vmul.f32 %v823_v53, %v410_v0  ;;  %vm415_vm11 = vmor %vm413_vm7, %vm414_vm9 }
 0x157   :  { %v669_v10 = vadd.f32 1.0, %v761_v1  ;;  %v590_v13 = vadd.f32 0.0036580483, %v589_v35  ;;  %v382_v14 = vmul.f32 %v381_v7, %v357_v24  ;;  %v629_v60 = vmul.f32 %v628_v4, %v1172_v2 }
 0x158   :  { %v670_v20 = vadd.f32 1.0, %v762_v3  ;;  %v602_v36 = vmul.f32 %v601_v19, %v1153_v37  ;;  %v412_v23 = vadd.f32 %v823_v53, %v411_v11  ;;  %vm418_vm10 = vcmp.eq.f32.partialorder %v417_v43, 8.507059e+37 }
 0x159   :  { %v677_v17 = vmul.f32 %v669_v10, %v1099_v52  ;;  %v639_v29 = vadd.f32 0.001143296, %v638_v8  ;;  %v757_v33 = vclamps-f32 %v382_v14, 1.0  ;;  %v420_v34 = vor.u32 1.1754944e-38, %v419_v51 }
 0x15a   :  { %v678_v32 = vmul.f32 %v670_v20, %v1105_v57  ;;  %v603_v25 = vadd.f32 0.112945676, %v602_v36  ;;  %v416_v24 = vsel %vm415_vm11, %v823_v53, %v412_v23  ;;  %v591_v38 = vmul.f32 %v590_v13, %v1153_v37 }
 0x15b   :  { %v640_v39 = vmul.f32 %v639_v29, %v1172_v2  ;;  %v425_v52 = vmul.f32 %v1184_v59, %v1184_v59  ;;  %v421_v42 = vsel %vm418_vm10, %v420_v34, %v416_v24  ;;  %v630_v43 = vadd.f32 0.0036580483, %v629_v60 }
 0x15c   :  { %v683_v40 = vpack.c.bf16 %v678_v32, %v677_v17  ;;  %v1206_v57 = vadd.f32 %v1014_v6, %v280_v31  ;;  %v665_v44 = vadd.f32 1.0, %v757_v33  ;;  %v422_v18 = vmul.f32 %v421_v42, %v1163_v41 }
 0x15d   :  { %v604_v45 = vmul.f32 %v603_v25, %v1153_v37  ;;  %v641_v46 = vadd.f32 0.014752088, %v640_v39  ;;  %v329_v49 = vmul.f32 0.5, %v1029_v21  ;;  %v330_v51 = vmul.f32 0.5, %v1032_v22 }
 0x15e   :  { %687 = vst [vmem:[%s1275_s5 + $0x10] sm:$0xff] %v683_v40  ;;  %v1215_v48 = vmin.f32 %v425_v52, 16.0  ;;  %v758_v26 = vclamps-f32 %v422_v18, 1.0  ;;  %v592_v27 = vadd.f32 0.05243302, %v591_v38  ;;  %v631_v41 = vmul.f32 %v630_v43, %v1172_v2 }
 0x15f   :  { %v605_v6 = vadd.f32 0.4994258, %v604_v45  ;;  %v642_v53 = vmul.f32 %v641_v46, %v1172_v2  ;;  %v1222_v55 = vmul.f32 0.70710677, %v1206_v57  ;;  %v673_v28 = vmul.f32 %v665_v44, %v329_v49 }
 0x160   :  { %v427_v47 = vmul.f32 2.1237322e-06, %v1215_v48  ;;  %v438_v54 = vmul.f32 3.8918573e-05, %v1215_v48  ;;  %v666_v21 = vadd.f32 1.0, %v758_v26  ;;  %v593_v35 = vmul.f32 %v592_v27, %v1153_v37 }
 0x161   :  { %v606_v22 = vmul.f32 %v605_v6, %v1153_v37  ;;  %v643_v56 = vadd.f32 0.112945676, %v642_v53  ;;  %v465_v15 = vmul.f32 %v1222_v55, %v1222_v55  ;;  %v632_v3 = vadd.f32 0.05243302, %v631_v41 }
 0x162   :  { %v428_v5 = vadd.f32 0.00028619796, %v427_v47  ;;  %v439_v50 = vadd.f32 0.001143296, %v438_v54  ;;  %v674_v61 = vmul.f32 %v666_v21, %v330_v51  ;;  %v594_v10 = vadd.f32 0.18741608, %v593_v35 }
 0x163   :  { %v607_v62 = vadd.f32 1.0, %v606_v22  ;;  %v644_v1 = vmul.f32 %v643_v56, %v1172_v2  ;;  %v1230_v4 = vmin.f32 %v465_v15, 16.0  ;;  %v633_v20 = vmul.f32 %v632_v3, %v1172_v2 }
 0x164   :  { %v440_v0 = vmul.f32 %v439_v50, %v1215_v48  ;;  %v681_v8 = vpack.c.bf16 %v674_v61, %v673_v28  ;;  %v429_v19 = vmul.f32 %v428_v5, %v1215_v48  ;;  %v595_v31 = vmul.f32 %v594_v10, %v1153_v37 }
 0x165   :  { %824 = vrcp.f32 %v607_v62  ;;  %v645_v12 = vadd.f32 0.4994258, %v644_v1  ;;  %v467_v13 = vmul.f32 2.1237322e-06, %v1230_v4  ;;  %v478_v36 = vmul.f32 3.8918573e-05, %v1230_v4 }
 0x166   :  { %685 = vst [vmem:[%s1275_s5] sm:$0xff] %v681_v8  ;;  %v441_v7 = vadd.f32 0.014752088, %v440_v0  ;;  %v430_v17 = vadd.f32 0.0036580483, %v429_v19  ;;  %v634_v25 = vadd.f32 0.18741608, %v633_v20  ;;  %vm613_vm13 = vweird.f32 %v607_v62 }
 0x167   :  { %v646_v11 = vmul.f32 %v645_v12, %v1172_v2  ;;  %v468_v23 = vadd.f32 0.00028619796, %v467_v13  ;;  %v479_v33 = vadd.f32 0.001143296, %v478_v36  ;;  %v596_v42 = vadd.f32 1.1283791, %v595_v31 }
 0x168   :  { %v442_v14 = vmul.f32 %v441_v7, %v1215_v48  ;;  %v431_v39 = vmul.f32 %v430_v17, %v1215_v48  ;;  %v619_v43 = vand.u32 2147483648, %v607_v62  ;;  %v617_v37 = vand.u32 2147483647, %v607_v62 }
 0x169   :  { %v647_v60 = vadd.f32 1.0, %v646_v11  ;;  %v469_v52 = vmul.f32 %v468_v23, %v1230_v4  ;;  %v480_v40 = vmul.f32 %v479_v33, %v1230_v4  ;;  %v635_v46 = vmul.f32 %v634_v25, %v1172_v2 }
 0x16a   :  { %v443_v32 = vadd.f32 0.112945676, %v442_v14  ;;  %v432_v27 = vadd.f32 0.05243302, %v431_v39  ;;  %v620_v41 = vor.u32 1.1754944e-38, %v619_v43  ;;  %v597_v28 = vmul.f32 %v596_v42, %v1129_v9 }
 0x16b   :  { %v825_v29 = vpop.eup %824  ;;  %826 = vrcp.f32 %v647_v60  ;;  %v481_v45 = vadd.f32 0.014752088, %v480_v40  ;;  %v470_v6 = vadd.f32 0.0036580483, %v469_v52  ;;  %vm618_vm15 = vcmp.eq.f32.partialorder %v617_v37, 8.507059e+37 }
 0x16c   :  { %v609_v34 = vmul.f32 %v825_v29, %v607_v62  ;;  %v444_v24 = vmul.f32 %v443_v32, %v1215_v48  ;;  %vm614_vm12 = vweird.f32 %v825_v29  ;;  %v636_v5 = vadd.f32 1.1283791, %v635_v46 }
 0x16d   :  { %v482_v53 = vmul.f32 %v481_v45, %v1230_v4  ;;  %vm615_vm14 = vmor %vm613_vm13, %vm614_vm12  ;;  %v659_v15 = vand.u32 2147483648, %v647_v60  ;;  %v433_v61 = vmul.f32 %v432_v27, %v1215_v48  ;;  %v471_v35 = vmul.f32 %v470_v6, %v1230_v4 }
 0x16e   :  { %v610_v38 = vsub.f32 1.0, %v609_v34  ;;  %v445_v44 = vadd.f32 0.4994258, %v444_v24  ;;  %v657_v1 = vand.u32 2147483647, %v647_v60  ;;  %vm653_vm1 = vweird.f32 %v647_v60 }
 0x16f   :  { %v483_v22 = vadd.f32 0.112945676, %v482_v53  ;;  %v660_v12 = vor.u32 1.1754944e-38, %v659_v15  ;;  %v434_v19 = vadd.f32 0.18741608, %v433_v61  ;;  %v637_v11 = vmul.f32 %v636_v5, %v1149_v30 }
 0x170   :  { %v611_v18 = vmul.f32 %v825_v29, %v610_v38  ;;  %v446_v49 = vmul.f32 %v445_v44, %v1215_v48  ;;  %v472_v10 = vadd.f32 0.05243302, %v471_v35  ;;  %vm658_vm3 = vcmp.eq.f32.partialorder %v657_v1, 8.507059e+37 }
 0x171   :  { %v827_v51 = vpop.eup %826  ;;  %v484_v0 = vmul.f32 %v483_v22, %v1230_v4  ;;  %v435_v31 = vmul.f32 %v434_v19, %v1215_v48  ;;  %v335_v33 = vmul.f32 0.5, %v1108_v58  ;;  %v336_v39 = vmul.f32 0.5, %v1117_v63 }
 0x172   :  { %v612_v26 = vadd.f32 %v825_v29, %v611_v18  ;;  %v649_v47 = vmul.f32 %v827_v51, %v647_v60  ;;  %v447_v54 = vadd.f32 1.0, %v446_v49  ;;  %vm654_vm0 = vweird.f32 %v827_v51 }
 0x173   :  { %v485_v3 = vadd.f32 0.4994258, %v484_v0  ;;  %vm655_vm2 = vmor %vm653_vm1, %vm654_vm0  ;;  %v473_v32 = vmul.f32 %v472_v10, %v1230_v4  ;;  %v436_v40 = vadd.f32 1.1283791, %v435_v31  ;;  %v331_v5 = vmul.f32 0.5, %v1120_v16 }
 0x174   :  { %v616_v21 = vsel %vm615_vm14, %v825_v29, %v612_v26  ;;  %v650_v2 = vsub.f32 1.0, %v649_v47  ;;  %828 = vrcp.f32 %v447_v54  ;;  %v459_v25 = vand.u32 2147483648, %v447_v54 }
 0x175   :  { %v621_v56 = vsel %vm618_vm15, %v620_v41, %v616_v21  ;;  %v486_v20 = vmul.f32 %v485_v3, %v1230_v4  ;;  %v457_v24 = vand.u32 2147483647, %v447_v54  ;;  %vm453_vm5 = vweird.f32 %v447_v54 }
 0x176   :  { %v622_v50 = vmul.f32 %v621_v56, %v597_v28  ;;  %v651_v62 = vmul.f32 %v827_v51, %v650_v2  ;;  %v474_v43 = vadd.f32 0.18741608, %v473_v32  ;;  %v460_v44 = vor.u32 1.1754944e-38, %v459_v25 }
 0x177   :  { %v487_v29 = vadd.f32 1.0, %v486_v20  ;;  %vm458_vm7 = vcmp.eq.f32.partialorder %v457_v24, 8.507059e+37  ;;  %v437_v46 = vmul.f32 %v436_v40, %v1184_v59  ;;  %v332_v15 = vmul.f32 0.5, %v1206_v57 }
 0x178   :  { %v763_v8 = vclamps-f32 %v622_v50, 1.0  ;;  %v652_v9 = vadd.f32 %v827_v51, %v651_v62  ;;  %v475_v49 = vmul.f32 %v474_v43, %v1230_v4 }
 0x179   :  { %830 = vrcp.f32 %v487_v29  ;;  %v499_v27 = vand.u32 2147483648, %v487_v29  ;;  %v497_v41 = vand.u32 2147483647, %v487_v29  ;;  %vm493_vm9 = vweird.f32 %v487_v29 }
 0x17a   :  { %v829_v7 = vpop.eup %828  ;;  %v656_v13 = vsel %vm655_vm2, %v827_v51, %v652_v9  ;;  %v671_v17 = vadd.f32 1.0, %v763_v8  ;;  %v476_v6 = vadd.f32 1.1283791, %v475_v49 }
 0x17b   :  { %v661_v14 = vsel %vm658_vm3, %v660_v12, %v656_v13  ;;  %v449_v36 = vmul.f32 %v829_v7, %v447_v54  ;;  %vm454_vm4 = vweird.f32 %v829_v7  ;;  %v500_v28 = vor.u32 1.1754944e-38, %v499_v27 }
 0x17c   :  { %v662_v23 = vmul.f32 %v661_v14, %v637_v11  ;;  %v679_v38 = vmul.f32 %v671_v17, %v335_v33  ;;  %vm455_vm6 = vmor %vm453_vm5, %vm454_vm4  ;;  %v477_v59 = vmul.f32 %v476_v6, %v1222_v55  ;;  %vm498_vm11 = vcmp.eq.f32.partialorder %v497_v41, 8.507059e+37 }
 0x17d   :  { %v450_v60 = vsub.f32 1.0, %v449_v36 }
 0x17e   :  { %v764_v34 = vclamps-f32 %v662_v23, 1.0 }
 0x17f   :  { %v451_v30 = vmul.f32 %v829_v7, %v450_v60  ;;  %v831_v58 = vpop.eup %830 }
 0x180   :  { %v672_v52 = vadd.f32 1.0, %v764_v34  ;;  %v489_v51 = vmul.f32 %v831_v58, %v487_v29  ;;  %vm494_vm8 = vweird.f32 %v831_v58 }
 0x181   :  { %v452_v42 = vadd.f32 %v829_v7, %v451_v30  ;;  %vm495_vm10 = vmor %vm493_vm9, %vm494_vm8 }
 0x182   :  { %v680_v48 = vmul.f32 %v672_v52, %v336_v39  ;;  %v490_v26 = vsub.f32 1.0, %v489_v51 }
 0x183   :  { %v456_v18 = vsel %vm455_vm6, %v829_v7, %v452_v42 }
 0x184   :  { %v684_v37 = vpack.c.bf16 %v680_v48, %v679_v38  ;;  %v461_v45 = vsel %vm458_vm7, %v460_v44, %v456_v18  ;;  %v491_v53 = vmul.f32 %v831_v58, %v490_v26 }
 0x185   :  { %v462_v63 = vmul.f32 %v461_v45, %v437_v46 }
 0x186   :  { %688 = vst [vmem:[%s1275_s5 + $0x18] sm:$0xff] %v684_v37  ;;  %v492_v54 = vadd.f32 %v831_v58, %v491_v53 }
 0x187   :  { %v759_v47 = vclamps-f32 %v462_v63, 1.0 }
 0x188   :  { %v496_v4 = vsel %vm495_vm10, %v831_v58, %v492_v54 }
 0x189   :  { %v501_v21 = vsel %vm498_vm11, %v500_v28, %v496_v4  ;;  %v667_v22 = vadd.f32 1.0, %v759_v47 }
 0x18a   :  { %v502_v56 = vmul.f32 %v501_v21, %v477_v59 }
 0x18b   :  { %v675_v50 = vmul.f32 %v667_v22, %v331_v5 }
 0x18c   :  { %v760_v2 = vclamps-f32 %v502_v56, 1.0 }
 0x18e   :  { %v668_v61 = vadd.f32 1.0, %v760_v2 }
 0x190   :  { %v676_v35 = vmul.f32 %v668_v61, %v332_v15 }
 0x192   :  { %v682_v62 = vpack.c.bf16 %v676_v35, %v675_v50 }
 0x194   :  { %686 = vst [vmem:[%s1275_s5 + $0x8] sm:$0xff] %v682_v62 }

// kernel: swin_forward.48
= control target key start
LH: loop header
LB: loop body
LE: loop exit
PB: predicated region body
PF: predicated region fallthrough
CT: control target
= control target key end

     0   :  { %s240_s0 = inlined_call_operand.vmem [shape: bf16[32,128], index: 0, kind: input, shape index: {}]   ;;  %s241_s1 = inlined_call_operand.vmem [shape: f32[1,128], index: 1, kind: input, shape index: {}]   ;;  %s242_s2 = inlined_call_operand.vmem [shape: f32[1,128], index: 2, kind: input, shape index: {}]   ;;  %s243_s3 = inlined_call_operand.vmem [shape: bf16[32,128], index: 3, kind: output, shape index: {}]  }
   0x1   :  { %v156_v0 = vld [vmem:[%s240_s0 + $0x8] sm:$0xff]   ;;  %v139_v1 = vld [vmem:[%s240_s0] sm:$0xff]  }
   0x2   :  { %v194_v2 = vunpack.c.l.bf16 %v156_v0  ;;  %v196_v3 = vunpack.c.l.bf16 %v139_v1  ;;  %v202_v5 = vunpack.c.h.bf16 %v139_v1  ;;  %v204_v6 = vunpack.c.h.bf16 %v156_v0  ;;  %v158_v55 = vld [vmem:[%s241_s1] ss:$0 sm:$0xff] }
   0x3   :  { %v159_v0 = vld [vmem:[%s242_s2] ss:$0 sm:$0xff] }
   0x4   :  { %26 = vadd.xlane.f32.xlu1 %v194_v2  ;;  %22 = vadd.xlane.f32.xlu0 %v196_v3  ;;  %v34_v4 = vmul.f32 %v196_v3, %v196_v3  ;;  %v35_v7 = vmul.f32 %v202_v5, %v202_v5  ;;  %v37_v8 = vmul.f32 %v204_v6, %v204_v6 }
   0x5   :  { %v36_v9 = vmul.f32 %v194_v2, %v194_v2 }
   0x6   :  { %38 = vadd.xlane.f32.xlu2 %v34_v4 }
   0xc   :  { %28 = vadd.xlane.f32.xlu1 %v204_v6  ;;  %24 = vadd.xlane.f32.xlu0 %v202_v5 }
   0xe   :  { %40 = vadd.xlane.f32.xlu2 %v35_v7 }
  0x14   :  { %44 = vadd.xlane.f32.xlu1 %v37_v8  ;;  %42 = vadd.xlane.f32.xlu0 %v36_v9 }
  0x77   :  { %v27_v10 = vpop.xlane.xlu1 %26  ;;  %v23_v11 = vpop.xlane.xlu0 %22 }
  0x78   :  { %v30_v12 = vmul.f32 0.015625, %v23_v11  ;;  %v214_v23 = vmul.f32 0.015625, %v27_v10 }
  0x79   :  { %v39_v13 = vpop.xlane.xlu2 %38 }
  0x7a   :  { %v50_v14 = vmul.f32 %v30_v12, %v30_v12  ;;  %v46_v15 = vmul.f32 0.015625, %v39_v13  ;;  %v52_v28 = vmul.f32 %v214_v23, %v214_v23  ;;  %v58_v51 = vsub.f32 %v196_v3, %v30_v12 }
  0x7b   :  { %v60_v11 = vsub.f32 %v194_v2, %v214_v23 }
  0x7c   :  { %v54_v16 = vsub.f32 %v46_v15, %v50_v14 }
  0x7e   :  { %v62_v17 = vadd.f32 1e-05, %v54_v16 }
  0x7f   :  { %v29_v18 = vpop.xlane.xlu1 %28  ;;  %v25_v19 = vpop.xlane.xlu0 %24 }
  0x80   :  { %v31_v20 = vmul.f32 0.015625, %v25_v19  ;;  %160 = vrsqrt.f32 %v62_v17  ;;  %v216_v25 = vmul.f32 0.015625, %v29_v18  ;;  %vm72_vm1 = vweird.f32 %v62_v17 }
  0x81   :  { %v41_v21 = vpop.xlane.xlu2 %40 }
  0x82   :  { %v51_v22 = vmul.f32 %v31_v20, %v31_v20  ;;  %v47_v24 = vmul.f32 0.015625, %v41_v21  ;;  %v53_v33 = vmul.f32 %v216_v25, %v216_v25  ;;  %v59_v60 = vsub.f32 %v202_v5, %v31_v20 }
  0x83   :  { %v61_v5 = vsub.f32 %v204_v6, %v216_v25 }
  0x84   :  { %v55_v26 = vsub.f32 %v47_v24, %v51_v22 }
  0x86   :  { %v161_v27 = vpop.eup %160  ;;  %v63_v29 = vadd.f32 1e-05, %v55_v26 }
  0x87   :  { %v45_v30 = vpop.xlane.xlu1 %44  ;;  %v43_v31 = vpop.xlane.xlu0 %42  ;;  %v67_v32 = vmul.f32 %v161_v27, %v62_v17  ;;  %vm73_vm0 = vweird.f32 %v161_v27 }
  0x88   :  { %v49_v34 = vmul.f32 0.015625, %v45_v30  ;;  %v48_v35 = vmul.f32 0.015625, %v43_v31  ;;  %162 = vrsqrt.f32 %v63_v29  ;;  %vm74_vm2 = vmor %vm72_vm1, %vm73_vm0  ;;  %vm82_vm4 = vweird.f32 %v63_v29 }
  0x89   :  { %v68_v36 = vmul.f32 %v161_v27, %v67_v32 }
  0x8a   :  { %v57_v37 = vsub.f32 %v49_v34, %v53_v33  ;;  %v56_v38 = vsub.f32 %v48_v35, %v52_v28 }
  0x8b   :  { %v69_v39 = vmul.f32 0.5, %v68_v36 }
  0x8c   :  { %v65_v40 = vadd.f32 1e-05, %v57_v37  ;;  %v64_v41 = vadd.f32 1e-05, %v56_v38 }
  0x8d   :  { %v70_v42 = vsub.f32 1.5, %v69_v39 }
  0x8e   :  { %164 = vrsqrt.f32 %v65_v40  ;;  %v163_v43 = vpop.eup %162  ;;  %vm102_vm8 = vweird.f32 %v65_v40  ;;  %vm92_vm10 = vweird.f32 %v64_v41 }
  0x8f   :  { %166 = vrsqrt.f32 %v64_v41  ;;  %v71_v44 = vmul.f32 %v161_v27, %v70_v42  ;;  %v77_v45 = vmul.f32 %v163_v43, %v63_v29  ;;  %vm83_vm3 = vweird.f32 %v163_v43 }
  0x90   :  { %vm84_vm5 = vmor %vm82_vm4, %vm83_vm3 }
  0x91   :  { %v78_v46 = vmul.f32 %v163_v43, %v77_v45  ;;  %v75_v48 = vsel %vm74_vm2, %v161_v27, %v71_v44 }
  0x92   :  { %v106_v56 = vmul.f32 %v75_v48, %v58_v51 }
  0x93   :  { %v79_v49 = vmul.f32 0.5, %v78_v46 }
  0x94   :  { %v165_v47 = vpop.eup %164  ;;  %v114_v1 = vmul.f32 %v158_v55, %v106_v56 }
  0x95   :  { %v167_v50 = vpop.eup %166  ;;  %v97_v52 = vmul.f32 %v165_v47, %v65_v40  ;;  %v80_v53 = vsub.f32 1.5, %v79_v49  ;;  %vm103_vm6 = vweird.f32 %v165_v47 }
  0x96   :  { %v87_v54 = vmul.f32 %v167_v50, %v64_v41  ;;  %vm93_vm7 = vweird.f32 %v167_v50  ;;  %vm104_vm9 = vmor %vm102_vm8, %vm103_vm6  ;;  %v122_v12 = vadd.f32 %v159_v0, %v114_v1 }
  0x97   :  { %v98_v57 = vmul.f32 %v165_v47, %v97_v52  ;;  %v81_v58 = vmul.f32 %v163_v43, %v80_v53  ;;  %vm94_vm11 = vmor %vm92_vm10, %vm93_vm7 }
  0x98   :  { %v88_v59 = vmul.f32 %v167_v50, %v87_v54 }
  0x99   :  { %v99_v61 = vmul.f32 0.5, %v98_v57  ;;  %v85_v62 = vsel %vm84_vm5, %v163_v43, %v81_v58 }
  0x9a   :  { %v89_v63 = vmul.f32 0.5, %v88_v59  ;;  %v107_v3 = vmul.f32 %v85_v62, %v59_v60 }
  0x9b   :  { %v100_v4 = vsub.f32 1.5, %v99_v61 }
  0x9c   :  { %v90_v7 = vsub.f32 1.5, %v89_v63  ;;  %v115_v8 = vmul.f32 %v158_v55, %v107_v3 }
  0x9d   :  { %v101_v9 = vmul.f32 %v165_v47, %v100_v4 }
  0x9e   :  { %v91_v10 = vmul.f32 %v167_v50, %v90_v7  ;;  %v123_v13 = vadd.f32 %v159_v0, %v115_v8 }
  0x9f   :  { %v105_v14 = vsel %vm104_vm9, %v165_v47, %v101_v9 }
  0xa0   :  { %v109_v15 = vmul.f32 %v105_v14, %v61_v5  ;;  %v95_v16 = vsel %vm94_vm11, %v167_v50, %v91_v10  ;;  %v149_v17 = vpack.c.bf16 %v123_v13, %v122_v12 }
  0xa1   :  { %v108_v18 = vmul.f32 %v95_v16, %v60_v11 }
  0xa2   :  { %v117_v19 = vmul.f32 %v158_v55, %v109_v15  ;;  %150 = vst [vmem:[%s243_s3] sm:$0xff] %v149_v17  }
  0xa3   :  { %v116_v6 = vmul.f32 %v158_v55, %v108_v18 }
  0xa4   :  { %v125_v20 = vadd.f32 %v159_v0, %v117_v19 }
  0xa5   :  { %v124_v21 = vadd.f32 %v159_v0, %v116_v6 }
  0xa7   :  { %v154_v22 = vpack.c.bf16 %v125_v20, %v124_v21 }
  0xa9   :  { %157 = vst [vmem:[%s243_s3 + $0x8] sm:$0xff] %v154_v22  }

// kernel: swin_forward.42
= control target key start
LH: loop header
LB: loop body
LE: loop exit
PB: predicated region body
PF: predicated region fallthrough
CT: control target
= control target key end

     0   :  { %s515_s1 = inlined_call_operand.vmem [shape: bf16[256,128], index: 1, kind: input, shape index: {}]   ;;  %s516_s0 = inlined_call_operand.vmem [shape: bf16[32,256], index: 0, kind: input, shape index: {}]   ;;  %s517_s2 = inlined_call_operand.vmem [shape: f32[1,128], index: 2, kind: input, shape index: {}]   ;;  %s518_s3 = inlined_call_operand.vmem [shape: bf16[32,128], index: 3, kind: input, shape index: {}]   ;;  %s519_s4 = inlined_call_operand.vmem [shape: bf16[32,128], index: 4, kind: output, shape index: {}]  }
   0x1   :  { %v357_v0 = vld [vmem:[%s515_s1 + $0x38] sm:$0xff]  ;;  %v356_v2 = vld [vmem:[%s515_s1 + $0x30] sm:$0xff]  ;;  %v355_v4 = vld [vmem:[%s515_s1 + $0x28] sm:$0xff] }
   0x2   :  { %v365_v1 = vld [vmem:[%s515_s1 + $0x78] sm:$0xff]  ;;  %181 = vmatpush.bf16.msra.mxu0 %v357_v0  ;;  %386 = vmatpush.bf16.msra.mxu2 %v357_v0  ;;  %v364_v3 = vld [vmem:[%s515_s1 + $0x70] sm:$0xff]  ;;  %v363_v5 = vld [vmem:[%s515_s1 + $0x68] sm:$0xff] }
   0x3   :  { %200 = vmatpush.bf16.msra.mxu1 %v365_v1  ;;  %394 = vmatpush.bf16.msra.mxu3 %v365_v1  ;;  %v354_v6 = vld [vmem:[%s515_s1 + $0x20] sm:$0xff]  ;;  %v353_v8 = vld [vmem:[%s515_s1 + $0x18] sm:$0xff]  ;;  %v352_v10 = vld [vmem:[%s515_s1 + $0x10] sm:$0xff] }
   0x4   :  { %v362_v7 = vld [vmem:[%s515_s1 + $0x60] sm:$0xff]  ;;  %v361_v9 = vld [vmem:[%s515_s1 + $0x58] sm:$0xff]  ;;  %v360_v11 = vld [vmem:[%s515_s1 + $0x50] sm:$0xff] }
   0x5   :  { %v351_v12 = vld [vmem:[%s515_s1 + $0x8] sm:$0xff]  ;;  %v350_v14 = vld [vmem:[%s515_s1] sm:$0xff]  ;;  %v276_v18 = vld [vmem:[%s516_s0 + $0x10] sm:$0xf] }
   0x6   :  { %182 = vmatpush.bf16.msra.mxu0 %v356_v2  ;;  %387 = vmatpush.bf16.msra.mxu2 %v356_v2  ;;  %v359_v13 = vld [vmem:[%s515_s1 + $0x48] sm:$0xff]  ;;  %v358_v15 = vld [vmem:[%s515_s1 + $0x40] sm:$0xff]  ;;  %v349_v19 = vld [vmem:[%s516_s0 + $0x14] sm:$0xf0] }
   0x7   :  { %201 = vmatpush.bf16.msra.mxu1 %v364_v3  ;;  %395 = vmatpush.bf16.msra.mxu3 %v364_v3  ;;  %v268_v16 = vld [vmem:[%s516_s0] sm:$0xf]  ;;  %v347_v17 = vld [vmem:[%s516_s0 + $0x4] sm:$0xf0]  ;;  %v346_v20 = vld [vmem:[%s516_s0 + $0x4] sm:$0xf]  ;;  %v277_v25 = vor.u32 %v349_v19, %v276_v18 }
   0x8   :  { %v270_v21 = vld [vmem:[%s516_s0 + $0x8] sm:$0xf0]  ;;  %v348_v22 = vld [vmem:[%s516_s0 + $0x14] sm:$0xf]  ;;  %v278_v23 = vld [vmem:[%s516_s0 + $0x18] sm:$0xf0]  ;;  %v269_v24 = vor.u32 %v347_v17, %v268_v16 }
   0x9   :  { %v273_v26 = vor.u32 %v346_v20, %v270_v21  ;;  %v281_v27 = vor.u32 %v348_v22, %v278_v23  ;;  %v402_v31 = vld [vmem:[%s517_s2] ss:$0 sm:$0xff]  ;;  %v384_v42 = vld [vmem:[%s518_s3 + $0x8] sm:$0xff]  }
   0xa   :  { %183 = vmatpush.bf16.msra.mxu0 %v355_v4  ;;  %388 = vmatpush.bf16.msra.mxu2 %v355_v4  ;;  %v367_v33 = vld [vmem:[%s518_s3] sm:$0xff]   ;;  %v372_v47 = vunpack.c.l.bf16 %v384_v42  ;;  %v373_v52 = vunpack.c.h.bf16 %v384_v42 }
   0xb   :  { %202 = vmatpush.bf16.msra.mxu1 %v363_v5  ;;  %396 = vmatpush.bf16.msra.mxu3 %v363_v5  ;;  %v368_v38 = vunpack.c.l.bf16 %v367_v33  ;;  %v369_v40 = vunpack.c.h.bf16 %v367_v33 }
   0xe   :  { %184 = vmatpush.bf16.msra.mxu0 %v354_v6  ;;  %389 = vmatpush.bf16.msra.mxu2 %v354_v6 }
   0xf   :  { %203 = vmatpush.bf16.msra.mxu1 %v362_v7  ;;  %397 = vmatpush.bf16.msra.mxu3 %v362_v7 }
  0x12   :  { %185 = vmatpush.bf16.msra.mxu0 %v353_v8  ;;  %390 = vmatpush.bf16.msra.mxu2 %v353_v8 }
  0x13   :  { %204 = vmatpush.bf16.msra.mxu1 %v361_v9  ;;  %398 = vmatpush.bf16.msra.mxu3 %v361_v9 }
  0x16   :  { %186 = vmatpush.bf16.msra.mxu0 %v352_v10  ;;  %391 = vmatpush.bf16.msra.mxu2 %v352_v10 }
  0x17   :  { %205 = vmatpush.bf16.msra.mxu1 %v360_v11  ;;  %399 = vmatpush.bf16.msra.mxu3 %v360_v11 }
  0x1a   :  { %187 = vmatpush.bf16.msra.mxu0 %v351_v12  ;;  %392 = vmatpush.bf16.msra.mxu2 %v351_v12 }
  0x1b   :  { %206 = vmatpush.bf16.msra.mxu1 %v359_v13  ;;  %400 = vmatpush.bf16.msra.mxu3 %v359_v13 }
  0x1e   :  { %188 = vmatpush.bf16.msra.mxu0 %v350_v14  ;;  %393 = vmatpush.bf16.msra.mxu2 %v350_v14 }
  0x1f   :  { %207 = vmatpush.bf16.msra.mxu1 %v358_v15  ;;  %401 = vmatpush.bf16.msra.mxu3 %v358_v15 }
  0x21   :  { %189 = vmatmul.bf16.vlgmr.msra.gmra.mxu0 %v269_v24  ;;  %194 = vmatmul.bf16.vlgmr.msra.gmra.mxu2 %v277_v25 }
  0x22   :  { %208 = vmatmul.bf16.vlgmr.msra.gmra.mxu1 %v273_v26  ;;  %213 = vmatmul.bf16.vlgmr.msra.gmra.mxu3 %v281_v27 }
  0x9e   :  { %v190_v28 = vpop.f32.mrf.mxu0 }
  0x9f   :  { %v209_v29 = vpop.f32.mrf.mxu1 }
  0xa0   :  { %v210_v30 = vadd.f32 %v209_v29, %v190_v28 }
  0xa2   :  { %v238_v37 = vadd.f32 %v402_v31, %v210_v30 }
  0xa4   :  { %v195_v32 = vpop.f32.mrf.mxu2  ;;  %v250_v44 = vadd.f32 %v368_v38, %v238_v37 }
  0xa5   :  { %v214_v34 = vpop.f32.mrf.mxu3 }
  0xa6   :  { %v192_v35 = vpop.f32.mrf.mxu0  ;;  %v215_v41 = vadd.f32 %v214_v34, %v195_v32 }
  0xa7   :  { %v211_v36 = vpop.f32.mrf.mxu1 }
  0xa8   :  { %v212_v39 = vadd.f32 %v211_v36, %v192_v35  ;;  %v240_v49 = vadd.f32 %v402_v31, %v215_v41 }
  0xaa   :  { %v239_v43 = vadd.f32 %v402_v31, %v212_v39  ;;  %v252_v54 = vadd.f32 %v372_v47, %v240_v49 }
  0xac   :  { %v251_v45 = vadd.f32 %v369_v40, %v239_v43  ;;  %v197_v46 = vpop.f32.mrf.mxu2 }
  0xad   :  { %v216_v48 = vpop.f32.mrf.mxu3 }
  0xae   :  { %v377_v50 = vpack.c.bf16 %v251_v45, %v250_v44  ;;  %v217_v51 = vadd.f32 %v216_v48, %v197_v46 }
  0xb0   :  { %378 = vst [vmem:[%s519_s4] sm:$0xff] %v377_v50   ;;  %v241_v53 = vadd.f32 %v402_v31, %v217_v51 }
  0xb2   :  { %v253_v55 = vadd.f32 %v373_v52, %v241_v53 }
  0xb4   :  { %v382_v56 = vpack.c.bf16 %v253_v55, %v252_v54 }
  0xb6   :  { %385 = vst [vmem:[%s519_s4 + $0x8] sm:$0xff] %v382_v56  }

// kernel: swin_forward.49
= control target key start
LH: loop header
LB: loop body
LE: loop exit
PB: predicated region body
PF: predicated region fallthrough
CT: control target
= control target key end

     0   :  { %s208_s1 = inlined_call_operand.vmem [shape: bf16[128,128], index: 1, kind: input, shape index: {}]   ;;  %s209_s2 = inlined_call_operand.vmem [shape: f32[1,128], index: 2, kind: input, shape index: {}]   ;;  %s210_s0 = inlined_call_operand.vmem [shape: bf16[8,128], index: 0, kind: input, shape index: {}]   ;;  %s211_s3 = inlined_call_operand.vmem [shape: f32[8,128], index: 3, kind: output, shape index: {}]  }
   0x1   :  { %v153_v0 = vld [vmem:[%s208_s1 + $0x38] sm:$0xff]  ;;  %v152_v1 = vld [vmem:[%s208_s1 + $0x30] sm:$0xff]  ;;  %v151_v2 = vld [vmem:[%s208_s1 + $0x28] sm:$0xff] }
   0x2   :  { %85 = vmatpush.bf16.msra.mxu0 %v153_v0  ;;  %v150_v3 = vld [vmem:[%s208_s1 + $0x20] sm:$0xff]  ;;  %v149_v4 = vld [vmem:[%s208_s1 + $0x18] sm:$0xff]  ;;  %v148_v5 = vld [vmem:[%s208_s1 + $0x10] sm:$0xff] }
   0x3   :  { %v147_v6 = vld [vmem:[%s208_s1 + $0x8] sm:$0xff]  ;;  %v146_v7 = vld [vmem:[%s208_s1] sm:$0xff] }
   0x4   :  { %v19_v8 = vld [vmem:[%s210_s0] sm:$0xf] }
   0x5   :  { %v154_v9 = vld [vmem:[%s209_s2] ss:$0 sm:$0xff] }
   0x6   :  { %86 = vmatpush.bf16.msra.mxu0 %v152_v1 }
   0xa   :  { %87 = vmatpush.bf16.msra.mxu0 %v151_v2 }
   0xe   :  { %88 = vmatpush.bf16.msra.mxu0 %v150_v3 }
  0x12   :  { %89 = vmatpush.bf16.msra.mxu0 %v149_v4 }
  0x16   :  { %90 = vmatpush.bf16.msra.mxu0 %v148_v5 }
  0x1a   :  { %91 = vmatpush.bf16.msra.mxu0 %v147_v6 }
  0x1e   :  { %92 = vmatpush.bf16.msra.mxu0 %v146_v7 }
  0x21   :  { %93 = vmatmul.bf16.vlgmr.msra.gmra.mxu0 %v19_v8 }
  0x9e   :  { %v94_v10 = vpop.f32.mrf.mxu0 }
  0x9f   :  { %v108_v11 = vadd.f32 %v154_v9, %v94_v10 }
  0xa1   :  { %109 = vst [vmem:[%s211_s3] sm:$0xff] %v108_v11 }
  0xa6   :  { %v96_v12 = vpop.f32.mrf.mxu0 }

</bundles_post_ra>
